<compile_context>
chip_gen: v7x
topology: tpu7x:2x2x1
jax: 0.10.0
libtpu: 0.0.40
codegen_flags: <defaults>
</compile_context>

<pallas_src>
import math

import jax
import jax.numpy as jnp
from jax import lax
from jax.experimental import pallas as pl
from jax.experimental.pallas import tpu as pltpu

# ---------------------------------------------------------------------------
# Reduced (but structurally faithful) config.  Layer counts match the PyTorch
# config; hidden sizes are shrunk so the example runs at small shapes.
# ---------------------------------------------------------------------------
HIDDEN_SIZE = 128          # C.HIDDEN_SIZE
FF_SIZE = 256              # C.FF_SIZE
MULTI_HEAD = 2             # C.MULTI_HEAD
HIDDEN_SIZE_HEAD = 64      # C.HIDDEN_SIZE_HEAD
X_LAYER = 4                # C.X_LAYER
V_LAYER = 3                # C.V_LAYER
L_LAYER = 1                # C.L_LAYER
LN_EPS = 1e-6
NEG_INF = -1e9
# TODO(synk): dropout (C.DROPOUT_R) is a no-op at inference; not implemented.


# ---------------------------------------------------------------------------
# In-kernel helpers (operate on 2-D float32 tiles for one batch element)
# ---------------------------------------------------------------------------
def _layernorm(x, gamma, beta):
    """Matches the PyTorch LayerNorm in VLT.py: unbiased std, (std + eps)."""
    n = x.shape[-1]
    mean = jnp.mean(x, axis=-1, keepdims=True)
    d = x - mean
    var_unbiased = jnp.sum(d * d, axis=-1, keepdims=True) * (1.0 / (n - 1.0))
    std = jnp.sqrt(var_unbiased)
    return gamma * d * pl.reciprocal(std + LN_EPS, approx=True) + beta


def _softmax(s):
    m = jnp.max(s, axis=-1, keepdims=True)
    e = jnp.exp(s - m)
    denom = jnp.sum(e, axis=-1, keepdims=True)
    return e * pl.reciprocal(denom, approx=True)


def _mhatt(q_in, kv_in, mask_bias,
           wq_ref, bq_ref, wk_ref, bk_ref, wv_ref, bv_ref, wo_ref, bo_ref):
    """Multi-head attention for one batch element.

    q_in: (Sq, H) f32; kv_in: (Skv, H) f32; mask_bias: (1, Skv) f32 additive.
    wq/wk/wv refs: (nh, H, dh) bf16; bq/bk/bv: (nh, 1, dh) f32;
    wo: (nh, dh, H) bf16; bo: (1, H) f32.
    """
    inv_sqrt_dk = 1.0 / math.sqrt(HIDDEN_SIZE_HEAD)
    q_bf = q_in.astype(jnp.bfloat16)
    kv_bf = kv_in.astype(jnp.bfloat16)

    merged = None
    for h in range(MULTI_HEAD):                      # static unrolled head loop
        qh = jnp.dot(q_bf, wq_ref[h], preferred_element_type=jnp.float32) + bq_ref[h]
        kh = jnp.dot(kv_bf, wk_ref[h], preferred_element_type=jnp.float32) + bk_ref[h]
        vh = jnp.dot(kv_bf, wv_ref[h], preferred_element_type=jnp.float32) + bv_ref[h]
        # scores: contract dh of q and k directly (no explicit transpose).
        s = lax.dot_general(qh.astype(jnp.bfloat16), kh.astype(jnp.bfloat16),
                            (((1,), (1,)), ((), ())),
                            preferred_element_type=jnp.float32)
        s = s * inv_sqrt_dk + mask_bias              # additive masked_fill
        p = _softmax(s)                              # f32 softmax
        oh = jnp.dot(p.astype(jnp.bfloat16), vh.astype(jnp.bfloat16),
                     preferred_element_type=jnp.float32)
        contrib = jnp.dot(oh.astype(jnp.bfloat16), wo_ref[h],
                          preferred_element_type=jnp.float32)
        merged = contrib if merged is None else merged + contrib
    return merged + bo_ref[...]


def _ffn(x, w1_ref, b1_ref, w2_ref, b2_ref):
    h = jnp.dot(x.astype(jnp.bfloat16), w1_ref[...],
                preferred_element_type=jnp.float32) + b1_ref[...]
    h = jnp.maximum(h, 0.0)                          # ReLU
    y = jnp.dot(h.astype(jnp.bfloat16), w2_ref[...],
                preferred_element_type=jnp.float32) + b2_ref[...]
    return y


# ---------------------------------------------------------------------------
# Fused per-layer kernels
# ---------------------------------------------------------------------------
def sa_kernel(x_ref, bias_ref, *refs):
    """LayerNorm(x + MHAtt(x,x,x)) then LayerNorm(x + FFN(x)) — one batch elem."""
    (wq, bq, wk, bk, wv, bv, wo, bo, g1, be1,
     w1, fb1, w2, fb2, g2, be2, o_ref) = refs

    x = x_ref[0].astype(jnp.float32)                 # (S, H)
    bias = bias_ref[0]                               # (1, S)

    att = _mhatt(x, x, bias, wq, bq, wk, bk, wv, bv, wo, bo)
    x = _layernorm(x + att, g1[...], be1[...])
    y = _ffn(x, w1, fb1, w2, fb2)
    x = _layernorm(x + y, g2[...], be2[...])
    o_ref[0] = x.astype(o_ref.dtype)


def ca_kernel(x_ref, y_ref, xbias_ref, ybias_ref, *refs):
    """Full CA block (self-attn, cross-attn, FFN, each with residual+LN)."""
    a1 = refs[0:10]
    a2 = refs[10:20]
    w1, fb1, w2, fb2, g3, b3 = refs[20:26]
    o_ref = refs[26]

    x = x_ref[0].astype(jnp.float32)                 # (Sx, H)
    y = y_ref[0].astype(jnp.float32)                 # (Sy, H)
    xbias = xbias_ref[0]                             # (1, Sx)
    ybias = ybias_ref[0]                             # (1, Sy)

    att1 = _mhatt(x, x, xbias, *a1[:8])
    x = _layernorm(x + att1, a1[8][...], a1[9][...])
    att2 = _mhatt(x, y, ybias, *a2[:8])
    x = _layernorm(x + att2, a2[8][...], a2[9][...])
    f = _ffn(x, w1, fb1, w2, fb2)
    x = _layernorm(x + f, g3[...], b3[...])
    o_ref[0] = x.astype(o_ref.dtype)


# ---------------------------------------------------------------------------
# Wrappers (pallas_call plumbing)
# ---------------------------------------------------------------------------
def _attn_flat(p):
    return [p["wq"], p["bq"], p["wk"], p["bk"], p["wv"], p["bv"],
            p["wo"], p["bo"], p["g"], p["b"]]


def _ffn_flat(p):
    return [p["w1"], p["b1"], p["w2"], p["b2"], p["g"], p["b"]]


def _param_spec(a):
    return pl.BlockSpec(a.shape, lambda b, _n=a.ndim: (0,) * _n)


def sa_layer(x, mask_bias, p):
    B, S, H = x.shape
    flat = _attn_flat(p["att"]) + _ffn_flat(p["ffn"])
    return pl.pallas_call(
        sa_kernel,
        out_shape=jax.ShapeDtypeStruct((B, S, H), x.dtype),
        grid=(B,),
        in_specs=[pl.BlockSpec((1, S, H), lambda b: (b, 0, 0)),
                  pl.BlockSpec((1, 1, S), lambda b: (b, 0, 0))]
                 + [_param_spec(a) for a in flat],
        out_specs=pl.BlockSpec((1, S, H), lambda b: (b, 0, 0)),
        compiler_params=pltpu.CompilerParams(dimension_semantics=("parallel",)),
    )(x, mask_bias, *flat)


def ca_layer(x, y, x_bias, y_bias, p):
    B, Sx, H = x.shape
    Sy = y.shape[1]
    flat = _attn_flat(p["att1"]) + _attn_flat(p["att2"]) + _ffn_flat(p["ffn"])
    return pl.pallas_call(
        ca_kernel,
        out_shape=jax.ShapeDtypeStruct((B, Sx, H), x.dtype),
        grid=(B,),
        in_specs=[pl.BlockSpec((1, Sx, H), lambda b: (b, 0, 0)),
                  pl.BlockSpec((1, Sy, H), lambda b: (b, 0, 0)),
                  pl.BlockSpec((1, 1, Sx), lambda b: (b, 0, 0)),
                  pl.BlockSpec((1, 1, Sy), lambda b: (b, 0, 0))]
                 + [_param_spec(a) for a in flat],
        out_specs=pl.BlockSpec((1, Sx, H), lambda b: (b, 0, 0)),
        compiler_params=pltpu.CompilerParams(dimension_semantics=("parallel",)),
    )(x, y, x_bias, y_bias, *flat)


# ---------------------------------------------------------------------------
# Module composition (mirrors SA / CA / CMEmodule / CME)
# ---------------------------------------------------------------------------
def apply_cme(x, y, x_mask, y_mask, params):
    B, Sx, _ = x.shape
    Sy = y.shape[1]
    # Additive mask bias (True == masked), computed once outside the kernels.
    x_bias = (x_mask.astype(jnp.float32) * NEG_INF).reshape(B, 1, Sx)
    y_bias = (y_mask.astype(jnp.float32) * NEG_INF).reshape(B, 1, Sy)

    for p in params["SA1"]:
        x = sa_layer(x, x_bias, p)
    for p in params["SA2"]:
        y = sa_layer(y, y_bias, p)
    for p in params["enc_list"]:
        x_sa = sa_layer(x, x_bias, p["sa1"])
        y_sa = sa_layer(y, y_bias, p["sa2"])
        x = ca_layer(x_sa, y_sa, x_bias, y_bias, p["ca1"])
        y = ca_layer(y_sa, x_sa, y_bias, x_bias, p["ca2"])

    x = jnp.mean(x, axis=1)          # tiny reduction; XLA fuses it for free
    return x, y


# ---------------------------------------------------------------------------
# Deterministic parameter init (weights stored bf16, biases / LN params f32)
# ---------------------------------------------------------------------------
def init_linear(key, fan_in, fan_out):
    kw, kb = jax.random.split(key)
    w = jax.random.normal(kw, (fan_in, fan_out), jnp.float32) / math.sqrt(fan_in)
    b = 0.01 * jax.random.normal(kb, (1, fan_out), jnp.float32)
    return w, b


def _split_proj(w, b):
    """(H, H) weight -> (nh, H, dh); (1, H) bias -> (nh, 1, dh)."""
    wh = w.reshape(HIDDEN_SIZE, MULTI_HEAD, HIDDEN_SIZE_HEAD).transpose(1, 0, 2)
    bh = b.reshape(1, MULTI_HEAD, HIDDEN_SIZE_HEAD).transpose(1, 0, 2)
    return wh.astype(jnp.bfloat16), bh


def init_attn_params(key):
    ks = jax.random.split(key, 4)
    wq, bq = init_linear(ks[0], HIDDEN_SIZE, HIDDEN_SIZE)
    wk, bk = init_linear(ks[1], HIDDEN_SIZE, HIDDEN_SIZE)
    wv, bv = init_linear(ks[2], HIDDEN_SIZE, HIDDEN_SIZE)
    wo, bo = init_linear(ks[3], HIDDEN_SIZE, HIDDEN_SIZE)
    wqh, bqh = _split_proj(wq, bq)
    wkh, bkh = _split_proj(wk, bk)
    wvh, bvh = _split_proj(wv, bv)
    woh = wo.reshape(MULTI_HEAD, HIDDEN_SIZE_HEAD, HIDDEN_SIZE).astype(jnp.bfloat16)
    return dict(wq=wqh, bq=bqh, wk=wkh, bk=bkh, wv=wvh, bv=bvh,
                wo=woh, bo=bo,
                g=jnp.ones((1, HIDDEN_SIZE), jnp.float32),
                b=jnp.zeros((1, HIDDEN_SIZE), jnp.float32))


def init_ffn_params(key):
    k1, k2 = jax.random.split(key)
    w1, b1 = init_linear(k1, HIDDEN_SIZE, FF_SIZE)
    w2, b2 = init_linear(k2, FF_SIZE, HIDDEN_SIZE)
    return dict(w1=w1.astype(jnp.bfloat16), b1=b1,
                w2=w2.astype(jnp.bfloat16), b2=b2,
                g=jnp.ones((1, HIDDEN_SIZE), jnp.float32),
                b=jnp.zeros((1, HIDDEN_SIZE), jnp.float32))


def init_sa_params(key):
    k1, k2 = jax.random.split(key)
    return dict(att=init_attn_params(k1), ffn=init_ffn_params(k2))


def init_ca_params(key):
    k1, k2, k3 = jax.random.split(key, 3)
    return dict(att1=init_attn_params(k1), att2=init_attn_params(k2),
                ffn=init_ffn_params(k3))


def init_cme_module_params(key):
    k1, k2, k3, k4 = jax.random.split(key, 4)
    return dict(sa1=init_sa_params(k1), sa2=init_sa_params(k2),
                ca1=init_ca_params(k3), ca2=init_ca_params(k4))


def init_cme_params(key):
    k_sa1, k_sa2, k_enc = jax.random.split(key, 3)
    sa1_keys = jax.random.split(k_sa1, V_LAYER)
    sa2_keys = jax.random.split(k_sa2, L_LAYER)
    enc_keys = jax.random.split(k_enc, X_LAYER)
    return dict(
        SA1=[init_sa_params(k) for k in sa1_keys],
        SA2=[init_sa_params(k) for k in sa2_keys],
        enc_list=[init_cme_module_params(k) for k in enc_keys],
    )


# ---------------------------------------------------------------------------
if __name__ == "__main__":
    B = 2
    SEQ_X = 16   # visual tokens
    SEQ_Y = 8    # language tokens

    key = jax.random.PRNGKey(0)
    k_params, k_x, k_y = jax.random.split(key, 3)

    params = init_cme_params(k_params)

    x = jax.random.normal(k_x, (B, SEQ_X, HIDDEN_SIZE), jnp.float32)
    y = jax.random.normal(k_y, (B, SEQ_Y, HIDDEN_SIZE), jnp.float32)

    # True = masked (padded) position; pad the tail of each sequence.
    x_valid = jnp.array([SEQ_X, SEQ_X - 3])
    y_valid = jnp.array([SEQ_Y, SEQ_Y - 2])
    x_mask = jnp.arange(SEQ_X)[None, :] >= x_valid[:, None]   # (B, SEQ_X) bool
    y_mask = jnp.arange(SEQ_Y)[None, :] >= y_valid[:, None]   # (B, SEQ_Y) bool

    fwd = jax.jit(apply_cme)
    x_out, y_out = fwd(x, y, x_mask, y_mask, params)
    jax.block_until_ready((x_out, y_out))

    assert x_out.shape == (B, HIDDEN_SIZE)
    assert y_out.shape == (B, SEQ_Y, HIDDEN_SIZE)
    assert bool(jnp.all(jnp.isfinite(x_out))) and bool(jnp.all(jnp.isfinite(y_out)))
    print("KERNEL_OK")
</pallas_src>

<mosaic_0001>
module attributes {stable_mosaic.version = 11 : i64} {
  func.func @sa_kernel(%arg0: i32, %arg1: memref<1x16x128xf32, #tpu.memory_space<vmem>>, %arg2: memref<1x1x16xf32, #tpu.memory_space<vmem>>, %arg3: memref<2x128x64xbf16, #tpu.memory_space<vmem>>, %arg4: memref<2x1x64xf32, #tpu.memory_space<vmem>>, %arg5: memref<2x128x64xbf16, #tpu.memory_space<vmem>>, %arg6: memref<2x1x64xf32, #tpu.memory_space<vmem>>, %arg7: memref<2x128x64xbf16, #tpu.memory_space<vmem>>, %arg8: memref<2x1x64xf32, #tpu.memory_space<vmem>>, %arg9: memref<2x64x128xbf16, #tpu.memory_space<vmem>>, %arg10: memref<1x128xf32, #tpu.memory_space<vmem>>, %arg11: memref<1x128xf32, #tpu.memory_space<vmem>>, %arg12: memref<1x128xf32, #tpu.memory_space<vmem>>, %arg13: memref<128x256xbf16, #tpu.memory_space<vmem>>, %arg14: memref<1x256xf32, #tpu.memory_space<vmem>>, %arg15: memref<256x128xbf16, #tpu.memory_space<vmem>>, %arg16: memref<1x128xf32, #tpu.memory_space<vmem>>, %arg17: memref<1x128xf32, #tpu.memory_space<vmem>>, %arg18: memref<1x128xf32, #tpu.memory_space<vmem>>, %arg19: memref<1x16x128xf32, #tpu.memory_space<vmem>>) attributes {dimension_semantics = [#tpu.dimension_semantics<parallel>], iteration_bounds = array<i64: 2>, scalar_prefetch = 0 : i64, scratch_operands = 0 : i64, tpu.core_type = #tpu.core_type<tc>, window_params = [{transform_indices = @transform_0, window_bounds = array<i64: 1, 16, 128>}, {transform_indices = @transform_1, window_bounds = array<i64: 1, 1, 16>}, {pipeline_mode = #tpu.pipeline_mode<synchronous>, transform_indices = @transform_2, window_bounds = array<i64: 2, 128, 64>}, {pipeline_mode = #tpu.pipeline_mode<synchronous>, transform_indices = @transform_3, window_bounds = array<i64: 2, 1, 64>}, {pipeline_mode = #tpu.pipeline_mode<synchronous>, transform_indices = @transform_4, window_bounds = array<i64: 2, 128, 64>}, {pipeline_mode = #tpu.pipeline_mode<synchronous>, transform_indices = @transform_5, window_bounds = array<i64: 2, 1, 64>}, {pipeline_mode = #tpu.pipeline_mode<synchronous>, transform_indices = @transform_6, window_bounds = array<i64: 2, 128, 64>}, {pipeline_mode = #tpu.pipeline_mode<synchronous>, transform_indices = @transform_7, window_bounds = array<i64: 2, 1, 64>}, {pipeline_mode = #tpu.pipeline_mode<synchronous>, transform_indices = @transform_8, window_bounds = array<i64: 2, 64, 128>}, {pipeline_mode = #tpu.pipeline_mode<synchronous>, transform_indices = @transform_9, window_bounds = array<i64: 1, 128>}, {pipeline_mode = #tpu.pipeline_mode<synchronous>, transform_indices = @transform_10, window_bounds = array<i64: 1, 128>}, {pipeline_mode = #tpu.pipeline_mode<synchronous>, transform_indices = @transform_11, window_bounds = array<i64: 1, 128>}, {pipeline_mode = #tpu.pipeline_mode<synchronous>, transform_indices = @transform_12, window_bounds = array<i64: 128, 256>}, {pipeline_mode = #tpu.pipeline_mode<synchronous>, transform_indices = @transform_13, window_bounds = array<i64: 1, 256>}, {pipeline_mode = #tpu.pipeline_mode<synchronous>, transform_indices = @transform_14, window_bounds = array<i64: 256, 128>}, {pipeline_mode = #tpu.pipeline_mode<synchronous>, transform_indices = @transform_15, window_bounds = array<i64: 1, 128>}, {pipeline_mode = #tpu.pipeline_mode<synchronous>, transform_indices = @transform_16, window_bounds = array<i64: 1, 128>}, {pipeline_mode = #tpu.pipeline_mode<synchronous>, transform_indices = @transform_17, window_bounds = array<i64: 1, 128>}, {transform_indices = @transform_18, window_bounds = array<i64: 1, 16, 128>}]} {
    %c0 = arith.constant 0 : index
    %c0_0 = arith.constant 0 : index
    %c0_1 = arith.constant 0 : index
    %0 = vector.load %arg1[%c0, %c0_0, %c0_1] : memref<1x16x128xf32, #tpu.memory_space<vmem>>, vector<1x16x128xf32>
    %1 = vector.shape_cast %0 : vector<1x16x128xf32> to vector<16x128xf32>
    %c0_2 = arith.constant 0 : index
    %c0_3 = arith.constant 0 : index
    %c0_4 = arith.constant 0 : index
    %2 = vector.load %arg2[%c0_2, %c0_3, %c0_4] : memref<1x1x16xf32, #tpu.memory_space<vmem>>, vector<1x1x16xf32>
    %3 = vector.shape_cast %2 : vector<1x1x16xf32> to vector<1x16xf32>
    %4 = arith.truncf %1 : vector<16x128xf32> to vector<16x128xbf16>
    %5 = arith.truncf %1 : vector<16x128xf32> to vector<16x128xbf16>
    %c0_5 = arith.constant 0 : index
    %c0_6 = arith.constant 0 : index
    %c0_7 = arith.constant 0 : index
    %6 = vector.load %arg3[%c0_5, %c0_6, %c0_7] : memref<2x128x64xbf16, #tpu.memory_space<vmem>>, vector<1x128x64xbf16>
    %7 = vector.shape_cast %6 : vector<1x128x64xbf16> to vector<128x64xbf16>
    %cst = arith.constant dense<0.000000e+00> : vector<16x64xf32>
    %8 = tpu.matmul %4, %7, %cst {dimension_numbers = #tpu.dot_dimension_numbers<[1], [0], [0], [1], [0, 0, 1, 1], [], []>} : vector<16x128xbf16>, vector<128x64xbf16>, vector<16x64xf32> -> vector<16x64xf32>
    %c0_8 = arith.constant 0 : index
    %c0_9 = arith.constant 0 : index
    %c0_10 = arith.constant 0 : index
    %9 = vector.load %arg4[%c0_8, %c0_9, %c0_10] : memref<2x1x64xf32, #tpu.memory_space<vmem>>, vector<1x1x64xf32>
    %10 = vector.shape_cast %9 : vector<1x1x64xf32> to vector<1x64xf32>
    %11 = vector.broadcast %10 : vector<1x64xf32> to vector<16x64xf32>
    %12 = arith.addf %8, %11 : vector<16x64xf32>
    %c0_11 = arith.constant 0 : index
    %c0_12 = arith.constant 0 : index
    %c0_13 = arith.constant 0 : index
    %13 = vector.load %arg5[%c0_11, %c0_12, %c0_13] : memref<2x128x64xbf16, #tpu.memory_space<vmem>>, vector<1x128x64xbf16>
    %14 = vector.shape_cast %13 : vector<1x128x64xbf16> to vector<128x64xbf16>
    %cst_14 = arith.constant dense<0.000000e+00> : vector<16x64xf32>
    %15 = tpu.matmul %5, %14, %cst_14 {dimension_numbers = #tpu.dot_dimension_numbers<[1], [0], [0], [1], [0, 0, 1, 1], [], []>} : vector<16x128xbf16>, vector<128x64xbf16>, vector<16x64xf32> -> vector<16x64xf32>
    %c0_15 = arith.constant 0 : index
    %c0_16 = arith.constant 0 : index
    %c0_17 = arith.constant 0 : index
    %16 = vector.load %arg6[%c0_15, %c0_16, %c0_17] : memref<2x1x64xf32, #tpu.memory_space<vmem>>, vector<1x1x64xf32>
    %17 = vector.shape_cast %16 : vector<1x1x64xf32> to vector<1x64xf32>
    %18 = vector.broadcast %17 : vector<1x64xf32> to vector<16x64xf32>
    %19 = arith.addf %15, %18 : vector<16x64xf32>
    %c0_18 = arith.constant 0 : index
    %c0_19 = arith.constant 0 : index
    %c0_20 = arith.constant 0 : index
    %20 = vector.load %arg7[%c0_18, %c0_19, %c0_20] : memref<2x128x64xbf16, #tpu.memory_space<vmem>>, vector<1x128x64xbf16>
    %21 = vector.shape_cast %20 : vector<1x128x64xbf16> to vector<128x64xbf16>
    %cst_21 = arith.constant dense<0.000000e+00> : vector<16x64xf32>
    %22 = tpu.matmul %5, %21, %cst_21 {dimension_numbers = #tpu.dot_dimension_numbers<[1], [0], [0], [1], [0, 0, 1, 1], [], []>} : vector<16x128xbf16>, vector<128x64xbf16>, vector<16x64xf32> -> vector<16x64xf32>
    %c0_22 = arith.constant 0 : index
    %c0_23 = arith.constant 0 : index
    %c0_24 = arith.constant 0 : index
    %23 = vector.load %arg8[%c0_22, %c0_23, %c0_24] : memref<2x1x64xf32, #tpu.memory_space<vmem>>, vector<1x1x64xf32>
    %24 = vector.shape_cast %23 : vector<1x1x64xf32> to vector<1x64xf32>
    %25 = vector.broadcast %24 : vector<1x64xf32> to vector<16x64xf32>
    %26 = arith.addf %22, %25 : vector<16x64xf32>
    %27 = arith.truncf %12 : vector<16x64xf32> to vector<16x64xbf16>
    %28 = arith.truncf %19 : vector<16x64xf32> to vector<16x64xbf16>
    %cst_25 = arith.constant dense<0.000000e+00> : vector<16x16xf32>
    %29 = tpu.matmul %27, %28, %cst_25 {dimension_numbers = #tpu.dot_dimension_numbers<[1], [1], [0], [0], [0, 0, 1, 0], [], []>} : vector<16x64xbf16>, vector<16x64xbf16>, vector<16x16xf32> -> vector<16x16xf32>
    %cst_26 = arith.constant 1.250000e-01 : f32
    %30 = vector.broadcast %cst_26 : f32 to vector<16x16xf32>
    %31 = arith.mulf %29, %30 : vector<16x16xf32>
    %32 = vector.broadcast %3 : vector<1x16xf32> to vector<16x16xf32>
    %33 = arith.addf %31, %32 : vector<16x16xf32>
    %cst_27 = arith.constant dense<0xFF800000> : vector<16xf32>
    %34 = vector.multi_reduction <maximumf>, %33, %cst_27 [1] : vector<16x16xf32> to vector<16xf32>
    %35 = vector.shape_cast %34 : vector<16xf32> to vector<16x1xf32>
    %36 = vector.broadcast %35 : vector<16x1xf32> to vector<16x16xf32>
    %37 = arith.subf %33, %36 : vector<16x16xf32>
    %38 = math.exp %37 : vector<16x16xf32>
    %cst_28 = arith.constant dense<0.000000e+00> : vector<16xf32>
    %39 = vector.multi_reduction <add>, %38, %cst_28 [1] : vector<16x16xf32> to vector<16xf32>
    %40 = vector.shape_cast %39 : vector<16xf32> to vector<16x1xf32>
    %41 = tpu.reciprocal %40 {approx = true} : vector<16x1xf32> -> vector<16x1xf32>
    %42 = vector.broadcast %41 : vector<16x1xf32> to vector<16x16xf32>
    %43 = arith.mulf %38, %42 : vector<16x16xf32>
    %44 = arith.truncf %43 : vector<16x16xf32> to vector<16x16xbf16>
    %45 = arith.truncf %26 : vector<16x64xf32> to vector<16x64xbf16>
    %cst_29 = arith.constant dense<0.000000e+00> : vector<16x64xf32>
    %46 = tpu.matmul %44, %45, %cst_29 {dimension_numbers = #tpu.dot_dimension_numbers<[1], [0], [0], [1], [0, 0, 1, 1], [], []>} : vector<16x16xbf16>, vector<16x64xbf16>, vector<16x64xf32> -> vector<16x64xf32>
    %47 = arith.truncf %46 : vector<16x64xf32> to vector<16x64xbf16>
    %c0_30 = arith.constant 0 : index
    %c0_31 = arith.constant 0 : index
    %c0_32 = arith.constant 0 : index
    %48 = vector.load %arg9[%c0_30, %c0_31, %c0_32] : memref<2x64x128xbf16, #tpu.memory_space<vmem>>, vector<1x64x128xbf16>
    %49 = vector.shape_cast %48 : vector<1x64x128xbf16> to vector<64x128xbf16>
    %cst_33 = arith.constant dense<0.000000e+00> : vector<16x128xf32>
    %50 = tpu.matmul %47, %49, %cst_33 {dimension_numbers = #tpu.dot_dimension_numbers<[1], [0], [0], [1], [0, 0, 1, 1], [], []>} : vector<16x64xbf16>, vector<64x128xbf16>, vector<16x128xf32> -> vector<16x128xf32>
    %c1 = arith.constant 1 : index
    %c0_34 = arith.constant 0 : index
    %c0_35 = arith.constant 0 : index
    %51 = vector.load %arg3[%c1, %c0_34, %c0_35] : memref<2x128x64xbf16, #tpu.memory_space<vmem>>, vector<1x128x64xbf16>
    %52 = vector.shape_cast %51 : vector<1x128x64xbf16> to vector<128x64xbf16>
    %cst_36 = arith.constant dense<0.000000e+00> : vector<16x64xf32>
    %53 = tpu.matmul %4, %52, %cst_36 {dimension_numbers = #tpu.dot_dimension_numbers<[1], [0], [0], [1], [0, 0, 1, 1], [], []>} : vector<16x128xbf16>, vector<128x64xbf16>, vector<16x64xf32> -> vector<16x64xf32>
    %c1_37 = arith.constant 1 : index
    %c0_38 = arith.constant 0 : index
    %c0_39 = arith.constant 0 : index
    %54 = vector.load %arg4[%c1_37, %c0_38, %c0_39] : memref<2x1x64xf32, #tpu.memory_space<vmem>>, vector<1x1x64xf32>
    %55 = vector.shape_cast %54 : vector<1x1x64xf32> to vector<1x64xf32>
    %56 = vector.broadcast %55 : vector<1x64xf32> to vector<16x64xf32>
    %57 = arith.addf %53, %56 : vector<16x64xf32>
    %c1_40 = arith.constant 1 : index
    %c0_41 = arith.constant 0 : index
    %c0_42 = arith.constant 0 : index
    %58 = vector.load %arg5[%c1_40, %c0_41, %c0_42] : memref<2x128x64xbf16, #tpu.memory_space<vmem>>, vector<1x128x64xbf16>
    %59 = vector.shape_cast %58 : vector<1x128x64xbf16> to vector<128x64xbf16>
    %cst_43 = arith.constant dense<0.000000e+00> : vector<16x64xf32>
    %60 = tpu.matmul %5, %59, %cst_43 {dimension_numbers = #tpu.dot_dimension_numbers<[1], [0], [0], [1], [0, 0, 1, 1], [], []>} : vector<16x128xbf16>, vector<128x64xbf16>, vector<16x64xf32> -> vector<16x64xf32>
    %c1_44 = arith.constant 1 : index
    %c0_45 = arith.constant 0 : index
    %c0_46 = arith.constant 0 : index
    %61 = vector.load %arg6[%c1_44, %c0_45, %c0_46] : memref<2x1x64xf32, #tpu.memory_space<vmem>>, vector<1x1x64xf32>
    %62 = vector.shape_cast %61 : vector<1x1x64xf32> to vector<1x64xf32>
    %63 = vector.broadcast %62 : vector<1x64xf32> to vector<16x64xf32>
    %64 = arith.addf %60, %63 : vector<16x64xf32>
    %c1_47 = arith.constant 1 : index
    %c0_48 = arith.constant 0 : index
    %c0_49 = arith.constant 0 : index
    %65 = vector.load %arg7[%c1_47, %c0_48, %c0_49] : memref<2x128x64xbf16, #tpu.memory_space<vmem>>, vector<1x128x64xbf16>
    %66 = vector.shape_cast %65 : vector<1x128x64xbf16> to vector<128x64xbf16>
    %cst_50 = arith.constant dense<0.000000e+00> : vector<16x64xf32>
    %67 = tpu.matmul %5, %66, %cst_50 {dimension_numbers = #tpu.dot_dimension_numbers<[1], [0], [0], [1], [0, 0, 1, 1], [], []>} : vector<16x128xbf16>, vector<128x64xbf16>, vector<16x64xf32> -> vector<16x64xf32>
    %c1_51 = arith.constant 1 : index
    %c0_52 = arith.constant 0 : index
    %c0_53 = arith.constant 0 : index
    %68 = vector.load %arg8[%c1_51, %c0_52, %c0_53] : memref<2x1x64xf32, #tpu.memory_space<vmem>>, vector<1x1x64xf32>
    %69 = vector.shape_cast %68 : vector<1x1x64xf32> to vector<1x64xf32>
    %70 = vector.broadcast %69 : vector<1x64xf32> to vector<16x64xf32>
    %71 = arith.addf %67, %70 : vector<16x64xf32>
    %72 = arith.truncf %57 : vector<16x64xf32> to vector<16x64xbf16>
    %73 = arith.truncf %64 : vector<16x64xf32> to vector<16x64xbf16>
    %cst_54 = arith.constant dense<0.000000e+00> : vector<16x16xf32>
    %74 = tpu.matmul %72, %73, %cst_54 {dimension_numbers = #tpu.dot_dimension_numbers<[1], [1], [0], [0], [0, 0, 1, 0], [], []>} : vector<16x64xbf16>, vector<16x64xbf16>, vector<16x16xf32> -> vector<16x16xf32>
    %cst_55 = arith.constant 1.250000e-01 : f32
    %75 = vector.broadcast %cst_55 : f32 to vector<16x16xf32>
    %76 = arith.mulf %74, %75 : vector<16x16xf32>
    %77 = vector.broadcast %3 : vector<1x16xf32> to vector<16x16xf32>
    %78 = arith.addf %76, %77 : vector<16x16xf32>
    %cst_56 = arith.constant dense<0xFF800000> : vector<16xf32>
    %79 = vector.multi_reduction <maximumf>, %78, %cst_56 [1] : vector<16x16xf32> to vector<16xf32>
    %80 = vector.shape_cast %79 : vector<16xf32> to vector<16x1xf32>
    %81 = vector.broadcast %80 : vector<16x1xf32> to vector<16x16xf32>
    %82 = arith.subf %78, %81 : vector<16x16xf32>
    %83 = math.exp %82 : vector<16x16xf32>
    %cst_57 = arith.constant dense<0.000000e+00> : vector<16xf32>
    %84 = vector.multi_reduction <add>, %83, %cst_57 [1] : vector<16x16xf32> to vector<16xf32>
    %85 = vector.shape_cast %84 : vector<16xf32> to vector<16x1xf32>
    %86 = tpu.reciprocal %85 {approx = true} : vector<16x1xf32> -> vector<16x1xf32>
    %87 = vector.broadcast %86 : vector<16x1xf32> to vector<16x16xf32>
    %88 = arith.mulf %83, %87 : vector<16x16xf32>
    %89 = arith.truncf %88 : vector<16x16xf32> to vector<16x16xbf16>
    %90 = arith.truncf %71 : vector<16x64xf32> to vector<16x64xbf16>
    %cst_58 = arith.constant dense<0.000000e+00> : vector<16x64xf32>
    %91 = tpu.matmul %89, %90, %cst_58 {dimension_numbers = #tpu.dot_dimension_numbers<[1], [0], [0], [1], [0, 0, 1, 1], [], []>} : vector<16x16xbf16>, vector<16x64xbf16>, vector<16x64xf32> -> vector<16x64xf32>
    %92 = arith.truncf %91 : vector<16x64xf32> to vector<16x64xbf16>
    %c1_59 = arith.constant 1 : index
    %c0_60 = arith.constant 0 : index
    %c0_61 = arith.constant 0 : index
    %93 = vector.load %arg9[%c1_59, %c0_60, %c0_61] : memref<2x64x128xbf16, #tpu.memory_space<vmem>>, vector<1x64x128xbf16>
    %94 = vector.shape_cast %93 : vector<1x64x128xbf16> to vector<64x128xbf16>
    %cst_62 = arith.constant dense<0.000000e+00> : vector<16x128xf32>
    %95 = tpu.matmul %92, %94, %cst_62 {dimension_numbers = #tpu.dot_dimension_numbers<[1], [0], [0], [1], [0, 0, 1, 1], [], []>} : vector<16x64xbf16>, vector<64x128xbf16>, vector<16x128xf32> -> vector<16x128xf32>
    %96 = arith.addf %50, %95 : vector<16x128xf32>
    %c0_63 = arith.constant 0 : index
    %c0_64 = arith.constant 0 : index
    %97 = vector.load %arg10[%c0_63, %c0_64] : memref<1x128xf32, #tpu.memory_space<vmem>>, vector<1x128xf32>
    %98 = vector.broadcast %97 : vector<1x128xf32> to vector<16x128xf32>
    %99 = arith.addf %96, %98 : vector<16x128xf32>
    %100 = arith.addf %1, %99 : vector<16x128xf32>
    %c0_65 = arith.constant 0 : index
    %c0_66 = arith.constant 0 : index
    %101 = vector.load %arg11[%c0_65, %c0_66] : memref<1x128xf32, #tpu.memory_space<vmem>>, vector<1x128xf32>
    %c0_67 = arith.constant 0 : index
    %c0_68 = arith.constant 0 : index
    %102 = vector.load %arg12[%c0_67, %c0_68] : memref<1x128xf32, #tpu.memory_space<vmem>>, vector<1x128xf32>
    %cst_69 = arith.constant dense<0.000000e+00> : vector<16xf32>
    %103 = vector.multi_reduction <add>, %100, %cst_69 [1] : vector<16x128xf32> to vector<16xf32>
    %104 = vector.shape_cast %103 : vector<16xf32> to vector<16x1xf32>
    %cst_70 = arith.constant 1.280000e+02 : f32
    %105 = vector.broadcast %cst_70 : f32 to vector<16x1xf32>
    %106 = arith.divf %104, %105 : vector<16x1xf32>
    %107 = vector.broadcast %106 : vector<16x1xf32> to vector<16x128xf32>
    %108 = arith.subf %100, %107 : vector<16x128xf32>
    %109 = arith.mulf %108, %108 : vector<16x128xf32>
    %cst_71 = arith.constant dense<0.000000e+00> : vector<16xf32>
    %110 = vector.multi_reduction <add>, %109, %cst_71 [1] : vector<16x128xf32> to vector<16xf32>
    %111 = vector.shape_cast %110 : vector<16xf32> to vector<16x1xf32>
    %cst_72 = arith.constant 0.00787401571 : f32
    %112 = vector.broadcast %cst_72 : f32 to vector<16x1xf32>
    %113 = arith.mulf %111, %112 : vector<16x1xf32>
    %114 = math.sqrt %113 : vector<16x1xf32>
    %115 = vector.broadcast %101 : vector<1x128xf32> to vector<16x128xf32>
    %116 = arith.mulf %115, %108 : vector<16x128xf32>
    %cst_73 = arith.constant 9.99999997E-7 : f32
    %117 = vector.broadcast %cst_73 : f32 to vector<16x1xf32>
    %118 = arith.addf %114, %117 : vector<16x1xf32>
    %119 = tpu.reciprocal %118 {approx = true} : vector<16x1xf32> -> vector<16x1xf32>
    %120 = vector.broadcast %119 : vector<16x1xf32> to vector<16x128xf32>
    %121 = arith.mulf %116, %120 : vector<16x128xf32>
    %122 = vector.broadcast %102 : vector<1x128xf32> to vector<16x128xf32>
    %123 = arith.addf %121, %122 : vector<16x128xf32>
    %124 = arith.truncf %123 : vector<16x128xf32> to vector<16x128xbf16>
    %c0_74 = arith.constant 0 : index
    %c0_75 = arith.constant 0 : index
    %125 = vector.load %arg13[%c0_74, %c0_75] : memref<128x256xbf16, #tpu.memory_space<vmem>>, vector<128x256xbf16>
    %cst_76 = arith.constant dense<0.000000e+00> : vector<16x256xf32>
    %126 = tpu.matmul %124, %125, %cst_76 {dimension_numbers = #tpu.dot_dimension_numbers<[1], [0], [0], [1], [0, 0, 1, 1], [], []>} : vector<16x128xbf16>, vector<128x256xbf16>, vector<16x256xf32> -> vector<16x256xf32>
    %c0_77 = arith.constant 0 : index
    %c0_78 = arith.constant 0 : index
    %127 = vector.load %arg14[%c0_77, %c0_78] : memref<1x256xf32, #tpu.memory_space<vmem>>, vector<1x256xf32>
    %128 = vector.broadcast %127 : vector<1x256xf32> to vector<16x256xf32>
    %129 = arith.addf %126, %128 : vector<16x256xf32>
    %cst_79 = arith.constant 0.000000e+00 : f32
    %130 = vector.broadcast %cst_79 : f32 to vector<16x256xf32>
    %131 = arith.maximumf %129, %130 : vector<16x256xf32>
    %132 = arith.truncf %131 : vector<16x256xf32> to vector<16x256xbf16>
    %c0_80 = arith.constant 0 : index
    %c0_81 = arith.constant 0 : index
    %133 = vector.load %arg15[%c0_80, %c0_81] : memref<256x128xbf16, #tpu.memory_space<vmem>>, vector<256x128xbf16>
    %cst_82 = arith.constant dense<0.000000e+00> : vector<16x128xf32>
    %134 = tpu.matmul %132, %133, %cst_82 {dimension_numbers = #tpu.dot_dimension_numbers<[1], [0], [0], [1], [0, 0, 1, 1], [], []>} : vector<16x256xbf16>, vector<256x128xbf16>, vector<16x128xf32> -> vector<16x128xf32>
    %c0_83 = arith.constant 0 : index
    %c0_84 = arith.constant 0 : index
    %135 = vector.load %arg16[%c0_83, %c0_84] : memref<1x128xf32, #tpu.memory_space<vmem>>, vector<1x128xf32>
    %136 = vector.broadcast %135 : vector<1x128xf32> to vector<16x128xf32>
    %137 = arith.addf %134, %136 : vector<16x128xf32>
    %138 = arith.addf %123, %137 : vector<16x128xf32>
    %c0_85 = arith.constant 0 : index
    %c0_86 = arith.constant 0 : index
    %139 = vector.load %arg17[%c0_85, %c0_86] : memref<1x128xf32, #tpu.memory_space<vmem>>, vector<1x128xf32>
    %c0_87 = arith.constant 0 : index
    %c0_88 = arith.constant 0 : index
    %140 = vector.load %arg18[%c0_87, %c0_88] : memref<1x128xf32, #tpu.memory_space<vmem>>, vector<1x128xf32>
    %cst_89 = arith.constant dense<0.000000e+00> : vector<16xf32>
    %141 = vector.multi_reduction <add>, %138, %cst_89 [1] : vector<16x128xf32> to vector<16xf32>
    %142 = vector.shape_cast %141 : vector<16xf32> to vector<16x1xf32>
    %cst_90 = arith.constant 1.280000e+02 : f32
    %143 = vector.broadcast %cst_90 : f32 to vector<16x1xf32>
    %144 = arith.divf %142, %143 : vector<16x1xf32>
    %145 = vector.broadcast %144 : vector<16x1xf32> to vector<16x128xf32>
    %146 = arith.subf %138, %145 : vector<16x128xf32>
    %147 = arith.mulf %146, %146 : vector<16x128xf32>
    %cst_91 = arith.constant dense<0.000000e+00> : vector<16xf32>
    %148 = vector.multi_reduction <add>, %147, %cst_91 [1] : vector<16x128xf32> to vector<16xf32>
    %149 = vector.shape_cast %148 : vector<16xf32> to vector<16x1xf32>
    %cst_92 = arith.constant 0.00787401571 : f32
    %150 = vector.broadcast %cst_92 : f32 to vector<16x1xf32>
    %151 = arith.mulf %149, %150 : vector<16x1xf32>
    %152 = math.sqrt %151 : vector<16x1xf32>
    %153 = vector.broadcast %139 : vector<1x128xf32> to vector<16x128xf32>
    %154 = arith.mulf %153, %146 : vector<16x128xf32>
    %cst_93 = arith.constant 9.99999997E-7 : f32
    %155 = vector.broadcast %cst_93 : f32 to vector<16x1xf32>
    %156 = arith.addf %152, %155 : vector<16x1xf32>
    %157 = tpu.reciprocal %156 {approx = true} : vector<16x1xf32> -> vector<16x1xf32>
    %158 = vector.broadcast %157 : vector<16x1xf32> to vector<16x128xf32>
    %159 = arith.mulf %154, %158 : vector<16x128xf32>
    %160 = vector.broadcast %140 : vector<1x128xf32> to vector<16x128xf32>
    %161 = arith.addf %159, %160 : vector<16x128xf32>
    %c0_94 = arith.constant 0 : index
    %c0_95 = arith.constant 0 : index
    %c0_96 = arith.constant 0 : index
    %162 = vector.load %arg19[%c0_94, %c0_95, %c0_96] : memref<1x16x128xf32, #tpu.memory_space<vmem>>, vector<1x16x128xf32>
    %163 = vector.shape_cast %162 : vector<1x16x128xf32> to vector<16x128xf32>
    %164 = vector.shape_cast %161 : vector<16x128xf32> to vector<1x16x128xf32>
    tpu.vector_store %arg19[%c0_94, %c0_95, %c0_96], %164 {strides = array<i32>} : memref<1x16x128xf32, #tpu.memory_space<vmem>>, vector<1x16x128xf32>,
    return
  }
  func.func @transform_0(%arg0: i32) -> (i32, i32, i32) {
    %c0_i32 = arith.constant 0 : i32
    %c0_i32_0 = arith.constant 0 : i32
    %c0_i32_1 = arith.constant 0 : i32
    return %arg0, %c0_i32, %c0_i32_0 : i32, i32, i32
  }
  func.func @transform_1(%arg0: i32) -> (i32, i32, i32) {
    %c0_i32 = arith.constant 0 : i32
    %c0_i32_0 = arith.constant 0 : i32
    %c0_i32_1 = arith.constant 0 : i32
    return %arg0, %c0_i32, %c0_i32_0 : i32, i32, i32
  }
  func.func @transform_2(%arg0: i32) -> (i32, i32, i32) {
    %c0_i32 = arith.constant 0 : i32
    %c0_i32_0 = arith.constant 0 : i32
    %c0_i32_1 = arith.constant 0 : i32
    %c0_i32_2 = arith.constant 0 : i32
    return %c0_i32, %c0_i32_0, %c0_i32_1 : i32, i32, i32
  }
  func.func @transform_3(%arg0: i32) -> (i32, i32, i32) {
    %c0_i32 = arith.constant 0 : i32
    %c0_i32_0 = arith.constant 0 : i32
    %c0_i32_1 = arith.constant 0 : i32
    %c0_i32_2 = arith.constant 0 : i32
    return %c0_i32, %c0_i32_0, %c0_i32_1 : i32, i32, i32
  }
  func.func @transform_4(%arg0: i32) -> (i32, i32, i32) {
    %c0_i32 = arith.constant 0 : i32
    %c0_i32_0 = arith.constant 0 : i32
    %c0_i32_1 = arith.constant 0 : i32
    %c0_i32_2 = arith.constant 0 : i32
    return %c0_i32, %c0_i32_0, %c0_i32_1 : i32, i32, i32
  }
  func.func @transform_5(%arg0: i32) -> (i32, i32, i32) {
    %c0_i32 = arith.constant 0 : i32
    %c0_i32_0 = arith.constant 0 : i32
    %c0_i32_1 = arith.constant 0 : i32
    %c0_i32_2 = arith.constant 0 : i32
    return %c0_i32, %c0_i32_0, %c0_i32_1 : i32, i32, i32
  }
  func.func @transform_6(%arg0: i32) -> (i32, i32, i32) {
    %c0_i32 = arith.constant 0 : i32
    %c0_i32_0 = arith.constant 0 : i32
    %c0_i32_1 = arith.constant 0 : i32
    %c0_i32_2 = arith.constant 0 : i32
    return %c0_i32, %c0_i32_0, %c0_i32_1 : i32, i32, i32
  }
  func.func @transform_7(%arg0: i32) -> (i32, i32, i32) {
    %c0_i32 = arith.constant 0 : i32
    %c0_i32_0 = arith.constant 0 : i32
    %c0_i32_1 = arith.constant 0 : i32
    %c0_i32_2 = arith.constant 0 : i32
    return %c0_i32, %c0_i32_0, %c0_i32_1 : i32, i32, i32
  }
  func.func @transform_8(%arg0: i32) -> (i32, i32, i32) {
    %c0_i32 = arith.constant 0 : i32
    %c0_i32_0 = arith.constant 0 : i32
    %c0_i32_1 = arith.constant 0 : i32
    %c0_i32_2 = arith.constant 0 : i32
    return %c0_i32, %c0_i32_0, %c0_i32_1 : i32, i32, i32
  }
  func.func @transform_9(%arg0: i32) -> (i32, i32) {
    %c0_i32 = arith.constant 0 : i32
    %c0_i32_0 = arith.constant 0 : i32
    %c0_i32_1 = arith.constant 0 : i32
    return %c0_i32, %c0_i32_0 : i32, i32
  }
  func.func @transform_10(%arg0: i32) -> (i32, i32) {
    %c0_i32 = arith.constant 0 : i32
    %c0_i32_0 = arith.constant 0 : i32
    %c0_i32_1 = arith.constant 0 : i32
    return %c0_i32, %c0_i32_0 : i32, i32
  }
  func.func @transform_11(%arg0: i32) -> (i32, i32) {
    %c0_i32 = arith.constant 0 : i32
    %c0_i32_0 = arith.constant 0 : i32
    %c0_i32_1 = arith.constant 0 : i32
    return %c0_i32, %c0_i32_0 : i32, i32
  }
  func.func @transform_12(%arg0: i32) -> (i32, i32) {
    %c0_i32 = arith.constant 0 : i32
    %c0_i32_0 = arith.constant 0 : i32
    %c0_i32_1 = arith.constant 0 : i32
    return %c0_i32, %c0_i32_0 : i32, i32
  }
  func.func @transform_13(%arg0: i32) -> (i32, i32) {
    %c0_i32 = arith.constant 0 : i32
    %c0_i32_0 = arith.constant 0 : i32
    %c0_i32_1 = arith.constant 0 : i32
    return %c0_i32, %c0_i32_0 : i32, i32
  }
  func.func @transform_14(%arg0: i32) -> (i32, i32) {
    %c0_i32 = arith.constant 0 : i32
    %c0_i32_0 = arith.constant 0 : i32
    %c0_i32_1 = arith.constant 0 : i32
    return %c0_i32, %c0_i32_0 : i32, i32
  }
  func.func @transform_15(%arg0: i32) -> (i32, i32) {
    %c0_i32 = arith.constant 0 : i32
    %c0_i32_0 = arith.constant 0 : i32
    %c0_i32_1 = arith.constant 0 : i32
    return %c0_i32, %c0_i32_0 : i32, i32
  }
  func.func @transform_16(%arg0: i32) -> (i32, i32) {
    %c0_i32 = arith.constant 0 : i32
    %c0_i32_0 = arith.constant 0 : i32
    %c0_i32_1 = arith.constant 0 : i32
    return %c0_i32, %c0_i32_0 : i32, i32
  }
  func.func @transform_17(%arg0: i32) -> (i32, i32) {
    %c0_i32 = arith.constant 0 : i32
    %c0_i32_0 = arith.constant 0 : i32
    %c0_i32_1 = arith.constant 0 : i32
    return %c0_i32, %c0_i32_0 : i32, i32
  }
  func.func @transform_18(%arg0: i32) -> (i32, i32, i32) {
    %c0_i32 = arith.constant 0 : i32
    %c0_i32_0 = arith.constant 0 : i32
    %c0_i32_1 = arith.constant 0 : i32
    return %arg0, %c0_i32, %c0_i32_0 : i32, i32, i32
  }
}

module attributes {stable_mosaic.version = 11 : i64} {
  func.func @sa_kernel(%arg0: i32, %arg1: memref<1x8x128xf32, #tpu.memory_space<vmem>>, %arg2: memref<1x1x8xf32, #tpu.memory_space<vmem>>, %arg3: memref<2x128x64xbf16, #tpu.memory_space<vmem>>, %arg4: memref<2x1x64xf32, #tpu.memory_space<vmem>>, %arg5: memref<2x128x64xbf16, #tpu.memory_space<vmem>>, %arg6: memref<2x1x64xf32, #tpu.memory_space<vmem>>, %arg7: memref<2x128x64xbf16, #tpu.memory_space<vmem>>, %arg8: memref<2x1x64xf32, #tpu.memory_space<vmem>>, %arg9: memref<2x64x128xbf16, #tpu.memory_space<vmem>>, %arg10: memref<1x128xf32, #tpu.memory_space<vmem>>, %arg11: memref<1x128xf32, #tpu.memory_space<vmem>>, %arg12: memref<1x128xf32, #tpu.memory_space<vmem>>, %arg13: memref<128x256xbf16, #tpu.memory_space<vmem>>, %arg14: memref<1x256xf32, #tpu.memory_space<vmem>>, %arg15: memref<256x128xbf16, #tpu.memory_space<vmem>>, %arg16: memref<1x128xf32, #tpu.memory_space<vmem>>, %arg17: memref<1x128xf32, #tpu.memory_space<vmem>>, %arg18: memref<1x128xf32, #tpu.memory_space<vmem>>, %arg19: memref<1x8x128xf32, #tpu.memory_space<vmem>>) attributes {dimension_semantics = [#tpu.dimension_semantics<parallel>], iteration_bounds = array<i64: 2>, scalar_prefetch = 0 : i64, scratch_operands = 0 : i64, tpu.core_type = #tpu.core_type<tc>, window_params = [{transform_indices = @transform_0, window_bounds = array<i64: 1, 8, 128>}, {transform_indices = @transform_1, window_bounds = array<i64: 1, 1, 8>}, {pipeline_mode = #tpu.pipeline_mode<synchronous>, transform_indices = @transform_2, window_bounds = array<i64: 2, 128, 64>}, {pipeline_mode = #tpu.pipeline_mode<synchronous>, transform_indices = @transform_3, window_bounds = array<i64: 2, 1, 64>}, {pipeline_mode = #tpu.pipeline_mode<synchronous>, transform_indices = @transform_4, window_bounds = array<i64: 2, 128, 64>}, {pipeline_mode = #tpu.pipeline_mode<synchronous>, transform_indices = @transform_5, window_bounds = array<i64: 2, 1, 64>}, {pipeline_mode = #tpu.pipeline_mode<synchronous>, transform_indices = @transform_6, window_bounds = array<i64: 2, 128, 64>}, {pipeline_mode = #tpu.pipeline_mode<synchronous>, transform_indices = @transform_7, window_bounds = array<i64: 2, 1, 64>}, {pipeline_mode = #tpu.pipeline_mode<synchronous>, transform_indices = @transform_8, window_bounds = array<i64: 2, 64, 128>}, {pipeline_mode = #tpu.pipeline_mode<synchronous>, transform_indices = @transform_9, window_bounds = array<i64: 1, 128>}, {pipeline_mode = #tpu.pipeline_mode<synchronous>, transform_indices = @transform_10, window_bounds = array<i64: 1, 128>}, {pipeline_mode = #tpu.pipeline_mode<synchronous>, transform_indices = @transform_11, window_bounds = array<i64: 1, 128>}, {pipeline_mode = #tpu.pipeline_mode<synchronous>, transform_indices = @transform_12, window_bounds = array<i64: 128, 256>}, {pipeline_mode = #tpu.pipeline_mode<synchronous>, transform_indices = @transform_13, window_bounds = array<i64: 1, 256>}, {pipeline_mode = #tpu.pipeline_mode<synchronous>, transform_indices = @transform_14, window_bounds = array<i64: 256, 128>}, {pipeline_mode = #tpu.pipeline_mode<synchronous>, transform_indices = @transform_15, window_bounds = array<i64: 1, 128>}, {pipeline_mode = #tpu.pipeline_mode<synchronous>, transform_indices = @transform_16, window_bounds = array<i64: 1, 128>}, {pipeline_mode = #tpu.pipeline_mode<synchronous>, transform_indices = @transform_17, window_bounds = array<i64: 1, 128>}, {transform_indices = @transform_18, window_bounds = array<i64: 1, 8, 128>}]} {
    %c0 = arith.constant 0 : index
    %c0_0 = arith.constant 0 : index
    %c0_1 = arith.constant 0 : index
    %0 = vector.load %arg1[%c0, %c0_0, %c0_1] : memref<1x8x128xf32, #tpu.memory_space<vmem>>, vector<1x8x128xf32>
    %1 = vector.shape_cast %0 : vector<1x8x128xf32> to vector<8x128xf32>
    %c0_2 = arith.constant 0 : index
    %c0_3 = arith.constant 0 : index
    %c0_4 = arith.constant 0 : index
    %2 = vector.load %arg2[%c0_2, %c0_3, %c0_4] : memref<1x1x8xf32, #tpu.memory_space<vmem>>, vector<1x1x8xf32>
    %3 = vector.shape_cast %2 : vector<1x1x8xf32> to vector<1x8xf32>
    %4 = arith.truncf %1 : vector<8x128xf32> to vector<8x128xbf16>
    %5 = arith.truncf %1 : vector<8x128xf32> to vector<8x128xbf16>
    %c0_5 = arith.constant 0 : index
    %c0_6 = arith.constant 0 : index
    %c0_7 = arith.constant 0 : index
    %6 = vector.load %arg3[%c0_5, %c0_6, %c0_7] : memref<2x128x64xbf16, #tpu.memory_space<vmem>>, vector<1x128x64xbf16>
    %7 = vector.shape_cast %6 : vector<1x128x64xbf16> to vector<128x64xbf16>
    %cst = arith.constant dense<0.000000e+00> : vector<8x64xf32>
    %8 = tpu.matmul %4, %7, %cst {dimension_numbers = #tpu.dot_dimension_numbers<[1], [0], [0], [1], [0, 0, 1, 1], [], []>} : vector<8x128xbf16>, vector<128x64xbf16>, vector<8x64xf32> -> vector<8x64xf32>
    %c0_8 = arith.constant 0 : index
    %c0_9 = arith.constant 0 : index
    %c0_10 = arith.constant 0 : index
    %9 = vector.load %arg4[%c0_8, %c0_9, %c0_10] : memref<2x1x64xf32, #tpu.memory_space<vmem>>, vector<1x1x64xf32>
    %10 = vector.shape_cast %9 : vector<1x1x64xf32> to vector<1x64xf32>
    %11 = vector.broadcast %10 : vector<1x64xf32> to vector<8x64xf32>
    %12 = arith.addf %8, %11 : vector<8x64xf32>
    %c0_11 = arith.constant 0 : index
    %c0_12 = arith.constant 0 : index
    %c0_13 = arith.constant 0 : index
    %13 = vector.load %arg5[%c0_11, %c0_12, %c0_13] : memref<2x128x64xbf16, #tpu.memory_space<vmem>>, vector<1x128x64xbf16>
    %14 = vector.shape_cast %13 : vector<1x128x64xbf16> to vector<128x64xbf16>
    %cst_14 = arith.constant dense<0.000000e+00> : vector<8x64xf32>
    %15 = tpu.matmul %5, %14, %cst_14 {dimension_numbers = #tpu.dot_dimension_numbers<[1], [0], [0], [1], [0, 0, 1, 1], [], []>} : vector<8x128xbf16>, vector<128x64xbf16>, vector<8x64xf32> -> vector<8x64xf32>
    %c0_15 = arith.constant 0 : index
    %c0_16 = arith.constant 0 : index
    %c0_17 = arith.constant 0 : index
    %16 = vector.load %arg6[%c0_15, %c0_16, %c0_17] : memref<2x1x64xf32, #tpu.memory_space<vmem>>, vector<1x1x64xf32>
    %17 = vector.shape_cast %16 : vector<1x1x64xf32> to vector<1x64xf32>
    %18 = vector.broadcast %17 : vector<1x64xf32> to vector<8x64xf32>
    %19 = arith.addf %15, %18 : vector<8x64xf32>
    %c0_18 = arith.constant 0 : index
    %c0_19 = arith.constant 0 : index
    %c0_20 = arith.constant 0 : index
    %20 = vector.load %arg7[%c0_18, %c0_19, %c0_20] : memref<2x128x64xbf16, #tpu.memory_space<vmem>>, vector<1x128x64xbf16>
    %21 = vector.shape_cast %20 : vector<1x128x64xbf16> to vector<128x64xbf16>
    %cst_21 = arith.constant dense<0.000000e+00> : vector<8x64xf32>
    %22 = tpu.matmul %5, %21, %cst_21 {dimension_numbers = #tpu.dot_dimension_numbers<[1], [0], [0], [1], [0, 0, 1, 1], [], []>} : vector<8x128xbf16>, vector<128x64xbf16>, vector<8x64xf32> -> vector<8x64xf32>
    %c0_22 = arith.constant 0 : index
    %c0_23 = arith.constant 0 : index
    %c0_24 = arith.constant 0 : index
    %23 = vector.load %arg8[%c0_22, %c0_23, %c0_24] : memref<2x1x64xf32, #tpu.memory_space<vmem>>, vector<1x1x64xf32>
    %24 = vector.shape_cast %23 : vector<1x1x64xf32> to vector<1x64xf32>
    %25 = vector.broadcast %24 : vector<1x64xf32> to vector<8x64xf32>
    %26 = arith.addf %22, %25 : vector<8x64xf32>
    %27 = arith.truncf %12 : vector<8x64xf32> to vector<8x64xbf16>
    %28 = arith.truncf %19 : vector<8x64xf32> to vector<8x64xbf16>
    %cst_25 = arith.constant dense<0.000000e+00> : vector<8x8xf32>
    %29 = tpu.matmul %27, %28, %cst_25 {dimension_numbers = #tpu.dot_dimension_numbers<[1], [1], [0], [0], [0, 0, 1, 0], [], []>} : vector<8x64xbf16>, vector<8x64xbf16>, vector<8x8xf32> -> vector<8x8xf32>
    %cst_26 = arith.constant 1.250000e-01 : f32
    %30 = vector.broadcast %cst_26 : f32 to vector<8x8xf32>
    %31 = arith.mulf %29, %30 : vector<8x8xf32>
    %32 = vector.broadcast %3 : vector<1x8xf32> to vector<8x8xf32>
    %33 = arith.addf %31, %32 : vector<8x8xf32>
    %cst_27 = arith.constant dense<0xFF800000> : vector<8xf32>
    %34 = vector.multi_reduction <maximumf>, %33, %cst_27 [1] : vector<8x8xf32> to vector<8xf32>
    %35 = vector.shape_cast %34 : vector<8xf32> to vector<8x1xf32>
    %36 = vector.broadcast %35 : vector<8x1xf32> to vector<8x8xf32>
    %37 = arith.subf %33, %36 : vector<8x8xf32>
    %38 = math.exp %37 : vector<8x8xf32>
    %cst_28 = arith.constant dense<0.000000e+00> : vector<8xf32>
    %39 = vector.multi_reduction <add>, %38, %cst_28 [1] : vector<8x8xf32> to vector<8xf32>
    %40 = vector.shape_cast %39 : vector<8xf32> to vector<8x1xf32>
    %41 = tpu.reciprocal %40 {approx = true} : vector<8x1xf32> -> vector<8x1xf32>
    %42 = vector.broadcast %41 : vector<8x1xf32> to vector<8x8xf32>
    %43 = arith.mulf %38, %42 : vector<8x8xf32>
    %44 = arith.truncf %43 : vector<8x8xf32> to vector<8x8xbf16>
    %45 = arith.truncf %26 : vector<8x64xf32> to vector<8x64xbf16>
    %cst_29 = arith.constant dense<0.000000e+00> : vector<8x64xf32>
    %46 = tpu.matmul %44, %45, %cst_29 {dimension_numbers = #tpu.dot_dimension_numbers<[1], [0], [0], [1], [0, 0, 1, 1], [], []>} : vector<8x8xbf16>, vector<8x64xbf16>, vector<8x64xf32> -> vector<8x64xf32>
    %47 = arith.truncf %46 : vector<8x64xf32> to vector<8x64xbf16>
    %c0_30 = arith.constant 0 : index
    %c0_31 = arith.constant 0 : index
    %c0_32 = arith.constant 0 : index
    %48 = vector.load %arg9[%c0_30, %c0_31, %c0_32] : memref<2x64x128xbf16, #tpu.memory_space<vmem>>, vector<1x64x128xbf16>
    %49 = vector.shape_cast %48 : vector<1x64x128xbf16> to vector<64x128xbf16>
    %cst_33 = arith.constant dense<0.000000e+00> : vector<8x128xf32>
    %50 = tpu.matmul %47, %49, %cst_33 {dimension_numbers = #tpu.dot_dimension_numbers<[1], [0], [0], [1], [0, 0, 1, 1], [], []>} : vector<8x64xbf16>, vector<64x128xbf16>, vector<8x128xf32> -> vector<8x128xf32>
    %c1 = arith.constant 1 : index
    %c0_34 = arith.constant 0 : index
    %c0_35 = arith.constant 0 : index
    %51 = vector.load %arg3[%c1, %c0_34, %c0_35] : memref<2x128x64xbf16, #tpu.memory_space<vmem>>, vector<1x128x64xbf16>
    %52 = vector.shape_cast %51 : vector<1x128x64xbf16> to vector<128x64xbf16>
    %cst_36 = arith.constant dense<0.000000e+00> : vector<8x64xf32>
    %53 = tpu.matmul %4, %52, %cst_36 {dimension_numbers = #tpu.dot_dimension_numbers<[1], [0], [0], [1], [0, 0, 1, 1], [], []>} : vector<8x128xbf16>, vector<128x64xbf16>, vector<8x64xf32> -> vector<8x64xf32>
    %c1_37 = arith.constant 1 : index
    %c0_38 = arith.constant 0 : index
    %c0_39 = arith.constant 0 : index
    %54 = vector.load %arg4[%c1_37, %c0_38, %c0_39] : memref<2x1x64xf32, #tpu.memory_space<vmem>>, vector<1x1x64xf32>
    %55 = vector.shape_cast %54 : vector<1x1x64xf32> to vector<1x64xf32>
    %56 = vector.broadcast %55 : vector<1x64xf32> to vector<8x64xf32>
    %57 = arith.addf %53, %56 : vector<8x64xf32>
    %c1_40 = arith.constant 1 : index
    %c0_41 = arith.constant 0 : index
    %c0_42 = arith.constant 0 : index
    %58 = vector.load %arg5[%c1_40, %c0_41, %c0_42] : memref<2x128x64xbf16, #tpu.memory_space<vmem>>, vector<1x128x64xbf16>
    %59 = vector.shape_cast %58 : vector<1x128x64xbf16> to vector<128x64xbf16>
    %cst_43 = arith.constant dense<0.000000e+00> : vector<8x64xf32>
    %60 = tpu.matmul %5, %59, %cst_43 {dimension_numbers = #tpu.dot_dimension_numbers<[1], [0], [0], [1], [0, 0, 1, 1], [], []>} : vector<8x128xbf16>, vector<128x64xbf16>, vector<8x64xf32> -> vector<8x64xf32>
    %c1_44 = arith.constant 1 : index
    %c0_45 = arith.constant 0 : index
    %c0_46 = arith.constant 0 : index
    %61 = vector.load %arg6[%c1_44, %c0_45, %c0_46] : memref<2x1x64xf32, #tpu.memory_space<vmem>>, vector<1x1x64xf32>
    %62 = vector.shape_cast %61 : vector<1x1x64xf32> to vector<1x64xf32>
    %63 = vector.broadcast %62 : vector<1x64xf32> to vector<8x64xf32>
    %64 = arith.addf %60, %63 : vector<8x64xf32>
    %c1_47 = arith.constant 1 : index
    %c0_48 = arith.constant 0 : index
    %c0_49 = arith.constant 0 : index
    %65 = vector.load %arg7[%c1_47, %c0_48, %c0_49] : memref<2x128x64xbf16, #tpu.memory_space<vmem>>, vector<1x128x64xbf16>
    %66 = vector.shape_cast %65 : vector<1x128x64xbf16> to vector<128x64xbf16>
    %cst_50 = arith.constant dense<0.000000e+00> : vector<8x64xf32>
    %67 = tpu.matmul %5, %66, %cst_50 {dimension_numbers = #tpu.dot_dimension_numbers<[1], [0], [0], [1], [0, 0, 1, 1], [], []>} : vector<8x128xbf16>, vector<128x64xbf16>, vector<8x64xf32> -> vector<8x64xf32>
    %c1_51 = arith.constant 1 : index
    %c0_52 = arith.constant 0 : index
    %c0_53 = arith.constant 0 : index
    %68 = vector.load %arg8[%c1_51, %c0_52, %c0_53] : memref<2x1x64xf32, #tpu.memory_space<vmem>>, vector<1x1x64xf32>
    %69 = vector.shape_cast %68 : vector<1x1x64xf32> to vector<1x64xf32>
    %70 = vector.broadcast %69 : vector<1x64xf32> to vector<8x64xf32>
    %71 = arith.addf %67, %70 : vector<8x64xf32>
    %72 = arith.truncf %57 : vector<8x64xf32> to vector<8x64xbf16>
    %73 = arith.truncf %64 : vector<8x64xf32> to vector<8x64xbf16>
    %cst_54 = arith.constant dense<0.000000e+00> : vector<8x8xf32>
    %74 = tpu.matmul %72, %73, %cst_54 {dimension_numbers = #tpu.dot_dimension_numbers<[1], [1], [0], [0], [0, 0, 1, 0], [], []>} : vector<8x64xbf16>, vector<8x64xbf16>, vector<8x8xf32> -> vector<8x8xf32>
    %cst_55 = arith.constant 1.250000e-01 : f32
    %75 = vector.broadcast %cst_55 : f32 to vector<8x8xf32>
    %76 = arith.mulf %74, %75 : vector<8x8xf32>
    %77 = vector.broadcast %3 : vector<1x8xf32> to vector<8x8xf32>
    %78 = arith.addf %76, %77 : vector<8x8xf32>
    %cst_56 = arith.constant dense<0xFF800000> : vector<8xf32>
    %79 = vector.multi_reduction <maximumf>, %78, %cst_56 [1] : vector<8x8xf32> to vector<8xf32>
    %80 = vector.shape_cast %79 : vector<8xf32> to vector<8x1xf32>
    %81 = vector.broadcast %80 : vector<8x1xf32> to vector<8x8xf32>
    %82 = arith.subf %78, %81 : vector<8x8xf32>
    %83 = math.exp %82 : vector<8x8xf32>
    %cst_57 = arith.constant dense<0.000000e+00> : vector<8xf32>
    %84 = vector.multi_reduction <add>, %83, %cst_57 [1] : vector<8x8xf32> to vector<8xf32>
    %85 = vector.shape_cast %84 : vector<8xf32> to vector<8x1xf32>
    %86 = tpu.reciprocal %85 {approx = true} : vector<8x1xf32> -> vector<8x1xf32>
    %87 = vector.broadcast %86 : vector<8x1xf32> to vector<8x8xf32>
    %88 = arith.mulf %83, %87 : vector<8x8xf32>
    %89 = arith.truncf %88 : vector<8x8xf32> to vector<8x8xbf16>
    %90 = arith.truncf %71 : vector<8x64xf32> to vector<8x64xbf16>
    %cst_58 = arith.constant dense<0.000000e+00> : vector<8x64xf32>
    %91 = tpu.matmul %89, %90, %cst_58 {dimension_numbers = #tpu.dot_dimension_numbers<[1], [0], [0], [1], [0, 0, 1, 1], [], []>} : vector<8x8xbf16>, vector<8x64xbf16>, vector<8x64xf32> -> vector<8x64xf32>
    %92 = arith.truncf %91 : vector<8x64xf32> to vector<8x64xbf16>
    %c1_59 = arith.constant 1 : index
    %c0_60 = arith.constant 0 : index
    %c0_61 = arith.constant 0 : index
    %93 = vector.load %arg9[%c1_59, %c0_60, %c0_61] : memref<2x64x128xbf16, #tpu.memory_space<vmem>>, vector<1x64x128xbf16>
    %94 = vector.shape_cast %93 : vector<1x64x128xbf16> to vector<64x128xbf16>
    %cst_62 = arith.constant dense<0.000000e+00> : vector<8x128xf32>
    %95 = tpu.matmul %92, %94, %cst_62 {dimension_numbers = #tpu.dot_dimension_numbers<[1], [0], [0], [1], [0, 0, 1, 1], [], []>} : vector<8x64xbf16>, vector<64x128xbf16>, vector<8x128xf32> -> vector<8x128xf32>
    %96 = arith.addf %50, %95 : vector<8x128xf32>
    %c0_63 = arith.constant 0 : index
    %c0_64 = arith.constant 0 : index
    %97 = vector.load %arg10[%c0_63, %c0_64] : memref<1x128xf32, #tpu.memory_space<vmem>>, vector<1x128xf32>
    %98 = vector.broadcast %97 : vector<1x128xf32> to vector<8x128xf32>
    %99 = arith.addf %96, %98 : vector<8x128xf32>
    %100 = arith.addf %1, %99 : vector<8x128xf32>
    %c0_65 = arith.constant 0 : index
    %c0_66 = arith.constant 0 : index
    %101 = vector.load %arg11[%c0_65, %c0_66] : memref<1x128xf32, #tpu.memory_space<vmem>>, vector<1x128xf32>
    %c0_67 = arith.constant 0 : index
    %c0_68 = arith.constant 0 : index
    %102 = vector.load %arg12[%c0_67, %c0_68] : memref<1x128xf32, #tpu.memory_space<vmem>>, vector<1x128xf32>
    %cst_69 = arith.constant dense<0.000000e+00> : vector<8xf32>
    %103 = vector.multi_reduction <add>, %100, %cst_69 [1] : vector<8x128xf32> to vector<8xf32>
    %104 = vector.shape_cast %103 : vector<8xf32> to vector<8x1xf32>
    %cst_70 = arith.constant 1.280000e+02 : f32
    %105 = vector.broadcast %cst_70 : f32 to vector<8x1xf32>
    %106 = arith.divf %104, %105 : vector<8x1xf32>
    %107 = vector.broadcast %106 : vector<8x1xf32> to vector<8x128xf32>
    %108 = arith.subf %100, %107 : vector<8x128xf32>
    %109 = arith.mulf %108, %108 : vector<8x128xf32>
    %cst_71 = arith.constant dense<0.000000e+00> : vector<8xf32>
    %110 = vector.multi_reduction <add>, %109, %cst_71 [1] : vector<8x128xf32> to vector<8xf32>
    %111 = vector.shape_cast %110 : vector<8xf32> to vector<8x1xf32>
    %cst_72 = arith.constant 0.00787401571 : f32
    %112 = vector.broadcast %cst_72 : f32 to vector<8x1xf32>
    %113 = arith.mulf %111, %112 : vector<8x1xf32>
    %114 = math.sqrt %113 : vector<8x1xf32>
    %115 = vector.broadcast %101 : vector<1x128xf32> to vector<8x128xf32>
    %116 = arith.mulf %115, %108 : vector<8x128xf32>
    %cst_73 = arith.constant 9.99999997E-7 : f32
    %117 = vector.broadcast %cst_73 : f32 to vector<8x1xf32>
    %118 = arith.addf %114, %117 : vector<8x1xf32>
    %119 = tpu.reciprocal %118 {approx = true} : vector<8x1xf32> -> vector<8x1xf32>
    %120 = vector.broadcast %119 : vector<8x1xf32> to vector<8x128xf32>
    %121 = arith.mulf %116, %120 : vector<8x128xf32>
    %122 = vector.broadcast %102 : vector<1x128xf32> to vector<8x128xf32>
    %123 = arith.addf %121, %122 : vector<8x128xf32>
    %124 = arith.truncf %123 : vector<8x128xf32> to vector<8x128xbf16>
    %c0_74 = arith.constant 0 : index
    %c0_75 = arith.constant 0 : index
    %125 = vector.load %arg13[%c0_74, %c0_75] : memref<128x256xbf16, #tpu.memory_space<vmem>>, vector<128x256xbf16>
    %cst_76 = arith.constant dense<0.000000e+00> : vector<8x256xf32>
    %126 = tpu.matmul %124, %125, %cst_76 {dimension_numbers = #tpu.dot_dimension_numbers<[1], [0], [0], [1], [0, 0, 1, 1], [], []>} : vector<8x128xbf16>, vector<128x256xbf16>, vector<8x256xf32> -> vector<8x256xf32>
    %c0_77 = arith.constant 0 : index
    %c0_78 = arith.constant 0 : index
    %127 = vector.load %arg14[%c0_77, %c0_78] : memref<1x256xf32, #tpu.memory_space<vmem>>, vector<1x256xf32>
    %128 = vector.broadcast %127 : vector<1x256xf32> to vector<8x256xf32>
    %129 = arith.addf %126, %128 : vector<8x256xf32>
    %cst_79 = arith.constant 0.000000e+00 : f32
    %130 = vector.broadcast %cst_79 : f32 to vector<8x256xf32>
    %131 = arith.maximumf %129, %130 : vector<8x256xf32>
    %132 = arith.truncf %131 : vector<8x256xf32> to vector<8x256xbf16>
    %c0_80 = arith.constant 0 : index
    %c0_81 = arith.constant 0 : index
    %133 = vector.load %arg15[%c0_80, %c0_81] : memref<256x128xbf16, #tpu.memory_space<vmem>>, vector<256x128xbf16>
    %cst_82 = arith.constant dense<0.000000e+00> : vector<8x128xf32>
    %134 = tpu.matmul %132, %133, %cst_82 {dimension_numbers = #tpu.dot_dimension_numbers<[1], [0], [0], [1], [0, 0, 1, 1], [], []>} : vector<8x256xbf16>, vector<256x128xbf16>, vector<8x128xf32> -> vector<8x128xf32>
    %c0_83 = arith.constant 0 : index
    %c0_84 = arith.constant 0 : index
    %135 = vector.load %arg16[%c0_83, %c0_84] : memref<1x128xf32, #tpu.memory_space<vmem>>, vector<1x128xf32>
    %136 = vector.broadcast %135 : vector<1x128xf32> to vector<8x128xf32>
    %137 = arith.addf %134, %136 : vector<8x128xf32>
    %138 = arith.addf %123, %137 : vector<8x128xf32>
    %c0_85 = arith.constant 0 : index
    %c0_86 = arith.constant 0 : index
    %139 = vector.load %arg17[%c0_85, %c0_86] : memref<1x128xf32, #tpu.memory_space<vmem>>, vector<1x128xf32>
    %c0_87 = arith.constant 0 : index
    %c0_88 = arith.constant 0 : index
    %140 = vector.load %arg18[%c0_87, %c0_88] : memref<1x128xf32, #tpu.memory_space<vmem>>, vector<1x128xf32>
    %cst_89 = arith.constant dense<0.000000e+00> : vector<8xf32>
    %141 = vector.multi_reduction <add>, %138, %cst_89 [1] : vector<8x128xf32> to vector<8xf32>
    %142 = vector.shape_cast %141 : vector<8xf32> to vector<8x1xf32>
    %cst_90 = arith.constant 1.280000e+02 : f32
    %143 = vector.broadcast %cst_90 : f32 to vector<8x1xf32>
    %144 = arith.divf %142, %143 : vector<8x1xf32>
    %145 = vector.broadcast %144 : vector<8x1xf32> to vector<8x128xf32>
    %146 = arith.subf %138, %145 : vector<8x128xf32>
    %147 = arith.mulf %146, %146 : vector<8x128xf32>
    %cst_91 = arith.constant dense<0.000000e+00> : vector<8xf32>
    %148 = vector.multi_reduction <add>, %147, %cst_91 [1] : vector<8x128xf32> to vector<8xf32>
    %149 = vector.shape_cast %148 : vector<8xf32> to vector<8x1xf32>
    %cst_92 = arith.constant 0.00787401571 : f32
    %150 = vector.broadcast %cst_92 : f32 to vector<8x1xf32>
    %151 = arith.mulf %149, %150 : vector<8x1xf32>
    %152 = math.sqrt %151 : vector<8x1xf32>
    %153 = vector.broadcast %139 : vector<1x128xf32> to vector<8x128xf32>
    %154 = arith.mulf %153, %146 : vector<8x128xf32>
    %cst_93 = arith.constant 9.99999997E-7 : f32
    %155 = vector.broadcast %cst_93 : f32 to vector<8x1xf32>
    %156 = arith.addf %152, %155 : vector<8x1xf32>
    %157 = tpu.reciprocal %156 {approx = true} : vector<8x1xf32> -> vector<8x1xf32>
    %158 = vector.broadcast %157 : vector<8x1xf32> to vector<8x128xf32>
    %159 = arith.mulf %154, %158 : vector<8x128xf32>
    %160 = vector.broadcast %140 : vector<1x128xf32> to vector<8x128xf32>
    %161 = arith.addf %159, %160 : vector<8x128xf32>
    %c0_94 = arith.constant 0 : index
    %c0_95 = arith.constant 0 : index
    %c0_96 = arith.constant 0 : index
    %162 = vector.load %arg19[%c0_94, %c0_95, %c0_96] : memref<1x8x128xf32, #tpu.memory_space<vmem>>, vector<1x8x128xf32>
    %163 = vector.shape_cast %162 : vector<1x8x128xf32> to vector<8x128xf32>
    %164 = vector.shape_cast %161 : vector<8x128xf32> to vector<1x8x128xf32>
    tpu.vector_store %arg19[%c0_94, %c0_95, %c0_96], %164 {strides = array<i32>} : memref<1x8x128xf32, #tpu.memory_space<vmem>>, vector<1x8x128xf32>,
    return
  }
  func.func @transform_0(%arg0: i32) -> (i32, i32, i32) {
    %c0_i32 = arith.constant 0 : i32
    %c0_i32_0 = arith.constant 0 : i32
    %c0_i32_1 = arith.constant 0 : i32
    return %arg0, %c0_i32, %c0_i32_0 : i32, i32, i32
  }
  func.func @transform_1(%arg0: i32) -> (i32, i32, i32) {
    %c0_i32 = arith.constant 0 : i32
    %c0_i32_0 = arith.constant 0 : i32
    %c0_i32_1 = arith.constant 0 : i32
    return %arg0, %c0_i32, %c0_i32_0 : i32, i32, i32
  }
  func.func @transform_2(%arg0: i32) -> (i32, i32, i32) {
    %c0_i32 = arith.constant 0 : i32
    %c0_i32_0 = arith.constant 0 : i32
    %c0_i32_1 = arith.constant 0 : i32
    %c0_i32_2 = arith.constant 0 : i32
    return %c0_i32, %c0_i32_0, %c0_i32_1 : i32, i32, i32
  }
  func.func @transform_3(%arg0: i32) -> (i32, i32, i32) {
    %c0_i32 = arith.constant 0 : i32
    %c0_i32_0 = arith.constant 0 : i32
    %c0_i32_1 = arith.constant 0 : i32
    %c0_i32_2 = arith.constant 0 : i32
    return %c0_i32, %c0_i32_0, %c0_i32_1 : i32, i32, i32
  }
  func.func @transform_4(%arg0: i32) -> (i32, i32, i32) {
    %c0_i32 = arith.constant 0 : i32
    %c0_i32_0 = arith.constant 0 : i32
    %c0_i32_1 = arith.constant 0 : i32
    %c0_i32_2 = arith.constant 0 : i32
    return %c0_i32, %c0_i32_0, %c0_i32_1 : i32, i32, i32
  }
  func.func @transform_5(%arg0: i32) -> (i32, i32, i32) {
    %c0_i32 = arith.constant 0 : i32
    %c0_i32_0 = arith.constant 0 : i32
    %c0_i32_1 = arith.constant 0 : i32
    %c0_i32_2 = arith.constant 0 : i32
    return %c0_i32, %c0_i32_0, %c0_i32_1 : i32, i32, i32
  }
  func.func @transform_6(%arg0: i32) -> (i32, i32, i32) {
    %c0_i32 = arith.constant 0 : i32
    %c0_i32_0 = arith.constant 0 : i32
    %c0_i32_1 = arith.constant 0 : i32
    %c0_i32_2 = arith.constant 0 : i32
    return %c0_i32, %c0_i32_0, %c0_i32_1 : i32, i32, i32
  }
  func.func @transform_7(%arg0: i32) -> (i32, i32, i32) {
    %c0_i32 = arith.constant 0 : i32
    %c0_i32_0 = arith.constant 0 : i32
    %c0_i32_1 = arith.constant 0 : i32
    %c0_i32_2 = arith.constant 0 : i32
    return %c0_i32, %c0_i32_0, %c0_i32_1 : i32, i32, i32
  }
  func.func @transform_8(%arg0: i32) -> (i32, i32, i32) {
    %c0_i32 = arith.constant 0 : i32
    %c0_i32_0 = arith.constant 0 : i32
    %c0_i32_1 = arith.constant 0 : i32
    %c0_i32_2 = arith.constant 0 : i32
    return %c0_i32, %c0_i32_0, %c0_i32_1 : i32, i32, i32
  }
  func.func @transform_9(%arg0: i32) -> (i32, i32) {
    %c0_i32 = arith.constant 0 : i32
    %c0_i32_0 = arith.constant 0 : i32
    %c0_i32_1 = arith.constant 0 : i32
    return %c0_i32, %c0_i32_0 : i32, i32
  }
  func.func @transform_10(%arg0: i32) -> (i32, i32) {
    %c0_i32 = arith.constant 0 : i32
    %c0_i32_0 = arith.constant 0 : i32
    %c0_i32_1 = arith.constant 0 : i32
    return %c0_i32, %c0_i32_0 : i32, i32
  }
  func.func @transform_11(%arg0: i32) -> (i32, i32) {
    %c0_i32 = arith.constant 0 : i32
    %c0_i32_0 = arith.constant 0 : i32
    %c0_i32_1 = arith.constant 0 : i32
    return %c0_i32, %c0_i32_0 : i32, i32
  }
  func.func @transform_12(%arg0: i32) -> (i32, i32) {
    %c0_i32 = arith.constant 0 : i32
    %c0_i32_0 = arith.constant 0 : i32
    %c0_i32_1 = arith.constant 0 : i32
    return %c0_i32, %c0_i32_0 : i32, i32
  }
  func.func @transform_13(%arg0: i32) -> (i32, i32) {
    %c0_i32 = arith.constant 0 : i32
    %c0_i32_0 = arith.constant 0 : i32
    %c0_i32_1 = arith.constant 0 : i32
    return %c0_i32, %c0_i32_0 : i32, i32
  }
  func.func @transform_14(%arg0: i32) -> (i32, i32) {
    %c0_i32 = arith.constant 0 : i32
    %c0_i32_0 = arith.constant 0 : i32
    %c0_i32_1 = arith.constant 0 : i32
    return %c0_i32, %c0_i32_0 : i32, i32
  }
  func.func @transform_15(%arg0: i32) -> (i32, i32) {
    %c0_i32 = arith.constant 0 : i32
    %c0_i32_0 = arith.constant 0 : i32
    %c0_i32_1 = arith.constant 0 : i32
    return %c0_i32, %c0_i32_0 : i32, i32
  }
  func.func @transform_16(%arg0: i32) -> (i32, i32) {
    %c0_i32 = arith.constant 0 : i32
    %c0_i32_0 = arith.constant 0 : i32
    %c0_i32_1 = arith.constant 0 : i32
    return %c0_i32, %c0_i32_0 : i32, i32
  }
  func.func @transform_17(%arg0: i32) -> (i32, i32) {
    %c0_i32 = arith.constant 0 : i32
    %c0_i32_0 = arith.constant 0 : i32
    %c0_i32_1 = arith.constant 0 : i32
    return %c0_i32, %c0_i32_0 : i32, i32
  }
  func.func @transform_18(%arg0: i32) -> (i32, i32, i32) {
    %c0_i32 = arith.constant 0 : i32
    %c0_i32_0 = arith.constant 0 : i32
    %c0_i32_1 = arith.constant 0 : i32
    return %arg0, %c0_i32, %c0_i32_0 : i32, i32, i32
  }
}

module attributes {stable_mosaic.version = 11 : i64} {
  func.func @ca_kernel(%arg0: i32, %arg1: memref<1x16x128xf32, #tpu.memory_space<vmem>>, %arg2: memref<1x8x128xf32, #tpu.memory_space<vmem>>, %arg3: memref<1x1x16xf32, #tpu.memory_space<vmem>>, %arg4: memref<1x1x8xf32, #tpu.memory_space<vmem>>, %arg5: memref<2x128x64xbf16, #tpu.memory_space<vmem>>, %arg6: memref<2x1x64xf32, #tpu.memory_space<vmem>>, %arg7: memref<2x128x64xbf16, #tpu.memory_space<vmem>>, %arg8: memref<2x1x64xf32, #tpu.memory_space<vmem>>, %arg9: memref<2x128x64xbf16, #tpu.memory_space<vmem>>, %arg10: memref<2x1x64xf32, #tpu.memory_space<vmem>>, %arg11: memref<2x64x128xbf16, #tpu.memory_space<vmem>>, %arg12: memref<1x128xf32, #tpu.memory_space<vmem>>, %arg13: memref<1x128xf32, #tpu.memory_space<vmem>>, %arg14: memref<1x128xf32, #tpu.memory_space<vmem>>, %arg15: memref<2x128x64xbf16, #tpu.memory_space<vmem>>, %arg16: memref<2x1x64xf32, #tpu.memory_space<vmem>>, %arg17: memref<2x128x64xbf16, #tpu.memory_space<vmem>>, %arg18: memref<2x1x64xf32, #tpu.memory_space<vmem>>, %arg19: memref<2x128x64xbf16, #tpu.memory_space<vmem>>, %arg20: memref<2x1x64xf32, #tpu.memory_space<vmem>>, %arg21: memref<2x64x128xbf16, #tpu.memory_space<vmem>>, %arg22: memref<1x128xf32, #tpu.memory_space<vmem>>, %arg23: memref<1x128xf32, #tpu.memory_space<vmem>>, %arg24: memref<1x128xf32, #tpu.memory_space<vmem>>, %arg25: memref<128x256xbf16, #tpu.memory_space<vmem>>, %arg26: memref<1x256xf32, #tpu.memory_space<vmem>>, %arg27: memref<256x128xbf16, #tpu.memory_space<vmem>>, %arg28: memref<1x128xf32, #tpu.memory_space<vmem>>, %arg29: memref<1x128xf32, #tpu.memory_space<vmem>>, %arg30: memref<1x128xf32, #tpu.memory_space<vmem>>, %arg31: memref<1x16x128xf32, #tpu.memory_space<vmem>>) attributes {dimension_semantics = [#tpu.dimension_semantics<parallel>], iteration_bounds = array<i64: 2>, scalar_prefetch = 0 : i64, scratch_operands = 0 : i64, tpu.core_type = #tpu.core_type<tc>, window_params = [{transform_indices = @transform_0, window_bounds = array<i64: 1, 16, 128>}, {transform_indices = @transform_1, window_bounds = array<i64: 1, 8, 128>}, {transform_indices = @transform_2, window_bounds = array<i64: 1, 1, 16>}, {transform_indices = @transform_3, window_bounds = array<i64: 1, 1, 8>}, {pipeline_mode = #tpu.pipeline_mode<synchronous>, transform_indices = @transform_4, window_bounds = array<i64: 2, 128, 64>}, {pipeline_mode = #tpu.pipeline_mode<synchronous>, transform_indices = @transform_5, window_bounds = array<i64: 2, 1, 64>}, {pipeline_mode = #tpu.pipeline_mode<synchronous>, transform_indices = @transform_6, window_bounds = array<i64: 2, 128, 64>}, {pipeline_mode = #tpu.pipeline_mode<synchronous>, transform_indices = @transform_7, window_bounds = array<i64: 2, 1, 64>}, {pipeline_mode = #tpu.pipeline_mode<synchronous>, transform_indices = @transform_8, window_bounds = array<i64: 2, 128, 64>}, {pipeline_mode = #tpu.pipeline_mode<synchronous>, transform_indices = @transform_9, window_bounds = array<i64: 2, 1, 64>}, {pipeline_mode = #tpu.pipeline_mode<synchronous>, transform_indices = @transform_10, window_bounds = array<i64: 2, 64, 128>}, {pipeline_mode = #tpu.pipeline_mode<synchronous>, transform_indices = @transform_11, window_bounds = array<i64: 1, 128>}, {pipeline_mode = #tpu.pipeline_mode<synchronous>, transform_indices = @transform_12, window_bounds = array<i64: 1, 128>}, {pipeline_mode = #tpu.pipeline_mode<synchronous>, transform_indices = @transform_13, window_bounds = array<i64: 1, 128>}, {pipeline_mode = #tpu.pipeline_mode<synchronous>, transform_indices = @transform_14, window_bounds = array<i64: 2, 128, 64>}, {pipeline_mode = #tpu.pipeline_mode<synchronous>, transform_indices = @transform_15, window_bounds = array<i64: 2, 1, 64>}, {pipeline_mode = #tpu.pipeline_mode<synchronous>, transform_indices = @transform_16, window_bounds = array<i64: 2, 128, 64>}, {pipeline_mode = #tpu.pipeline_mode<synchronous>, transform_indices = @transform_17, window_bounds = array<i64: 2, 1, 64>}, {pipeline_mode = #tpu.pipeline_mode<synchronous>, transform_indices = @transform_18, window_bounds = array<i64: 2, 128, 64>}, {pipeline_mode = #tpu.pipeline_mode<synchronous>, transform_indices = @transform_19, window_bounds = array<i64: 2, 1, 64>}, {pipeline_mode = #tpu.pipeline_mode<synchronous>, transform_indices = @transform_20, window_bounds = array<i64: 2, 64, 128>}, {pipeline_mode = #tpu.pipeline_mode<synchronous>, transform_indices = @transform_21, window_bounds = array<i64: 1, 128>}, {pipeline_mode = #tpu.pipeline_mode<synchronous>, transform_indices = @transform_22, window_bounds = array<i64: 1, 128>}, {pipeline_mode = #tpu.pipeline_mode<synchronous>, transform_indices = @transform_23, window_bounds = array<i64: 1, 128>}, {pipeline_mode = #tpu.pipeline_mode<synchronous>, transform_indices = @transform_24, window_bounds = array<i64: 128, 256>}, {pipeline_mode = #tpu.pipeline_mode<synchronous>, transform_indices = @transform_25, window_bounds = array<i64: 1, 256>}, {pipeline_mode = #tpu.pipeline_mode<synchronous>, transform_indices = @transform_26, window_bounds = array<i64: 256, 128>}, {pipeline_mode = #tpu.pipeline_mode<synchronous>, transform_indices = @transform_27, window_bounds = array<i64: 1, 128>}, {pipeline_mode = #tpu.pipeline_mode<synchronous>, transform_indices = @transform_28, window_bounds = array<i64: 1, 128>}, {pipeline_mode = #tpu.pipeline_mode<synchronous>, transform_indices = @transform_29, window_bounds = array<i64: 1, 128>}, {transform_indices = @transform_30, window_bounds = array<i64: 1, 16, 128>}]} {
    %c0 = arith.constant 0 : index
    %c0_0 = arith.constant 0 : index
    %c0_1 = arith.constant 0 : index
    %0 = vector.load %arg1[%c0, %c0_0, %c0_1] : memref<1x16x128xf32, #tpu.memory_space<vmem>>, vector<1x16x128xf32>
    %1 = vector.shape_cast %0 : vector<1x16x128xf32> to vector<16x128xf32>
    %c0_2 = arith.constant 0 : index
    %c0_3 = arith.constant 0 : index
    %c0_4 = arith.constant 0 : index
    %2 = vector.load %arg2[%c0_2, %c0_3, %c0_4] : memref<1x8x128xf32, #tpu.memory_space<vmem>>, vector<1x8x128xf32>
    %3 = vector.shape_cast %2 : vector<1x8x128xf32> to vector<8x128xf32>
    %c0_5 = arith.constant 0 : index
    %c0_6 = arith.constant 0 : index
    %c0_7 = arith.constant 0 : index
    %4 = vector.load %arg3[%c0_5, %c0_6, %c0_7] : memref<1x1x16xf32, #tpu.memory_space<vmem>>, vector<1x1x16xf32>
    %5 = vector.shape_cast %4 : vector<1x1x16xf32> to vector<1x16xf32>
    %c0_8 = arith.constant 0 : index
    %c0_9 = arith.constant 0 : index
    %c0_10 = arith.constant 0 : index
    %6 = vector.load %arg4[%c0_8, %c0_9, %c0_10] : memref<1x1x8xf32, #tpu.memory_space<vmem>>, vector<1x1x8xf32>
    %7 = vector.shape_cast %6 : vector<1x1x8xf32> to vector<1x8xf32>
    %8 = arith.truncf %1 : vector<16x128xf32> to vector<16x128xbf16>
    %9 = arith.truncf %1 : vector<16x128xf32> to vector<16x128xbf16>
    %c0_11 = arith.constant 0 : index
    %c0_12 = arith.constant 0 : index
    %c0_13 = arith.constant 0 : index
    %10 = vector.load %arg5[%c0_11, %c0_12, %c0_13] : memref<2x128x64xbf16, #tpu.memory_space<vmem>>, vector<1x128x64xbf16>
    %11 = vector.shape_cast %10 : vector<1x128x64xbf16> to vector<128x64xbf16>
    %cst = arith.constant dense<0.000000e+00> : vector<16x64xf32>
    %12 = tpu.matmul %8, %11, %cst {dimension_numbers = #tpu.dot_dimension_numbers<[1], [0], [0], [1], [0, 0, 1, 1], [], []>} : vector<16x128xbf16>, vector<128x64xbf16>, vector<16x64xf32> -> vector<16x64xf32>
    %c0_14 = arith.constant 0 : index
    %c0_15 = arith.constant 0 : index
    %c0_16 = arith.constant 0 : index
    %13 = vector.load %arg6[%c0_14, %c0_15, %c0_16] : memref<2x1x64xf32, #tpu.memory_space<vmem>>, vector<1x1x64xf32>
    %14 = vector.shape_cast %13 : vector<1x1x64xf32> to vector<1x64xf32>
    %15 = vector.broadcast %14 : vector<1x64xf32> to vector<16x64xf32>
    %16 = arith.addf %12, %15 : vector<16x64xf32>
    %c0_17 = arith.constant 0 : index
    %c0_18 = arith.constant 0 : index
    %c0_19 = arith.constant 0 : index
    %17 = vector.load %arg7[%c0_17, %c0_18, %c0_19] : memref<2x128x64xbf16, #tpu.memory_space<vmem>>, vector<1x128x64xbf16>
    %18 = vector.shape_cast %17 : vector<1x128x64xbf16> to vector<128x64xbf16>
    %cst_20 = arith.constant dense<0.000000e+00> : vector<16x64xf32>
    %19 = tpu.matmul %9, %18, %cst_20 {dimension_numbers = #tpu.dot_dimension_numbers<[1], [0], [0], [1], [0, 0, 1, 1], [], []>} : vector<16x128xbf16>, vector<128x64xbf16>, vector<16x64xf32> -> vector<16x64xf32>
    %c0_21 = arith.constant 0 : index
    %c0_22 = arith.constant 0 : index
    %c0_23 = arith.constant 0 : index
    %20 = vector.load %arg8[%c0_21, %c0_22, %c0_23] : memref<2x1x64xf32, #tpu.memory_space<vmem>>, vector<1x1x64xf32>
    %21 = vector.shape_cast %20 : vector<1x1x64xf32> to vector<1x64xf32>
    %22 = vector.broadcast %21 : vector<1x64xf32> to vector<16x64xf32>
    %23 = arith.addf %19, %22 : vector<16x64xf32>
    %c0_24 = arith.constant 0 : index
    %c0_25 = arith.constant 0 : index
    %c0_26 = arith.constant 0 : index
    %24 = vector.load %arg9[%c0_24, %c0_25, %c0_26] : memref<2x128x64xbf16, #tpu.memory_space<vmem>>, vector<1x128x64xbf16>
    %25 = vector.shape_cast %24 : vector<1x128x64xbf16> to vector<128x64xbf16>
    %cst_27 = arith.constant dense<0.000000e+00> : vector<16x64xf32>
    %26 = tpu.matmul %9, %25, %cst_27 {dimension_numbers = #tpu.dot_dimension_numbers<[1], [0], [0], [1], [0, 0, 1, 1], [], []>} : vector<16x128xbf16>, vector<128x64xbf16>, vector<16x64xf32> -> vector<16x64xf32>
    %c0_28 = arith.constant 0 : index
    %c0_29 = arith.constant 0 : index
    %c0_30 = arith.constant 0 : index
    %27 = vector.load %arg10[%c0_28, %c0_29, %c0_30] : memref<2x1x64xf32, #tpu.memory_space<vmem>>, vector<1x1x64xf32>
    %28 = vector.shape_cast %27 : vector<1x1x64xf32> to vector<1x64xf32>
    %29 = vector.broadcast %28 : vector<1x64xf32> to vector<16x64xf32>
    %30 = arith.addf %26, %29 : vector<16x64xf32>
    %31 = arith.truncf %16 : vector<16x64xf32> to vector<16x64xbf16>
    %32 = arith.truncf %23 : vector<16x64xf32> to vector<16x64xbf16>
    %cst_31 = arith.constant dense<0.000000e+00> : vector<16x16xf32>
    %33 = tpu.matmul %31, %32, %cst_31 {dimension_numbers = #tpu.dot_dimension_numbers<[1], [1], [0], [0], [0, 0, 1, 0], [], []>} : vector<16x64xbf16>, vector<16x64xbf16>, vector<16x16xf32> -> vector<16x16xf32>
    %cst_32 = arith.constant 1.250000e-01 : f32
    %34 = vector.broadcast %cst_32 : f32 to vector<16x16xf32>
    %35 = arith.mulf %33, %34 : vector<16x16xf32>
    %36 = vector.broadcast %5 : vector<1x16xf32> to vector<16x16xf32>
    %37 = arith.addf %35, %36 : vector<16x16xf32>
    %cst_33 = arith.constant dense<0xFF800000> : vector<16xf32>
    %38 = vector.multi_reduction <maximumf>, %37, %cst_33 [1] : vector<16x16xf32> to vector<16xf32>
    %39 = vector.shape_cast %38 : vector<16xf32> to vector<16x1xf32>
    %40 = vector.broadcast %39 : vector<16x1xf32> to vector<16x16xf32>
    %41 = arith.subf %37, %40 : vector<16x16xf32>
    %42 = math.exp %41 : vector<16x16xf32>
    %cst_34 = arith.constant dense<0.000000e+00> : vector<16xf32>
    %43 = vector.multi_reduction <add>, %42, %cst_34 [1] : vector<16x16xf32> to vector<16xf32>
    %44 = vector.shape_cast %43 : vector<16xf32> to vector<16x1xf32>
    %45 = tpu.reciprocal %44 {approx = true} : vector<16x1xf32> -> vector<16x1xf32>
    %46 = vector.broadcast %45 : vector<16x1xf32> to vector<16x16xf32>
    %47 = arith.mulf %42, %46 : vector<16x16xf32>
    %48 = arith.truncf %47 : vector<16x16xf32> to vector<16x16xbf16>
    %49 = arith.truncf %30 : vector<16x64xf32> to vector<16x64xbf16>
    %cst_35 = arith.constant dense<0.000000e+00> : vector<16x64xf32>
    %50 = tpu.matmul %48, %49, %cst_35 {dimension_numbers = #tpu.dot_dimension_numbers<[1], [0], [0], [1], [0, 0, 1, 1], [], []>} : vector<16x16xbf16>, vector<16x64xbf16>, vector<16x64xf32> -> vector<16x64xf32>
    %51 = arith.truncf %50 : vector<16x64xf32> to vector<16x64xbf16>
    %c0_36 = arith.constant 0 : index
    %c0_37 = arith.constant 0 : index
    %c0_38 = arith.constant 0 : index
    %52 = vector.load %arg11[%c0_36, %c0_37, %c0_38] : memref<2x64x128xbf16, #tpu.memory_space<vmem>>, vector<1x64x128xbf16>
    %53 = vector.shape_cast %52 : vector<1x64x128xbf16> to vector<64x128xbf16>
    %cst_39 = arith.constant dense<0.000000e+00> : vector<16x128xf32>
    %54 = tpu.matmul %51, %53, %cst_39 {dimension_numbers = #tpu.dot_dimension_numbers<[1], [0], [0], [1], [0, 0, 1, 1], [], []>} : vector<16x64xbf16>, vector<64x128xbf16>, vector<16x128xf32> -> vector<16x128xf32>
    %c1 = arith.constant 1 : index
    %c0_40 = arith.constant 0 : index
    %c0_41 = arith.constant 0 : index
    %55 = vector.load %arg5[%c1, %c0_40, %c0_41] : memref<2x128x64xbf16, #tpu.memory_space<vmem>>, vector<1x128x64xbf16>
    %56 = vector.shape_cast %55 : vector<1x128x64xbf16> to vector<128x64xbf16>
    %cst_42 = arith.constant dense<0.000000e+00> : vector<16x64xf32>
    %57 = tpu.matmul %8, %56, %cst_42 {dimension_numbers = #tpu.dot_dimension_numbers<[1], [0], [0], [1], [0, 0, 1, 1], [], []>} : vector<16x128xbf16>, vector<128x64xbf16>, vector<16x64xf32> -> vector<16x64xf32>
    %c1_43 = arith.constant 1 : index
    %c0_44 = arith.constant 0 : index
    %c0_45 = arith.constant 0 : index
    %58 = vector.load %arg6[%c1_43, %c0_44, %c0_45] : memref<2x1x64xf32, #tpu.memory_space<vmem>>, vector<1x1x64xf32>
    %59 = vector.shape_cast %58 : vector<1x1x64xf32> to vector<1x64xf32>
    %60 = vector.broadcast %59 : vector<1x64xf32> to vector<16x64xf32>
    %61 = arith.addf %57, %60 : vector<16x64xf32>
    %c1_46 = arith.constant 1 : index
    %c0_47 = arith.constant 0 : index
    %c0_48 = arith.constant 0 : index
    %62 = vector.load %arg7[%c1_46, %c0_47, %c0_48] : memref<2x128x64xbf16, #tpu.memory_space<vmem>>, vector<1x128x64xbf16>
    %63 = vector.shape_cast %62 : vector<1x128x64xbf16> to vector<128x64xbf16>
    %cst_49 = arith.constant dense<0.000000e+00> : vector<16x64xf32>
    %64 = tpu.matmul %9, %63, %cst_49 {dimension_numbers = #tpu.dot_dimension_numbers<[1], [0], [0], [1], [0, 0, 1, 1], [], []>} : vector<16x128xbf16>, vector<128x64xbf16>, vector<16x64xf32> -> vector<16x64xf32>
    %c1_50 = arith.constant 1 : index
    %c0_51 = arith.constant 0 : index
    %c0_52 = arith.constant 0 : index
    %65 = vector.load %arg8[%c1_50, %c0_51, %c0_52] : memref<2x1x64xf32, #tpu.memory_space<vmem>>, vector<1x1x64xf32>
    %66 = vector.shape_cast %65 : vector<1x1x64xf32> to vector<1x64xf32>
    %67 = vector.broadcast %66 : vector<1x64xf32> to vector<16x64xf32>
    %68 = arith.addf %64, %67 : vector<16x64xf32>
    %c1_53 = arith.constant 1 : index
    %c0_54 = arith.constant 0 : index
    %c0_55 = arith.constant 0 : index
    %69 = vector.load %arg9[%c1_53, %c0_54, %c0_55] : memref<2x128x64xbf16, #tpu.memory_space<vmem>>, vector<1x128x64xbf16>
    %70 = vector.shape_cast %69 : vector<1x128x64xbf16> to vector<128x64xbf16>
    %cst_56 = arith.constant dense<0.000000e+00> : vector<16x64xf32>
    %71 = tpu.matmul %9, %70, %cst_56 {dimension_numbers = #tpu.dot_dimension_numbers<[1], [0], [0], [1], [0, 0, 1, 1], [], []>} : vector<16x128xbf16>, vector<128x64xbf16>, vector<16x64xf32> -> vector<16x64xf32>
    %c1_57 = arith.constant 1 : index
    %c0_58 = arith.constant 0 : index
    %c0_59 = arith.constant 0 : index
    %72 = vector.load %arg10[%c1_57, %c0_58, %c0_59] : memref<2x1x64xf32, #tpu.memory_space<vmem>>, vector<1x1x64xf32>
    %73 = vector.shape_cast %72 : vector<1x1x64xf32> to vector<1x64xf32>
    %74 = vector.broadcast %73 : vector<1x64xf32> to vector<16x64xf32>
    %75 = arith.addf %71, %74 : vector<16x64xf32>
    %76 = arith.truncf %61 : vector<16x64xf32> to vector<16x64xbf16>
    %77 = arith.truncf %68 : vector<16x64xf32> to vector<16x64xbf16>
    %cst_60 = arith.constant dense<0.000000e+00> : vector<16x16xf32>
    %78 = tpu.matmul %76, %77, %cst_60 {dimension_numbers = #tpu.dot_dimension_numbers<[1], [1], [0], [0], [0, 0, 1, 0], [], []>} : vector<16x64xbf16>, vector<16x64xbf16>, vector<16x16xf32> -> vector<16x16xf32>
    %cst_61 = arith.constant 1.250000e-01 : f32
    %79 = vector.broadcast %cst_61 : f32 to vector<16x16xf32>
    %80 = arith.mulf %78, %79 : vector<16x16xf32>
    %81 = vector.broadcast %5 : vector<1x16xf32> to vector<16x16xf32>
    %82 = arith.addf %80, %81 : vector<16x16xf32>
    %cst_62 = arith.constant dense<0xFF800000> : vector<16xf32>
    %83 = vector.multi_reduction <maximumf>, %82, %cst_62 [1] : vector<16x16xf32> to vector<16xf32>
    %84 = vector.shape_cast %83 : vector<16xf32> to vector<16x1xf32>
    %85 = vector.broadcast %84 : vector<16x1xf32> to vector<16x16xf32>
    %86 = arith.subf %82, %85 : vector<16x16xf32>
    %87 = math.exp %86 : vector<16x16xf32>
    %cst_63 = arith.constant dense<0.000000e+00> : vector<16xf32>
    %88 = vector.multi_reduction <add>, %87, %cst_63 [1] : vector<16x16xf32> to vector<16xf32>
    %89 = vector.shape_cast %88 : vector<16xf32> to vector<16x1xf32>
    %90 = tpu.reciprocal %89 {approx = true} : vector<16x1xf32> -> vector<16x1xf32>
    %91 = vector.broadcast %90 : vector<16x1xf32> to vector<16x16xf32>
    %92 = arith.mulf %87, %91 : vector<16x16xf32>
    %93 = arith.truncf %92 : vector<16x16xf32> to vector<16x16xbf16>
    %94 = arith.truncf %75 : vector<16x64xf32> to vector<16x64xbf16>
    %cst_64 = arith.constant dense<0.000000e+00> : vector<16x64xf32>
    %95 = tpu.matmul %93, %94, %cst_64 {dimension_numbers = #tpu.dot_dimension_numbers<[1], [0], [0], [1], [0, 0, 1, 1], [], []>} : vector<16x16xbf16>, vector<16x64xbf16>, vector<16x64xf32> -> vector<16x64xf32>
    %96 = arith.truncf %95 : vector<16x64xf32> to vector<16x64xbf16>
    %c1_65 = arith.constant 1 : index
    %c0_66 = arith.constant 0 : index
    %c0_67 = arith.constant 0 : index
    %97 = vector.load %arg11[%c1_65, %c0_66, %c0_67] : memref<2x64x128xbf16, #tpu.memory_space<vmem>>, vector<1x64x128xbf16>
    %98 = vector.shape_cast %97 : vector<1x64x128xbf16> to vector<64x128xbf16>
    %cst_68 = arith.constant dense<0.000000e+00> : vector<16x128xf32>
    %99 = tpu.matmul %96, %98, %cst_68 {dimension_numbers = #tpu.dot_dimension_numbers<[1], [0], [0], [1], [0, 0, 1, 1], [], []>} : vector<16x64xbf16>, vector<64x128xbf16>, vector<16x128xf32> -> vector<16x128xf32>
    %100 = arith.addf %54, %99 : vector<16x128xf32>
    %c0_69 = arith.constant 0 : index
    %c0_70 = arith.constant 0 : index
    %101 = vector.load %arg12[%c0_69, %c0_70] : memref<1x128xf32, #tpu.memory_space<vmem>>, vector<1x128xf32>
    %102 = vector.broadcast %101 : vector<1x128xf32> to vector<16x128xf32>
    %103 = arith.addf %100, %102 : vector<16x128xf32>
    %104 = arith.addf %1, %103 : vector<16x128xf32>
    %c0_71 = arith.constant 0 : index
    %c0_72 = arith.constant 0 : index
    %105 = vector.load %arg13[%c0_71, %c0_72] : memref<1x128xf32, #tpu.memory_space<vmem>>, vector<1x128xf32>
    %c0_73 = arith.constant 0 : index
    %c0_74 = arith.constant 0 : index
    %106 = vector.load %arg14[%c0_73, %c0_74] : memref<1x128xf32, #tpu.memory_space<vmem>>, vector<1x128xf32>
    %cst_75 = arith.constant dense<0.000000e+00> : vector<16xf32>
    %107 = vector.multi_reduction <add>, %104, %cst_75 [1] : vector<16x128xf32> to vector<16xf32>
    %108 = vector.shape_cast %107 : vector<16xf32> to vector<16x1xf32>
    %cst_76 = arith.constant 1.280000e+02 : f32
    %109 = vector.broadcast %cst_76 : f32 to vector<16x1xf32>
    %110 = arith.divf %108, %109 : vector<16x1xf32>
    %111 = vector.broadcast %110 : vector<16x1xf32> to vector<16x128xf32>
    %112 = arith.subf %104, %111 : vector<16x128xf32>
    %113 = arith.mulf %112, %112 : vector<16x128xf32>
    %cst_77 = arith.constant dense<0.000000e+00> : vector<16xf32>
    %114 = vector.multi_reduction <add>, %113, %cst_77 [1] : vector<16x128xf32> to vector<16xf32>
    %115 = vector.shape_cast %114 : vector<16xf32> to vector<16x1xf32>
    %cst_78 = arith.constant 0.00787401571 : f32
    %116 = vector.broadcast %cst_78 : f32 to vector<16x1xf32>
    %117 = arith.mulf %115, %116 : vector<16x1xf32>
    %118 = math.sqrt %117 : vector<16x1xf32>
    %119 = vector.broadcast %105 : vector<1x128xf32> to vector<16x128xf32>
    %120 = arith.mulf %119, %112 : vector<16x128xf32>
    %cst_79 = arith.constant 9.99999997E-7 : f32
    %121 = vector.broadcast %cst_79 : f32 to vector<16x1xf32>
    %122 = arith.addf %118, %121 : vector<16x1xf32>
    %123 = tpu.reciprocal %122 {approx = true} : vector<16x1xf32> -> vector<16x1xf32>
    %124 = vector.broadcast %123 : vector<16x1xf32> to vector<16x128xf32>
    %125 = arith.mulf %120, %124 : vector<16x128xf32>
    %126 = vector.broadcast %106 : vector<1x128xf32> to vector<16x128xf32>
    %127 = arith.addf %125, %126 : vector<16x128xf32>
    %128 = arith.truncf %127 : vector<16x128xf32> to vector<16x128xbf16>
    %129 = arith.truncf %3 : vector<8x128xf32> to vector<8x128xbf16>
    %c0_80 = arith.constant 0 : index
    %c0_81 = arith.constant 0 : index
    %c0_82 = arith.constant 0 : index
    %130 = vector.load %arg15[%c0_80, %c0_81, %c0_82] : memref<2x128x64xbf16, #tpu.memory_space<vmem>>, vector<1x128x64xbf16>
    %131 = vector.shape_cast %130 : vector<1x128x64xbf16> to vector<128x64xbf16>
    %cst_83 = arith.constant dense<0.000000e+00> : vector<16x64xf32>
    %132 = tpu.matmul %128, %131, %cst_83 {dimension_numbers = #tpu.dot_dimension_numbers<[1], [0], [0], [1], [0, 0, 1, 1], [], []>} : vector<16x128xbf16>, vector<128x64xbf16>, vector<16x64xf32> -> vector<16x64xf32>
    %c0_84 = arith.constant 0 : index
    %c0_85 = arith.constant 0 : index
    %c0_86 = arith.constant 0 : index
    %133 = vector.load %arg16[%c0_84, %c0_85, %c0_86] : memref<2x1x64xf32, #tpu.memory_space<vmem>>, vector<1x1x64xf32>
    %134 = vector.shape_cast %133 : vector<1x1x64xf32> to vector<1x64xf32>
    %135 = vector.broadcast %134 : vector<1x64xf32> to vector<16x64xf32>
    %136 = arith.addf %132, %135 : vector<16x64xf32>
    %c0_87 = arith.constant 0 : index
    %c0_88 = arith.constant 0 : index
    %c0_89 = arith.constant 0 : index
    %137 = vector.load %arg17[%c0_87, %c0_88, %c0_89] : memref<2x128x64xbf16, #tpu.memory_space<vmem>>, vector<1x128x64xbf16>
    %138 = vector.shape_cast %137 : vector<1x128x64xbf16> to vector<128x64xbf16>
    %cst_90 = arith.constant dense<0.000000e+00> : vector<8x64xf32>
    %139 = tpu.matmul %129, %138, %cst_90 {dimension_numbers = #tpu.dot_dimension_numbers<[1], [0], [0], [1], [0, 0, 1, 1], [], []>} : vector<8x128xbf16>, vector<128x64xbf16>, vector<8x64xf32> -> vector<8x64xf32>
    %c0_91 = arith.constant 0 : index
    %c0_92 = arith.constant 0 : index
    %c0_93 = arith.constant 0 : index
    %140 = vector.load %arg18[%c0_91, %c0_92, %c0_93] : memref<2x1x64xf32, #tpu.memory_space<vmem>>, vector<1x1x64xf32>
    %141 = vector.shape_cast %140 : vector<1x1x64xf32> to vector<1x64xf32>
    %142 = vector.broadcast %141 : vector<1x64xf32> to vector<8x64xf32>
    %143 = arith.addf %139, %142 : vector<8x64xf32>
    %c0_94 = arith.constant 0 : index
    %c0_95 = arith.constant 0 : index
    %c0_96 = arith.constant 0 : index
    %144 = vector.load %arg19[%c0_94, %c0_95, %c0_96] : memref<2x128x64xbf16, #tpu.memory_space<vmem>>, vector<1x128x64xbf16>
    %145 = vector.shape_cast %144 : vector<1x128x64xbf16> to vector<128x64xbf16>
    %cst_97 = arith.constant dense<0.000000e+00> : vector<8x64xf32>
    %146 = tpu.matmul %129, %145, %cst_97 {dimension_numbers = #tpu.dot_dimension_numbers<[1], [0], [0], [1], [0, 0, 1, 1], [], []>} : vector<8x128xbf16>, vector<128x64xbf16>, vector<8x64xf32> -> vector<8x64xf32>
    %c0_98 = arith.constant 0 : index
    %c0_99 = arith.constant 0 : index
    %c0_100 = arith.constant 0 : index
    %147 = vector.load %arg20[%c0_98, %c0_99, %c0_100] : memref<2x1x64xf32, #tpu.memory_space<vmem>>, vector<1x1x64xf32>
    %148 = vector.shape_cast %147 : vector<1x1x64xf32> to vector<1x64xf32>
    %149 = vector.broadcast %148 : vector<1x64xf32> to vector<8x64xf32>
    %150 = arith.addf %146, %149 : vector<8x64xf32>
    %151 = arith.truncf %136 : vector<16x64xf32> to vector<16x64xbf16>
    %152 = arith.truncf %143 : vector<8x64xf32> to vector<8x64xbf16>
    %cst_101 = arith.constant dense<0.000000e+00> : vector<16x8xf32>
    %153 = tpu.matmul %151, %152, %cst_101 {dimension_numbers = #tpu.dot_dimension_numbers<[1], [1], [0], [0], [0, 0, 1, 0], [], []>} : vector<16x64xbf16>, vector<8x64xbf16>, vector<16x8xf32> -> vector<16x8xf32>
    %cst_102 = arith.constant 1.250000e-01 : f32
    %154 = vector.broadcast %cst_102 : f32 to vector<16x8xf32>
    %155 = arith.mulf %153, %154 : vector<16x8xf32>
    %156 = vector.broadcast %7 : vector<1x8xf32> to vector<16x8xf32>
    %157 = arith.addf %155, %156 : vector<16x8xf32>
    %cst_103 = arith.constant dense<0xFF800000> : vector<16xf32>
    %158 = vector.multi_reduction <maximumf>, %157, %cst_103 [1] : vector<16x8xf32> to vector<16xf32>
    %159 = vector.shape_cast %158 : vector<16xf32> to vector<16x1xf32>
    %160 = vector.broadcast %159 : vector<16x1xf32> to vector<16x8xf32>
    %161 = arith.subf %157, %160 : vector<16x8xf32>
    %162 = math.exp %161 : vector<16x8xf32>
    %cst_104 = arith.constant dense<0.000000e+00> : vector<16xf32>
    %163 = vector.multi_reduction <add>, %162, %cst_104 [1] : vector<16x8xf32> to vector<16xf32>
    %164 = vector.shape_cast %163 : vector<16xf32> to vector<16x1xf32>
    %165 = tpu.reciprocal %164 {approx = true} : vector<16x1xf32> -> vector<16x1xf32>
    %166 = vector.broadcast %165 : vector<16x1xf32> to vector<16x8xf32>
    %167 = arith.mulf %162, %166 : vector<16x8xf32>
    %168 = arith.truncf %167 : vector<16x8xf32> to vector<16x8xbf16>
    %169 = arith.truncf %150 : vector<8x64xf32> to vector<8x64xbf16>
    %cst_105 = arith.constant dense<0.000000e+00> : vector<16x64xf32>
    %170 = tpu.matmul %168, %169, %cst_105 {dimension_numbers = #tpu.dot_dimension_numbers<[1], [0], [0], [1], [0, 0, 1, 1], [], []>} : vector<16x8xbf16>, vector<8x64xbf16>, vector<16x64xf32> -> vector<16x64xf32>
    %171 = arith.truncf %170 : vector<16x64xf32> to vector<16x64xbf16>
    %c0_106 = arith.constant 0 : index
    %c0_107 = arith.constant 0 : index
    %c0_108 = arith.constant 0 : index
    %172 = vector.load %arg21[%c0_106, %c0_107, %c0_108] : memref<2x64x128xbf16, #tpu.memory_space<vmem>>, vector<1x64x128xbf16>
    %173 = vector.shape_cast %172 : vector<1x64x128xbf16> to vector<64x128xbf16>
    %cst_109 = arith.constant dense<0.000000e+00> : vector<16x128xf32>
    %174 = tpu.matmul %171, %173, %cst_109 {dimension_numbers = #tpu.dot_dimension_numbers<[1], [0], [0], [1], [0, 0, 1, 1], [], []>} : vector<16x64xbf16>, vector<64x128xbf16>, vector<16x128xf32> -> vector<16x128xf32>
    %c1_110 = arith.constant 1 : index
    %c0_111 = arith.constant 0 : index
    %c0_112 = arith.constant 0 : index
    %175 = vector.load %arg15[%c1_110, %c0_111, %c0_112] : memref<2x128x64xbf16, #tpu.memory_space<vmem>>, vector<1x128x64xbf16>
    %176 = vector.shape_cast %175 : vector<1x128x64xbf16> to vector<128x64xbf16>
    %cst_113 = arith.constant dense<0.000000e+00> : vector<16x64xf32>
    %177 = tpu.matmul %128, %176, %cst_113 {dimension_numbers = #tpu.dot_dimension_numbers<[1], [0], [0], [1], [0, 0, 1, 1], [], []>} : vector<16x128xbf16>, vector<128x64xbf16>, vector<16x64xf32> -> vector<16x64xf32>
    %c1_114 = arith.constant 1 : index
    %c0_115 = arith.constant 0 : index
    %c0_116 = arith.constant 0 : index
    %178 = vector.load %arg16[%c1_114, %c0_115, %c0_116] : memref<2x1x64xf32, #tpu.memory_space<vmem>>, vector<1x1x64xf32>
    %179 = vector.shape_cast %178 : vector<1x1x64xf32> to vector<1x64xf32>
    %180 = vector.broadcast %179 : vector<1x64xf32> to vector<16x64xf32>
    %181 = arith.addf %177, %180 : vector<16x64xf32>
    %c1_117 = arith.constant 1 : index
    %c0_118 = arith.constant 0 : index
    %c0_119 = arith.constant 0 : index
    %182 = vector.load %arg17[%c1_117, %c0_118, %c0_119] : memref<2x128x64xbf16, #tpu.memory_space<vmem>>, vector<1x128x64xbf16>
    %183 = vector.shape_cast %182 : vector<1x128x64xbf16> to vector<128x64xbf16>
    %cst_120 = arith.constant dense<0.000000e+00> : vector<8x64xf32>
    %184 = tpu.matmul %129, %183, %cst_120 {dimension_numbers = #tpu.dot_dimension_numbers<[1], [0], [0], [1], [0, 0, 1, 1], [], []>} : vector<8x128xbf16>, vector<128x64xbf16>, vector<8x64xf32> -> vector<8x64xf32>
    %c1_121 = arith.constant 1 : index
    %c0_122 = arith.constant 0 : index
    %c0_123 = arith.constant 0 : index
    %185 = vector.load %arg18[%c1_121, %c0_122, %c0_123] : memref<2x1x64xf32, #tpu.memory_space<vmem>>, vector<1x1x64xf32>
    %186 = vector.shape_cast %185 : vector<1x1x64xf32> to vector<1x64xf32>
    %187 = vector.broadcast %186 : vector<1x64xf32> to vector<8x64xf32>
    %188 = arith.addf %184, %187 : vector<8x64xf32>
    %c1_124 = arith.constant 1 : index
    %c0_125 = arith.constant 0 : index
    %c0_126 = arith.constant 0 : index
    %189 = vector.load %arg19[%c1_124, %c0_125, %c0_126] : memref<2x128x64xbf16, #tpu.memory_space<vmem>>, vector<1x128x64xbf16>
    %190 = vector.shape_cast %189 : vector<1x128x64xbf16> to vector<128x64xbf16>
    %cst_127 = arith.constant dense<0.000000e+00> : vector<8x64xf32>
    %191 = tpu.matmul %129, %190, %cst_127 {dimension_numbers = #tpu.dot_dimension_numbers<[1], [0], [0], [1], [0, 0, 1, 1], [], []>} : vector<8x128xbf16>, vector<128x64xbf16>, vector<8x64xf32> -> vector<8x64xf32>
    %c1_128 = arith.constant 1 : index
    %c0_129 = arith.constant 0 : index
    %c0_130 = arith.constant 0 : index
    %192 = vector.load %arg20[%c1_128, %c0_129, %c0_130] : memref<2x1x64xf32, #tpu.memory_space<vmem>>, vector<1x1x64xf32>
    %193 = vector.shape_cast %192 : vector<1x1x64xf32> to vector<1x64xf32>
    %194 = vector.broadcast %193 : vector<1x64xf32> to vector<8x64xf32>
    %195 = arith.addf %191, %194 : vector<8x64xf32>
    %196 = arith.truncf %181 : vector<16x64xf32> to vector<16x64xbf16>
    %197 = arith.truncf %188 : vector<8x64xf32> to vector<8x64xbf16>
    %cst_131 = arith.constant dense<0.000000e+00> : vector<16x8xf32>
    %198 = tpu.matmul %196, %197, %cst_131 {dimension_numbers = #tpu.dot_dimension_numbers<[1], [1], [0], [0], [0, 0, 1, 0], [], []>} : vector<16x64xbf16>, vector<8x64xbf16>, vector<16x8xf32> -> vector<16x8xf32>
    %cst_132 = arith.constant 1.250000e-01 : f32
    %199 = vector.broadcast %cst_132 : f32 to vector<16x8xf32>
    %200 = arith.mulf %198, %199 : vector<16x8xf32>
    %201 = vector.broadcast %7 : vector<1x8xf32> to vector<16x8xf32>
    %202 = arith.addf %200, %201 : vector<16x8xf32>
    %cst_133 = arith.constant dense<0xFF800000> : vector<16xf32>
    %203 = vector.multi_reduction <maximumf>, %202, %cst_133 [1] : vector<16x8xf32> to vector<16xf32>
    %204 = vector.shape_cast %203 : vector<16xf32> to vector<16x1xf32>
    %205 = vector.broadcast %204 : vector<16x1xf32> to vector<16x8xf32>
    %206 = arith.subf %202, %205 : vector<16x8xf32>
    %207 = math.exp %206 : vector<16x8xf32>
    %cst_134 = arith.constant dense<0.000000e+00> : vector<16xf32>
    %208 = vector.multi_reduction <add>, %207, %cst_134 [1] : vector<16x8xf32> to vector<16xf32>
    %209 = vector.shape_cast %208 : vector<16xf32> to vector<16x1xf32>
    %210 = tpu.reciprocal %209 {approx = true} : vector<16x1xf32> -> vector<16x1xf32>
    %211 = vector.broadcast %210 : vector<16x1xf32> to vector<16x8xf32>
    %212 = arith.mulf %207, %211 : vector<16x8xf32>
    %213 = arith.truncf %212 : vector<16x8xf32> to vector<16x8xbf16>
    %214 = arith.truncf %195 : vector<8x64xf32> to vector<8x64xbf16>
    %cst_135 = arith.constant dense<0.000000e+00> : vector<16x64xf32>
    %215 = tpu.matmul %213, %214, %cst_135 {dimension_numbers = #tpu.dot_dimension_numbers<[1], [0], [0], [1], [0, 0, 1, 1], [], []>} : vector<16x8xbf16>, vector<8x64xbf16>, vector<16x64xf32> -> vector<16x64xf32>
    %216 = arith.truncf %215 : vector<16x64xf32> to vector<16x64xbf16>
    %c1_136 = arith.constant 1 : index
    %c0_137 = arith.constant 0 : index
    %c0_138 = arith.constant 0 : index
    %217 = vector.load %arg21[%c1_136, %c0_137, %c0_138] : memref<2x64x128xbf16, #tpu.memory_space<vmem>>, vector<1x64x128xbf16>
    %218 = vector.shape_cast %217 : vector<1x64x128xbf16> to vector<64x128xbf16>
    %cst_139 = arith.constant dense<0.000000e+00> : vector<16x128xf32>
    %219 = tpu.matmul %216, %218, %cst_139 {dimension_numbers = #tpu.dot_dimension_numbers<[1], [0], [0], [1], [0, 0, 1, 1], [], []>} : vector<16x64xbf16>, vector<64x128xbf16>, vector<16x128xf32> -> vector<16x128xf32>
    %220 = arith.addf %174, %219 : vector<16x128xf32>
    %c0_140 = arith.constant 0 : index
    %c0_141 = arith.constant 0 : index
    %221 = vector.load %arg22[%c0_140, %c0_141] : memref<1x128xf32, #tpu.memory_space<vmem>>, vector<1x128xf32>
    %222 = vector.broadcast %221 : vector<1x128xf32> to vector<16x128xf32>
    %223 = arith.addf %220, %222 : vector<16x128xf32>
    %224 = arith.addf %127, %223 : vector<16x128xf32>
    %c0_142 = arith.constant 0 : index
    %c0_143 = arith.constant 0 : index
    %225 = vector.load %arg23[%c0_142, %c0_143] : memref<1x128xf32, #tpu.memory_space<vmem>>, vector<1x128xf32>
    %c0_144 = arith.constant 0 : index
    %c0_145 = arith.constant 0 : index
    %226 = vector.load %arg24[%c0_144, %c0_145] : memref<1x128xf32, #tpu.memory_space<vmem>>, vector<1x128xf32>
    %cst_146 = arith.constant dense<0.000000e+00> : vector<16xf32>
    %227 = vector.multi_reduction <add>, %224, %cst_146 [1] : vector<16x128xf32> to vector<16xf32>
    %228 = vector.shape_cast %227 : vector<16xf32> to vector<16x1xf32>
    %cst_147 = arith.constant 1.280000e+02 : f32
    %229 = vector.broadcast %cst_147 : f32 to vector<16x1xf32>
    %230 = arith.divf %228, %229 : vector<16x1xf32>
    %231 = vector.broadcast %230 : vector<16x1xf32> to vector<16x128xf32>
    %232 = arith.subf %224, %231 : vector<16x128xf32>
    %233 = arith.mulf %232, %232 : vector<16x128xf32>
    %cst_148 = arith.constant dense<0.000000e+00> : vector<16xf32>
    %234 = vector.multi_reduction <add>, %233, %cst_148 [1] : vector<16x128xf32> to vector<16xf32>
    %235 = vector.shape_cast %234 : vector<16xf32> to vector<16x1xf32>
    %cst_149 = arith.constant 0.00787401571 : f32
    %236 = vector.broadcast %cst_149 : f32 to vector<16x1xf32>
    %237 = arith.mulf %235, %236 : vector<16x1xf32>
    %238 = math.sqrt %237 : vector<16x1xf32>
    %239 = vector.broadcast %225 : vector<1x128xf32> to vector<16x128xf32>
    %240 = arith.mulf %239, %232 : vector<16x128xf32>
    %cst_150 = arith.constant 9.99999997E-7 : f32
    %241 = vector.broadcast %cst_150 : f32 to vector<16x1xf32>
    %242 = arith.addf %238, %241 : vector<16x1xf32>
    %243 = tpu.reciprocal %242 {approx = true} : vector<16x1xf32> -> vector<16x1xf32>
    %244 = vector.broadcast %243 : vector<16x1xf32> to vector<16x128xf32>
    %245 = arith.mulf %240, %244 : vector<16x128xf32>
    %246 = vector.broadcast %226 : vector<1x128xf32> to vector<16x128xf32>
    %247 = arith.addf %245, %246 : vector<16x128xf32>
    %248 = arith.truncf %247 : vector<16x128xf32> to vector<16x128xbf16>
    %c0_151 = arith.constant 0 : index
    %c0_152 = arith.constant 0 : index
    %249 = vector.load %arg25[%c0_151, %c0_152] : memref<128x256xbf16, #tpu.memory_space<vmem>>, vector<128x256xbf16>
    %cst_153 = arith.constant dense<0.000000e+00> : vector<16x256xf32>
    %250 = tpu.matmul %248, %249, %cst_153 {dimension_numbers = #tpu.dot_dimension_numbers<[1], [0], [0], [1], [0, 0, 1, 1], [], []>} : vector<16x128xbf16>, vector<128x256xbf16>, vector<16x256xf32> -> vector<16x256xf32>
    %c0_154 = arith.constant 0 : index
    %c0_155 = arith.constant 0 : index
    %251 = vector.load %arg26[%c0_154, %c0_155] : memref<1x256xf32, #tpu.memory_space<vmem>>, vector<1x256xf32>
    %252 = vector.broadcast %251 : vector<1x256xf32> to vector<16x256xf32>
    %253 = arith.addf %250, %252 : vector<16x256xf32>
    %cst_156 = arith.constant 0.000000e+00 : f32
    %254 = vector.broadcast %cst_156 : f32 to vector<16x256xf32>
    %255 = arith.maximumf %253, %254 : vector<16x256xf32>
    %256 = arith.truncf %255 : vector<16x256xf32> to vector<16x256xbf16>
    %c0_157 = arith.constant 0 : index
    %c0_158 = arith.constant 0 : index
    %257 = vector.load %arg27[%c0_157, %c0_158] : memref<256x128xbf16, #tpu.memory_space<vmem>>, vector<256x128xbf16>
    %cst_159 = arith.constant dense<0.000000e+00> : vector<16x128xf32>
    %258 = tpu.matmul %256, %257, %cst_159 {dimension_numbers = #tpu.dot_dimension_numbers<[1], [0], [0], [1], [0, 0, 1, 1], [], []>} : vector<16x256xbf16>, vector<256x128xbf16>, vector<16x128xf32> -> vector<16x128xf32>
    %c0_160 = arith.constant 0 : index
    %c0_161 = arith.constant 0 : index
    %259 = vector.load %arg28[%c0_160, %c0_161] : memref<1x128xf32, #tpu.memory_space<vmem>>, vector<1x128xf32>
    %260 = vector.broadcast %259 : vector<1x128xf32> to vector<16x128xf32>
    %261 = arith.addf %258, %260 : vector<16x128xf32>
    %262 = arith.addf %247, %261 : vector<16x128xf32>
    %c0_162 = arith.constant 0 : index
    %c0_163 = arith.constant 0 : index
    %263 = vector.load %arg29[%c0_162, %c0_163] : memref<1x128xf32, #tpu.memory_space<vmem>>, vector<1x128xf32>
    %c0_164 = arith.constant 0 : index
    %c0_165 = arith.constant 0 : index
    %264 = vector.load %arg30[%c0_164, %c0_165] : memref<1x128xf32, #tpu.memory_space<vmem>>, vector<1x128xf32>
    %cst_166 = arith.constant dense<0.000000e+00> : vector<16xf32>
    %265 = vector.multi_reduction <add>, %262, %cst_166 [1] : vector<16x128xf32> to vector<16xf32>
    %266 = vector.shape_cast %265 : vector<16xf32> to vector<16x1xf32>
    %cst_167 = arith.constant 1.280000e+02 : f32
    %267 = vector.broadcast %cst_167 : f32 to vector<16x1xf32>
    %268 = arith.divf %266, %267 : vector<16x1xf32>
    %269 = vector.broadcast %268 : vector<16x1xf32> to vector<16x128xf32>
    %270 = arith.subf %262, %269 : vector<16x128xf32>
    %271 = arith.mulf %270, %270 : vector<16x128xf32>
    %cst_168 = arith.constant dense<0.000000e+00> : vector<16xf32>
    %272 = vector.multi_reduction <add>, %271, %cst_168 [1] : vector<16x128xf32> to vector<16xf32>
    %273 = vector.shape_cast %272 : vector<16xf32> to vector<16x1xf32>
    %cst_169 = arith.constant 0.00787401571 : f32
    %274 = vector.broadcast %cst_169 : f32 to vector<16x1xf32>
    %275 = arith.mulf %273, %274 : vector<16x1xf32>
    %276 = math.sqrt %275 : vector<16x1xf32>
    %277 = vector.broadcast %263 : vector<1x128xf32> to vector<16x128xf32>
    %278 = arith.mulf %277, %270 : vector<16x128xf32>
    %cst_170 = arith.constant 9.99999997E-7 : f32
    %279 = vector.broadcast %cst_170 : f32 to vector<16x1xf32>
    %280 = arith.addf %276, %279 : vector<16x1xf32>
    %281 = tpu.reciprocal %280 {approx = true} : vector<16x1xf32> -> vector<16x1xf32>
    %282 = vector.broadcast %281 : vector<16x1xf32> to vector<16x128xf32>
    %283 = arith.mulf %278, %282 : vector<16x128xf32>
    %284 = vector.broadcast %264 : vector<1x128xf32> to vector<16x128xf32>
    %285 = arith.addf %283, %284 : vector<16x128xf32>
    %c0_171 = arith.constant 0 : index
    %c0_172 = arith.constant 0 : index
    %c0_173 = arith.constant 0 : index
    %286 = vector.load %arg31[%c0_171, %c0_172, %c0_173] : memref<1x16x128xf32, #tpu.memory_space<vmem>>, vector<1x16x128xf32>
    %287 = vector.shape_cast %286 : vector<1x16x128xf32> to vector<16x128xf32>
    %288 = vector.shape_cast %285 : vector<16x128xf32> to vector<1x16x128xf32>
    tpu.vector_store %arg31[%c0_171, %c0_172, %c0_173], %288 {strides = array<i32>} : memref<1x16x128xf32, #tpu.memory_space<vmem>>, vector<1x16x128xf32>,
    return
  }
  func.func @transform_0(%arg0: i32) -> (i32, i32, i32) {
    %c0_i32 = arith.constant 0 : i32
    %c0_i32_0 = arith.constant 0 : i32
    %c0_i32_1 = arith.constant 0 : i32
    return %arg0, %c0_i32, %c0_i32_0 : i32, i32, i32
  }
  func.func @transform_1(%arg0: i32) -> (i32, i32, i32) {
    %c0_i32 = arith.constant 0 : i32
    %c0_i32_0 = arith.constant 0 : i32
    %c0_i32_1 = arith.constant 0 : i32
    return %arg0, %c0_i32, %c0_i32_0 : i32, i32, i32
  }
  func.func @transform_2(%arg0: i32) -> (i32, i32, i32) {
    %c0_i32 = arith.constant 0 : i32
    %c0_i32_0 = arith.constant 0 : i32
    %c0_i32_1 = arith.constant 0 : i32
    return %arg0, %c0_i32, %c0_i32_0 : i32, i32, i32
  }
  func.func @transform_3(%arg0: i32) -> (i32, i32, i32) {
    %c0_i32 = arith.constant 0 : i32
    %c0_i32_0 = arith.constant 0 : i32
    %c0_i32_1 = arith.constant 0 : i32
    return %arg0, %c0_i32, %c0_i32_0 : i32, i32, i32
  }
  func.func @transform_4(%arg0: i32) -> (i32, i32, i32) {
    %c0_i32 = arith.constant 0 : i32
    %c0_i32_0 = arith.constant 0 : i32
    %c0_i32_1 = arith.constant 0 : i32
    %c0_i32_2 = arith.constant 0 : i32
    return %c0_i32, %c0_i32_0, %c0_i32_1 : i32, i32, i32
  }
  func.func @transform_5(%arg0: i32) -> (i32, i32, i32) {
    %c0_i32 = arith.constant 0 : i32
    %c0_i32_0 = arith.constant 0 : i32
    %c0_i32_1 = arith.constant 0 : i32
    %c0_i32_2 = arith.constant 0 : i32
    return %c0_i32, %c0_i32_0, %c0_i32_1 : i32, i32, i32
  }
  func.func @transform_6(%arg0: i32) -> (i32, i32, i32) {
    %c0_i32 = arith.constant 0 : i32
    %c0_i32_0 = arith.constant 0 : i32
    %c0_i32_1 = arith.constant 0 : i32
    %c0_i32_2 = arith.constant 0 : i32
    return %c0_i32, %c0_i32_0, %c0_i32_1 : i32, i32, i32
  }
  func.func @transform_7(%arg0: i32) -> (i32, i32, i32) {
    %c0_i32 = arith.constant 0 : i32
    %c0_i32_0 = arith.constant 0 : i32
    %c0_i32_1 = arith.constant 0 : i32
    %c0_i32_2 = arith.constant 0 : i32
    return %c0_i32, %c0_i32_0, %c0_i32_1 : i32, i32, i32
  }
  func.func @transform_8(%arg0: i32) -> (i32, i32, i32) {
    %c0_i32 = arith.constant 0 : i32
    %c0_i32_0 = arith.constant 0 : i32
    %c0_i32_1 = arith.constant 0 : i32
    %c0_i32_2 = arith.constant 0 : i32
    return %c0_i32, %c0_i32_0, %c0_i32_1 : i32, i32, i32
  }
  func.func @transform_9(%arg0: i32) -> (i32, i32, i32) {
    %c0_i32 = arith.constant 0 : i32
    %c0_i32_0 = arith.constant 0 : i32
    %c0_i32_1 = arith.constant 0 : i32
    %c0_i32_2 = arith.constant 0 : i32
    return %c0_i32, %c0_i32_0, %c0_i32_1 : i32, i32, i32
  }
  func.func @transform_10(%arg0: i32) -> (i32, i32, i32) {
    %c0_i32 = arith.constant 0 : i32
    %c0_i32_0 = arith.constant 0 : i32
    %c0_i32_1 = arith.constant 0 : i32
    %c0_i32_2 = arith.constant 0 : i32
    return %c0_i32, %c0_i32_0, %c0_i32_1 : i32, i32, i32
  }
  func.func @transform_11(%arg0: i32) -> (i32, i32) {
    %c0_i32 = arith.constant 0 : i32
    %c0_i32_0 = arith.constant 0 : i32
    %c0_i32_1 = arith.constant 0 : i32
    return %c0_i32, %c0_i32_0 : i32, i32
  }
  func.func @transform_12(%arg0: i32) -> (i32, i32) {
    %c0_i32 = arith.constant 0 : i32
    %c0_i32_0 = arith.constant 0 : i32
    %c0_i32_1 = arith.constant 0 : i32
    return %c0_i32, %c0_i32_0 : i32, i32
  }
  func.func @transform_13(%arg0: i32) -> (i32, i32) {
    %c0_i32 = arith.constant 0 : i32
    %c0_i32_0 = arith.constant 0 : i32
    %c0_i32_1 = arith.constant 0 : i32
    return %c0_i32, %c0_i32_0 : i32, i32
  }
  func.func @transform_14(%arg0: i32) -> (i32, i32, i32) {
    %c0_i32 = arith.constant 0 : i32
    %c0_i32_0 = arith.constant 0 : i32
    %c0_i32_1 = arith.constant 0 : i32
    %c0_i32_2 = arith.constant 0 : i32
    return %c0_i32, %c0_i32_0, %c0_i32_1 : i32, i32, i32
  }
  func.func @transform_15(%arg0: i32) -> (i32, i32, i32) {
    %c0_i32 = arith.constant 0 : i32
    %c0_i32_0 = arith.constant 0 : i32
    %c0_i32_1 = arith.constant 0 : i32
    %c0_i32_2 = arith.constant 0 : i32
    return %c0_i32, %c0_i32_0, %c0_i32_1 : i32, i32, i32
  }
  func.func @transform_16(%arg0: i32) -> (i32, i32, i32) {
    %c0_i32 = arith.constant 0 : i32
    %c0_i32_0 = arith.constant 0 : i32
    %c0_i32_1 = arith.constant 0 : i32
    %c0_i32_2 = arith.constant 0 : i32
    return %c0_i32, %c0_i32_0, %c0_i32_1 : i32, i32, i32
  }
  func.func @transform_17(%arg0: i32) -> (i32, i32, i32) {
    %c0_i32 = arith.constant 0 : i32
    %c0_i32_0 = arith.constant 0 : i32
    %c0_i32_1 = arith.constant 0 : i32
    %c0_i32_2 = arith.constant 0 : i32
    return %c0_i32, %c0_i32_0, %c0_i32_1 : i32, i32, i32
  }
  func.func @transform_18(%arg0: i32) -> (i32, i32, i32) {
    %c0_i32 = arith.constant 0 : i32
    %c0_i32_0 = arith.constant 0 : i32
    %c0_i32_1 = arith.constant 0 : i32
    %c0_i32_2 = arith.constant 0 : i32
    return %c0_i32, %c0_i32_0, %c0_i32_1 : i32, i32, i32
  }
  func.func @transform_19(%arg0: i32) -> (i32, i32, i32) {
    %c0_i32 = arith.constant 0 : i32
    %c0_i32_0 = arith.constant 0 : i32
    %c0_i32_1 = arith.constant 0 : i32
    %c0_i32_2 = arith.constant 0 : i32
    return %c0_i32, %c0_i32_0, %c0_i32_1 : i32, i32, i32
  }
  func.func @transform_20(%arg0: i32) -> (i32, i32, i32) {
    %c0_i32 = arith.constant 0 : i32
    %c0_i32_0 = arith.constant 0 : i32
    %c0_i32_1 = arith.constant 0 : i32
    %c0_i32_2 = arith.constant 0 : i32
    return %c0_i32, %c0_i32_0, %c0_i32_1 : i32, i32, i32
  }
  func.func @transform_21(%arg0: i32) -> (i32, i32) {
    %c0_i32 = arith.constant 0 : i32
    %c0_i32_0 = arith.constant 0 : i32
    %c0_i32_1 = arith.constant 0 : i32
    return %c0_i32, %c0_i32_0 : i32, i32
  }
  func.func @transform_22(%arg0: i32) -> (i32, i32) {
    %c0_i32 = arith.constant 0 : i32
    %c0_i32_0 = arith.constant 0 : i32
    %c0_i32_1 = arith.constant 0 : i32
    return %c0_i32, %c0_i32_0 : i32, i32
  }
  func.func @transform_23(%arg0: i32) -> (i32, i32) {
    %c0_i32 = arith.constant 0 : i32
    %c0_i32_0 = arith.constant 0 : i32
    %c0_i32_1 = arith.constant 0 : i32
    return %c0_i32, %c0_i32_0 : i32, i32
  }
  func.func @transform_24(%arg0: i32) -> (i32, i32) {
    %c0_i32 = arith.constant 0 : i32
    %c0_i32_0 = arith.constant 0 : i32
    %c0_i32_1 = arith.constant 0 : i32
    return %c0_i32, %c0_i32_0 : i32, i32
  }
  func.func @transform_25(%arg0: i32) -> (i32, i32) {
    %c0_i32 = arith.constant 0 : i32
    %c0_i32_0 = arith.constant 0 : i32
    %c0_i32_1 = arith.constant 0 : i32
    return %c0_i32, %c0_i32_0 : i32, i32
  }
  func.func @transform_26(%arg0: i32) -> (i32, i32) {
    %c0_i32 = arith.constant 0 : i32
    %c0_i32_0 = arith.constant 0 : i32
    %c0_i32_1 = arith.constant 0 : i32
    return %c0_i32, %c0_i32_0 : i32, i32
  }
  func.func @transform_27(%arg0: i32) -> (i32, i32) {
    %c0_i32 = arith.constant 0 : i32
    %c0_i32_0 = arith.constant 0 : i32
    %c0_i32_1 = arith.constant 0 : i32
    return %c0_i32, %c0_i32_0 : i32, i32
  }
  func.func @transform_28(%arg0: i32) -> (i32, i32) {
    %c0_i32 = arith.constant 0 : i32
    %c0_i32_0 = arith.constant 0 : i32
    %c0_i32_1 = arith.constant 0 : i32
    return %c0_i32, %c0_i32_0 : i32, i32
  }
  func.func @transform_29(%arg0: i32) -> (i32, i32) {
    %c0_i32 = arith.constant 0 : i32
    %c0_i32_0 = arith.constant 0 : i32
    %c0_i32_1 = arith.constant 0 : i32
    return %c0_i32, %c0_i32_0 : i32, i32
  }
  func.func @transform_30(%arg0: i32) -> (i32, i32, i32) {
    %c0_i32 = arith.constant 0 : i32
    %c0_i32_0 = arith.constant 0 : i32
    %c0_i32_1 = arith.constant 0 : i32
    return %arg0, %c0_i32, %c0_i32_0 : i32, i32, i32
  }
}

module attributes {stable_mosaic.version = 11 : i64} {
  func.func @ca_kernel(%arg0: i32, %arg1: memref<1x8x128xf32, #tpu.memory_space<vmem>>, %arg2: memref<1x16x128xf32, #tpu.memory_space<vmem>>, %arg3: memref<1x1x8xf32, #tpu.memory_space<vmem>>, %arg4: memref<1x1x16xf32, #tpu.memory_space<vmem>>, %arg5: memref<2x128x64xbf16, #tpu.memory_space<vmem>>, %arg6: memref<2x1x64xf32, #tpu.memory_space<vmem>>, %arg7: memref<2x128x64xbf16, #tpu.memory_space<vmem>>, %arg8: memref<2x1x64xf32, #tpu.memory_space<vmem>>, %arg9: memref<2x128x64xbf16, #tpu.memory_space<vmem>>, %arg10: memref<2x1x64xf32, #tpu.memory_space<vmem>>, %arg11: memref<2x64x128xbf16, #tpu.memory_space<vmem>>, %arg12: memref<1x128xf32, #tpu.memory_space<vmem>>, %arg13: memref<1x128xf32, #tpu.memory_space<vmem>>, %arg14: memref<1x128xf32, #tpu.memory_space<vmem>>, %arg15: memref<2x128x64xbf16, #tpu.memory_space<vmem>>, %arg16: memref<2x1x64xf32, #tpu.memory_space<vmem>>, %arg17: memref<2x128x64xbf16, #tpu.memory_space<vmem>>, %arg18: memref<2x1x64xf32, #tpu.memory_space<vmem>>, %arg19: memref<2x128x64xbf16, #tpu.memory_space<vmem>>, %arg20: memref<2x1x64xf32, #tpu.memory_space<vmem>>, %arg21: memref<2x64x128xbf16, #tpu.memory_space<vmem>>, %arg22: memref<1x128xf32, #tpu.memory_space<vmem>>, %arg23: memref<1x128xf32, #tpu.memory_space<vmem>>, %arg24: memref<1x128xf32, #tpu.memory_space<vmem>>, %arg25: memref<128x256xbf16, #tpu.memory_space<vmem>>, %arg26: memref<1x256xf32, #tpu.memory_space<vmem>>, %arg27: memref<256x128xbf16, #tpu.memory_space<vmem>>, %arg28: memref<1x128xf32, #tpu.memory_space<vmem>>, %arg29: memref<1x128xf32, #tpu.memory_space<vmem>>, %arg30: memref<1x128xf32, #tpu.memory_space<vmem>>, %arg31: memref<1x8x128xf32, #tpu.memory_space<vmem>>) attributes {dimension_semantics = [#tpu.dimension_semantics<parallel>], iteration_bounds = array<i64: 2>, scalar_prefetch = 0 : i64, scratch_operands = 0 : i64, tpu.core_type = #tpu.core_type<tc>, window_params = [{transform_indices = @transform_0, window_bounds = array<i64: 1, 8, 128>}, {transform_indices = @transform_1, window_bounds = array<i64: 1, 16, 128>}, {transform_indices = @transform_2, window_bounds = array<i64: 1, 1, 8>}, {transform_indices = @transform_3, window_bounds = array<i64: 1, 1, 16>}, {pipeline_mode = #tpu.pipeline_mode<synchronous>, transform_indices = @transform_4, window_bounds = array<i64: 2, 128, 64>}, {pipeline_mode = #tpu.pipeline_mode<synchronous>, transform_indices = @transform_5, window_bounds = array<i64: 2, 1, 64>}, {pipeline_mode = #tpu.pipeline_mode<synchronous>, transform_indices = @transform_6, window_bounds = array<i64: 2, 128, 64>}, {pipeline_mode = #tpu.pipeline_mode<synchronous>, transform_indices = @transform_7, window_bounds = array<i64: 2, 1, 64>}, {pipeline_mode = #tpu.pipeline_mode<synchronous>, transform_indices = @transform_8, window_bounds = array<i64: 2, 128, 64>}, {pipeline_mode = #tpu.pipeline_mode<synchronous>, transform_indices = @transform_9, window_bounds = array<i64: 2, 1, 64>}, {pipeline_mode = #tpu.pipeline_mode<synchronous>, transform_indices = @transform_10, window_bounds = array<i64: 2, 64, 128>}, {pipeline_mode = #tpu.pipeline_mode<synchronous>, transform_indices = @transform_11, window_bounds = array<i64: 1, 128>}, {pipeline_mode = #tpu.pipeline_mode<synchronous>, transform_indices = @transform_12, window_bounds = array<i64: 1, 128>}, {pipeline_mode = #tpu.pipeline_mode<synchronous>, transform_indices = @transform_13, window_bounds = array<i64: 1, 128>}, {pipeline_mode = #tpu.pipeline_mode<synchronous>, transform_indices = @transform_14, window_bounds = array<i64: 2, 128, 64>}, {pipeline_mode = #tpu.pipeline_mode<synchronous>, transform_indices = @transform_15, window_bounds = array<i64: 2, 1, 64>}, {pipeline_mode = #tpu.pipeline_mode<synchronous>, transform_indices = @transform_16, window_bounds = array<i64: 2, 128, 64>}, {pipeline_mode = #tpu.pipeline_mode<synchronous>, transform_indices = @transform_17, window_bounds = array<i64: 2, 1, 64>}, {pipeline_mode = #tpu.pipeline_mode<synchronous>, transform_indices = @transform_18, window_bounds = array<i64: 2, 128, 64>}, {pipeline_mode = #tpu.pipeline_mode<synchronous>, transform_indices = @transform_19, window_bounds = array<i64: 2, 1, 64>}, {pipeline_mode = #tpu.pipeline_mode<synchronous>, transform_indices = @transform_20, window_bounds = array<i64: 2, 64, 128>}, {pipeline_mode = #tpu.pipeline_mode<synchronous>, transform_indices = @transform_21, window_bounds = array<i64: 1, 128>}, {pipeline_mode = #tpu.pipeline_mode<synchronous>, transform_indices = @transform_22, window_bounds = array<i64: 1, 128>}, {pipeline_mode = #tpu.pipeline_mode<synchronous>, transform_indices = @transform_23, window_bounds = array<i64: 1, 128>}, {pipeline_mode = #tpu.pipeline_mode<synchronous>, transform_indices = @transform_24, window_bounds = array<i64: 128, 256>}, {pipeline_mode = #tpu.pipeline_mode<synchronous>, transform_indices = @transform_25, window_bounds = array<i64: 1, 256>}, {pipeline_mode = #tpu.pipeline_mode<synchronous>, transform_indices = @transform_26, window_bounds = array<i64: 256, 128>}, {pipeline_mode = #tpu.pipeline_mode<synchronous>, transform_indices = @transform_27, window_bounds = array<i64: 1, 128>}, {pipeline_mode = #tpu.pipeline_mode<synchronous>, transform_indices = @transform_28, window_bounds = array<i64: 1, 128>}, {pipeline_mode = #tpu.pipeline_mode<synchronous>, transform_indices = @transform_29, window_bounds = array<i64: 1, 128>}, {transform_indices = @transform_30, window_bounds = array<i64: 1, 8, 128>}]} {
    %c0 = arith.constant 0 : index
    %c0_0 = arith.constant 0 : index
    %c0_1 = arith.constant 0 : index
    %0 = vector.load %arg1[%c0, %c0_0, %c0_1] : memref<1x8x128xf32, #tpu.memory_space<vmem>>, vector<1x8x128xf32>
    %1 = vector.shape_cast %0 : vector<1x8x128xf32> to vector<8x128xf32>
    %c0_2 = arith.constant 0 : index
    %c0_3 = arith.constant 0 : index
    %c0_4 = arith.constant 0 : index
    %2 = vector.load %arg2[%c0_2, %c0_3, %c0_4] : memref<1x16x128xf32, #tpu.memory_space<vmem>>, vector<1x16x128xf32>
    %3 = vector.shape_cast %2 : vector<1x16x128xf32> to vector<16x128xf32>
    %c0_5 = arith.constant 0 : index
    %c0_6 = arith.constant 0 : index
    %c0_7 = arith.constant 0 : index
    %4 = vector.load %arg3[%c0_5, %c0_6, %c0_7] : memref<1x1x8xf32, #tpu.memory_space<vmem>>, vector<1x1x8xf32>
    %5 = vector.shape_cast %4 : vector<1x1x8xf32> to vector<1x8xf32>
    %c0_8 = arith.constant 0 : index
    %c0_9 = arith.constant 0 : index
    %c0_10 = arith.constant 0 : index
    %6 = vector.load %arg4[%c0_8, %c0_9, %c0_10] : memref<1x1x16xf32, #tpu.memory_space<vmem>>, vector<1x1x16xf32>
    %7 = vector.shape_cast %6 : vector<1x1x16xf32> to vector<1x16xf32>
    %8 = arith.truncf %1 : vector<8x128xf32> to vector<8x128xbf16>
    %9 = arith.truncf %1 : vector<8x128xf32> to vector<8x128xbf16>
    %c0_11 = arith.constant 0 : index
    %c0_12 = arith.constant 0 : index
    %c0_13 = arith.constant 0 : index
    %10 = vector.load %arg5[%c0_11, %c0_12, %c0_13] : memref<2x128x64xbf16, #tpu.memory_space<vmem>>, vector<1x128x64xbf16>
    %11 = vector.shape_cast %10 : vector<1x128x64xbf16> to vector<128x64xbf16>
    %cst = arith.constant dense<0.000000e+00> : vector<8x64xf32>
    %12 = tpu.matmul %8, %11, %cst {dimension_numbers = #tpu.dot_dimension_numbers<[1], [0], [0], [1], [0, 0, 1, 1], [], []>} : vector<8x128xbf16>, vector<128x64xbf16>, vector<8x64xf32> -> vector<8x64xf32>
    %c0_14 = arith.constant 0 : index
    %c0_15 = arith.constant 0 : index
    %c0_16 = arith.constant 0 : index
    %13 = vector.load %arg6[%c0_14, %c0_15, %c0_16] : memref<2x1x64xf32, #tpu.memory_space<vmem>>, vector<1x1x64xf32>
    %14 = vector.shape_cast %13 : vector<1x1x64xf32> to vector<1x64xf32>
    %15 = vector.broadcast %14 : vector<1x64xf32> to vector<8x64xf32>
    %16 = arith.addf %12, %15 : vector<8x64xf32>
    %c0_17 = arith.constant 0 : index
    %c0_18 = arith.constant 0 : index
    %c0_19 = arith.constant 0 : index
    %17 = vector.load %arg7[%c0_17, %c0_18, %c0_19] : memref<2x128x64xbf16, #tpu.memory_space<vmem>>, vector<1x128x64xbf16>
    %18 = vector.shape_cast %17 : vector<1x128x64xbf16> to vector<128x64xbf16>
    %cst_20 = arith.constant dense<0.000000e+00> : vector<8x64xf32>
    %19 = tpu.matmul %9, %18, %cst_20 {dimension_numbers = #tpu.dot_dimension_numbers<[1], [0], [0], [1], [0, 0, 1, 1], [], []>} : vector<8x128xbf16>, vector<128x64xbf16>, vector<8x64xf32> -> vector<8x64xf32>
    %c0_21 = arith.constant 0 : index
    %c0_22 = arith.constant 0 : index
    %c0_23 = arith.constant 0 : index
    %20 = vector.load %arg8[%c0_21, %c0_22, %c0_23] : memref<2x1x64xf32, #tpu.memory_space<vmem>>, vector<1x1x64xf32>
    %21 = vector.shape_cast %20 : vector<1x1x64xf32> to vector<1x64xf32>
    %22 = vector.broadcast %21 : vector<1x64xf32> to vector<8x64xf32>
    %23 = arith.addf %19, %22 : vector<8x64xf32>
    %c0_24 = arith.constant 0 : index
    %c0_25 = arith.constant 0 : index
    %c0_26 = arith.constant 0 : index
    %24 = vector.load %arg9[%c0_24, %c0_25, %c0_26] : memref<2x128x64xbf16, #tpu.memory_space<vmem>>, vector<1x128x64xbf16>
    %25 = vector.shape_cast %24 : vector<1x128x64xbf16> to vector<128x64xbf16>
    %cst_27 = arith.constant dense<0.000000e+00> : vector<8x64xf32>
    %26 = tpu.matmul %9, %25, %cst_27 {dimension_numbers = #tpu.dot_dimension_numbers<[1], [0], [0], [1], [0, 0, 1, 1], [], []>} : vector<8x128xbf16>, vector<128x64xbf16>, vector<8x64xf32> -> vector<8x64xf32>
    %c0_28 = arith.constant 0 : index
    %c0_29 = arith.constant 0 : index
    %c0_30 = arith.constant 0 : index
    %27 = vector.load %arg10[%c0_28, %c0_29, %c0_30] : memref<2x1x64xf32, #tpu.memory_space<vmem>>, vector<1x1x64xf32>
    %28 = vector.shape_cast %27 : vector<1x1x64xf32> to vector<1x64xf32>
    %29 = vector.broadcast %28 : vector<1x64xf32> to vector<8x64xf32>
    %30 = arith.addf %26, %29 : vector<8x64xf32>
    %31 = arith.truncf %16 : vector<8x64xf32> to vector<8x64xbf16>
    %32 = arith.truncf %23 : vector<8x64xf32> to vector<8x64xbf16>
    %cst_31 = arith.constant dense<0.000000e+00> : vector<8x8xf32>
    %33 = tpu.matmul %31, %32, %cst_31 {dimension_numbers = #tpu.dot_dimension_numbers<[1], [1], [0], [0], [0, 0, 1, 0], [], []>} : vector<8x64xbf16>, vector<8x64xbf16>, vector<8x8xf32> -> vector<8x8xf32>
    %cst_32 = arith.constant 1.250000e-01 : f32
    %34 = vector.broadcast %cst_32 : f32 to vector<8x8xf32>
    %35 = arith.mulf %33, %34 : vector<8x8xf32>
    %36 = vector.broadcast %5 : vector<1x8xf32> to vector<8x8xf32>
    %37 = arith.addf %35, %36 : vector<8x8xf32>
    %cst_33 = arith.constant dense<0xFF800000> : vector<8xf32>
    %38 = vector.multi_reduction <maximumf>, %37, %cst_33 [1] : vector<8x8xf32> to vector<8xf32>
    %39 = vector.shape_cast %38 : vector<8xf32> to vector<8x1xf32>
    %40 = vector.broadcast %39 : vector<8x1xf32> to vector<8x8xf32>
    %41 = arith.subf %37, %40 : vector<8x8xf32>
    %42 = math.exp %41 : vector<8x8xf32>
    %cst_34 = arith.constant dense<0.000000e+00> : vector<8xf32>
    %43 = vector.multi_reduction <add>, %42, %cst_34 [1] : vector<8x8xf32> to vector<8xf32>
    %44 = vector.shape_cast %43 : vector<8xf32> to vector<8x1xf32>
    %45 = tpu.reciprocal %44 {approx = true} : vector<8x1xf32> -> vector<8x1xf32>
    %46 = vector.broadcast %45 : vector<8x1xf32> to vector<8x8xf32>
    %47 = arith.mulf %42, %46 : vector<8x8xf32>
    %48 = arith.truncf %47 : vector<8x8xf32> to vector<8x8xbf16>
    %49 = arith.truncf %30 : vector<8x64xf32> to vector<8x64xbf16>
    %cst_35 = arith.constant dense<0.000000e+00> : vector<8x64xf32>
    %50 = tpu.matmul %48, %49, %cst_35 {dimension_numbers = #tpu.dot_dimension_numbers<[1], [0], [0], [1], [0, 0, 1, 1], [], []>} : vector<8x8xbf16>, vector<8x64xbf16>, vector<8x64xf32> -> vector<8x64xf32>
    %51 = arith.truncf %50 : vector<8x64xf32> to vector<8x64xbf16>
    %c0_36 = arith.constant 0 : index
    %c0_37 = arith.constant 0 : index
    %c0_38 = arith.constant 0 : index
    %52 = vector.load %arg11[%c0_36, %c0_37, %c0_38] : memref<2x64x128xbf16, #tpu.memory_space<vmem>>, vector<1x64x128xbf16>
    %53 = vector.shape_cast %52 : vector<1x64x128xbf16> to vector<64x128xbf16>
    %cst_39 = arith.constant dense<0.000000e+00> : vector<8x128xf32>
    %54 = tpu.matmul %51, %53, %cst_39 {dimension_numbers = #tpu.dot_dimension_numbers<[1], [0], [0], [1], [0, 0, 1, 1], [], []>} : vector<8x64xbf16>, vector<64x128xbf16>, vector<8x128xf32> -> vector<8x128xf32>
    %c1 = arith.constant 1 : index
    %c0_40 = arith.constant 0 : index
    %c0_41 = arith.constant 0 : index
    %55 = vector.load %arg5[%c1, %c0_40, %c0_41] : memref<2x128x64xbf16, #tpu.memory_space<vmem>>, vector<1x128x64xbf16>
    %56 = vector.shape_cast %55 : vector<1x128x64xbf16> to vector<128x64xbf16>
    %cst_42 = arith.constant dense<0.000000e+00> : vector<8x64xf32>
    %57 = tpu.matmul %8, %56, %cst_42 {dimension_numbers = #tpu.dot_dimension_numbers<[1], [0], [0], [1], [0, 0, 1, 1], [], []>} : vector<8x128xbf16>, vector<128x64xbf16>, vector<8x64xf32> -> vector<8x64xf32>
    %c1_43 = arith.constant 1 : index
    %c0_44 = arith.constant 0 : index
    %c0_45 = arith.constant 0 : index
    %58 = vector.load %arg6[%c1_43, %c0_44, %c0_45] : memref<2x1x64xf32, #tpu.memory_space<vmem>>, vector<1x1x64xf32>
    %59 = vector.shape_cast %58 : vector<1x1x64xf32> to vector<1x64xf32>
    %60 = vector.broadcast %59 : vector<1x64xf32> to vector<8x64xf32>
    %61 = arith.addf %57, %60 : vector<8x64xf32>
    %c1_46 = arith.constant 1 : index
    %c0_47 = arith.constant 0 : index
    %c0_48 = arith.constant 0 : index
    %62 = vector.load %arg7[%c1_46, %c0_47, %c0_48] : memref<2x128x64xbf16, #tpu.memory_space<vmem>>, vector<1x128x64xbf16>
    %63 = vector.shape_cast %62 : vector<1x128x64xbf16> to vector<128x64xbf16>
    %cst_49 = arith.constant dense<0.000000e+00> : vector<8x64xf32>
    %64 = tpu.matmul %9, %63, %cst_49 {dimension_numbers = #tpu.dot_dimension_numbers<[1], [0], [0], [1], [0, 0, 1, 1], [], []>} : vector<8x128xbf16>, vector<128x64xbf16>, vector<8x64xf32> -> vector<8x64xf32>
    %c1_50 = arith.constant 1 : index
    %c0_51 = arith.constant 0 : index
    %c0_52 = arith.constant 0 : index
    %65 = vector.load %arg8[%c1_50, %c0_51, %c0_52] : memref<2x1x64xf32, #tpu.memory_space<vmem>>, vector<1x1x64xf32>
    %66 = vector.shape_cast %65 : vector<1x1x64xf32> to vector<1x64xf32>
    %67 = vector.broadcast %66 : vector<1x64xf32> to vector<8x64xf32>
    %68 = arith.addf %64, %67 : vector<8x64xf32>
    %c1_53 = arith.constant 1 : index
    %c0_54 = arith.constant 0 : index
    %c0_55 = arith.constant 0 : index
    %69 = vector.load %arg9[%c1_53, %c0_54, %c0_55] : memref<2x128x64xbf16, #tpu.memory_space<vmem>>, vector<1x128x64xbf16>
    %70 = vector.shape_cast %69 : vector<1x128x64xbf16> to vector<128x64xbf16>
    %cst_56 = arith.constant dense<0.000000e+00> : vector<8x64xf32>
    %71 = tpu.matmul %9, %70, %cst_56 {dimension_numbers = #tpu.dot_dimension_numbers<[1], [0], [0], [1], [0, 0, 1, 1], [], []>} : vector<8x128xbf16>, vector<128x64xbf16>, vector<8x64xf32> -> vector<8x64xf32>
    %c1_57 = arith.constant 1 : index
    %c0_58 = arith.constant 0 : index
    %c0_59 = arith.constant 0 : index
    %72 = vector.load %arg10[%c1_57, %c0_58, %c0_59] : memref<2x1x64xf32, #tpu.memory_space<vmem>>, vector<1x1x64xf32>
    %73 = vector.shape_cast %72 : vector<1x1x64xf32> to vector<1x64xf32>
    %74 = vector.broadcast %73 : vector<1x64xf32> to vector<8x64xf32>
    %75 = arith.addf %71, %74 : vector<8x64xf32>
    %76 = arith.truncf %61 : vector<8x64xf32> to vector<8x64xbf16>
    %77 = arith.truncf %68 : vector<8x64xf32> to vector<8x64xbf16>
    %cst_60 = arith.constant dense<0.000000e+00> : vector<8x8xf32>
    %78 = tpu.matmul %76, %77, %cst_60 {dimension_numbers = #tpu.dot_dimension_numbers<[1], [1], [0], [0], [0, 0, 1, 0], [], []>} : vector<8x64xbf16>, vector<8x64xbf16>, vector<8x8xf32> -> vector<8x8xf32>
    %cst_61 = arith.constant 1.250000e-01 : f32
    %79 = vector.broadcast %cst_61 : f32 to vector<8x8xf32>
    %80 = arith.mulf %78, %79 : vector<8x8xf32>
    %81 = vector.broadcast %5 : vector<1x8xf32> to vector<8x8xf32>
    %82 = arith.addf %80, %81 : vector<8x8xf32>
    %cst_62 = arith.constant dense<0xFF800000> : vector<8xf32>
    %83 = vector.multi_reduction <maximumf>, %82, %cst_62 [1] : vector<8x8xf32> to vector<8xf32>
    %84 = vector.shape_cast %83 : vector<8xf32> to vector<8x1xf32>
    %85 = vector.broadcast %84 : vector<8x1xf32> to vector<8x8xf32>
    %86 = arith.subf %82, %85 : vector<8x8xf32>
    %87 = math.exp %86 : vector<8x8xf32>
    %cst_63 = arith.constant dense<0.000000e+00> : vector<8xf32>
    %88 = vector.multi_reduction <add>, %87, %cst_63 [1] : vector<8x8xf32> to vector<8xf32>
    %89 = vector.shape_cast %88 : vector<8xf32> to vector<8x1xf32>
    %90 = tpu.reciprocal %89 {approx = true} : vector<8x1xf32> -> vector<8x1xf32>
    %91 = vector.broadcast %90 : vector<8x1xf32> to vector<8x8xf32>
    %92 = arith.mulf %87, %91 : vector<8x8xf32>
    %93 = arith.truncf %92 : vector<8x8xf32> to vector<8x8xbf16>
    %94 = arith.truncf %75 : vector<8x64xf32> to vector<8x64xbf16>
    %cst_64 = arith.constant dense<0.000000e+00> : vector<8x64xf32>
    %95 = tpu.matmul %93, %94, %cst_64 {dimension_numbers = #tpu.dot_dimension_numbers<[1], [0], [0], [1], [0, 0, 1, 1], [], []>} : vector<8x8xbf16>, vector<8x64xbf16>, vector<8x64xf32> -> vector<8x64xf32>
    %96 = arith.truncf %95 : vector<8x64xf32> to vector<8x64xbf16>
    %c1_65 = arith.constant 1 : index
    %c0_66 = arith.constant 0 : index
    %c0_67 = arith.constant 0 : index
    %97 = vector.load %arg11[%c1_65, %c0_66, %c0_67] : memref<2x64x128xbf16, #tpu.memory_space<vmem>>, vector<1x64x128xbf16>
    %98 = vector.shape_cast %97 : vector<1x64x128xbf16> to vector<64x128xbf16>
    %cst_68 = arith.constant dense<0.000000e+00> : vector<8x128xf32>
    %99 = tpu.matmul %96, %98, %cst_68 {dimension_numbers = #tpu.dot_dimension_numbers<[1], [0], [0], [1], [0, 0, 1, 1], [], []>} : vector<8x64xbf16>, vector<64x128xbf16>, vector<8x128xf32> -> vector<8x128xf32>
    %100 = arith.addf %54, %99 : vector<8x128xf32>
    %c0_69 = arith.constant 0 : index
    %c0_70 = arith.constant 0 : index
    %101 = vector.load %arg12[%c0_69, %c0_70] : memref<1x128xf32, #tpu.memory_space<vmem>>, vector<1x128xf32>
    %102 = vector.broadcast %101 : vector<1x128xf32> to vector<8x128xf32>
    %103 = arith.addf %100, %102 : vector<8x128xf32>
    %104 = arith.addf %1, %103 : vector<8x128xf32>
    %c0_71 = arith.constant 0 : index
    %c0_72 = arith.constant 0 : index
    %105 = vector.load %arg13[%c0_71, %c0_72] : memref<1x128xf32, #tpu.memory_space<vmem>>, vector<1x128xf32>
    %c0_73 = arith.constant 0 : index
    %c0_74 = arith.constant 0 : index
    %106 = vector.load %arg14[%c0_73, %c0_74] : memref<1x128xf32, #tpu.memory_space<vmem>>, vector<1x128xf32>
    %cst_75 = arith.constant dense<0.000000e+00> : vector<8xf32>
    %107 = vector.multi_reduction <add>, %104, %cst_75 [1] : vector<8x128xf32> to vector<8xf32>
    %108 = vector.shape_cast %107 : vector<8xf32> to vector<8x1xf32>
    %cst_76 = arith.constant 1.280000e+02 : f32
    %109 = vector.broadcast %cst_76 : f32 to vector<8x1xf32>
    %110 = arith.divf %108, %109 : vector<8x1xf32>
    %111 = vector.broadcast %110 : vector<8x1xf32> to vector<8x128xf32>
    %112 = arith.subf %104, %111 : vector<8x128xf32>
    %113 = arith.mulf %112, %112 : vector<8x128xf32>
    %cst_77 = arith.constant dense<0.000000e+00> : vector<8xf32>
    %114 = vector.multi_reduction <add>, %113, %cst_77 [1] : vector<8x128xf32> to vector<8xf32>
    %115 = vector.shape_cast %114 : vector<8xf32> to vector<8x1xf32>
    %cst_78 = arith.constant 0.00787401571 : f32
    %116 = vector.broadcast %cst_78 : f32 to vector<8x1xf32>
    %117 = arith.mulf %115, %116 : vector<8x1xf32>
    %118 = math.sqrt %117 : vector<8x1xf32>
    %119 = vector.broadcast %105 : vector<1x128xf32> to vector<8x128xf32>
    %120 = arith.mulf %119, %112 : vector<8x128xf32>
    %cst_79 = arith.constant 9.99999997E-7 : f32
    %121 = vector.broadcast %cst_79 : f32 to vector<8x1xf32>
    %122 = arith.addf %118, %121 : vector<8x1xf32>
    %123 = tpu.reciprocal %122 {approx = true} : vector<8x1xf32> -> vector<8x1xf32>
    %124 = vector.broadcast %123 : vector<8x1xf32> to vector<8x128xf32>
    %125 = arith.mulf %120, %124 : vector<8x128xf32>
    %126 = vector.broadcast %106 : vector<1x128xf32> to vector<8x128xf32>
    %127 = arith.addf %125, %126 : vector<8x128xf32>
    %128 = arith.truncf %127 : vector<8x128xf32> to vector<8x128xbf16>
    %129 = arith.truncf %3 : vector<16x128xf32> to vector<16x128xbf16>
    %c0_80 = arith.constant 0 : index
    %c0_81 = arith.constant 0 : index
    %c0_82 = arith.constant 0 : index
    %130 = vector.load %arg15[%c0_80, %c0_81, %c0_82] : memref<2x128x64xbf16, #tpu.memory_space<vmem>>, vector<1x128x64xbf16>
    %131 = vector.shape_cast %130 : vector<1x128x64xbf16> to vector<128x64xbf16>
    %cst_83 = arith.constant dense<0.000000e+00> : vector<8x64xf32>
    %132 = tpu.matmul %128, %131, %cst_83 {dimension_numbers = #tpu.dot_dimension_numbers<[1], [0], [0], [1], [0, 0, 1, 1], [], []>} : vector<8x128xbf16>, vector<128x64xbf16>, vector<8x64xf32> -> vector<8x64xf32>
    %c0_84 = arith.constant 0 : index
    %c0_85 = arith.constant 0 : index
    %c0_86 = arith.constant 0 : index
    %133 = vector.load %arg16[%c0_84, %c0_85, %c0_86] : memref<2x1x64xf32, #tpu.memory_space<vmem>>, vector<1x1x64xf32>
    %134 = vector.shape_cast %133 : vector<1x1x64xf32> to vector<1x64xf32>
    %135 = vector.broadcast %134 : vector<1x64xf32> to vector<8x64xf32>
    %136 = arith.addf %132, %135 : vector<8x64xf32>
    %c0_87 = arith.constant 0 : index
    %c0_88 = arith.constant 0 : index
    %c0_89 = arith.constant 0 : index
    %137 = vector.load %arg17[%c0_87, %c0_88, %c0_89] : memref<2x128x64xbf16, #tpu.memory_space<vmem>>, vector<1x128x64xbf16>
    %138 = vector.shape_cast %137 : vector<1x128x64xbf16> to vector<128x64xbf16>
    %cst_90 = arith.constant dense<0.000000e+00> : vector<16x64xf32>
    %139 = tpu.matmul %129, %138, %cst_90 {dimension_numbers = #tpu.dot_dimension_numbers<[1], [0], [0], [1], [0, 0, 1, 1], [], []>} : vector<16x128xbf16>, vector<128x64xbf16>, vector<16x64xf32> -> vector<16x64xf32>
    %c0_91 = arith.constant 0 : index
    %c0_92 = arith.constant 0 : index
    %c0_93 = arith.constant 0 : index
    %140 = vector.load %arg18[%c0_91, %c0_92, %c0_93] : memref<2x1x64xf32, #tpu.memory_space<vmem>>, vector<1x1x64xf32>
    %141 = vector.shape_cast %140 : vector<1x1x64xf32> to vector<1x64xf32>
    %142 = vector.broadcast %141 : vector<1x64xf32> to vector<16x64xf32>
    %143 = arith.addf %139, %142 : vector<16x64xf32>
    %c0_94 = arith.constant 0 : index
    %c0_95 = arith.constant 0 : index
    %c0_96 = arith.constant 0 : index
    %144 = vector.load %arg19[%c0_94, %c0_95, %c0_96] : memref<2x128x64xbf16, #tpu.memory_space<vmem>>, vector<1x128x64xbf16>
    %145 = vector.shape_cast %144 : vector<1x128x64xbf16> to vector<128x64xbf16>
    %cst_97 = arith.constant dense<0.000000e+00> : vector<16x64xf32>
    %146 = tpu.matmul %129, %145, %cst_97 {dimension_numbers = #tpu.dot_dimension_numbers<[1], [0], [0], [1], [0, 0, 1, 1], [], []>} : vector<16x128xbf16>, vector<128x64xbf16>, vector<16x64xf32> -> vector<16x64xf32>
    %c0_98 = arith.constant 0 : index
    %c0_99 = arith.constant 0 : index
    %c0_100 = arith.constant 0 : index
    %147 = vector.load %arg20[%c0_98, %c0_99, %c0_100] : memref<2x1x64xf32, #tpu.memory_space<vmem>>, vector<1x1x64xf32>
    %148 = vector.shape_cast %147 : vector<1x1x64xf32> to vector<1x64xf32>
    %149 = vector.broadcast %148 : vector<1x64xf32> to vector<16x64xf32>
    %150 = arith.addf %146, %149 : vector<16x64xf32>
    %151 = arith.truncf %136 : vector<8x64xf32> to vector<8x64xbf16>
    %152 = arith.truncf %143 : vector<16x64xf32> to vector<16x64xbf16>
    %cst_101 = arith.constant dense<0.000000e+00> : vector<8x16xf32>
    %153 = tpu.matmul %151, %152, %cst_101 {dimension_numbers = #tpu.dot_dimension_numbers<[1], [1], [0], [0], [0, 0, 1, 0], [], []>} : vector<8x64xbf16>, vector<16x64xbf16>, vector<8x16xf32> -> vector<8x16xf32>
    %cst_102 = arith.constant 1.250000e-01 : f32
    %154 = vector.broadcast %cst_102 : f32 to vector<8x16xf32>
    %155 = arith.mulf %153, %154 : vector<8x16xf32>
    %156 = vector.broadcast %7 : vector<1x16xf32> to vector<8x16xf32>
    %157 = arith.addf %155, %156 : vector<8x16xf32>
    %cst_103 = arith.constant dense<0xFF800000> : vector<8xf32>
    %158 = vector.multi_reduction <maximumf>, %157, %cst_103 [1] : vector<8x16xf32> to vector<8xf32>
    %159 = vector.shape_cast %158 : vector<8xf32> to vector<8x1xf32>
    %160 = vector.broadcast %159 : vector<8x1xf32> to vector<8x16xf32>
    %161 = arith.subf %157, %160 : vector<8x16xf32>
    %162 = math.exp %161 : vector<8x16xf32>
    %cst_104 = arith.constant dense<0.000000e+00> : vector<8xf32>
    %163 = vector.multi_reduction <add>, %162, %cst_104 [1] : vector<8x16xf32> to vector<8xf32>
    %164 = vector.shape_cast %163 : vector<8xf32> to vector<8x1xf32>
    %165 = tpu.reciprocal %164 {approx = true} : vector<8x1xf32> -> vector<8x1xf32>
    %166 = vector.broadcast %165 : vector<8x1xf32> to vector<8x16xf32>
    %167 = arith.mulf %162, %166 : vector<8x16xf32>
    %168 = arith.truncf %167 : vector<8x16xf32> to vector<8x16xbf16>
    %169 = arith.truncf %150 : vector<16x64xf32> to vector<16x64xbf16>
    %cst_105 = arith.constant dense<0.000000e+00> : vector<8x64xf32>
    %170 = tpu.matmul %168, %169, %cst_105 {dimension_numbers = #tpu.dot_dimension_numbers<[1], [0], [0], [1], [0, 0, 1, 1], [], []>} : vector<8x16xbf16>, vector<16x64xbf16>, vector<8x64xf32> -> vector<8x64xf32>
    %171 = arith.truncf %170 : vector<8x64xf32> to vector<8x64xbf16>
    %c0_106 = arith.constant 0 : index
    %c0_107 = arith.constant 0 : index
    %c0_108 = arith.constant 0 : index
    %172 = vector.load %arg21[%c0_106, %c0_107, %c0_108] : memref<2x64x128xbf16, #tpu.memory_space<vmem>>, vector<1x64x128xbf16>
    %173 = vector.shape_cast %172 : vector<1x64x128xbf16> to vector<64x128xbf16>
    %cst_109 = arith.constant dense<0.000000e+00> : vector<8x128xf32>
    %174 = tpu.matmul %171, %173, %cst_109 {dimension_numbers = #tpu.dot_dimension_numbers<[1], [0], [0], [1], [0, 0, 1, 1], [], []>} : vector<8x64xbf16>, vector<64x128xbf16>, vector<8x128xf32> -> vector<8x128xf32>
    %c1_110 = arith.constant 1 : index
    %c0_111 = arith.constant 0 : index
    %c0_112 = arith.constant 0 : index
    %175 = vector.load %arg15[%c1_110, %c0_111, %c0_112] : memref<2x128x64xbf16, #tpu.memory_space<vmem>>, vector<1x128x64xbf16>
    %176 = vector.shape_cast %175 : vector<1x128x64xbf16> to vector<128x64xbf16>
    %cst_113 = arith.constant dense<0.000000e+00> : vector<8x64xf32>
    %177 = tpu.matmul %128, %176, %cst_113 {dimension_numbers = #tpu.dot_dimension_numbers<[1], [0], [0], [1], [0, 0, 1, 1], [], []>} : vector<8x128xbf16>, vector<128x64xbf16>, vector<8x64xf32> -> vector<8x64xf32>
    %c1_114 = arith.constant 1 : index
    %c0_115 = arith.constant 0 : index
    %c0_116 = arith.constant 0 : index
    %178 = vector.load %arg16[%c1_114, %c0_115, %c0_116] : memref<2x1x64xf32, #tpu.memory_space<vmem>>, vector<1x1x64xf32>
    %179 = vector.shape_cast %178 : vector<1x1x64xf32> to vector<1x64xf32>
    %180 = vector.broadcast %179 : vector<1x64xf32> to vector<8x64xf32>
    %181 = arith.addf %177, %180 : vector<8x64xf32>
    %c1_117 = arith.constant 1 : index
    %c0_118 = arith.constant 0 : index
    %c0_119 = arith.constant 0 : index
    %182 = vector.load %arg17[%c1_117, %c0_118, %c0_119] : memref<2x128x64xbf16, #tpu.memory_space<vmem>>, vector<1x128x64xbf16>
    %183 = vector.shape_cast %182 : vector<1x128x64xbf16> to vector<128x64xbf16>
    %cst_120 = arith.constant dense<0.000000e+00> : vector<16x64xf32>
    %184 = tpu.matmul %129, %183, %cst_120 {dimension_numbers = #tpu.dot_dimension_numbers<[1], [0], [0], [1], [0, 0, 1, 1], [], []>} : vector<16x128xbf16>, vector<128x64xbf16>, vector<16x64xf32> -> vector<16x64xf32>
    %c1_121 = arith.constant 1 : index
    %c0_122 = arith.constant 0 : index
    %c0_123 = arith.constant 0 : index
    %185 = vector.load %arg18[%c1_121, %c0_122, %c0_123] : memref<2x1x64xf32, #tpu.memory_space<vmem>>, vector<1x1x64xf32>
    %186 = vector.shape_cast %185 : vector<1x1x64xf32> to vector<1x64xf32>
    %187 = vector.broadcast %186 : vector<1x64xf32> to vector<16x64xf32>
    %188 = arith.addf %184, %187 : vector<16x64xf32>
    %c1_124 = arith.constant 1 : index
    %c0_125 = arith.constant 0 : index
    %c0_126 = arith.constant 0 : index
    %189 = vector.load %arg19[%c1_124, %c0_125, %c0_126] : memref<2x128x64xbf16, #tpu.memory_space<vmem>>, vector<1x128x64xbf16>
    %190 = vector.shape_cast %189 : vector<1x128x64xbf16> to vector<128x64xbf16>
    %cst_127 = arith.constant dense<0.000000e+00> : vector<16x64xf32>
    %191 = tpu.matmul %129, %190, %cst_127 {dimension_numbers = #tpu.dot_dimension_numbers<[1], [0], [0], [1], [0, 0, 1, 1], [], []>} : vector<16x128xbf16>, vector<128x64xbf16>, vector<16x64xf32> -> vector<16x64xf32>
    %c1_128 = arith.constant 1 : index
    %c0_129 = arith.constant 0 : index
    %c0_130 = arith.constant 0 : index
    %192 = vector.load %arg20[%c1_128, %c0_129, %c0_130] : memref<2x1x64xf32, #tpu.memory_space<vmem>>, vector<1x1x64xf32>
    %193 = vector.shape_cast %192 : vector<1x1x64xf32> to vector<1x64xf32>
    %194 = vector.broadcast %193 : vector<1x64xf32> to vector<16x64xf32>
    %195 = arith.addf %191, %194 : vector<16x64xf32>
    %196 = arith.truncf %181 : vector<8x64xf32> to vector<8x64xbf16>
    %197 = arith.truncf %188 : vector<16x64xf32> to vector<16x64xbf16>
    %cst_131 = arith.constant dense<0.000000e+00> : vector<8x16xf32>
    %198 = tpu.matmul %196, %197, %cst_131 {dimension_numbers = #tpu.dot_dimension_numbers<[1], [1], [0], [0], [0, 0, 1, 0], [], []>} : vector<8x64xbf16>, vector<16x64xbf16>, vector<8x16xf32> -> vector<8x16xf32>
    %cst_132 = arith.constant 1.250000e-01 : f32
    %199 = vector.broadcast %cst_132 : f32 to vector<8x16xf32>
    %200 = arith.mulf %198, %199 : vector<8x16xf32>
    %201 = vector.broadcast %7 : vector<1x16xf32> to vector<8x16xf32>
    %202 = arith.addf %200, %201 : vector<8x16xf32>
    %cst_133 = arith.constant dense<0xFF800000> : vector<8xf32>
    %203 = vector.multi_reduction <maximumf>, %202, %cst_133 [1] : vector<8x16xf32> to vector<8xf32>
    %204 = vector.shape_cast %203 : vector<8xf32> to vector<8x1xf32>
    %205 = vector.broadcast %204 : vector<8x1xf32> to vector<8x16xf32>
    %206 = arith.subf %202, %205 : vector<8x16xf32>
    %207 = math.exp %206 : vector<8x16xf32>
    %cst_134 = arith.constant dense<0.000000e+00> : vector<8xf32>
    %208 = vector.multi_reduction <add>, %207, %cst_134 [1] : vector<8x16xf32> to vector<8xf32>
    %209 = vector.shape_cast %208 : vector<8xf32> to vector<8x1xf32>
    %210 = tpu.reciprocal %209 {approx = true} : vector<8x1xf32> -> vector<8x1xf32>
    %211 = vector.broadcast %210 : vector<8x1xf32> to vector<8x16xf32>
    %212 = arith.mulf %207, %211 : vector<8x16xf32>
    %213 = arith.truncf %212 : vector<8x16xf32> to vector<8x16xbf16>
    %214 = arith.truncf %195 : vector<16x64xf32> to vector<16x64xbf16>
    %cst_135 = arith.constant dense<0.000000e+00> : vector<8x64xf32>
    %215 = tpu.matmul %213, %214, %cst_135 {dimension_numbers = #tpu.dot_dimension_numbers<[1], [0], [0], [1], [0, 0, 1, 1], [], []>} : vector<8x16xbf16>, vector<16x64xbf16>, vector<8x64xf32> -> vector<8x64xf32>
    %216 = arith.truncf %215 : vector<8x64xf32> to vector<8x64xbf16>
    %c1_136 = arith.constant 1 : index
    %c0_137 = arith.constant 0 : index
    %c0_138 = arith.constant 0 : index
    %217 = vector.load %arg21[%c1_136, %c0_137, %c0_138] : memref<2x64x128xbf16, #tpu.memory_space<vmem>>, vector<1x64x128xbf16>
    %218 = vector.shape_cast %217 : vector<1x64x128xbf16> to vector<64x128xbf16>
    %cst_139 = arith.constant dense<0.000000e+00> : vector<8x128xf32>
    %219 = tpu.matmul %216, %218, %cst_139 {dimension_numbers = #tpu.dot_dimension_numbers<[1], [0], [0], [1], [0, 0, 1, 1], [], []>} : vector<8x64xbf16>, vector<64x128xbf16>, vector<8x128xf32> -> vector<8x128xf32>
    %220 = arith.addf %174, %219 : vector<8x128xf32>
    %c0_140 = arith.constant 0 : index
    %c0_141 = arith.constant 0 : index
    %221 = vector.load %arg22[%c0_140, %c0_141] : memref<1x128xf32, #tpu.memory_space<vmem>>, vector<1x128xf32>
    %222 = vector.broadcast %221 : vector<1x128xf32> to vector<8x128xf32>
    %223 = arith.addf %220, %222 : vector<8x128xf32>
    %224 = arith.addf %127, %223 : vector<8x128xf32>
    %c0_142 = arith.constant 0 : index
    %c0_143 = arith.constant 0 : index
    %225 = vector.load %arg23[%c0_142, %c0_143] : memref<1x128xf32, #tpu.memory_space<vmem>>, vector<1x128xf32>
    %c0_144 = arith.constant 0 : index
    %c0_145 = arith.constant 0 : index
    %226 = vector.load %arg24[%c0_144, %c0_145] : memref<1x128xf32, #tpu.memory_space<vmem>>, vector<1x128xf32>
    %cst_146 = arith.constant dense<0.000000e+00> : vector<8xf32>
    %227 = vector.multi_reduction <add>, %224, %cst_146 [1] : vector<8x128xf32> to vector<8xf32>
    %228 = vector.shape_cast %227 : vector<8xf32> to vector<8x1xf32>
    %cst_147 = arith.constant 1.280000e+02 : f32
    %229 = vector.broadcast %cst_147 : f32 to vector<8x1xf32>
    %230 = arith.divf %228, %229 : vector<8x1xf32>
    %231 = vector.broadcast %230 : vector<8x1xf32> to vector<8x128xf32>
    %232 = arith.subf %224, %231 : vector<8x128xf32>
    %233 = arith.mulf %232, %232 : vector<8x128xf32>
    %cst_148 = arith.constant dense<0.000000e+00> : vector<8xf32>
    %234 = vector.multi_reduction <add>, %233, %cst_148 [1] : vector<8x128xf32> to vector<8xf32>
    %235 = vector.shape_cast %234 : vector<8xf32> to vector<8x1xf32>
    %cst_149 = arith.constant 0.00787401571 : f32
    %236 = vector.broadcast %cst_149 : f32 to vector<8x1xf32>
    %237 = arith.mulf %235, %236 : vector<8x1xf32>
    %238 = math.sqrt %237 : vector<8x1xf32>
    %239 = vector.broadcast %225 : vector<1x128xf32> to vector<8x128xf32>
    %240 = arith.mulf %239, %232 : vector<8x128xf32>
    %cst_150 = arith.constant 9.99999997E-7 : f32
    %241 = vector.broadcast %cst_150 : f32 to vector<8x1xf32>
    %242 = arith.addf %238, %241 : vector<8x1xf32>
    %243 = tpu.reciprocal %242 {approx = true} : vector<8x1xf32> -> vector<8x1xf32>
    %244 = vector.broadcast %243 : vector<8x1xf32> to vector<8x128xf32>
    %245 = arith.mulf %240, %244 : vector<8x128xf32>
    %246 = vector.broadcast %226 : vector<1x128xf32> to vector<8x128xf32>
    %247 = arith.addf %245, %246 : vector<8x128xf32>
    %248 = arith.truncf %247 : vector<8x128xf32> to vector<8x128xbf16>
    %c0_151 = arith.constant 0 : index
    %c0_152 = arith.constant 0 : index
    %249 = vector.load %arg25[%c0_151, %c0_152] : memref<128x256xbf16, #tpu.memory_space<vmem>>, vector<128x256xbf16>
    %cst_153 = arith.constant dense<0.000000e+00> : vector<8x256xf32>
    %250 = tpu.matmul %248, %249, %cst_153 {dimension_numbers = #tpu.dot_dimension_numbers<[1], [0], [0], [1], [0, 0, 1, 1], [], []>} : vector<8x128xbf16>, vector<128x256xbf16>, vector<8x256xf32> -> vector<8x256xf32>
    %c0_154 = arith.constant 0 : index
    %c0_155 = arith.constant 0 : index
    %251 = vector.load %arg26[%c0_154, %c0_155] : memref<1x256xf32, #tpu.memory_space<vmem>>, vector<1x256xf32>
    %252 = vector.broadcast %251 : vector<1x256xf32> to vector<8x256xf32>
    %253 = arith.addf %250, %252 : vector<8x256xf32>
    %cst_156 = arith.constant 0.000000e+00 : f32
    %254 = vector.broadcast %cst_156 : f32 to vector<8x256xf32>
    %255 = arith.maximumf %253, %254 : vector<8x256xf32>
    %256 = arith.truncf %255 : vector<8x256xf32> to vector<8x256xbf16>
    %c0_157 = arith.constant 0 : index
    %c0_158 = arith.constant 0 : index
    %257 = vector.load %arg27[%c0_157, %c0_158] : memref<256x128xbf16, #tpu.memory_space<vmem>>, vector<256x128xbf16>
    %cst_159 = arith.constant dense<0.000000e+00> : vector<8x128xf32>
    %258 = tpu.matmul %256, %257, %cst_159 {dimension_numbers = #tpu.dot_dimension_numbers<[1], [0], [0], [1], [0, 0, 1, 1], [], []>} : vector<8x256xbf16>, vector<256x128xbf16>, vector<8x128xf32> -> vector<8x128xf32>
    %c0_160 = arith.constant 0 : index
    %c0_161 = arith.constant 0 : index
    %259 = vector.load %arg28[%c0_160, %c0_161] : memref<1x128xf32, #tpu.memory_space<vmem>>, vector<1x128xf32>
    %260 = vector.broadcast %259 : vector<1x128xf32> to vector<8x128xf32>
    %261 = arith.addf %258, %260 : vector<8x128xf32>
    %262 = arith.addf %247, %261 : vector<8x128xf32>
    %c0_162 = arith.constant 0 : index
    %c0_163 = arith.constant 0 : index
    %263 = vector.load %arg29[%c0_162, %c0_163] : memref<1x128xf32, #tpu.memory_space<vmem>>, vector<1x128xf32>
    %c0_164 = arith.constant 0 : index
    %c0_165 = arith.constant 0 : index
    %264 = vector.load %arg30[%c0_164, %c0_165] : memref<1x128xf32, #tpu.memory_space<vmem>>, vector<1x128xf32>
    %cst_166 = arith.constant dense<0.000000e+00> : vector<8xf32>
    %265 = vector.multi_reduction <add>, %262, %cst_166 [1] : vector<8x128xf32> to vector<8xf32>
    %266 = vector.shape_cast %265 : vector<8xf32> to vector<8x1xf32>
    %cst_167 = arith.constant 1.280000e+02 : f32
    %267 = vector.broadcast %cst_167 : f32 to vector<8x1xf32>
    %268 = arith.divf %266, %267 : vector<8x1xf32>
    %269 = vector.broadcast %268 : vector<8x1xf32> to vector<8x128xf32>
    %270 = arith.subf %262, %269 : vector<8x128xf32>
    %271 = arith.mulf %270, %270 : vector<8x128xf32>
    %cst_168 = arith.constant dense<0.000000e+00> : vector<8xf32>
    %272 = vector.multi_reduction <add>, %271, %cst_168 [1] : vector<8x128xf32> to vector<8xf32>
    %273 = vector.shape_cast %272 : vector<8xf32> to vector<8x1xf32>
    %cst_169 = arith.constant 0.00787401571 : f32
    %274 = vector.broadcast %cst_169 : f32 to vector<8x1xf32>
    %275 = arith.mulf %273, %274 : vector<8x1xf32>
    %276 = math.sqrt %275 : vector<8x1xf32>
    %277 = vector.broadcast %263 : vector<1x128xf32> to vector<8x128xf32>
    %278 = arith.mulf %277, %270 : vector<8x128xf32>
    %cst_170 = arith.constant 9.99999997E-7 : f32
    %279 = vector.broadcast %cst_170 : f32 to vector<8x1xf32>
    %280 = arith.addf %276, %279 : vector<8x1xf32>
    %281 = tpu.reciprocal %280 {approx = true} : vector<8x1xf32> -> vector<8x1xf32>
    %282 = vector.broadcast %281 : vector<8x1xf32> to vector<8x128xf32>
    %283 = arith.mulf %278, %282 : vector<8x128xf32>
    %284 = vector.broadcast %264 : vector<1x128xf32> to vector<8x128xf32>
    %285 = arith.addf %283, %284 : vector<8x128xf32>
    %c0_171 = arith.constant 0 : index
    %c0_172 = arith.constant 0 : index
    %c0_173 = arith.constant 0 : index
    %286 = vector.load %arg31[%c0_171, %c0_172, %c0_173] : memref<1x8x128xf32, #tpu.memory_space<vmem>>, vector<1x8x128xf32>
    %287 = vector.shape_cast %286 : vector<1x8x128xf32> to vector<8x128xf32>
    %288 = vector.shape_cast %285 : vector<8x128xf32> to vector<1x8x128xf32>
    tpu.vector_store %arg31[%c0_171, %c0_172, %c0_173], %288 {strides = array<i32>} : memref<1x8x128xf32, #tpu.memory_space<vmem>>, vector<1x8x128xf32>,
    return
  }
  func.func @transform_0(%arg0: i32) -> (i32, i32, i32) {
    %c0_i32 = arith.constant 0 : i32
    %c0_i32_0 = arith.constant 0 : i32
    %c0_i32_1 = arith.constant 0 : i32
    return %arg0, %c0_i32, %c0_i32_0 : i32, i32, i32
  }
  func.func @transform_1(%arg0: i32) -> (i32, i32, i32) {
    %c0_i32 = arith.constant 0 : i32
    %c0_i32_0 = arith.constant 0 : i32
    %c0_i32_1 = arith.constant 0 : i32
    return %arg0, %c0_i32, %c0_i32_0 : i32, i32, i32
  }
  func.func @transform_2(%arg0: i32) -> (i32, i32, i32) {
    %c0_i32 = arith.constant 0 : i32
    %c0_i32_0 = arith.constant 0 : i32
    %c0_i32_1 = arith.constant 0 : i32
    return %arg0, %c0_i32, %c0_i32_0 : i32, i32, i32
  }
  func.func @transform_3(%arg0: i32) -> (i32, i32, i32) {
    %c0_i32 = arith.constant 0 : i32
    %c0_i32_0 = arith.constant 0 : i32
    %c0_i32_1 = arith.constant 0 : i32
    return %arg0, %c0_i32, %c0_i32_0 : i32, i32, i32
  }
  func.func @transform_4(%arg0: i32) -> (i32, i32, i32) {
    %c0_i32 = arith.constant 0 : i32
    %c0_i32_0 = arith.constant 0 : i32
    %c0_i32_1 = arith.constant 0 : i32
    %c0_i32_2 = arith.constant 0 : i32
    return %c0_i32, %c0_i32_0, %c0_i32_1 : i32, i32, i32
  }
  func.func @transform_5(%arg0: i32) -> (i32, i32, i32) {
    %c0_i32 = arith.constant 0 : i32
    %c0_i32_0 = arith.constant 0 : i32
    %c0_i32_1 = arith.constant 0 : i32
    %c0_i32_2 = arith.constant 0 : i32
    return %c0_i32, %c0_i32_0, %c0_i32_1 : i32, i32, i32
  }
  func.func @transform_6(%arg0: i32) -> (i32, i32, i32) {
    %c0_i32 = arith.constant 0 : i32
    %c0_i32_0 = arith.constant 0 : i32
    %c0_i32_1 = arith.constant 0 : i32
    %c0_i32_2 = arith.constant 0 : i32
    return %c0_i32, %c0_i32_0, %c0_i32_1 : i32, i32, i32
  }
  func.func @transform_7(%arg0: i32) -> (i32, i32, i32) {
    %c0_i32 = arith.constant 0 : i32
    %c0_i32_0 = arith.constant 0 : i32
    %c0_i32_1 = arith.constant 0 : i32
    %c0_i32_2 = arith.constant 0 : i32
    return %c0_i32, %c0_i32_0, %c0_i32_1 : i32, i32, i32
  }
  func.func @transform_8(%arg0: i32) -> (i32, i32, i32) {
    %c0_i32 = arith.constant 0 : i32
    %c0_i32_0 = arith.constant 0 : i32
    %c0_i32_1 = arith.constant 0 : i32
    %c0_i32_2 = arith.constant 0 : i32
    return %c0_i32, %c0_i32_0, %c0_i32_1 : i32, i32, i32
  }
  func.func @transform_9(%arg0: i32) -> (i32, i32, i32) {
    %c0_i32 = arith.constant 0 : i32
    %c0_i32_0 = arith.constant 0 : i32
    %c0_i32_1 = arith.constant 0 : i32
    %c0_i32_2 = arith.constant 0 : i32
    return %c0_i32, %c0_i32_0, %c0_i32_1 : i32, i32, i32
  }
  func.func @transform_10(%arg0: i32) -> (i32, i32, i32) {
    %c0_i32 = arith.constant 0 : i32
    %c0_i32_0 = arith.constant 0 : i32
    %c0_i32_1 = arith.constant 0 : i32
    %c0_i32_2 = arith.constant 0 : i32
    return %c0_i32, %c0_i32_0, %c0_i32_1 : i32, i32, i32
  }
  func.func @transform_11(%arg0: i32) -> (i32, i32) {
    %c0_i32 = arith.constant 0 : i32
    %c0_i32_0 = arith.constant 0 : i32
    %c0_i32_1 = arith.constant 0 : i32
    return %c0_i32, %c0_i32_0 : i32, i32
  }
  func.func @transform_12(%arg0: i32) -> (i32, i32) {
    %c0_i32 = arith.constant 0 : i32
    %c0_i32_0 = arith.constant 0 : i32
    %c0_i32_1 = arith.constant 0 : i32
    return %c0_i32, %c0_i32_0 : i32, i32
  }
  func.func @transform_13(%arg0: i32) -> (i32, i32) {
    %c0_i32 = arith.constant 0 : i32
    %c0_i32_0 = arith.constant 0 : i32
    %c0_i32_1 = arith.constant 0 : i32
    return %c0_i32, %c0_i32_0 : i32, i32
  }
  func.func @transform_14(%arg0: i32) -> (i32, i32, i32) {
    %c0_i32 = arith.constant 0 : i32
    %c0_i32_0 = arith.constant 0 : i32
    %c0_i32_1 = arith.constant 0 : i32
    %c0_i32_2 = arith.constant 0 : i32
    return %c0_i32, %c0_i32_0, %c0_i32_1 : i32, i32, i32
  }
  func.func @transform_15(%arg0: i32) -> (i32, i32, i32) {
    %c0_i32 = arith.constant 0 : i32
    %c0_i32_0 = arith.constant 0 : i32
    %c0_i32_1 = arith.constant 0 : i32
    %c0_i32_2 = arith.constant 0 : i32
    return %c0_i32, %c0_i32_0, %c0_i32_1 : i32, i32, i32
  }
  func.func @transform_16(%arg0: i32) -> (i32, i32, i32) {
    %c0_i32 = arith.constant 0 : i32
    %c0_i32_0 = arith.constant 0 : i32
    %c0_i32_1 = arith.constant 0 : i32
    %c0_i32_2 = arith.constant 0 : i32
    return %c0_i32, %c0_i32_0, %c0_i32_1 : i32, i32, i32
  }
  func.func @transform_17(%arg0: i32) -> (i32, i32, i32) {
    %c0_i32 = arith.constant 0 : i32
    %c0_i32_0 = arith.constant 0 : i32
    %c0_i32_1 = arith.constant 0 : i32
    %c0_i32_2 = arith.constant 0 : i32
    return %c0_i32, %c0_i32_0, %c0_i32_1 : i32, i32, i32
  }
  func.func @transform_18(%arg0: i32) -> (i32, i32, i32) {
    %c0_i32 = arith.constant 0 : i32
    %c0_i32_0 = arith.constant 0 : i32
    %c0_i32_1 = arith.constant 0 : i32
    %c0_i32_2 = arith.constant 0 : i32
    return %c0_i32, %c0_i32_0, %c0_i32_1 : i32, i32, i32
  }
  func.func @transform_19(%arg0: i32) -> (i32, i32, i32) {
    %c0_i32 = arith.constant 0 : i32
    %c0_i32_0 = arith.constant 0 : i32
    %c0_i32_1 = arith.constant 0 : i32
    %c0_i32_2 = arith.constant 0 : i32
    return %c0_i32, %c0_i32_0, %c0_i32_1 : i32, i32, i32
  }
  func.func @transform_20(%arg0: i32) -> (i32, i32, i32) {
    %c0_i32 = arith.constant 0 : i32
    %c0_i32_0 = arith.constant 0 : i32
    %c0_i32_1 = arith.constant 0 : i32
    %c0_i32_2 = arith.constant 0 : i32
    return %c0_i32, %c0_i32_0, %c0_i32_1 : i32, i32, i32
  }
  func.func @transform_21(%arg0: i32) -> (i32, i32) {
    %c0_i32 = arith.constant 0 : i32
    %c0_i32_0 = arith.constant 0 : i32
    %c0_i32_1 = arith.constant 0 : i32
    return %c0_i32, %c0_i32_0 : i32, i32
  }
  func.func @transform_22(%arg0: i32) -> (i32, i32) {
    %c0_i32 = arith.constant 0 : i32
    %c0_i32_0 = arith.constant 0 : i32
    %c0_i32_1 = arith.constant 0 : i32
    return %c0_i32, %c0_i32_0 : i32, i32
  }
  func.func @transform_23(%arg0: i32) -> (i32, i32) {
    %c0_i32 = arith.constant 0 : i32
    %c0_i32_0 = arith.constant 0 : i32
    %c0_i32_1 = arith.constant 0 : i32
    return %c0_i32, %c0_i32_0 : i32, i32
  }
  func.func @transform_24(%arg0: i32) -> (i32, i32) {
    %c0_i32 = arith.constant 0 : i32
    %c0_i32_0 = arith.constant 0 : i32
    %c0_i32_1 = arith.constant 0 : i32
    return %c0_i32, %c0_i32_0 : i32, i32
  }
  func.func @transform_25(%arg0: i32) -> (i32, i32) {
    %c0_i32 = arith.constant 0 : i32
    %c0_i32_0 = arith.constant 0 : i32
    %c0_i32_1 = arith.constant 0 : i32
    return %c0_i32, %c0_i32_0 : i32, i32
  }
  func.func @transform_26(%arg0: i32) -> (i32, i32) {
    %c0_i32 = arith.constant 0 : i32
    %c0_i32_0 = arith.constant 0 : i32
    %c0_i32_1 = arith.constant 0 : i32
    return %c0_i32, %c0_i32_0 : i32, i32
  }
  func.func @transform_27(%arg0: i32) -> (i32, i32) {
    %c0_i32 = arith.constant 0 : i32
    %c0_i32_0 = arith.constant 0 : i32
    %c0_i32_1 = arith.constant 0 : i32
    return %c0_i32, %c0_i32_0 : i32, i32
  }
  func.func @transform_28(%arg0: i32) -> (i32, i32) {
    %c0_i32 = arith.constant 0 : i32
    %c0_i32_0 = arith.constant 0 : i32
    %c0_i32_1 = arith.constant 0 : i32
    return %c0_i32, %c0_i32_0 : i32, i32
  }
  func.func @transform_29(%arg0: i32) -> (i32, i32) {
    %c0_i32 = arith.constant 0 : i32
    %c0_i32_0 = arith.constant 0 : i32
    %c0_i32_1 = arith.constant 0 : i32
    return %c0_i32, %c0_i32_0 : i32, i32
  }
  func.func @transform_30(%arg0: i32) -> (i32, i32, i32) {
    %c0_i32 = arith.constant 0 : i32
    %c0_i32_0 = arith.constant 0 : i32
    %c0_i32_1 = arith.constant 0 : i32
    return %arg0, %c0_i32, %c0_i32_0 : i32, i32, i32
  }
}

module attributes {stable_mosaic.version = 11 : i64} {
  func.func @ca_kernel(%arg0: i32, %arg1: memref<1x8x128xf32, #tpu.memory_space<vmem>>, %arg2: memref<1x16x128xf32, #tpu.memory_space<vmem>>, %arg3: memref<1x1x8xf32, #tpu.memory_space<vmem>>, %arg4: memref<1x1x16xf32, #tpu.memory_space<vmem>>, %arg5: memref<2x128x64xbf16, #tpu.memory_space<vmem>>, %arg6: memref<2x1x64xf32, #tpu.memory_space<vmem>>, %arg7: memref<2x128x64xbf16, #tpu.memory_space<vmem>>, %arg8: memref<2x1x64xf32, #tpu.memory_space<vmem>>, %arg9: memref<2x128x64xbf16, #tpu.memory_space<vmem>>, %arg10: memref<2x1x64xf32, #tpu.memory_space<vmem>>, %arg11: memref<2x64x128xbf16, #tpu.memory_space<vmem>>, %arg12: memref<1x128xf32, #tpu.memory_space<vmem>>, %arg13: memref<1x128xf32, #tpu.memory_space<vmem>>, %arg14: memref<1x128xf32, #tpu.memory_space<vmem>>, %arg15: memref<2x128x64xbf16, #tpu.memory_space<vmem>>, %arg16: memref<2x1x64xf32, #tpu.memory_space<vmem>>, %arg17: memref<2x128x64xbf16, #tpu.memory_space<vmem>>, %arg18: memref<2x1x64xf32, #tpu.memory_space<vmem>>, %arg19: memref<2x128x64xbf16, #tpu.memory_space<vmem>>, %arg20: memref<2x1x64xf32, #tpu.memory_space<vmem>>, %arg21: memref<2x64x128xbf16, #tpu.memory_space<vmem>>, %arg22: memref<1x128xf32, #tpu.memory_space<vmem>>, %arg23: memref<1x128xf32, #tpu.memory_space<vmem>>, %arg24: memref<1x128xf32, #tpu.memory_space<vmem>>, %arg25: memref<128x256xbf16, #tpu.memory_space<vmem>>, %arg26: memref<1x256xf32, #tpu.memory_space<vmem>>, %arg27: memref<256x128xbf16, #tpu.memory_space<vmem>>, %arg28: memref<1x128xf32, #tpu.memory_space<vmem>>, %arg29: memref<1x128xf32, #tpu.memory_space<vmem>>, %arg30: memref<1x128xf32, #tpu.memory_space<vmem>>, %arg31: memref<1x8x128xf32, #tpu.memory_space<vmem>>) attributes {dimension_semantics = [#tpu.dimension_semantics<parallel>], iteration_bounds = array<i64: 2>, scalar_prefetch = 0 : i64, scratch_operands = 0 : i64, tpu.core_type = #tpu.core_type<tc>, window_params = [{transform_indices = @transform_0, window_bounds = array<i64: 1, 8, 128>}, {transform_indices = @transform_1, window_bounds = array<i64: 1, 16, 128>}, {transform_indices = @transform_2, window_bounds = array<i64: 1, 1, 8>}, {transform_indices = @transform_3, window_bounds = array<i64: 1, 1, 16>}, {pipeline_mode = #tpu.pipeline_mode<synchronous>, transform_indices = @transform_4, window_bounds = array<i64: 2, 128, 64>}, {pipeline_mode = #tpu.pipeline_mode<synchronous>, transform_indices = @transform_5, window_bounds = array<i64: 2, 1, 64>}, {pipeline_mode = #tpu.pipeline_mode<synchronous>, transform_indices = @transform_6, window_bounds = array<i64: 2, 128, 64>}, {pipeline_mode = #tpu.pipeline_mode<synchronous>, transform_indices = @transform_7, window_bounds = array<i64: 2, 1, 64>}, {pipeline_mode = #tpu.pipeline_mode<synchronous>, transform_indices = @transform_8, window_bounds = array<i64: 2, 128, 64>}, {pipeline_mode = #tpu.pipeline_mode<synchronous>, transform_indices = @transform_9, window_bounds = array<i64: 2, 1, 64>}, {pipeline_mode = #tpu.pipeline_mode<synchronous>, transform_indices = @transform_10, window_bounds = array<i64: 2, 64, 128>}, {pipeline_mode = #tpu.pipeline_mode<synchronous>, transform_indices = @transform_11, window_bounds = array<i64: 1, 128>}, {pipeline_mode = #tpu.pipeline_mode<synchronous>, transform_indices = @transform_12, window_bounds = array<i64: 1, 128>}, {pipeline_mode = #tpu.pipeline_mode<synchronous>, transform_indices = @transform_13, window_bounds = array<i64: 1, 128>}, {pipeline_mode = #tpu.pipeline_mode<synchronous>, transform_indices = @transform_14, window_bounds = array<i64: 2, 128, 64>}, {pipeline_mode = #tpu.pipeline_mode<synchronous>, transform_indices = @transform_15, window_bounds = array<i64: 2, 1, 64>}, {pipeline_mode = #tpu.pipeline_mode<synchronous>, transform_indices = @transform_16, window_bounds = array<i64: 2, 128, 64>}, {pipeline_mode = #tpu.pipeline_mode<synchronous>, transform_indices = @transform_17, window_bounds = array<i64: 2, 1, 64>}, {pipeline_mode = #tpu.pipeline_mode<synchronous>, transform_indices = @transform_18, window_bounds = array<i64: 2, 128, 64>}, {pipeline_mode = #tpu.pipeline_mode<synchronous>, transform_indices = @transform_19, window_bounds = array<i64: 2, 1, 64>}, {pipeline_mode = #tpu.pipeline_mode<synchronous>, transform_indices = @transform_20, window_bounds = array<i64: 2, 64, 128>}, {pipeline_mode = #tpu.pipeline_mode<synchronous>, transform_indices = @transform_21, window_bounds = array<i64: 1, 128>}, {pipeline_mode = #tpu.pipeline_mode<synchronous>, transform_indices = @transform_22, window_bounds = array<i64: 1, 128>}, {pipeline_mode = #tpu.pipeline_mode<synchronous>, transform_indices = @transform_23, window_bounds = array<i64: 1, 128>}, {pipeline_mode = #tpu.pipeline_mode<synchronous>, transform_indices = @transform_24, window_bounds = array<i64: 128, 256>}, {pipeline_mode = #tpu.pipeline_mode<synchronous>, transform_indices = @transform_25, window_bounds = array<i64: 1, 256>}, {pipeline_mode = #tpu.pipeline_mode<synchronous>, transform_indices = @transform_26, window_bounds = array<i64: 256, 128>}, {pipeline_mode = #tpu.pipeline_mode<synchronous>, transform_indices = @transform_27, window_bounds = array<i64: 1, 128>}, {pipeline_mode = #tpu.pipeline_mode<synchronous>, transform_indices = @transform_28, window_bounds = array<i64: 1, 128>}, {pipeline_mode = #tpu.pipeline_mode<synchronous>, transform_indices = @transform_29, window_bounds = array<i64: 1, 128>}, {transform_indices = @transform_30, window_bounds = array<i64: 1, 8, 128>}]} {
    %c0 = arith.constant 0 : index
    %c0_0 = arith.constant 0 : index
    %c0_1 = arith.constant 0 : index
    %0 = vector.load %arg1[%c0, %c0_0, %c0_1] : memref<1x8x128xf32, #tpu.memory_space<vmem>>, vector<1x8x128xf32>
    %1 = vector.shape_cast %0 : vector<1x8x128xf32> to vector<8x128xf32>
    %c0_2 = arith.constant 0 : index
    %c0_3 = arith.constant 0 : index
    %c0_4 = arith.constant 0 : index
    %2 = vector.load %arg2[%c0_2, %c0_3, %c0_4] : memref<1x16x128xf32, #tpu.memory_space<vmem>>, vector<1x16x128xf32>
    %3 = vector.shape_cast %2 : vector<1x16x128xf32> to vector<16x128xf32>
    %c0_5 = arith.constant 0 : index
    %c0_6 = arith.constant 0 : index
    %c0_7 = arith.constant 0 : index
    %4 = vector.load %arg3[%c0_5, %c0_6, %c0_7] : memref<1x1x8xf32, #tpu.memory_space<vmem>>, vector<1x1x8xf32>
    %5 = vector.shape_cast %4 : vector<1x1x8xf32> to vector<1x8xf32>
    %c0_8 = arith.constant 0 : index
    %c0_9 = arith.constant 0 : index
    %c0_10 = arith.constant 0 : index
    %6 = vector.load %arg4[%c0_8, %c0_9, %c0_10] : memref<1x1x16xf32, #tpu.memory_space<vmem>>, vector<1x1x16xf32>
    %7 = vector.shape_cast %6 : vector<1x1x16xf32> to vector<1x16xf32>
    %8 = arith.truncf %1 : vector<8x128xf32> to vector<8x128xbf16>
    %9 = arith.truncf %1 : vector<8x128xf32> to vector<8x128xbf16>
    %c0_11 = arith.constant 0 : index
    %c0_12 = arith.constant 0 : index
    %c0_13 = arith.constant 0 : index
    %10 = vector.load %arg5[%c0_11, %c0_12, %c0_13] : memref<2x128x64xbf16, #tpu.memory_space<vmem>>, vector<1x128x64xbf16>
    %11 = vector.shape_cast %10 : vector<1x128x64xbf16> to vector<128x64xbf16>
    %cst = arith.constant dense<0.000000e+00> : vector<8x64xf32>
    %12 = tpu.matmul %8, %11, %cst {dimension_numbers = #tpu.dot_dimension_numbers<[1], [0], [0], [1], [0, 0, 1, 1], [], []>} : vector<8x128xbf16>, vector<128x64xbf16>, vector<8x64xf32> -> vector<8x64xf32>
    %c0_14 = arith.constant 0 : index
    %c0_15 = arith.constant 0 : index
    %c0_16 = arith.constant 0 : index
    %13 = vector.load %arg6[%c0_14, %c0_15, %c0_16] : memref<2x1x64xf32, #tpu.memory_space<vmem>>, vector<1x1x64xf32>
    %14 = vector.shape_cast %13 : vector<1x1x64xf32> to vector<1x64xf32>
    %15 = vector.broadcast %14 : vector<1x64xf32> to vector<8x64xf32>
    %16 = arith.addf %12, %15 : vector<8x64xf32>
    %c0_17 = arith.constant 0 : index
    %c0_18 = arith.constant 0 : index
    %c0_19 = arith.constant 0 : index
    %17 = vector.load %arg7[%c0_17, %c0_18, %c0_19] : memref<2x128x64xbf16, #tpu.memory_space<vmem>>, vector<1x128x64xbf16>
    %18 = vector.shape_cast %17 : vector<1x128x64xbf16> to vector<128x64xbf16>
    %cst_20 = arith.constant dense<0.000000e+00> : vector<8x64xf32>
    %19 = tpu.matmul %9, %18, %cst_20 {dimension_numbers = #tpu.dot_dimension_numbers<[1], [0], [0], [1], [0, 0, 1, 1], [], []>} : vector<8x128xbf16>, vector<128x64xbf16>, vector<8x64xf32> -> vector<8x64xf32>
    %c0_21 = arith.constant 0 : index
    %c0_22 = arith.constant 0 : index
    %c0_23 = arith.constant 0 : index
    %20 = vector.load %arg8[%c0_21, %c0_22, %c0_23] : memref<2x1x64xf32, #tpu.memory_space<vmem>>, vector<1x1x64xf32>
    %21 = vector.shape_cast %20 : vector<1x1x64xf32> to vector<1x64xf32>
    %22 = vector.broadcast %21 : vector<1x64xf32> to vector<8x64xf32>
    %23 = arith.addf %19, %22 : vector<8x64xf32>
    %c0_24 = arith.constant 0 : index
    %c0_25 = arith.constant 0 : index
    %c0_26 = arith.constant 0 : index
    %24 = vector.load %arg9[%c0_24, %c0_25, %c0_26] : memref<2x128x64xbf16, #tpu.memory_space<vmem>>, vector<1x128x64xbf16>
    %25 = vector.shape_cast %24 : vector<1x128x64xbf16> to vector<128x64xbf16>
    %cst_27 = arith.constant dense<0.000000e+00> : vector<8x64xf32>
    %26 = tpu.matmul %9, %25, %cst_27 {dimension_numbers = #tpu.dot_dimension_numbers<[1], [0], [0], [1], [0, 0, 1, 1], [], []>} : vector<8x128xbf16>, vector<128x64xbf16>, vector<8x64xf32> -> vector<8x64xf32>
    %c0_28 = arith.constant 0 : index
    %c0_29 = arith.constant 0 : index
    %c0_30 = arith.constant 0 : index
    %27 = vector.load %arg10[%c0_28, %c0_29, %c0_30] : memref<2x1x64xf32, #tpu.memory_space<vmem>>, vector<1x1x64xf32>
    %28 = vector.shape_cast %27 : vector<1x1x64xf32> to vector<1x64xf32>
    %29 = vector.broadcast %28 : vector<1x64xf32> to vector<8x64xf32>
    %30 = arith.addf %26, %29 : vector<8x64xf32>
    %31 = arith.truncf %16 : vector<8x64xf32> to vector<8x64xbf16>
    %32 = arith.truncf %23 : vector<8x64xf32> to vector<8x64xbf16>
    %cst_31 = arith.constant dense<0.000000e+00> : vector<8x8xf32>
    %33 = tpu.matmul %31, %32, %cst_31 {dimension_numbers = #tpu.dot_dimension_numbers<[1], [1], [0], [0], [0, 0, 1, 0], [], []>} : vector<8x64xbf16>, vector<8x64xbf16>, vector<8x8xf32> -> vector<8x8xf32>
    %cst_32 = arith.constant 1.250000e-01 : f32
    %34 = vector.broadcast %cst_32 : f32 to vector<8x8xf32>
    %35 = arith.mulf %33, %34 : vector<8x8xf32>
    %36 = vector.broadcast %5 : vector<1x8xf32> to vector<8x8xf32>
    %37 = arith.addf %35, %36 : vector<8x8xf32>
    %cst_33 = arith.constant dense<0xFF800000> : vector<8xf32>
    %38 = vector.multi_reduction <maximumf>, %37, %cst_33 [1] : vector<8x8xf32> to vector<8xf32>
    %39 = vector.shape_cast %38 : vector<8xf32> to vector<8x1xf32>
    %40 = vector.broadcast %39 : vector<8x1xf32> to vector<8x8xf32>
    %41 = arith.subf %37, %40 : vector<8x8xf32>
    %42 = math.exp %41 : vector<8x8xf32>
    %cst_34 = arith.constant dense<0.000000e+00> : vector<8xf32>
    %43 = vector.multi_reduction <add>, %42, %cst_34 [1] : vector<8x8xf32> to vector<8xf32>
    %44 = vector.shape_cast %43 : vector<8xf32> to vector<8x1xf32>
    %45 = tpu.reciprocal %44 {approx = true} : vector<8x1xf32> -> vector<8x1xf32>
    %46 = vector.broadcast %45 : vector<8x1xf32> to vector<8x8xf32>
    %47 = arith.mulf %42, %46 : vector<8x8xf32>
    %48 = arith.truncf %47 : vector<8x8xf32> to vector<8x8xbf16>
    %49 = arith.truncf %30 : vector<8x64xf32> to vector<8x64xbf16>
    %cst_35 = arith.constant dense<0.000000e+00> : vector<8x64xf32>
    %50 = tpu.matmul %48, %49, %cst_35 {dimension_numbers = #tpu.dot_dimension_numbers<[1], [0], [0], [1], [0, 0, 1, 1], [], []>} : vector<8x8xbf16>, vector<8x64xbf16>, vector<8x64xf32> -> vector<8x64xf32>
    %51 = arith.truncf %50 : vector<8x64xf32> to vector<8x64xbf16>
    %c0_36 = arith.constant 0 : index
    %c0_37 = arith.constant 0 : index
    %c0_38 = arith.constant 0 : index
    %52 = vector.load %arg11[%c0_36, %c0_37, %c0_38] : memref<2x64x128xbf16, #tpu.memory_space<vmem>>, vector<1x64x128xbf16>
    %53 = vector.shape_cast %52 : vector<1x64x128xbf16> to vector<64x128xbf16>
    %cst_39 = arith.constant dense<0.000000e+00> : vector<8x128xf32>
    %54 = tpu.matmul %51, %53, %cst_39 {dimension_numbers = #tpu.dot_dimension_numbers<[1], [0], [0], [1], [0, 0, 1, 1], [], []>} : vector<8x64xbf16>, vector<64x128xbf16>, vector<8x128xf32> -> vector<8x128xf32>
    %c1 = arith.constant 1 : index
    %c0_40 = arith.constant 0 : index
    %c0_41 = arith.constant 0 : index
    %55 = vector.load %arg5[%c1, %c0_40, %c0_41] : memref<2x128x64xbf16, #tpu.memory_space<vmem>>, vector<1x128x64xbf16>
    %56 = vector.shape_cast %55 : vector<1x128x64xbf16> to vector<128x64xbf16>
    %cst_42 = arith.constant dense<0.000000e+00> : vector<8x64xf32>
    %57 = tpu.matmul %8, %56, %cst_42 {dimension_numbers = #tpu.dot_dimension_numbers<[1], [0], [0], [1], [0, 0, 1, 1], [], []>} : vector<8x128xbf16>, vector<128x64xbf16>, vector<8x64xf32> -> vector<8x64xf32>
    %c1_43 = arith.constant 1 : index
    %c0_44 = arith.constant 0 : index
    %c0_45 = arith.constant 0 : index
    %58 = vector.load %arg6[%c1_43, %c0_44, %c0_45] : memref<2x1x64xf32, #tpu.memory_space<vmem>>, vector<1x1x64xf32>
    %59 = vector.shape_cast %58 : vector<1x1x64xf32> to vector<1x64xf32>
    %60 = vector.broadcast %59 : vector<1x64xf32> to vector<8x64xf32>
    %61 = arith.addf %57, %60 : vector<8x64xf32>
    %c1_46 = arith.constant 1 : index
    %c0_47 = arith.constant 0 : index
    %c0_48 = arith.constant 0 : index
    %62 = vector.load %arg7[%c1_46, %c0_47, %c0_48] : memref<2x128x64xbf16, #tpu.memory_space<vmem>>, vector<1x128x64xbf16>
    %63 = vector.shape_cast %62 : vector<1x128x64xbf16> to vector<128x64xbf16>
    %cst_49 = arith.constant dense<0.000000e+00> : vector<8x64xf32>
    %64 = tpu.matmul %9, %63, %cst_49 {dimension_numbers = #tpu.dot_dimension_numbers<[1], [0], [0], [1], [0, 0, 1, 1], [], []>} : vector<8x128xbf16>, vector<128x64xbf16>, vector<8x64xf32> -> vector<8x64xf32>
    %c1_50 = arith.constant 1 : index
    %c0_51 = arith.constant 0 : index
    %c0_52 = arith.constant 0 : index
    %65 = vector.load %arg8[%c1_50, %c0_51, %c0_52] : memref<2x1x64xf32, #tpu.memory_space<vmem>>, vector<1x1x64xf32>
    %66 = vector.shape_cast %65 : vector<1x1x64xf32> to vector<1x64xf32>
    %67 = vector.broadcast %66 : vector<1x64xf32> to vector<8x64xf32>
    %68 = arith.addf %64, %67 : vector<8x64xf32>
    %c1_53 = arith.constant 1 : index
    %c0_54 = arith.constant 0 : index
    %c0_55 = arith.constant 0 : index
    %69 = vector.load %arg9[%c1_53, %c0_54, %c0_55] : memref<2x128x64xbf16, #tpu.memory_space<vmem>>, vector<1x128x64xbf16>
    %70 = vector.shape_cast %69 : vector<1x128x64xbf16> to vector<128x64xbf16>
    %cst_56 = arith.constant dense<0.000000e+00> : vector<8x64xf32>
    %71 = tpu.matmul %9, %70, %cst_56 {dimension_numbers = #tpu.dot_dimension_numbers<[1], [0], [0], [1], [0, 0, 1, 1], [], []>} : vector<8x128xbf16>, vector<128x64xbf16>, vector<8x64xf32> -> vector<8x64xf32>
    %c1_57 = arith.constant 1 : index
    %c0_58 = arith.constant 0 : index
    %c0_59 = arith.constant 0 : index
    %72 = vector.load %arg10[%c1_57, %c0_58, %c0_59] : memref<2x1x64xf32, #tpu.memory_space<vmem>>, vector<1x1x64xf32>
    %73 = vector.shape_cast %72 : vector<1x1x64xf32> to vector<1x64xf32>
    %74 = vector.broadcast %73 : vector<1x64xf32> to vector<8x64xf32>
    %75 = arith.addf %71, %74 : vector<8x64xf32>
    %76 = arith.truncf %61 : vector<8x64xf32> to vector<8x64xbf16>
    %77 = arith.truncf %68 : vector<8x64xf32> to vector<8x64xbf16>
    %cst_60 = arith.constant dense<0.000000e+00> : vector<8x8xf32>
    %78 = tpu.matmul %76, %77, %cst_60 {dimension_numbers = #tpu.dot_dimension_numbers<[1], [1], [0], [0], [0, 0, 1, 0], [], []>} : vector<8x64xbf16>, vector<8x64xbf16>, vector<8x8xf32> -> vector<8x8xf32>
    %cst_61 = arith.constant 1.250000e-01 : f32
    %79 = vector.broadcast %cst_61 : f32 to vector<8x8xf32>
    %80 = arith.mulf %78, %79 : vector<8x8xf32>
    %81 = vector.broadcast %5 : vector<1x8xf32> to vector<8x8xf32>
    %82 = arith.addf %80, %81 : vector<8x8xf32>
    %cst_62 = arith.constant dense<0xFF800000> : vector<8xf32>
    %83 = vector.multi_reduction <maximumf>, %82, %cst_62 [1] : vector<8x8xf32> to vector<8xf32>
    %84 = vector.shape_cast %83 : vector<8xf32> to vector<8x1xf32>
    %85 = vector.broadcast %84 : vector<8x1xf32> to vector<8x8xf32>
    %86 = arith.subf %82, %85 : vector<8x8xf32>
    %87 = math.exp %86 : vector<8x8xf32>
    %cst_63 = arith.constant dense<0.000000e+00> : vector<8xf32>
    %88 = vector.multi_reduction <add>, %87, %cst_63 [1] : vector<8x8xf32> to vector<8xf32>
    %89 = vector.shape_cast %88 : vector<8xf32> to vector<8x1xf32>
    %90 = tpu.reciprocal %89 {approx = true} : vector<8x1xf32> -> vector<8x1xf32>
    %91 = vector.broadcast %90 : vector<8x1xf32> to vector<8x8xf32>
    %92 = arith.mulf %87, %91 : vector<8x8xf32>
    %93 = arith.truncf %92 : vector<8x8xf32> to vector<8x8xbf16>
    %94 = arith.truncf %75 : vector<8x64xf32> to vector<8x64xbf16>
    %cst_64 = arith.constant dense<0.000000e+00> : vector<8x64xf32>
    %95 = tpu.matmul %93, %94, %cst_64 {dimension_numbers = #tpu.dot_dimension_numbers<[1], [0], [0], [1], [0, 0, 1, 1], [], []>} : vector<8x8xbf16>, vector<8x64xbf16>, vector<8x64xf32> -> vector<8x64xf32>
    %96 = arith.truncf %95 : vector<8x64xf32> to vector<8x64xbf16>
    %c1_65 = arith.constant 1 : index
    %c0_66 = arith.constant 0 : index
    %c0_67 = arith.constant 0 : index
    %97 = vector.load %arg11[%c1_65, %c0_66, %c0_67] : memref<2x64x128xbf16, #tpu.memory_space<vmem>>, vector<1x64x128xbf16>
    %98 = vector.shape_cast %97 : vector<1x64x128xbf16> to vector<64x128xbf16>
    %cst_68 = arith.constant dense<0.000000e+00> : vector<8x128xf32>
    %99 = tpu.matmul %96, %98, %cst_68 {dimension_numbers = #tpu.dot_dimension_numbers<[1], [0], [0], [1], [0, 0, 1, 1], [], []>} : vector<8x64xbf16>, vector<64x128xbf16>, vector<8x128xf32> -> vector<8x128xf32>
    %100 = arith.addf %54, %99 : vector<8x128xf32>
    %c0_69 = arith.constant 0 : index
    %c0_70 = arith.constant 0 : index
    %101 = vector.load %arg12[%c0_69, %c0_70] : memref<1x128xf32, #tpu.memory_space<vmem>>, vector<1x128xf32>
    %102 = vector.broadcast %101 : vector<1x128xf32> to vector<8x128xf32>
    %103 = arith.addf %100, %102 : vector<8x128xf32>
    %104 = arith.addf %1, %103 : vector<8x128xf32>
    %c0_71 = arith.constant 0 : index
    %c0_72 = arith.constant 0 : index
    %105 = vector.load %arg13[%c0_71, %c0_72] : memref<1x128xf32, #tpu.memory_space<vmem>>, vector<1x128xf32>
    %c0_73 = arith.constant 0 : index
    %c0_74 = arith.constant 0 : index
    %106 = vector.load %arg14[%c0_73, %c0_74] : memref<1x128xf32, #tpu.memory_space<vmem>>, vector<1x128xf32>
    %cst_75 = arith.constant dense<0.000000e+00> : vector<8xf32>
    %107 = vector.multi_reduction <add>, %104, %cst_75 [1] : vector<8x128xf32> to vector<8xf32>
    %108 = vector.shape_cast %107 : vector<8xf32> to vector<8x1xf32>
    %cst_76 = arith.constant 1.280000e+02 : f32
    %109 = vector.broadcast %cst_76 : f32 to vector<8x1xf32>
    %110 = arith.divf %108, %109 : vector<8x1xf32>
    %111 = vector.broadcast %110 : vector<8x1xf32> to vector<8x128xf32>
    %112 = arith.subf %104, %111 : vector<8x128xf32>
    %113 = arith.mulf %112, %112 : vector<8x128xf32>
    %cst_77 = arith.constant dense<0.000000e+00> : vector<8xf32>
    %114 = vector.multi_reduction <add>, %113, %cst_77 [1] : vector<8x128xf32> to vector<8xf32>
    %115 = vector.shape_cast %114 : vector<8xf32> to vector<8x1xf32>
    %cst_78 = arith.constant 0.00787401571 : f32
    %116 = vector.broadcast %cst_78 : f32 to vector<8x1xf32>
    %117 = arith.mulf %115, %116 : vector<8x1xf32>
    %118 = math.sqrt %117 : vector<8x1xf32>
    %119 = vector.broadcast %105 : vector<1x128xf32> to vector<8x128xf32>
    %120 = arith.mulf %119, %112 : vector<8x128xf32>
    %cst_79 = arith.constant 9.99999997E-7 : f32
    %121 = vector.broadcast %cst_79 : f32 to vector<8x1xf32>
    %122 = arith.addf %118, %121 : vector<8x1xf32>
    %123 = tpu.reciprocal %122 {approx = true} : vector<8x1xf32> -> vector<8x1xf32>
    %124 = vector.broadcast %123 : vector<8x1xf32> to vector<8x128xf32>
    %125 = arith.mulf %120, %124 : vector<8x128xf32>
    %126 = vector.broadcast %106 : vector<1x128xf32> to vector<8x128xf32>
    %127 = arith.addf %125, %126 : vector<8x128xf32>
    %128 = arith.truncf %127 : vector<8x128xf32> to vector<8x128xbf16>
    %129 = arith.truncf %3 : vector<16x128xf32> to vector<16x128xbf16>
    %c0_80 = arith.constant 0 : index
    %c0_81 = arith.constant 0 : index
    %c0_82 = arith.constant 0 : index
    %130 = vector.load %arg15[%c0_80, %c0_81, %c0_82] : memref<2x128x64xbf16, #tpu.memory_space<vmem>>, vector<1x128x64xbf16>
    %131 = vector.shape_cast %130 : vector<1x128x64xbf16> to vector<128x64xbf16>
    %cst_83 = arith.constant dense<0.000000e+00> : vector<8x64xf32>
    %132 = tpu.matmul %128, %131, %cst_83 {dimension_numbers = #tpu.dot_dimension_numbers<[1], [0], [0], [1], [0, 0, 1, 1], [], []>} : vector<8x128xbf16>, vector<128x64xbf16>, vector<8x64xf32> -> vector<8x64xf32>
    %c0_84 = arith.constant 0 : index
    %c0_85 = arith.constant 0 : index
    %c0_86 = arith.constant 0 : index
    %133 = vector.load %arg16[%c0_84, %c0_85, %c0_86] : memref<2x1x64xf32, #tpu.memory_space<vmem>>, vector<1x1x64xf32>
    %134 = vector.shape_cast %133 : vector<1x1x64xf32> to vector<1x64xf32>
    %135 = vector.broadcast %134 : vector<1x64xf32> to vector<8x64xf32>
    %136 = arith.addf %132, %135 : vector<8x64xf32>
    %c0_87 = arith.constant 0 : index
    %c0_88 = arith.constant 0 : index
    %c0_89 = arith.constant 0 : index
    %137 = vector.load %arg17[%c0_87, %c0_88, %c0_89] : memref<2x128x64xbf16, #tpu.memory_space<vmem>>, vector<1x128x64xbf16>
    %138 = vector.shape_cast %137 : vector<1x128x64xbf16> to vector<128x64xbf16>
    %cst_90 = arith.constant dense<0.000000e+00> : vector<16x64xf32>
    %139 = tpu.matmul %129, %138, %cst_90 {dimension_numbers = #tpu.dot_dimension_numbers<[1], [0], [0], [1], [0, 0, 1, 1], [], []>} : vector<16x128xbf16>, vector<128x64xbf16>, vector<16x64xf32> -> vector<16x64xf32>
    %c0_91 = arith.constant 0 : index
    %c0_92 = arith.constant 0 : index
    %c0_93 = arith.constant 0 : index
    %140 = vector.load %arg18[%c0_91, %c0_92, %c0_93] : memref<2x1x64xf32, #tpu.memory_space<vmem>>, vector<1x1x64xf32>
    %141 = vector.shape_cast %140 : vector<1x1x64xf32> to vector<1x64xf32>
    %142 = vector.broadcast %141 : vector<1x64xf32> to vector<16x64xf32>
    %143 = arith.addf %139, %142 : vector<16x64xf32>
    %c0_94 = arith.constant 0 : index
    %c0_95 = arith.constant 0 : index
    %c0_96 = arith.constant 0 : index
    %144 = vector.load %arg19[%c0_94, %c0_95, %c0_96] : memref<2x128x64xbf16, #tpu.memory_space<vmem>>, vector<1x128x64xbf16>
    %145 = vector.shape_cast %144 : vector<1x128x64xbf16> to vector<128x64xbf16>
    %cst_97 = arith.constant dense<0.000000e+00> : vector<16x64xf32>
    %146 = tpu.matmul %129, %145, %cst_97 {dimension_numbers = #tpu.dot_dimension_numbers<[1], [0], [0], [1], [0, 0, 1, 1], [], []>} : vector<16x128xbf16>, vector<128x64xbf16>, vector<16x64xf32> -> vector<16x64xf32>
    %c0_98 = arith.constant 0 : index
    %c0_99 = arith.constant 0 : index
    %c0_100 = arith.constant 0 : index
    %147 = vector.load %arg20[%c0_98, %c0_99, %c0_100] : memref<2x1x64xf32, #tpu.memory_space<vmem>>, vector<1x1x64xf32>
    %148 = vector.shape_cast %147 : vector<1x1x64xf32> to vector<1x64xf32>
    %149 = vector.broadcast %148 : vector<1x64xf32> to vector<16x64xf32>
    %150 = arith.addf %146, %149 : vector<16x64xf32>
    %151 = arith.truncf %136 : vector<8x64xf32> to vector<8x64xbf16>
    %152 = arith.truncf %143 : vector<16x64xf32> to vector<16x64xbf16>
    %cst_101 = arith.constant dense<0.000000e+00> : vector<8x16xf32>
    %153 = tpu.matmul %151, %152, %cst_101 {dimension_numbers = #tpu.dot_dimension_numbers<[1], [1], [0], [0], [0, 0, 1, 0], [], []>} : vector<8x64xbf16>, vector<16x64xbf16>, vector<8x16xf32> -> vector<8x16xf32>
    %cst_102 = arith.constant 1.250000e-01 : f32
    %154 = vector.broadcast %cst_102 : f32 to vector<8x16xf32>
    %155 = arith.mulf %153, %154 : vector<8x16xf32>
    %156 = vector.broadcast %7 : vector<1x16xf32> to vector<8x16xf32>
    %157 = arith.addf %155, %156 : vector<8x16xf32>
    %cst_103 = arith.constant dense<0xFF800000> : vector<8xf32>
    %158 = vector.multi_reduction <maximumf>, %157, %cst_103 [1] : vector<8x16xf32> to vector<8xf32>
    %159 = vector.shape_cast %158 : vector<8xf32> to vector<8x1xf32>
    %160 = vector.broadcast %159 : vector<8x1xf32> to vector<8x16xf32>
    %161 = arith.subf %157, %160 : vector<8x16xf32>
    %162 = math.exp %161 : vector<8x16xf32>
    %cst_104 = arith.constant dense<0.000000e+00> : vector<8xf32>
    %163 = vector.multi_reduction <add>, %162, %cst_104 [1] : vector<8x16xf32> to vector<8xf32>
    %164 = vector.shape_cast %163 : vector<8xf32> to vector<8x1xf32>
    %165 = tpu.reciprocal %164 {approx = true} : vector<8x1xf32> -> vector<8x1xf32>
    %166 = vector.broadcast %165 : vector<8x1xf32> to vector<8x16xf32>
    %167 = arith.mulf %162, %166 : vector<8x16xf32>
    %168 = arith.truncf %167 : vector<8x16xf32> to vector<8x16xbf16>
    %169 = arith.truncf %150 : vector<16x64xf32> to vector<16x64xbf16>
    %cst_105 = arith.constant dense<0.000000e+00> : vector<8x64xf32>
    %170 = tpu.matmul %168, %169, %cst_105 {dimension_numbers = #tpu.dot_dimension_numbers<[1], [0], [0], [1], [0, 0, 1, 1], [], []>} : vector<8x16xbf16>, vector<16x64xbf16>, vector<8x64xf32> -> vector<8x64xf32>
    %171 = arith.truncf %170 : vector<8x64xf32> to vector<8x64xbf16>
    %c0_106 = arith.constant 0 : index
    %c0_107 = arith.constant 0 : index
    %c0_108 = arith.constant 0 : index
    %172 = vector.load %arg21[%c0_106, %c0_107, %c0_108] : memref<2x64x128xbf16, #tpu.memory_space<vmem>>, vector<1x64x128xbf16>
    %173 = vector.shape_cast %172 : vector<1x64x128xbf16> to vector<64x128xbf16>
    %cst_109 = arith.constant dense<0.000000e+00> : vector<8x128xf32>
    %174 = tpu.matmul %171, %173, %cst_109 {dimension_numbers = #tpu.dot_dimension_numbers<[1], [0], [0], [1], [0, 0, 1, 1], [], []>} : vector<8x64xbf16>, vector<64x128xbf16>, vector<8x128xf32> -> vector<8x128xf32>
    %c1_110 = arith.constant 1 : index
    %c0_111 = arith.constant 0 : index
    %c0_112 = arith.constant 0 : index
    %175 = vector.load %arg15[%c1_110, %c0_111, %c0_112] : memref<2x128x64xbf16, #tpu.memory_space<vmem>>, vector<1x128x64xbf16>
    %176 = vector.shape_cast %175 : vector<1x128x64xbf16> to vector<128x64xbf16>
    %cst_113 = arith.constant dense<0.000000e+00> : vector<8x64xf32>
    %177 = tpu.matmul %128, %176, %cst_113 {dimension_numbers = #tpu.dot_dimension_numbers<[1], [0], [0], [1], [0, 0, 1, 1], [], []>} : vector<8x128xbf16>, vector<128x64xbf16>, vector<8x64xf32> -> vector<8x64xf32>
    %c1_114 = arith.constant 1 : index
    %c0_115 = arith.constant 0 : index
    %c0_116 = arith.constant 0 : index
    %178 = vector.load %arg16[%c1_114, %c0_115, %c0_116] : memref<2x1x64xf32, #tpu.memory_space<vmem>>, vector<1x1x64xf32>
    %179 = vector.shape_cast %178 : vector<1x1x64xf32> to vector<1x64xf32>
    %180 = vector.broadcast %179 : vector<1x64xf32> to vector<8x64xf32>
    %181 = arith.addf %177, %180 : vector<8x64xf32>
    %c1_117 = arith.constant 1 : index
    %c0_118 = arith.constant 0 : index
    %c0_119 = arith.constant 0 : index
    %182 = vector.load %arg17[%c1_117, %c0_118, %c0_119] : memref<2x128x64xbf16, #tpu.memory_space<vmem>>, vector<1x128x64xbf16>
    %183 = vector.shape_cast %182 : vector<1x128x64xbf16> to vector<128x64xbf16>
    %cst_120 = arith.constant dense<0.000000e+00> : vector<16x64xf32>
    %184 = tpu.matmul %129, %183, %cst_120 {dimension_numbers = #tpu.dot_dimension_numbers<[1], [0], [0], [1], [0, 0, 1, 1], [], []>} : vector<16x128xbf16>, vector<128x64xbf16>, vector<16x64xf32> -> vector<16x64xf32>
    %c1_121 = arith.constant 1 : index
    %c0_122 = arith.constant 0 : index
    %c0_123 = arith.constant 0 : index
    %185 = vector.load %arg18[%c1_121, %c0_122, %c0_123] : memref<2x1x64xf32, #tpu.memory_space<vmem>>, vector<1x1x64xf32>
    %186 = vector.shape_cast %185 : vector<1x1x64xf32> to vector<1x64xf32>
    %187 = vector.broadcast %186 : vector<1x64xf32> to vector<16x64xf32>
    %188 = arith.addf %184, %187 : vector<16x64xf32>
    %c1_124 = arith.constant 1 : index
    %c0_125 = arith.constant 0 : index
    %c0_126 = arith.constant 0 : index
    %189 = vector.load %arg19[%c1_124, %c0_125, %c0_126] : memref<2x128x64xbf16, #tpu.memory_space<vmem>>, vector<1x128x64xbf16>
    %190 = vector.shape_cast %189 : vector<1x128x64xbf16> to vector<128x64xbf16>
    %cst_127 = arith.constant dense<0.000000e+00> : vector<16x64xf32>
    %191 = tpu.matmul %129, %190, %cst_127 {dimension_numbers = #tpu.dot_dimension_numbers<[1], [0], [0], [1], [0, 0, 1, 1], [], []>} : vector<16x128xbf16>, vector<128x64xbf16>, vector<16x64xf32> -> vector<16x64xf32>
    %c1_128 = arith.constant 1 : index
    %c0_129 = arith.constant 0 : index
    %c0_130 = arith.constant 0 : index
    %192 = vector.load %arg20[%c1_128, %c0_129, %c0_130] : memref<2x1x64xf32, #tpu.memory_space<vmem>>, vector<1x1x64xf32>
    %193 = vector.shape_cast %192 : vector<1x1x64xf32> to vector<1x64xf32>
    %194 = vector.broadcast %193 : vector<1x64xf32> to vector<16x64xf32>
    %195 = arith.addf %191, %194 : vector<16x64xf32>
    %196 = arith.truncf %181 : vector<8x64xf32> to vector<8x64xbf16>
    %197 = arith.truncf %188 : vector<16x64xf32> to vector<16x64xbf16>
    %cst_131 = arith.constant dense<0.000000e+00> : vector<8x16xf32>
    %198 = tpu.matmul %196, %197, %cst_131 {dimension_numbers = #tpu.dot_dimension_numbers<[1], [1], [0], [0], [0, 0, 1, 0], [], []>} : vector<8x64xbf16>, vector<16x64xbf16>, vector<8x16xf32> -> vector<8x16xf32>
    %cst_132 = arith.constant 1.250000e-01 : f32
    %199 = vector.broadcast %cst_132 : f32 to vector<8x16xf32>
    %200 = arith.mulf %198, %199 : vector<8x16xf32>
    %201 = vector.broadcast %7 : vector<1x16xf32> to vector<8x16xf32>
    %202 = arith.addf %200, %201 : vector<8x16xf32>
    %cst_133 = arith.constant dense<0xFF800000> : vector<8xf32>
    %203 = vector.multi_reduction <maximumf>, %202, %cst_133 [1] : vector<8x16xf32> to vector<8xf32>
    %204 = vector.shape_cast %203 : vector<8xf32> to vector<8x1xf32>
    %205 = vector.broadcast %204 : vector<8x1xf32> to vector<8x16xf32>
    %206 = arith.subf %202, %205 : vector<8x16xf32>
    %207 = math.exp %206 : vector<8x16xf32>
    %cst_134 = arith.constant dense<0.000000e+00> : vector<8xf32>
    %208 = vector.multi_reduction <add>, %207, %cst_134 [1] : vector<8x16xf32> to vector<8xf32>
    %209 = vector.shape_cast %208 : vector<8xf32> to vector<8x1xf32>
    %210 = tpu.reciprocal %209 {approx = true} : vector<8x1xf32> -> vector<8x1xf32>
    %211 = vector.broadcast %210 : vector<8x1xf32> to vector<8x16xf32>
    %212 = arith.mulf %207, %211 : vector<8x16xf32>
    %213 = arith.truncf %212 : vector<8x16xf32> to vector<8x16xbf16>
    %214 = arith.truncf %195 : vector<16x64xf32> to vector<16x64xbf16>
    %cst_135 = arith.constant dense<0.000000e+00> : vector<8x64xf32>
    %215 = tpu.matmul %213, %214, %cst_135 {dimension_numbers = #tpu.dot_dimension_numbers<[1], [0], [0], [1], [0, 0, 1, 1], [], []>} : vector<8x16xbf16>, vector<16x64xbf16>, vector<8x64xf32> -> vector<8x64xf32>
    %216 = arith.truncf %215 : vector<8x64xf32> to vector<8x64xbf16>
    %c1_136 = arith.constant 1 : index
    %c0_137 = arith.constant 0 : index
    %c0_138 = arith.constant 0 : index
    %217 = vector.load %arg21[%c1_136, %c0_137, %c0_138] : memref<2x64x128xbf16, #tpu.memory_space<vmem>>, vector<1x64x128xbf16>
    %218 = vector.shape_cast %217 : vector<1x64x128xbf16> to vector<64x128xbf16>
    %cst_139 = arith.constant dense<0.000000e+00> : vector<8x128xf32>
    %219 = tpu.matmul %216, %218, %cst_139 {dimension_numbers = #tpu.dot_dimension_numbers<[1], [0], [0], [1], [0, 0, 1, 1], [], []>} : vector<8x64xbf16>, vector<64x128xbf16>, vector<8x128xf32> -> vector<8x128xf32>
    %220 = arith.addf %174, %219 : vector<8x128xf32>
    %c0_140 = arith.constant 0 : index
    %c0_141 = arith.constant 0 : index
    %221 = vector.load %arg22[%c0_140, %c0_141] : memref<1x128xf32, #tpu.memory_space<vmem>>, vector<1x128xf32>
    %222 = vector.broadcast %221 : vector<1x128xf32> to vector<8x128xf32>
    %223 = arith.addf %220, %222 : vector<8x128xf32>
    %224 = arith.addf %127, %223 : vector<8x128xf32>
    %c0_142 = arith.constant 0 : index
    %c0_143 = arith.constant 0 : index
    %225 = vector.load %arg23[%c0_142, %c0_143] : memref<1x128xf32, #tpu.memory_space<vmem>>, vector<1x128xf32>
    %c0_144 = arith.constant 0 : index
    %c0_145 = arith.constant 0 : index
    %226 = vector.load %arg24[%c0_144, %c0_145] : memref<1x128xf32, #tpu.memory_space<vmem>>, vector<1x128xf32>
    %cst_146 = arith.constant dense<0.000000e+00> : vector<8xf32>
    %227 = vector.multi_reduction <add>, %224, %cst_146 [1] : vector<8x128xf32> to vector<8xf32>
    %228 = vector.shape_cast %227 : vector<8xf32> to vector<8x1xf32>
    %cst_147 = arith.constant 1.280000e+02 : f32
    %229 = vector.broadcast %cst_147 : f32 to vector<8x1xf32>
    %230 = arith.divf %228, %229 : vector<8x1xf32>
    %231 = vector.broadcast %230 : vector<8x1xf32> to vector<8x128xf32>
    %232 = arith.subf %224, %231 : vector<8x128xf32>
    %233 = arith.mulf %232, %232 : vector<8x128xf32>
    %cst_148 = arith.constant dense<0.000000e+00> : vector<8xf32>
    %234 = vector.multi_reduction <add>, %233, %cst_148 [1] : vector<8x128xf32> to vector<8xf32>
    %235 = vector.shape_cast %234 : vector<8xf32> to vector<8x1xf32>
    %cst_149 = arith.constant 0.00787401571 : f32
    %236 = vector.broadcast %cst_149 : f32 to vector<8x1xf32>
    %237 = arith.mulf %235, %236 : vector<8x1xf32>
    %238 = math.sqrt %237 : vector<8x1xf32>
    %239 = vector.broadcast %225 : vector<1x128xf32> to vector<8x128xf32>
    %240 = arith.mulf %239, %232 : vector<8x128xf32>
    %cst_150 = arith.constant 9.99999997E-7 : f32
    %241 = vector.broadcast %cst_150 : f32 to vector<8x1xf32>
    %242 = arith.addf %238, %241 : vector<8x1xf32>
    %243 = tpu.reciprocal %242 {approx = true} : vector<8x1xf32> -> vector<8x1xf32>
    %244 = vector.broadcast %243 : vector<8x1xf32> to vector<8x128xf32>
    %245 = arith.mulf %240, %244 : vector<8x128xf32>
    %246 = vector.broadcast %226 : vector<1x128xf32> to vector<8x128xf32>
    %247 = arith.addf %245, %246 : vector<8x128xf32>
    %248 = arith.truncf %247 : vector<8x128xf32> to vector<8x128xbf16>
    %c0_151 = arith.constant 0 : index
    %c0_152 = arith.constant 0 : index
    %249 = vector.load %arg25[%c0_151, %c0_152] : memref<128x256xbf16, #tpu.memory_space<vmem>>, vector<128x256xbf16>
    %cst_153 = arith.constant dense<0.000000e+00> : vector<8x256xf32>
    %250 = tpu.matmul %248, %249, %cst_153 {dimension_numbers = #tpu.dot_dimension_numbers<[1], [0], [0], [1], [0, 0, 1, 1], [], []>} : vector<8x128xbf16>, vector<128x256xbf16>, vector<8x256xf32> -> vector<8x256xf32>
    %c0_154 = arith.constant 0 : index
    %c0_155 = arith.constant 0 : index
    %251 = vector.load %arg26[%c0_154, %c0_155] : memref<1x256xf32, #tpu.memory_space<vmem>>, vector<1x256xf32>
    %252 = vector.broadcast %251 : vector<1x256xf32> to vector<8x256xf32>
    %253 = arith.addf %250, %252 : vector<8x256xf32>
    %cst_156 = arith.constant 0.000000e+00 : f32
    %254 = vector.broadcast %cst_156 : f32 to vector<8x256xf32>
    %255 = arith.maximumf %253, %254 : vector<8x256xf32>
    %256 = arith.truncf %255 : vector<8x256xf32> to vector<8x256xbf16>
    %c0_157 = arith.constant 0 : index
    %c0_158 = arith.constant 0 : index
    %257 = vector.load %arg27[%c0_157, %c0_158] : memref<256x128xbf16, #tpu.memory_space<vmem>>, vector<256x128xbf16>
    %cst_159 = arith.constant dense<0.000000e+00> : vector<8x128xf32>
    %258 = tpu.matmul %256, %257, %cst_159 {dimension_numbers = #tpu.dot_dimension_numbers<[1], [0], [0], [1], [0, 0, 1, 1], [], []>} : vector<8x256xbf16>, vector<256x128xbf16>, vector<8x128xf32> -> vector<8x128xf32>
    %c0_160 = arith.constant 0 : index
    %c0_161 = arith.constant 0 : index
    %259 = vector.load %arg28[%c0_160, %c0_161] : memref<1x128xf32, #tpu.memory_space<vmem>>, vector<1x128xf32>
    %260 = vector.broadcast %259 : vector<1x128xf32> to vector<8x128xf32>
    %261 = arith.addf %258, %260 : vector<8x128xf32>
    %262 = arith.addf %247, %261 : vector<8x128xf32>
    %c0_162 = arith.constant 0 : index
    %c0_163 = arith.constant 0 : index
    %263 = vector.load %arg29[%c0_162, %c0_163] : memref<1x128xf32, #tpu.memory_space<vmem>>, vector<1x128xf32>
    %c0_164 = arith.constant 0 : index
    %c0_165 = arith.constant 0 : index
    %264 = vector.load %arg30[%c0_164, %c0_165] : memref<1x128xf32, #tpu.memory_space<vmem>>, vector<1x128xf32>
    %cst_166 = arith.constant dense<0.000000e+00> : vector<8xf32>
    %265 = vector.multi_reduction <add>, %262, %cst_166 [1] : vector<8x128xf32> to vector<8xf32>
    %266 = vector.shape_cast %265 : vector<8xf32> to vector<8x1xf32>
    %cst_167 = arith.constant 1.280000e+02 : f32
    %267 = vector.broadcast %cst_167 : f32 to vector<8x1xf32>
    %268 = arith.divf %266, %267 : vector<8x1xf32>
    %269 = vector.broadcast %268 : vector<8x1xf32> to vector<8x128xf32>
    %270 = arith.subf %262, %269 : vector<8x128xf32>
    %271 = arith.mulf %270, %270 : vector<8x128xf32>
    %cst_168 = arith.constant dense<0.000000e+00> : vector<8xf32>
    %272 = vector.multi_reduction <add>, %271, %cst_168 [1] : vector<8x128xf32> to vector<8xf32>
    %273 = vector.shape_cast %272 : vector<8xf32> to vector<8x1xf32>
    %cst_169 = arith.constant 0.00787401571 : f32
    %274 = vector.broadcast %cst_169 : f32 to vector<8x1xf32>
    %275 = arith.mulf %273, %274 : vector<8x1xf32>
    %276 = math.sqrt %275 : vector<8x1xf32>
    %277 = vector.broadcast %263 : vector<1x128xf32> to vector<8x128xf32>
    %278 = arith.mulf %277, %270 : vector<8x128xf32>
    %cst_170 = arith.constant 9.99999997E-7 : f32
    %279 = vector.broadcast %cst_170 : f32 to vector<8x1xf32>
    %280 = arith.addf %276, %279 : vector<8x1xf32>
    %281 = tpu.reciprocal %280 {approx = true} : vector<8x1xf32> -> vector<8x1xf32>
    %282 = vector.broadcast %281 : vector<8x1xf32> to vector<8x128xf32>
    %283 = arith.mulf %278, %282 : vector<8x128xf32>
    %284 = vector.broadcast %264 : vector<1x128xf32> to vector<8x128xf32>
    %285 = arith.addf %283, %284 : vector<8x128xf32>
    %c0_171 = arith.constant 0 : index
    %c0_172 = arith.constant 0 : index
    %c0_173 = arith.constant 0 : index
    %286 = vector.load %arg31[%c0_171, %c0_172, %c0_173] : memref<1x8x128xf32, #tpu.memory_space<vmem>>, vector<1x8x128xf32>
    %287 = vector.shape_cast %286 : vector<1x8x128xf32> to vector<8x128xf32>
    %288 = vector.shape_cast %285 : vector<8x128xf32> to vector<1x8x128xf32>
    tpu.vector_store %arg31[%c0_171, %c0_172, %c0_173], %288 {strides = array<i32>} : memref<1x8x128xf32, #tpu.memory_space<vmem>>, vector<1x8x128xf32>,
    return
  }
  func.func @transform_0(%arg0: i32) -> (i32, i32, i32) {
    %c0_i32 = arith.constant 0 : i32
    %c0_i32_0 = arith.constant 0 : i32
    %c0_i32_1 = arith.constant 0 : i32
    return %arg0, %c0_i32, %c0_i32_0 : i32, i32, i32
  }
  func.func @transform_1(%arg0: i32) -> (i32, i32, i32) {
    %c0_i32 = arith.constant 0 : i32
    %c0_i32_0 = arith.constant 0 : i32
    %c0_i32_1 = arith.constant 0 : i32
    return %arg0, %c0_i32, %c0_i32_0 : i32, i32, i32
  }
  func.func @transform_2(%arg0: i32) -> (i32, i32, i32) {
    %c0_i32 = arith.constant 0 : i32
    %c0_i32_0 = arith.constant 0 : i32
    %c0_i32_1 = arith.constant 0 : i32
    return %arg0, %c0_i32, %c0_i32_0 : i32, i32, i32
  }
  func.func @transform_3(%arg0: i32) -> (i32, i32, i32) {
    %c0_i32 = arith.constant 0 : i32
    %c0_i32_0 = arith.constant 0 : i32
    %c0_i32_1 = arith.constant 0 : i32
    return %arg0, %c0_i32, %c0_i32_0 : i32, i32, i32
  }
  func.func @transform_4(%arg0: i32) -> (i32, i32, i32) {
    %c0_i32 = arith.constant 0 : i32
    %c0_i32_0 = arith.constant 0 : i32
    %c0_i32_1 = arith.constant 0 : i32
    %c0_i32_2 = arith.constant 0 : i32
    return %c0_i32, %c0_i32_0, %c0_i32_1 : i32, i32, i32
  }
  func.func @transform_5(%arg0: i32) -> (i32, i32, i32) {
    %c0_i32 = arith.constant 0 : i32
    %c0_i32_0 = arith.constant 0 : i32
    %c0_i32_1 = arith.constant 0 : i32
    %c0_i32_2 = arith.constant 0 : i32
    return %c0_i32, %c0_i32_0, %c0_i32_1 : i32, i32, i32
  }
  func.func @transform_6(%arg0: i32) -> (i32, i32, i32) {
    %c0_i32 = arith.constant 0 : i32
    %c0_i32_0 = arith.constant 0 : i32
    %c0_i32_1 = arith.constant 0 : i32
    %c0_i32_2 = arith.constant 0 : i32
    return %c0_i32, %c0_i32_0, %c0_i32_1 : i32, i32, i32
  }
  func.func @transform_7(%arg0: i32) -> (i32, i32, i32) {
    %c0_i32 = arith.constant 0 : i32
    %c0_i32_0 = arith.constant 0 : i32
    %c0_i32_1 = arith.constant 0 : i32
    %c0_i32_2 = arith.constant 0 : i32
    return %c0_i32, %c0_i32_0, %c0_i32_1 : i32, i32, i32
  }
  func.func @transform_8(%arg0: i32) -> (i32, i32, i32) {
    %c0_i32 = arith.constant 0 : i32
    %c0_i32_0 = arith.constant 0 : i32
    %c0_i32_1 = arith.constant 0 : i32
    %c0_i32_2 = arith.constant 0 : i32
    return %c0_i32, %c0_i32_0, %c0_i32_1 : i32, i32, i32
  }
  func.func @transform_9(%arg0: i32) -> (i32, i32, i32) {
    %c0_i32 = arith.constant 0 : i32
    %c0_i32_0 = arith.constant 0 : i32
    %c0_i32_1 = arith.constant 0 : i32
    %c0_i32_2 = arith.constant 0 : i32
    return %c0_i32, %c0_i32_0, %c0_i32_1 : i32, i32, i32
  }
  func.func @transform_10(%arg0: i32) -> (i32, i32, i32) {
    %c0_i32 = arith.constant 0 : i32
    %c0_i32_0 = arith.constant 0 : i32
    %c0_i32_1 = arith.constant 0 : i32
    %c0_i32_2 = arith.constant 0 : i32
    return %c0_i32, %c0_i32_0, %c0_i32_1 : i32, i32, i32
  }
  func.func @transform_11(%arg0: i32) -> (i32, i32) {
    %c0_i32 = arith.constant 0 : i32
    %c0_i32_0 = arith.constant 0 : i32
    %c0_i32_1 = arith.constant 0 : i32
    return %c0_i32, %c0_i32_0 : i32, i32
  }
  func.func @transform_12(%arg0: i32) -> (i32, i32) {
    %c0_i32 = arith.constant 0 : i32
    %c0_i32_0 = arith.constant 0 : i32
    %c0_i32_1 = arith.constant 0 : i32
    return %c0_i32, %c0_i32_0 : i32, i32
  }
  func.func @transform_13(%arg0: i32) -> (i32, i32) {
    %c0_i32 = arith.constant 0 : i32
    %c0_i32_0 = arith.constant 0 : i32
    %c0_i32_1 = arith.constant 0 : i32
    return %c0_i32, %c0_i32_0 : i32, i32
  }
  func.func @transform_14(%arg0: i32) -> (i32, i32, i32) {
    %c0_i32 = arith.constant 0 : i32
    %c0_i32_0 = arith.constant 0 : i32
    %c0_i32_1 = arith.constant 0 : i32
    %c0_i32_2 = arith.constant 0 : i32
    return %c0_i32, %c0_i32_0, %c0_i32_1 : i32, i32, i32
  }
  func.func @transform_15(%arg0: i32) -> (i32, i32, i32) {
    %c0_i32 = arith.constant 0 : i32
    %c0_i32_0 = arith.constant 0 : i32
    %c0_i32_1 = arith.constant 0 : i32
    %c0_i32_2 = arith.constant 0 : i32
    return %c0_i32, %c0_i32_0, %c0_i32_1 : i32, i32, i32
  }
  func.func @transform_16(%arg0: i32) -> (i32, i32, i32) {
    %c0_i32 = arith.constant 0 : i32
    %c0_i32_0 = arith.constant 0 : i32
    %c0_i32_1 = arith.constant 0 : i32
    %c0_i32_2 = arith.constant 0 : i32
    return %c0_i32, %c0_i32_0, %c0_i32_1 : i32, i32, i32
  }
  func.func @transform_17(%arg0: i32) -> (i32, i32, i32) {
    %c0_i32 = arith.constant 0 : i32
    %c0_i32_0 = arith.constant 0 : i32
    %c0_i32_1 = arith.constant 0 : i32
    %c0_i32_2 = arith.constant 0 : i32
    return %c0_i32, %c0_i32_0, %c0_i32_1 : i32, i32, i32
  }
  func.func @transform_18(%arg0: i32) -> (i32, i32, i32) {
    %c0_i32 = arith.constant 0 : i32
    %c0_i32_0 = arith.constant 0 : i32
    %c0_i32_1 = arith.constant 0 : i32
    %c0_i32_2 = arith.constant 0 : i32
    return %c0_i32, %c0_i32_0, %c0_i32_1 : i32, i32, i32
  }
  func.func @transform_19(%arg0: i32) -> (i32, i32, i32) {
    %c0_i32 = arith.constant 0 : i32
    %c0_i32_0 = arith.constant 0 : i32
    %c0_i32_1 = arith.constant 0 : i32
    %c0_i32_2 = arith.constant 0 : i32
    return %c0_i32, %c0_i32_0, %c0_i32_1 : i32, i32, i32
  }
  func.func @transform_20(%arg0: i32) -> (i32, i32, i32) {
    %c0_i32 = arith.constant 0 : i32
    %c0_i32_0 = arith.constant 0 : i32
    %c0_i32_1 = arith.constant 0 : i32
    %c0_i32_2 = arith.constant 0 : i32
    return %c0_i32, %c0_i32_0, %c0_i32_1 : i32, i32, i32
  }
  func.func @transform_21(%arg0: i32) -> (i32, i32) {
    %c0_i32 = arith.constant 0 : i32
    %c0_i32_0 = arith.constant 0 : i32
    %c0_i32_1 = arith.constant 0 : i32
    return %c0_i32, %c0_i32_0 : i32, i32
  }
  func.func @transform_22(%arg0: i32) -> (i32, i32) {
    %c0_i32 = arith.constant 0 : i32
    %c0_i32_0 = arith.constant 0 : i32
    %c0_i32_1 = arith.constant 0 : i32
    return %c0_i32, %c0_i32_0 : i32, i32
  }
  func.func @transform_23(%arg0: i32) -> (i32, i32) {
    %c0_i32 = arith.constant 0 : i32
    %c0_i32_0 = arith.constant 0 : i32
    %c0_i32_1 = arith.constant 0 : i32
    return %c0_i32, %c0_i32_0 : i32, i32
  }
  func.func @transform_24(%arg0: i32) -> (i32, i32) {
    %c0_i32 = arith.constant 0 : i32
    %c0_i32_0 = arith.constant 0 : i32
    %c0_i32_1 = arith.constant 0 : i32
    return %c0_i32, %c0_i32_0 : i32, i32
  }
  func.func @transform_25(%arg0: i32) -> (i32, i32) {
    %c0_i32 = arith.constant 0 : i32
    %c0_i32_0 = arith.constant 0 : i32
    %c0_i32_1 = arith.constant 0 : i32
    return %c0_i32, %c0_i32_0 : i32, i32
  }
  func.func @transform_26(%arg0: i32) -> (i32, i32) {
    %c0_i32 = arith.constant 0 : i32
    %c0_i32_0 = arith.constant 0 : i32
    %c0_i32_1 = arith.constant 0 : i32
    return %c0_i32, %c0_i32_0 : i32, i32
  }
  func.func @transform_27(%arg0: i32) -> (i32, i32) {
    %c0_i32 = arith.constant 0 : i32
    %c0_i32_0 = arith.constant 0 : i32
    %c0_i32_1 = arith.constant 0 : i32
    return %c0_i32, %c0_i32_0 : i32, i32
  }
  func.func @transform_28(%arg0: i32) -> (i32, i32) {
    %c0_i32 = arith.constant 0 : i32
    %c0_i32_0 = arith.constant 0 : i32
    %c0_i32_1 = arith.constant 0 : i32
    return %c0_i32, %c0_i32_0 : i32, i32
  }
  func.func @transform_29(%arg0: i32) -> (i32, i32) {
    %c0_i32 = arith.constant 0 : i32
    %c0_i32_0 = arith.constant 0 : i32
    %c0_i32_1 = arith.constant 0 : i32
    return %c0_i32, %c0_i32_0 : i32, i32
  }
  func.func @transform_30(%arg0: i32) -> (i32, i32, i32) {
    %c0_i32 = arith.constant 0 : i32
    %c0_i32_0 = arith.constant 0 : i32
    %c0_i32_1 = arith.constant 0 : i32
    return %arg0, %c0_i32, %c0_i32_0 : i32, i32, i32
  }
}

</mosaic_0001>

<bundles_post_ra>
// kernel: apply_cme.23
= control target key start
LH: loop header
LB: loop body
LE: loop exit
PB: predicated region body
PF: predicated region fallthrough
CT: control target
= control target key end

     0   :  { %s2778_s27 = smov 0   ;;  %s3233_s0 = inlined_call_operand.vmem [shape: f32[2,8,128], index: 0, kind: input, shape index: {}]   ;;  %s3234_s1 = inlined_call_operand.vmem [shape: f32[2,1,8], index: 1, kind: input, shape index: {}]   ;;  %s3235_s2 = inlined_call_operand.vmem [shape: bf16[2,128,64], index: 2, kind: input, shape index: {}]   ;;  %s3236_s3 = inlined_call_operand.vmem [shape: f32[2,1,64], index: 3, kind: input, shape index: {}]   ;;  %s3237_s4 = inlined_call_operand.vmem [shape: bf16[2,128,64], index: 4, kind: input, shape index: {}]   ;;  %s3238_s5 = inlined_call_operand.vmem [shape: f32[2,1,64], index: 5, kind: input, shape index: {}]   ;;  %s3239_s6 = inlined_call_operand.vmem [shape: bf16[2,128,64], index: 6, kind: input, shape index: {}]   ;;  %s3240_s7 = inlined_call_operand.vmem [shape: f32[2,1,64], index: 7, kind: input, shape index: {}]   ;;  %s3241_s8 = inlined_call_operand.vmem [shape: bf16[2,64,128], index: 8, kind: input, shape index: {}]   ;;  %s3242_s9 = inlined_call_operand.vmem [shape: f32[1,128], index: 9, kind: input, shape index: {}]   ;;  %s3243_s10 = inlined_call_operand.vmem [shape: f32[1,128], index: 10, kind: input, shape index: {}]   ;;  %s3244_s11 = inlined_call_operand.vmem [shape: f32[1,128], index: 11, kind: input, shape index: {}]   ;;  %s3245_s12 = inlined_call_operand.vmem [shape: bf16[128,256], index: 12, kind: input, shape index: {}]   ;;  %s3246_s13 = inlined_call_operand.vmem [shape: f32[1,256], index: 13, kind: input, shape index: {}]   ;;  %s3247_s14 = inlined_call_operand.vmem [shape: bf16[256,128], index: 14, kind: input, shape index: {}]   ;;  %s3248_s15 = inlined_call_operand.vmem [shape: f32[1,128], index: 15, kind: input, shape index: {}]   ;;  %s3249_s16 = inlined_call_operand.vmem [shape: f32[1,128], index: 16, kind: input, shape index: {}]   ;;  %s3250_s17 = inlined_call_operand.vmem [shape: f32[1,128], index: 17, kind: input, shape index: {}]   ;;  %s3251_s18 = inlined_call_operand.vmem [shape: f32[2,8,128], index: 18, kind: output, shape index: {}]  }
   0x1   :  { %3253 = sst [smem:[#allocation2_spill]] %s3233_s0 }
   0x2   :  { %3254 = sst [smem:[#allocation3_spill]] %s3234_s1 }
   0x3   :  { %3255 = sst [smem:[#allocation4_spill]] %s3235_s2 }
   0x4 LB: > { %s2112_s28 = sadd.s32 4294967295, %s2678_s27   ;;  %p2116_p0 = scmp.ge.s32.totalorder %s2678_s27, 1  ;;  %s2678_s27 = sphi %s2778_s27, %s28_s27  }
   0x5   : > { %p519_p1 = scmp.lt.s32.totalorder %s2678_s27, 3 }
   0x7   : > { %p520_p2 = pnand %p2116_p0, %p519_p1 }
   0x8   : > { %v2560_v0 = vld [vmem:[%s3237_s4] sm:$0xff] (!%p520_p2)   ;;  %v2680_v1 = vmov (!%p520_p2), 0.0   ;;  %v2561_v2 = vld [vmem:[%s3237_s4 + $0x8] sm:$0xff] (!%p520_p2)   ;;  %s3256_s21 = sld [smem:[#allocation4_spill]] (!%p520_p2)  ;;  %vm2681_vm0 = vmmov (!%p520_p2), 0   ;;  %v2563_v5 = vld [vmem:[%s3237_s4 + $0x10] sm:$0xff] (!%p520_p2)  }
   0x9   : > { %523 = sbr.rel (%p520_p2) target bundleno = 3099 (0xc1b), region = 92  ;;  %2401 = vmatprep.subr.bf16.mxu1 (!%p520_p2), %v2680_v1  ;;  %2381 = vmatprep.subr.bf16.mxu0 (!%p520_p2), %v2680_v1  ;;  %p574_p3 = scmp.lt.s32.totalorder (!%p520_p2), %s2112_s28, 1  ;;  %v2565_v7 = vld [vmem:[%s3237_s4 + $0x18] sm:$0xff] (!%p520_p2)   ;;  %v2567_v9 = vld [vmem:[%s3237_s4 + $0x20] sm:$0xff] (!%p520_p2)   ;;  %v2569_v10 = vld [vmem:[%s3237_s4 + $0x28] sm:$0xff] (!%p520_p2)   ;;  %vm924_vm1 = vcmask (!%p520_p2), 523264  }
   0xa   : > { %2402 = vmatpush3.bf16.msra.mxu1 (!%p520_p2), %v2560_v0  ;;  %2417 = vmatprep.mubr.msk.bf16.mxu1 (!%p520_p2), %vm2681_vm0, %v2680_v1  ;;  %v2571_v13 = vld [vmem:[%s3237_s4 + $0x30] sm:$0xff] (!%p520_p2)   ;;  %s3257_s20 = sld [smem:[#allocation2_spill]] (!%p520_p2)  ;;  %v2573_v15 = vld [vmem:[%s3237_s4 + $0x38] sm:$0xff] (!%p520_p2)   ;;  %v2128_v19 = vld [vmem:[%s3238_s5] ss:$0 sm:$0xff] (!%p520_p2)  ;;  %s3258_s0 = sld [smem:[#allocation3_spill]] (!%p520_p2) }
   0xb   : > { %2403 = vmatprep.subr.bf16.mxu1 (!%p520_p2), %v2680_v1  ;;  %2397 = vmatprep.mubr.msk.bf16.mxu0 (!%p520_p2), %vm2681_vm0, %v2680_v1  ;;  %v2119_v24 = vld [vmem:[%s3236_s3] ss:$0 sm:$0xff] (!%p520_p2)  ;;  %v2577_v35 = vld [vmem:[%s3239_s6 + $0x8] sm:$0xff] (!%p520_p2)   ;;  %v2578_v36 = vld [vmem:[%s3239_s6 + $0x10] sm:$0xff] (!%p520_p2)   ;;  %vm979_vm2 = vcmask (!%p520_p2), 64512   ;;  %vm996_vm3 = vcmask (!%p520_p2), 1043456  }
   0xc   : > { %v2576_v34 = vld [vmem:[%s3239_s6] sm:$0xff] (!%p520_p2)   ;;  %v2579_v37 = vld [vmem:[%s3239_s6 + $0x18] sm:$0xff] (!%p520_p2)   ;;  %v2581_v39 = vld [vmem:[%s3239_s6 + $0x28] sm:$0xff] (!%p520_p2)  }
   0xd   : > { %v2580_v38 = vld [vmem:[%s3239_s6 + $0x20] sm:$0xff] (!%p520_p2)   ;;  %v2582_v40 = vld [vmem:[%s3239_s6 + $0x30] sm:$0xff] (!%p520_p2)   ;;  %v2583_v41 = vld [vmem:[%s3239_s6 + $0x38] sm:$0xff] (!%p520_p2)  }
   0xe   : > { %v2562_v3 = vld [vmem:[%s3256_s21] sm:$0xff] (!%p520_p2)   ;;  %v2564_v4 = vld [vmem:[%s3256_s21 + $0x8] sm:$0xff] (!%p520_p2)   ;;  %2404 = vmatpush3.bf16.msra.mxu1 (!%p520_p2), %v2561_v2  ;;  %v2566_v6 = vld [vmem:[%s3256_s21 + $0x10] sm:$0xff] (!%p520_p2)  }
   0xf   : > { %2382 = vmatpush3.bf16.msra.mxu0 (!%p520_p2), %v2562_v3  ;;  %2405 = vmatprep.subr.bf16.mxu1 (!%p520_p2), %v2680_v1  ;;  %v2568_v8 = vld [vmem:[%s3256_s21 + $0x18] sm:$0xff] (!%p520_p2)   ;;  %v2570_v11 = vld [vmem:[%s3256_s21 + $0x20] sm:$0xff] (!%p520_p2)   ;;  %v2572_v12 = vld [vmem:[%s3256_s21 + $0x28] sm:$0xff] (!%p520_p2)  }
  0x10   : > { %2383 = vmatprep.subr.bf16.mxu0 %v2680_v1  ;;  %s3260_s28 = smov (!%p574_p3, %s2112_s28), 1  ;;  %v2574_v14 = vld [vmem:[%s3256_s21 + $0x30] sm:$0xff]   ;;  %v2575_v17 = vld [vmem:[%s3256_s21 + $0x38] sm:$0xff]   ;;  %v2584_v56 = vld [vmem:[%s3237_s4 + $0x40] sm:$0xff]  }
  0x11   : > { %s2117_s25 = sshll.u32 %s3260_s28, 3  ;;  %s580_s19 = scalar_lea.vmem %s3258_s0, %s3260_s28  ;;  %v2137_v59 = vld [vmem:[%s3240_s7] ss:$0 sm:$0xff]  ;;  %v2585_v62 = vld [vmem:[%s3237_s4 + $0x48] sm:$0xff]   ;;  %v2586_v2 = vld [vmem:[%s3237_s4 + $0x50] sm:$0xff]  }
  0x12   : > { %2406 = vmatpush3.bf16.msra.mxu1 %v2563_v5  ;;  %s577_s22 = scalar_lea.vmem %s3257_s20, %s2117_s25  ;;  %v2930_v43 = vld [vmem:[%s580_s19] ss:$0 sm:$0xff]  ;;  %v2588_v3 = vld [vmem:[%s3237_s4 + $0x58] sm:$0xff]   ;;  %v2592_v5 = vld [vmem:[%s3237_s4 + $0x68] sm:$0xff]   ;;  %s584_s0 = scalar_lea.vmem %s3251_s18, %s2117_s25 }
  0x13   : > { %2384 = vmatpush3.bf16.msra.mxu0 %v2564_v4  ;;  %2407 = vmatprep.subr.bf16.mxu1 %v2680_v1  ;;  %v2860_v16 = vld [vmem:[%s577_s22] sm:$0xff] }
  0x14   : > { %2385 = vmatprep.subr.bf16.mxu0 %v2680_v1  ;;  %v2869_v18 = vpack.c.bf16 %v2860_v16, %v2860_v16  ;;  %v2590_v4 = vld [vmem:[%s3237_s4 + $0x60] sm:$0xff]  }
  0x16   : > { %2408 = vmatpush3.bf16.msra.mxu1 %v2565_v7  ;;  %v2596_v7 = vld [vmem:[%s3237_s4 + $0x78] sm:$0xff]  }
  0x17   : > { %2386 = vmatpush3.bf16.msra.mxu0 %v2566_v6  ;;  %2409 = vmatprep.subr.bf16.mxu1 %v2680_v1  ;;  %v2594_v6 = vld [vmem:[%s3237_s4 + $0x70] sm:$0xff]  }
  0x18   : > { %2387 = vmatprep.subr.bf16.mxu0 %v2680_v1 }
  0x1a   : > { %2410 = vmatpush3.bf16.msra.mxu1 %v2567_v9 }
  0x1b   : > { %2388 = vmatpush3.bf16.msra.mxu0 %v2568_v8  ;;  %2411 = vmatprep.subr.bf16.mxu1 %v2680_v1 }
  0x1c   : > { %2389 = vmatprep.subr.bf16.mxu0 %v2680_v1 }
  0x1e   : > { %2412 = vmatpush3.bf16.msra.mxu1 %v2569_v10 }
  0x1f   : > { %2390 = vmatpush3.bf16.msra.mxu0 %v2570_v11  ;;  %2413 = vmatprep.subr.bf16.mxu1 %v2680_v1  ;;  %v2587_v11 = vld [vmem:[%s3256_s21 + $0x40] sm:$0xff]  }
  0x20   : > { %2391 = vmatprep.subr.bf16.mxu0 %v2680_v1 }
  0x22   : > { %2414 = vmatpush3.bf16.msra.mxu1 %v2571_v13  ;;  %v2589_v13 = vld [vmem:[%s3256_s21 + $0x48] sm:$0xff]  }
  0x23   : > { %2392 = vmatpush3.bf16.msra.mxu0 %v2572_v12  ;;  %2415 = vmatprep.subr.bf16.mxu1 %v2680_v1 }
  0x24   : > { %2393 = vmatprep.subr.bf16.mxu0 %v2680_v1 }
  0x26   : > { %2416 = vmatpush3.bf16.msra.mxu1 %v2573_v15  ;;  %v2593_v15 = vld [vmem:[%s3256_s21 + $0x58] sm:$0xff]  }
  0x27   : > { %2394 = vmatpush3.bf16.msra.mxu0 %v2574_v14  ;;  %2441 = vmatprep.subr.bf16.mxu1 %v2680_v1  ;;  %v2591_v14 = vld [vmem:[%s3256_s21 + $0x50] sm:$0xff]  }
  0x28   : > { %2395 = vmatprep.subr.bf16.mxu0 %v2680_v1 }
  0x29   : > { %2418 = vmatmul.mubr.bf16.vlgmr.msra.gmra.mrb[0].mxu1 %v2869_v18 }
  0x2a   : > { %2443 = vmatprep.mubr.msk.bf16.mxu1 %vm2681_vm0, %v2680_v1 }
  0x2b   : > { %2396 = vmatpush3.bf16.msra.mxu0 %v2575_v17  ;;  %v2595_v17 = vld [vmem:[%s3256_s21 + $0x60] sm:$0xff]  }
  0x2c   : > { %2421 = vmatprep.subr.bf16.mxu0 %v2680_v1 }
  0x2e   : > { %2398 = vmatmul.mubr.bf16.vlgmr.msra.gmra.mrb[0].mxu0 %v2869_v18 }
  0x2f   : > { %2437 = vmatprep.mubr.msk.bf16.mxu0 %vm2681_vm0, %v2680_v1  ;;  %2422 = vmatpush3.bf16.msra.mxu0 %v2576_v34 }
  0x30   : > { %2423 = vmatprep.subr.bf16.mxu0 %v2680_v1 }
  0x33   : > { %2424 = vmatpush3.bf16.msra.mxu0 %v2577_v35 }
  0x34   : > { %2425 = vmatprep.subr.bf16.mxu0 %v2680_v1 }
  0x37   : > { %2426 = vmatpush3.bf16.msra.mxu0 %v2578_v36 }
  0x38   : > { %2427 = vmatprep.subr.bf16.mxu0 %v2680_v1 }
  0x3b   : > { %2428 = vmatpush3.bf16.msra.mxu0 %v2579_v37 }
  0x3c   : > { %2429 = vmatprep.subr.bf16.mxu0 %v2680_v1 }
  0x3f   : > { %2430 = vmatpush3.bf16.msra.mxu0 %v2580_v38 }
  0x40   : > { %2431 = vmatprep.subr.bf16.mxu0 %v2680_v1 }
  0x43   : > { %2432 = vmatpush3.bf16.msra.mxu0 %v2581_v39 }
  0x44   : > { %2433 = vmatprep.subr.bf16.mxu0 %v2680_v1 }
  0x47   : > { %2434 = vmatpush3.bf16.msra.mxu0 %v2582_v40 }
  0x48   : > { %2435 = vmatprep.subr.bf16.mxu0 %v2680_v1 }
  0x4b   : > { %2436 = vmatpush3.bf16.msra.mxu0 %v2583_v41 }
  0x4c   : > { %2473 = vmatprep.subr.bf16.mxu0 %v2680_v1 }
  0x4e   : > { %2438 = vmatmul.mubr.bf16.vlgmr.msra.gmra.mrb[4].mxu0 %v2869_v18 }
  0x4f   : > { %2489 = vmatprep.mubr.msk.bf16.mxu0 %vm2681_vm0, %v2680_v1  ;;  %2474 = vmatpush3.bf16.msra.mxu0 %v2584_v56 }
  0x50   : > { %2475 = vmatprep.subr.bf16.mxu0 %v2680_v1 }
  0x53   : > { %2476 = vmatpush3.bf16.msra.mxu0 %v2585_v62 }
  0x54   : > { %2477 = vmatprep.subr.bf16.mxu0 %v2680_v1 }
  0x57   : > { %2478 = vmatpush3.bf16.msra.mxu0 %v2586_v2 }
  0x58   : > { %2479 = vmatprep.subr.bf16.mxu0 %v2680_v1 }
  0x5b   : > { %2480 = vmatpush3.bf16.msra.mxu0 %v2588_v3 }
  0x5c   : > { %2481 = vmatprep.subr.bf16.mxu0 %v2680_v1 }
  0x5f   : > { %2482 = vmatpush3.bf16.msra.mxu0 %v2590_v4 }
  0x60   : > { %2483 = vmatprep.subr.bf16.mxu0 %v2680_v1 }
  0x63   : > { %2484 = vmatpush3.bf16.msra.mxu0 %v2592_v5 }
  0x64   : > { %2485 = vmatprep.subr.bf16.mxu0 %v2680_v1 }
  0x67   : > { %2486 = vmatpush3.bf16.msra.mxu0 %v2594_v6 }
  0x68   : > { %2487 = vmatprep.subr.bf16.mxu0 %v2680_v1 }
  0x6b   : > { %2488 = vmatpush3.bf16.msra.mxu0 %v2596_v7 }
  0x6c   : > { %2513 = vmatprep.subr.bf16.mxu0 %v2680_v1 }
  0x6e   : > { %2490 = vmatmul.mubr.bf16.vlgmr.msra.gmra.mrb[8].mxu0 %v2869_v18 }
  0x6f   : > { %2515 = vmatprep.mubr.msk.bf16.mxu0 %vm2681_vm0, %v2680_v1 }
  0xfc   : > { %v805_v20 = vpop.f32.mrb[0].mxu1 }
  0xfd   : > { %v806_v21 = vadd.f32 %v2128_v19, %v805_v20  ;;  %v2419_v22 = vpop.f32.mrb[1].mxu1  ;;  %v2597_v19 = vld [vmem:[%s3256_s21 + $0x68] sm:$0xff]   ;;  %v2598_v20 = vld [vmem:[%s3256_s21 + $0x70] sm:$0xff]  }
  0xfe   : > { %v808_v23 = vpop.f32.mrb[2].mxu1  ;;  %v2600_v22 = vld [vmem:[%s3239_s6 + $0x40] sm:$0xff]  }
  0xff   : > { %v923_v26 = vpack.c.bf16 %v806_v21, %v806_v21  ;;  %v2420_v27 = vpop.f32.mrb[3].mxu1  ;;  %v2599_v21 = vld [vmem:[%s3256_s21 + $0x78] sm:$0xff]   ;;  %v2601_v23 = vld [vmem:[%s3239_s6 + $0x48] sm:$0xff]  }
 0x100   : > { %v2605_v27 = vld [vmem:[%s3239_s6 + $0x68] sm:$0xff]  }
 0x101   : > { %v694_v25 = vpop.f32.mrb[0].mxu0  ;;  %v929_v30 = vsel %vm924_vm1, %v923_v26, 0  ;;  %v2604_v26 = vld [vmem:[%s3239_s6 + $0x60] sm:$0xff]  }
 0x102   : > { %v2399_v28 = vpop.f32.mrb[1].mxu0  ;;  %v695_v31 = vadd.f32 %v2119_v24, %v694_v25  ;;  %2442 = vmatpush3.bf16.xpose.msra.mxu1 %v929_v30  ;;  %v2602_v24 = vld [vmem:[%s3239_s6 + $0x50] sm:$0xff]   ;;  %v2603_v25 = vld [vmem:[%s3239_s6 + $0x58] sm:$0xff]   ;;  %v2608_v30 = vld [vmem:[%s3241_s8] sm:$0xff]  }
 0x103   : > { %v697_v29 = vpop.f32.mrb[2].mxu0  ;;  %2447 = vmatprep.subr.bf16.mxu1 %v2680_v1  ;;  %v2606_v28 = vld [vmem:[%s3239_s6 + $0x70] sm:$0xff]  }
 0x104   : > { %v2400_v32 = vpop.f32.mrb[3].mxu0  ;;  %v922_v33 = vpack.c.bf16 %v695_v31, %v695_v31  ;;  %v2607_v29 = vld [vmem:[%s3239_s6 + $0x78] sm:$0xff]   ;;  %v2609_v31 = vld [vmem:[%s3241_s8 + $0x8] sm:$0xff]  }
 0x105   : > { %v2610_v32 = vld [vmem:[%s3241_s8 + $0x10] sm:$0xff]  }
 0x109   : > { %2444 = vmatmul.mubr.msk.bf16.vlgmr.msra.gmra.mrb[4].mxu1 %vm924_vm1, %v922_v33  ;;  %v2192_v33 = vld [vmem:[%s3238_s5 + $0x1] ss:$0 sm:$0xff] }
 0x10a   : > { %2449 = vmatprep.mubr.msk.bf16.mxu1 %vm2681_vm0, %v2680_v1 }
 0x121   : > { %v916_v55 = vpop.f32.mrb[4].mxu0 }
 0x122   : > { %v2439_v57 = vpop.f32.mrb[5].mxu0  ;;  %v917_v61 = vadd.f32 %v2137_v59, %v916_v55 }
 0x123   : > { %v919_v58 = vpop.f32.mrb[6].mxu0 }
 0x124   : > { %v2440_v60 = vpop.f32.mrb[7].mxu0  ;;  %v992_v63 = vpack.c.bf16 %v917_v61, %v917_v61 }
 0x126   : > { %v998_v0 = vsel %vm996_vm3, %v992_v63, 0 }
 0x127   : > { %2448 = vmatpush3.bf16.msra.mxu1 %v998_v0 }
 0x128   : > { %2453 = vmatprep.subr.bf16.mxu1 %v2680_v1 }
 0x141   : > { %v1269_v34 = vpop.f32.mrb[8].mxu0 }
 0x142   : > { %v1270_v35 = vadd.f32 %v2192_v33, %v1269_v34  ;;  %v2491_v36 = vpop.f32.mrb[9].mxu0 }
 0x143   : > { %v1272_v37 = vpop.f32.mrb[10].mxu0 }
 0x144   : > { %v1389_v38 = vpack.c.bf16 %v1270_v35, %v1270_v35  ;;  %v2492_v39 = vpop.f32.mrb[11].mxu0 }
 0x145   : > { %v2618_v39 = vld [vmem:[%s3245_s12 + $0x4] ss:$8 sps:$4 sm:$0xff]  }
 0x146   : > { %v1394_v40 = vsel %vm924_vm1, %v1389_v38, 0 }
 0x147   : > { %2514 = vmatpush3.bf16.xpose.msra.mxu0 %v1394_v40  ;;  %v2616_v40 = vld [vmem:[%s3245_s12] ss:$8 sps:$4 sm:$0xff]  }
 0x148   : > { %2519 = vmatprep.subr.bf16.mxu0 %v2680_v1 }
 0x1dc   : > { %v965_v42 = vpop.f32.mrb[4].mxu1 }
 0x1dd   : > { %v971_v44 = vmul.f32 0.125, %v965_v42  ;;  %v2445_v45 = vpop.f32.mrb[5].mxu1 }
 0x1de   : > { %v968_v46 = vpop.f32.mrb[6].mxu1 }
 0x1df   : > { %v2446_v47 = vpop.f32.mrb[7].mxu1  ;;  %v978_v48 = vadd.f32 %v2930_v43, %v971_v44 }
 0x1e0   : > { %v2166_v47 = vld [vmem:[%s3236_s3 + $0x1] ss:$0 sm:$0xff] }
 0x1e1   : > { %v980_v49 = vsel %vm979_vm2, %v978_v48, -inf }
 0x1e2   : > { %981 = vmax.xlane.f32.xlu0 %v980_v49 }
 0x26f   : > { %v982_v50 = vpop.xlane.xlu0 %981 }
 0x270   : > { %v983_v51 = vsub.f32 %v978_v48, %v982_v50 }
 0x272   : > { %v984_v52 = vmul.f32 1.442695, %v983_v51 }
 0x274   : > { %2656 = vpow2.f32 %v984_v52 }
 0x27e   : > { %v2657_v53 = vpop.eup %2656 }
 0x27f   : > { %v986_v54 = vsel %vm979_vm2, %v2657_v53, 0.0 }
 0x280   : > { %987 = vadd.xlane.f32.xlu0 %v986_v54  ;;  %v2218_v54 = vld [vmem:[%s3240_s7 + $0x1] ss:$0 sm:$0xff] }
 0x30d   : > { %v988_v8 = vpop.xlane.xlu0 %987 }
 0x30e   : > { %2658 = vrcp.f32 %v988_v8 }
 0x318   : > { %v2659_v9 = vpop.eup %2658 }
 0x319   : > { %v990_v10 = vmul.f32 %v2659_v9, %v2657_v53 }
 0x31b   : > { %v991_v12 = vpack.c.bf16 %v990_v10, %v990_v10 }
 0x31d   : > { %2450 = vmatmul.mubr.msk.bf16.vlgmr.msra.gmra.mrb[8].mxu1 %vm979_vm2, %v991_v12 }
 0x31e   : > { %2454 = vmatpush3.bf16.msra.mxu1 %v2587_v11  ;;  %2469 = vmatprep.mubr.msk.bf16.mxu1 %vm2681_vm0, %v2680_v1 }
 0x31f   : > { %2455 = vmatprep.subr.bf16.mxu1 %v2680_v1 }
 0x322   : > { %2456 = vmatpush3.bf16.msra.mxu1 %v2589_v13 }
 0x323   : > { %2457 = vmatprep.subr.bf16.mxu1 %v2680_v1 }
 0x326   : > { %2458 = vmatpush3.bf16.msra.mxu1 %v2591_v14 }
 0x327   : > { %2459 = vmatprep.subr.bf16.mxu1 %v2680_v1 }
 0x32a   : > { %2460 = vmatpush3.bf16.msra.mxu1 %v2593_v15 }
 0x32b   : > { %2461 = vmatprep.subr.bf16.mxu1 %v2680_v1 }
 0x32e   : > { %2462 = vmatpush3.bf16.msra.mxu1 %v2595_v17 }
 0x32f   : > { %2463 = vmatprep.subr.bf16.mxu1 %v2680_v1 }
 0x332   : > { %2464 = vmatpush3.bf16.msra.mxu1 %v2597_v19 }
 0x333   : > { %2465 = vmatprep.subr.bf16.mxu1 %v2680_v1 }
 0x336   : > { %2466 = vmatpush3.bf16.msra.mxu1 %v2598_v20  ;;  %v2612_v20 = vld [vmem:[%s3241_s8 + $0x20] sm:$0xff]  }
 0x337   : > { %2467 = vmatprep.subr.bf16.mxu1 %v2680_v1 }
 0x33a   : > { %2468 = vmatpush3.bf16.msra.mxu1 %v2599_v21  ;;  %v2613_v21 = vld [vmem:[%s3241_s8 + $0x28] sm:$0xff]  }
 0x33b   : > { %2493 = vmatprep.subr.bf16.mxu1 %v2680_v1 }
 0x33d   : > { %2470 = vmatmul.mubr.bf16.vlgmr.msra.gmra.mrb[12].mxu1 %v2869_v18 }
 0x33e   : > { %2494 = vmatpush3.bf16.msra.mxu1 %v2600_v22  ;;  %2509 = vmatprep.mubr.msk.bf16.mxu1 %vm2681_vm0, %v2680_v1  ;;  %v2614_v22 = vld [vmem:[%s3241_s8 + $0x30] sm:$0xff]  }
 0x33f   : > { %2495 = vmatprep.subr.bf16.mxu1 %v2680_v1 }
 0x342   : > { %2496 = vmatpush3.bf16.msra.mxu1 %v2601_v23  ;;  %v2615_v23 = vld [vmem:[%s3241_s8 + $0x38] sm:$0xff]  }
 0x343   : > { %2497 = vmatprep.subr.bf16.mxu1 %v2680_v1 }
 0x346   : > { %2498 = vmatpush3.bf16.msra.mxu1 %v2602_v24 }
 0x347   : > { %2499 = vmatprep.subr.bf16.mxu1 %v2680_v1 }
 0x34a   : > { %2500 = vmatpush3.bf16.msra.mxu1 %v2603_v25 }
 0x34b   : > { %2501 = vmatprep.subr.bf16.mxu1 %v2680_v1 }
 0x34e   : > { %2502 = vmatpush3.bf16.msra.mxu1 %v2604_v26 }
 0x34f   : > { %2503 = vmatprep.subr.bf16.mxu1 %v2680_v1 }
 0x352   : > { %2504 = vmatpush3.bf16.msra.mxu1 %v2605_v27 }
 0x353   : > { %2505 = vmatprep.subr.bf16.mxu1 %v2680_v1 }
 0x356   : > { %2506 = vmatpush3.bf16.msra.mxu1 %v2606_v28 }
 0x357   : > { %2507 = vmatprep.subr.bf16.mxu1 %v2680_v1 }
 0x35a   : > { %2508 = vmatpush3.bf16.msra.mxu1 %v2607_v29 }
 0x35b   : > { %2537 = vmatprep.subr.bf16.mxu1 %v2680_v1 }
 0x35d   : > { %2510 = vmatmul.mubr.bf16.vlgmr.msra.gmra.mrb[16].mxu1 %v2869_v18  ;;  %v2611_v18 = vld [vmem:[%s3241_s8 + $0x18] sm:$0xff]  }
 0x35e   : > { %2538 = vmatpush3.bf16.msra.mxu1 %v2608_v30  ;;  %2545 = vmatprep.mubr.msk.bf16.mxu1 %vm2681_vm0, %v2680_v1  ;;  %v2247_v30 = vld [vmem:[%s3242_s9] ss:$0 sm:$0xff] }
 0x35f   : > { %2539 = vmatprep.subr.bf16.mxu1 %v2680_v1 }
 0x362   : > { %2540 = vmatpush3.bf16.msra.mxu1 %v2609_v31 }
 0x363   : > { %2541 = vmatprep.subr.bf16.mxu1 %v2680_v1 }
 0x366   : > { %2542 = vmatpush3.bf16.msra.mxu1 %v2610_v32 }
 0x367   : > { %2543 = vmatprep.subr.bf16.mxu1 %v2680_v1 }
 0x36a   : > { %2544 = vmatpush3.bf16.msra.mxu1 %v2611_v18 }
 0x3f0   : > { %v1034_v41 = vpop.f32.mrb[8].mxu1 }
 0x3f1   : > { %v1040_v42 = vpack.c.bf16 %v1034_v41, %v1034_v41  ;;  %v2451_v44 = vpop.f32.mrb[9].mxu1  ;;  %v2619_v41 = vld [vmem:[%s3245_s12 + $0x10] ss:$8 sps:$4 sm:$0xff]  }
 0x3f2   : > { %v1037_v45 = vpop.f32.mrb[10].mxu1  ;;  %v2622_v44 = vld [vmem:[%s3245_s12 + $0x20] ss:$8 sps:$4 sm:$0xff]  }
 0x3f3   : > { %v2452_v46 = vpop.f32.mrb[11].mxu1  ;;  %2546 = vmatmul.mubr.msk.bf16.vlgmr.msra.gmra.mrb[20].mxu1 %vm924_vm1, %v1040_v42  ;;  %v2624_v42 = vld [vmem:[%s3245_s12 + $0x24] ss:$8 sps:$4 sm:$0xff]   ;;  %v2627_v45 = vld [vmem:[%s3245_s12 + $0x34] ss:$8 sps:$4 sm:$0xff]  }
 0x3f4   : > { %v2625_v46 = vld [vmem:[%s3245_s12 + $0x30] ss:$8 sps:$4 sm:$0xff]  }
 0x410   : > { %v1156_v48 = vpop.f32.mrb[12].mxu1 }
 0x411   : > { %v1157_v49 = vadd.f32 %v2166_v47, %v1156_v48  ;;  %v2471_v50 = vpop.f32.mrb[13].mxu1  ;;  %v2630_v47 = vld [vmem:[%s3245_s12 + $0x44] ss:$8 sps:$4 sm:$0xff]   ;;  %v2628_v48 = vld [vmem:[%s3245_s12 + $0x40] ss:$8 sps:$4 sm:$0xff]  }
 0x412   : > { %v1159_v51 = vpop.f32.mrb[14].mxu1  ;;  %v2631_v50 = vld [vmem:[%s3245_s12 + $0x50] ss:$8 sps:$4 sm:$0xff]  }
 0x413   : > { %v1388_v52 = vpack.c.bf16 %v1157_v49, %v1157_v49  ;;  %v2472_v53 = vpop.f32.mrb[15].mxu1  ;;  %v2633_v49 = vld [vmem:[%s3245_s12 + $0x54] ss:$8 sps:$4 sm:$0xff]   ;;  %v2636_v51 = vld [vmem:[%s3245_s12 + $0x64] ss:$8 sps:$4 sm:$0xff]  }
 0x414   : > { %v2634_v53 = vld [vmem:[%s3245_s12 + $0x60] ss:$8 sps:$4 sm:$0xff]  }
 0x415   : > { %2516 = vmatmul.mubr.msk.bf16.vlgmr.msra.gmra.mrb[12].mxu0 %vm924_vm1, %v1388_v52  ;;  %v2682_v52 = vmov 0  }
 0x416   : > { %2521 = vmatprep.mubr.msk.bf16.mxu0 %vm2681_vm0, %v2680_v1 }
 0x430   : > { %v1382_v55 = vpop.f32.mrb[16].mxu1 }
 0x431   : > { %v1383_v56 = vadd.f32 %v2218_v54, %v1382_v55  ;;  %v2511_v57 = vpop.f32.mrb[17].mxu1  ;;  %v2639_v54 = vld [vmem:[%s3245_s12 + $0x74] ss:$8 sps:$4 sm:$0xff]   ;;  %v2637_v55 = vld [vmem:[%s3245_s12 + $0x70] ss:$8 sps:$4 sm:$0xff]  }
 0x432   : > { %v1385_v58 = vpop.f32.mrb[18].mxu1  ;;  %v2641_v57 = vld [vmem:[%s3247_s14] sm:$0xff]  }
 0x433   : > { %v1450_v59 = vpack.c.bf16 %v1383_v56, %v1383_v56  ;;  %v2512_v60 = vpop.f32.mrb[19].mxu1  ;;  %v2640_v56 = vld [vmem:[%s3247_s14 + $0x40] sm:$0xff]   ;;  %v2642_v58 = vld [vmem:[%s3247_s14 + $0x48] sm:$0xff]  }
 0x434   : > { %2359 = vmatprep.subr.bf16.mxu1 %v2640_v56  ;;  %v2644_v60 = vld [vmem:[%s3247_s14 + $0x50] sm:$0xff]  }
 0x435   : > { %v1455_v61 = vsel %vm996_vm3, %v1450_v59, 0  ;;  %2360 = vmatpush3.bf16.msra.mxu1 %v2641_v57  ;;  %v2643_v59 = vld [vmem:[%s3247_s14 + $0x8] sm:$0xff]  }
 0x436   : > { %2520 = vmatpush3.bf16.msra.mxu0 %v1455_v61  ;;  %2361 = vmatprep.subr.bf16.mxu1 %v2642_v58  ;;  %v2645_v61 = vld [vmem:[%s3247_s14 + $0x10] sm:$0xff]  }
 0x437   : > { %2525 = vmatprep.subr.bf16.mxu0 %v2680_v1 }
 0x439   : > { %2362 = vmatpush3.bf16.msra.mxu1 %v2643_v59 }
 0x43a   : > { %2363 = vmatprep.subr.bf16.mxu1 %v2644_v60  ;;  %v2283_v60 = vld [vmem:[%s3249_s16] ss:$0 sm:$0xff] }
 0x43d   : > { %2364 = vmatpush3.bf16.msra.mxu1 %v2645_v61 }
 0x4c6   : > { %v1635_v62 = vpop.f32.mrb[20].mxu1 }
 0x4c7   : > { %v2547_v63 = vpop.f32.mrb[21].mxu1 }
 0x4c8   : > { %v1638_v0 = vpop.f32.mrb[22].mxu1  ;;  %v2647_v63 = vld [vmem:[%s3247_s14 + $0x18] sm:$0xff]  }
 0x4c9   : > { %v2548_v2 = vpop.f32.mrb[23].mxu1  ;;  %v2648_v0 = vld [vmem:[%s3247_s14 + $0x60] sm:$0xff]  }
 0x4ca   : > { %v2649_v2 = vld [vmem:[%s3247_s14 + $0x20] sm:$0xff]  }
 0x4e8   : > { %v1430_v3 = vpop.f32.mrb[12].mxu0 }
 0x4e9   : > { %v1436_v4 = vmul.f32 0.125, %v1430_v3  ;;  %v2517_v5 = vpop.f32.mrb[13].mxu0  ;;  %v2650_v3 = vld [vmem:[%s3247_s14 + $0x68] sm:$0xff]  }
 0x4ea   : > { %v1433_v6 = vpop.f32.mrb[14].mxu0 }
 0x4eb   : > { %v2518_v7 = vpop.f32.mrb[15].mxu0  ;;  %v1437_v8 = vadd.f32 %v2930_v43, %v1436_v4  ;;  %v2651_v4 = vld [vmem:[%s3247_s14 + $0x28] sm:$0xff]  }
 0x4ed   : > { %v1438_v9 = vsel %vm979_vm2, %v1437_v8, -inf }
 0x4ee   : > { %1439 = vmax.xlane.f32.xlu1 %v1438_v9 }
 0x57b   : > { %v1440_v10 = vpop.xlane.xlu1 %1439 }
 0x57c   : > { %v1441_v11 = vsub.f32 %v1437_v8, %v1440_v10 }
 0x57e   : > { %v1442_v12 = vmul.f32 1.442695, %v1441_v11 }
 0x580   : > { %2660 = vpow2.f32 %v1442_v12 }
 0x58a   : > { %v2661_v13 = vpop.eup %2660 }
 0x58b   : > { %v1444_v14 = vsel %vm979_vm2, %v2661_v13, 0.0 }
 0x58c   : > { %1445 = vadd.xlane.f32.xlu1 %v1444_v14 }
 0x619   : > { %v1446_v15 = vpop.xlane.xlu1 %1445 }
 0x61a   : > { %2662 = vrcp.f32 %v1446_v15 }
 0x624   : > { %v2663_v17 = vpop.eup %2662 }
 0x625   : > { %v1448_v19 = vmul.f32 %v2663_v17, %v2661_v13  ;;  %v2248_v13 = vld [vmem:[%s3243_s10] ss:$0 sm:$0xff] }
 0x626   : > { %v2249_v17 = vld [vmem:[%s3244_s11] ss:$0 sm:$0xff] }
 0x627   : > { %v1449_v43 = vpack.c.bf16 %v1448_v19, %v1448_v19 }
 0x629   : > { %2522 = vmatmul.mubr.msk.bf16.vlgmr.msra.gmra.mrb[16].mxu0 %vm979_vm2, %v1449_v43 }
 0x62a   : > { %2526 = vmatpush3.bf16.msra.mxu0 %v2612_v20  ;;  %2533 = vmatprep.mubr.msk.bf16.mxu0 %vm2681_vm0, %v2680_v1 }
 0x62b   : > { %2527 = vmatprep.subr.bf16.mxu0 %v2680_v1 }
 0x62e   : > { %2528 = vmatpush3.bf16.msra.mxu0 %v2613_v21  ;;  %v2652_v21 = vld [vmem:[%s3247_s14 + $0x70] sm:$0xff]  }
 0x62f   : > { %2529 = vmatprep.subr.bf16.mxu0 %v2680_v1 }
 0x632   : > { %2530 = vmatpush3.bf16.msra.mxu0 %v2614_v22  ;;  %v2653_v22 = vld [vmem:[%s3247_s14 + $0x30] sm:$0xff]  }
 0x633   : > { %2531 = vmatprep.subr.bf16.mxu0 %v2680_v1 }
 0x636   : > { %2532 = vmatpush3.bf16.msra.mxu0 %v2615_v23  ;;  %v2654_v23 = vld [vmem:[%s3247_s14 + $0x78] sm:$0xff]  }
 0x637   : > { %1794 = vmatprep.subr.bf16.mxu0 %v2618_v39 }
 0x6fc   : > { %v1491_v24 = vpop.f32.mrb[16].mxu0 }
 0x6fd   : > { %v1497_v25 = vpack.c.bf16 %v1491_v24, %v1491_v24  ;;  %v2523_v26 = vpop.f32.mrb[17].mxu0  ;;  %v2655_v24 = vld [vmem:[%s3247_s14 + $0x38] sm:$0xff]  }
 0x6fe   : > { %v1494_v27 = vpop.f32.mrb[18].mxu0 }
 0x6ff   : > { %v2524_v28 = vpop.f32.mrb[19].mxu0  ;;  %2534 = vmatmul.mubr.msk.bf16.vlgmr.msra.gmra.mrb[20].mxu0 %vm924_vm1, %v1497_v25  ;;  %v1704_v25 = vlaneseq }
 0x700   : > { %1795 = vmatpush1.bf16.msra.mxu0 %v2616_v40  ;;  %1826 = vmatprep.mubr.bf16.mxu0 %v2682_v52  ;;  %v1702_v28 = vld [vmem:[%s3246_s13] sm:$0x3] }
 0x701   : > { %v1705_v26 = vshrl.u32 %v1704_v25, 7 }
 0x703   : > { %v1706_v27 = vsub.s32 0, %v1705_v26 }
 0x7d2   : > { %v1568_v29 = vpop.f32.mrb[20].mxu0 }
 0x7d3   : > { %v1636_v31 = vadd.f32 %v1635_v62, %v1568_v29  ;;  %v2535_v32 = vpop.f32.mrb[21].mxu0  ;;  %v2646_v62 = vld [vmem:[%s3247_s14 + $0x58] sm:$0xff]   ;;  %v1710_v29 = vsub.s32 1, %v1705_v26 }
 0x7d4   : > { %v1571_v1 = vpop.f32.mrb[22].mxu0  ;;  %2365 = vmatprep.subr.bf16.mxu1 %v2646_v62 }
 0x7d5   : > { %v1648_v18 = vadd.f32 %v2247_v30, %v1636_v31  ;;  %v2536_v33 = vpop.f32.mrb[23].mxu0  ;;  %2366 = vmatpush3.bf16.msra.mxu1 %v2647_v63  ;;  %v1707_v30 = vrot.slane %v1702_v28, %v1706_v27  ;;  %v1711_v31 = vrot.slane %v1702_v28, %v1710_v29  ;;  %v2284_v63 = vld [vmem:[%s3250_s17] ss:$0 sm:$0xff] }
 0x7d6   : > { %2367 = vmatprep.subr.bf16.mxu1 %v2648_v0 }
 0x7d7   : > { %v1649_v34 = vadd.f32 %v1648_v18, %v2860_v16  ;;  %v2621_v16 = vld [vmem:[%s3245_s12 + $0x14] ss:$8 sps:$4 sm:$0xff]  }
 0x7d8   : > { %1796 = vmatprep.subr.bf16.mxu0 %v2621_v16  ;;  %v2266_v16 = vld [vmem:[%s3248_s15] ss:$0 sm:$0xff] }
 0x7d9   : > { %1652 = vadd.xlane.f32.xlu0 %v1649_v34  ;;  %1797 = vmatpush1.bf16.msra.mxu0 %v2619_v41 }
 0x7da   : > { %1798 = vmatprep.subr.bf16.mxu0 %v2624_v42  ;;  %2368 = vmatpush3.bf16.msra.mxu1 %v2649_v2 }
 0x7db   : > { %2369 = vmatprep.subr.bf16.mxu1 %v2650_v3 }
 0x7dd   : > { %1799 = vmatpush1.bf16.msra.mxu0 %v2622_v44 }
 0x7de   : > { %1800 = vmatprep.subr.bf16.mxu0 %v2627_v45  ;;  %2370 = vmatpush3.bf16.msra.mxu1 %v2651_v4 }
 0x7df   : > { %2371 = vmatprep.subr.bf16.mxu1 %v2652_v21 }
 0x7e1   : > { %1801 = vmatpush1.bf16.msra.mxu0 %v2625_v46 }
 0x7e2   : > { %1802 = vmatprep.subr.bf16.mxu0 %v2630_v47  ;;  %2372 = vmatpush3.bf16.msra.mxu1 %v2653_v22 }
 0x7e3   : > { %2373 = vmatprep.subr.bf16.mxu1 %v2654_v23 }
 0x7e5   : > { %1803 = vmatpush1.bf16.msra.mxu0 %v2628_v48 }
 0x7e6   : > { %1804 = vmatprep.subr.bf16.mxu0 %v2633_v49  ;;  %2374 = vmatpush3.bf16.msra.mxu1 %v2655_v24 }
 0x7e9   : > { %1805 = vmatpush1.bf16.msra.mxu0 %v2631_v50 }
 0x7ea   : > { %1806 = vmatprep.subr.bf16.mxu0 %v2636_v51 }
 0x7ed   : > { %1807 = vmatpush1.bf16.msra.mxu0 %v2634_v53 }
 0x7ee   : > { %1808 = vmatprep.subr.bf16.mxu0 %v2639_v54 }
 0x7f1   : > { %1809 = vmatpush1.bf16.msra.mxu0 %v2637_v55 }
 0x866   : > { %v1653_v35 = vpop.xlane.xlu0 %1652 }
 0x867   : > { %v1655_v36 = vmul.f32 0.0078125, %v1653_v35 }
 0x869   : > { %v3106_v37 = vsub.f32 %v1649_v34, %v1655_v36 }
 0x86b   : > { %v1657_v38 = vmul.f32 %v3106_v37, %v3106_v37  ;;  %v1674_v14 = vmul.f32 %v2248_v13, %v3106_v37 }
 0x86d   : > { %1658 = vadd.xlane.f32.xlu1 %v1657_v38 }
 0x8fa   : > { %v1659_v5 = vpop.xlane.xlu1 %1658 }
 0x8fb   : > { %v1660_v6 = vmul.f32 0.007874016, %v1659_v5 }
 0x8fd   : > { %2664 = vrsqrt.f32 %v1660_v6  ;;  %vm1663_vm4 = vcmp.eq.f32.partialorder %v1660_v6, inf  ;;  %v1666_v9 = vand.u32 2147483648, %v1660_v6  ;;  %vm1665_vm5 = vcmp.eq.f32.partialorder %v1660_v6, 0.0 }
 0x907   : > { %v2665_v7 = vpop.eup %2664 }
 0x908   : > { %v1662_v8 = vmul.f32 %v2665_v7, %v1660_v6 }
 0x90a   : > { %v1664_v10 = vsel %vm1663_vm4, %v1660_v6, %v1662_v8 }
 0x90b   : > { %v1667_v11 = vsel %vm1665_vm5, %v1666_v9, %v1664_v10 }
 0x90c   : > { %v1675_v12 = vadd.f32 1e-06, %v1667_v11 }
 0x90e   : > { %2666 = vrcp.f32 %v1675_v12 }
 0x918   : > { %v2667_v15 = vpop.eup %2666 }
 0x919   : > { %v1677_v19 = vmul.f32 %v2667_v15, %v1674_v14 }
 0x91b   : > { %v1684_v20 = vadd.f32 %v2249_v17, %v1677_v19 }
 0x91d   : > { %v1685_v43 = vpack.c.bf16 %v1684_v20, %v1684_v20 }
 0x91f   : > { %1827 = vmatmul.mubr.bf16.vlgmr.msra.gmra.mrb[24].mxu0 %v1685_v43 }
 0x9f2   : > { %v1828_v32 = vpop.f32.mrb[24].mxu0 }
 0x9f3   : > { %v1829_v1 = vadd.f32 %v1828_v32, %v1707_v30  ;;  %v1830_v18 = vpop.f32.mrb[25].mxu0 }
 0x9f4   : > { %v1831_v33 = vadd.f32 %v1830_v18, %v1711_v31  ;;  %v1832_v34 = vpop.f32.mrb[26].mxu0 }
 0x9f5   : > { %v1835_v35 = vmax.f32 %v1829_v1, 0.0  ;;  %v1833_v36 = vpop.f32.mrb[27].mxu0 }
 0x9f6   : > { %v1836_v37 = vmax.f32 %v1831_v33, 0.0 }
 0x9f7   : > { %v1837_v39 = vpack.c.bf16 %v1835_v35, %v1835_v35 }
 0x9f8   : > { %v1838_v38 = vpack.c.bf16 %v1836_v37, %v1836_v37 }
 0x9fa   : > { %2006 = vmatprep.mubr.bf16.mxu1 %v1838_v38 }
 0x9fb   : > { %2007 = vmatmul.mubr.bf16.vlgmr.msra.gmra.mrb[24].mxu1 %v1837_v39 }
 0xace   : > { %v2375_v40 = vpop.f32.mrb[24].mxu1 }
 0xacf   : > { %v2376_v41 = vpop.f32.mrb[25].mxu1 }
 0xad0   : > { %v2377_v42 = vadd.f32 %v2376_v41, %v2375_v40  ;;  %v2378_v44 = vpop.f32.mrb[26].mxu1 }
 0xad1   : > { %v2379_v45 = vpop.f32.mrb[27].mxu1 }
 0xad2   : > { %v2009_v46 = vadd.f32 %v2377_v42, %v2266_v16 }
 0xad4   : > { %v2014_v47 = vadd.f32 %v2009_v46, %v1684_v20 }
 0xad6   : > { %2017 = vadd.xlane.f32.xlu0 %v2014_v47 }
 0xb63   : > { %v2018_v48 = vpop.xlane.xlu0 %2017 }
 0xb64   : > { %v2019_v49 = vmul.f32 0.0078125, %v2018_v48 }
 0xb66   : > { %v2020_v50 = vsub.f32 %v2014_v47, %v2019_v49 }
 0xb68   : > { %v2021_v51 = vmul.f32 %v2020_v50, %v2020_v50  ;;  %v2038_v61 = vmul.f32 %v2283_v60, %v2020_v50 }
 0xb6a   : > { %2022 = vadd.xlane.f32.xlu1 %v2021_v51 }
 0xbf7   : > { %v2023_v52 = vpop.xlane.xlu1 %2022 }
 0xbf8   : > { %v2024_v53 = vmul.f32 0.007874016, %v2023_v52 }
 0xbfa   : > { %2668 = vrsqrt.f32 %v2024_v53  ;;  %vm2027_vm6 = vcmp.eq.f32.partialorder %v2024_v53, inf  ;;  %v2030_v56 = vand.u32 2147483648, %v2024_v53  ;;  %vm2029_vm7 = vcmp.eq.f32.partialorder %v2024_v53, 0.0 }
 0xc04   : > { %v2669_v54 = vpop.eup %2668 }
 0xc05   : > { %v2026_v55 = vmul.f32 %v2669_v54, %v2024_v53 }
 0xc07   : > { %v2028_v57 = vsel %vm2027_vm6, %v2024_v53, %v2026_v55 }
 0xc08   : > { %v2031_v58 = vsel %vm2029_vm7, %v2030_v56, %v2028_v57 }
 0xc09   : > { %v2039_v59 = vadd.f32 1e-06, %v2031_v58 }
 0xc0b   : > { %2670 = vrcp.f32 %v2039_v59 }
 0xc15   : > { %v2671_v62 = vpop.eup %2670 }
 0xc16   : > { %v2041_v0 = vmul.f32 %v2671_v62, %v2038_v61 }
 0xc18   : > { %v2048_v2 = vadd.f32 %v2284_v63, %v2041_v0 }
 0xc1a   : > { %2049 = vst [vmem:[%s584_s0] sm:$0xff] %v2048_v2 }
 0xc1b PF: > { %s28_s27 = sadd.s32 1, %s2678_s27  }
 0xc1c   : > { %p25_p4 = scmp.ge.s32.totalorder %s28_s27, 4  }
 0xc1e   :  { %27 = sbr.rel (!%p25_p4) target bundleno = 4 (0x4), region = 132 }

// kernel: apply_cme.20
= control target key start
LH: loop header
LB: loop body
LE: loop exit
PB: predicated region body
PF: predicated region fallthrough
CT: control target
= control target key end

     0   :  { %s2886_s27 = smov 0   ;;  %s3353_s0 = inlined_call_operand.vmem [shape: f32[2,16,128], index: 0, kind: input, shape index: {}]   ;;  %s3354_s1 = inlined_call_operand.vmem [shape: f32[2,1,16], index: 1, kind: input, shape index: {}]   ;;  %s3355_s2 = inlined_call_operand.vmem [shape: bf16[2,128,64], index: 2, kind: input, shape index: {}]   ;;  %s3356_s3 = inlined_call_operand.vmem [shape: f32[2,1,64], index: 3, kind: input, shape index: {}]   ;;  %s3357_s4 = inlined_call_operand.vmem [shape: bf16[2,128,64], index: 4, kind: input, shape index: {}]   ;;  %s3358_s5 = inlined_call_operand.vmem [shape: f32[2,1,64], index: 5, kind: input, shape index: {}]   ;;  %s3359_s6 = inlined_call_operand.vmem [shape: bf16[2,128,64], index: 6, kind: input, shape index: {}]   ;;  %s3360_s7 = inlined_call_operand.vmem [shape: f32[2,1,64], index: 7, kind: input, shape index: {}]   ;;  %s3361_s8 = inlined_call_operand.vmem [shape: bf16[2,64,128], index: 8, kind: input, shape index: {}]   ;;  %s3362_s9 = inlined_call_operand.vmem [shape: f32[1,128], index: 9, kind: input, shape index: {}]   ;;  %s3363_s10 = inlined_call_operand.vmem [shape: f32[1,128], index: 10, kind: input, shape index: {}]   ;;  %s3364_s11 = inlined_call_operand.vmem [shape: f32[1,128], index: 11, kind: input, shape index: {}]   ;;  %s3365_s12 = inlined_call_operand.vmem [shape: bf16[128,256], index: 12, kind: input, shape index: {}]   ;;  %s3366_s13 = inlined_call_operand.vmem [shape: f32[1,256], index: 13, kind: input, shape index: {}]   ;;  %s3367_s14 = inlined_call_operand.vmem [shape: bf16[256,128], index: 14, kind: input, shape index: {}]   ;;  %s3368_s15 = inlined_call_operand.vmem [shape: f32[1,128], index: 15, kind: input, shape index: {}]   ;;  %s3369_s16 = inlined_call_operand.vmem [shape: f32[1,128], index: 16, kind: input, shape index: {}]   ;;  %s3370_s17 = inlined_call_operand.vmem [shape: f32[1,128], index: 17, kind: input, shape index: {}]   ;;  %s3371_s18 = inlined_call_operand.vmem [shape: f32[2,16,128], index: 18, kind: output, shape index: {}]  }
   0x1   :  { %3373 = sst [smem:[#allocation2_spill]] %s3353_s0 }
   0x2   :  { %3374 = sst [smem:[#allocation3_spill]] %s3354_s1 }
   0x3   :  { %3375 = sst [smem:[#allocation4_spill]] %s3355_s2 }
   0x4 LB: > { %s2200_s28 = sadd.s32 4294967295, %s2786_s27   ;;  %p2204_p0 = scmp.ge.s32.totalorder %s2786_s27, 1  ;;  %s2786_s27 = sphi %s2886_s27, %s28_s27  }
   0x5   : > { %p520_p1 = scmp.lt.s32.totalorder %s2786_s27, 3 }
   0x7   : > { %p521_p2 = pnand %p2204_p0, %p520_p1 }
   0x8   : > { %v2652_v0 = vld [vmem:[%s3357_s4] sm:$0xff] (!%p521_p2)   ;;  %v2788_v1 = vmov (!%p521_p2), 0.0   ;;  %v2653_v2 = vld [vmem:[%s3357_s4 + $0x8] sm:$0xff] (!%p521_p2)   ;;  %s3376_s21 = sld [smem:[#allocation4_spill]] (!%p521_p2)  ;;  %vm2789_vm0 = vmmov (!%p521_p2), 0   ;;  %v2655_v5 = vld [vmem:[%s3357_s4 + $0x10] sm:$0xff] (!%p521_p2)  }
   0x9   : > { %524 = sbr.rel (%p521_p2) target bundleno = 3117 (0xc2d), region = 92  ;;  %2493 = vmatprep.subr.bf16.mxu1 (!%p521_p2), %v2788_v1  ;;  %2473 = vmatprep.subr.bf16.mxu0 (!%p521_p2), %v2788_v1  ;;  %p577_p3 = scmp.lt.s32.totalorder (!%p521_p2), %s2200_s28, 1  ;;  %v2657_v7 = vld [vmem:[%s3357_s4 + $0x18] sm:$0xff] (!%p521_p2)   ;;  %v2659_v9 = vld [vmem:[%s3357_s4 + $0x20] sm:$0xff] (!%p521_p2)   ;;  %v2661_v10 = vld [vmem:[%s3357_s4 + $0x28] sm:$0xff] (!%p521_p2)   ;;  %vm933_vm1 = vcmask (!%p521_p2), 523264  }
   0xa   : > { %2494 = vmatpush3.bf16.msra.mxu1 (!%p521_p2), %v2652_v0  ;;  %2509 = vmatprep.mubr.msk.bf16.mxu1 (!%p521_p2), %vm2789_vm0, %v2788_v1  ;;  %v2663_v13 = vld [vmem:[%s3357_s4 + $0x30] sm:$0xff] (!%p521_p2)   ;;  %s3377_s20 = sld [smem:[#allocation2_spill]] (!%p521_p2)  ;;  %v2665_v15 = vld [vmem:[%s3357_s4 + $0x38] sm:$0xff] (!%p521_p2)   ;;  %v2218_v20 = vld [vmem:[%s3358_s5] ss:$0 sm:$0xff] (!%p521_p2)  ;;  %s3378_s0 = sld [smem:[#allocation3_spill]] (!%p521_p2) }
   0xb   : > { %2495 = vmatprep.subr.bf16.mxu1 (!%p521_p2), %v2788_v1  ;;  %2489 = vmatprep.mubr.msk.bf16.mxu0 (!%p521_p2), %vm2789_vm0, %v2788_v1  ;;  %v2209_v22 = vld [vmem:[%s3356_s3] ss:$0 sm:$0xff] (!%p521_p2)  ;;  %v2669_v38 = vld [vmem:[%s3359_s6 + $0x8] sm:$0xff] (!%p521_p2)   ;;  %v2670_v39 = vld [vmem:[%s3359_s6 + $0x10] sm:$0xff] (!%p521_p2)   ;;  %vm991_vm2 = vcmask (!%p521_p2), 130048  }
   0xc   : > { %v2668_v37 = vld [vmem:[%s3359_s6] sm:$0xff] (!%p521_p2)   ;;  %v2671_v40 = vld [vmem:[%s3359_s6 + $0x18] sm:$0xff] (!%p521_p2)   ;;  %v2673_v42 = vld [vmem:[%s3359_s6 + $0x28] sm:$0xff] (!%p521_p2)  }
   0xd   : > { %v2672_v41 = vld [vmem:[%s3359_s6 + $0x20] sm:$0xff] (!%p521_p2)   ;;  %v2674_v43 = vld [vmem:[%s3359_s6 + $0x30] sm:$0xff] (!%p521_p2)   ;;  %v2675_v44 = vld [vmem:[%s3359_s6 + $0x38] sm:$0xff] (!%p521_p2)  }
   0xe   : > { %v2654_v3 = vld [vmem:[%s3376_s21] sm:$0xff] (!%p521_p2)   ;;  %v2656_v4 = vld [vmem:[%s3376_s21 + $0x8] sm:$0xff] (!%p521_p2)   ;;  %2496 = vmatpush3.bf16.msra.mxu1 (!%p521_p2), %v2653_v2  ;;  %v2658_v6 = vld [vmem:[%s3376_s21 + $0x10] sm:$0xff] (!%p521_p2)  }
   0xf   : > { %2474 = vmatpush3.bf16.msra.mxu0 (!%p521_p2), %v2654_v3  ;;  %2497 = vmatprep.subr.bf16.mxu1 (!%p521_p2), %v2788_v1  ;;  %v2660_v8 = vld [vmem:[%s3376_s21 + $0x18] sm:$0xff] (!%p521_p2)   ;;  %v2662_v11 = vld [vmem:[%s3376_s21 + $0x20] sm:$0xff] (!%p521_p2)   ;;  %v2664_v12 = vld [vmem:[%s3376_s21 + $0x28] sm:$0xff] (!%p521_p2)  }
  0x10   : > { %2475 = vmatprep.subr.bf16.mxu0 %v2788_v1  ;;  %s3380_s28 = smov (!%p577_p3, %s2200_s28), 1  ;;  %v2666_v14 = vld [vmem:[%s3376_s21 + $0x30] sm:$0xff]   ;;  %v2667_v18 = vld [vmem:[%s3376_s21 + $0x38] sm:$0xff]  }
  0x11   : > { %s2377_s25 = sshll.u32 %s3380_s28, 4  ;;  %s584_s19 = scalar_lea.vmem %s3378_s0, %s3380_s28 }
  0x12   : > { %2498 = vmatpush3.bf16.msra.mxu1 %v2655_v5  ;;  %s581_s22 = scalar_lea.vmem %s3377_s20, %s2377_s25  ;;  %v3040_v46 = vld [vmem:[%s584_s19] ss:$0 sm:$0xff]  ;;  %s589_s0 = scalar_lea.vmem %s3371_s18, %s2377_s25 }
  0x13   : > { %2476 = vmatpush3.bf16.msra.mxu0 %v2656_v4  ;;  %2499 = vmatprep.subr.bf16.mxu1 %v2788_v1  ;;  %v2968_v16 = vld [vmem:[%s581_s22] sm:$0xff]  ;;  %v2970_v17 = vld [vmem:[%s581_s22 + $0x8] sm:$0xff] }
  0x14   : > { %2477 = vmatprep.subr.bf16.mxu0 %v2788_v1  ;;  %v2979_v19 = vpack.c.bf16 %v2970_v17, %v2968_v16  ;;  %v2676_v5 = vld [vmem:[%s3357_s4 + $0x40] sm:$0xff]  }
  0x16   : > { %2500 = vmatpush3.bf16.msra.mxu1 %v2657_v7  ;;  %v2227_v7 = vld [vmem:[%s3360_s7] ss:$0 sm:$0xff] }
  0x17   : > { %2478 = vmatpush3.bf16.msra.mxu0 %v2658_v6  ;;  %2501 = vmatprep.subr.bf16.mxu1 %v2788_v1 }
  0x18   : > { %2479 = vmatprep.subr.bf16.mxu0 %v2788_v1 }
  0x1a   : > { %2502 = vmatpush3.bf16.msra.mxu1 %v2659_v9 }
  0x1b   : > { %2480 = vmatpush3.bf16.msra.mxu0 %v2660_v8  ;;  %2503 = vmatprep.subr.bf16.mxu1 %v2788_v1 }
  0x1c   : > { %2481 = vmatprep.subr.bf16.mxu0 %v2788_v1 }
  0x1e   : > { %2504 = vmatpush3.bf16.msra.mxu1 %v2661_v10 }
  0x1f   : > { %2482 = vmatpush3.bf16.msra.mxu0 %v2662_v11  ;;  %2505 = vmatprep.subr.bf16.mxu1 %v2788_v1  ;;  %v2677_v11 = vld [vmem:[%s3357_s4 + $0x48] sm:$0xff]  }
  0x20   : > { %2483 = vmatprep.subr.bf16.mxu0 %v2788_v1 }
  0x22   : > { %2506 = vmatpush3.bf16.msra.mxu1 %v2663_v13  ;;  %v2678_v13 = vld [vmem:[%s3357_s4 + $0x50] sm:$0xff]  }
  0x23   : > { %2484 = vmatpush3.bf16.msra.mxu0 %v2664_v12  ;;  %2507 = vmatprep.subr.bf16.mxu1 %v2788_v1 }
  0x24   : > { %2485 = vmatprep.subr.bf16.mxu0 %v2788_v1 }
  0x26   : > { %2508 = vmatpush3.bf16.msra.mxu1 %v2665_v15  ;;  %v2682_v15 = vld [vmem:[%s3357_s4 + $0x60] sm:$0xff]  }
  0x27   : > { %2486 = vmatpush3.bf16.msra.mxu0 %v2666_v14  ;;  %2533 = vmatprep.subr.bf16.mxu1 %v2788_v1  ;;  %v2680_v14 = vld [vmem:[%s3357_s4 + $0x58] sm:$0xff]  }
  0x28   : > { %2487 = vmatprep.subr.bf16.mxu0 %v2788_v1 }
  0x29   : > { %2510 = vmatmul.mubr.bf16.vlgmr.msra.gmra.mrb[0].mxu1 %v2979_v19 }
  0x2a   : > { %2535 = vmatprep.mubr.msk.bf16.mxu1 %vm2789_vm0, %v2788_v1 }
  0x2b   : > { %2488 = vmatpush3.bf16.msra.mxu0 %v2667_v18  ;;  %v2684_v18 = vld [vmem:[%s3357_s4 + $0x68] sm:$0xff]  }
  0x2c   : > { %2513 = vmatprep.subr.bf16.mxu0 %v2788_v1 }
  0x2e   : > { %2490 = vmatmul.mubr.bf16.vlgmr.msra.gmra.mrb[0].mxu0 %v2979_v19 }
  0x2f   : > { %2529 = vmatprep.mubr.msk.bf16.mxu0 %vm2789_vm0, %v2788_v1  ;;  %2514 = vmatpush3.bf16.msra.mxu0 %v2668_v37  ;;  %v2692_v37 = vld [vmem:[%s3359_s6 + $0x40] sm:$0xff]  }
  0x30   : > { %2515 = vmatprep.subr.bf16.mxu0 %v2788_v1 }
  0x33   : > { %2516 = vmatpush3.bf16.msra.mxu0 %v2669_v38  ;;  %v2693_v38 = vld [vmem:[%s3359_s6 + $0x48] sm:$0xff]  }
  0x34   : > { %2517 = vmatprep.subr.bf16.mxu0 %v2788_v1 }
  0x37   : > { %2518 = vmatpush3.bf16.msra.mxu0 %v2670_v39  ;;  %v2694_v39 = vld [vmem:[%s3359_s6 + $0x50] sm:$0xff]  }
  0x38   : > { %2519 = vmatprep.subr.bf16.mxu0 %v2788_v1 }
  0x3b   : > { %2520 = vmatpush3.bf16.msra.mxu0 %v2671_v40  ;;  %v2695_v40 = vld [vmem:[%s3359_s6 + $0x58] sm:$0xff]  }
  0x3c   : > { %2521 = vmatprep.subr.bf16.mxu0 %v2788_v1 }
  0x3f   : > { %2522 = vmatpush3.bf16.msra.mxu0 %v2672_v41  ;;  %v2696_v41 = vld [vmem:[%s3359_s6 + $0x60] sm:$0xff]  }
  0x40   : > { %2523 = vmatprep.subr.bf16.mxu0 %v2788_v1 }
  0x43   : > { %2524 = vmatpush3.bf16.msra.mxu0 %v2673_v42  ;;  %v2697_v42 = vld [vmem:[%s3359_s6 + $0x68] sm:$0xff]  }
  0x44   : > { %2525 = vmatprep.subr.bf16.mxu0 %v2788_v1 }
  0x47   : > { %2526 = vmatpush3.bf16.msra.mxu0 %v2674_v43  ;;  %v2698_v43 = vld [vmem:[%s3359_s6 + $0x70] sm:$0xff]  }
  0x48   : > { %2527 = vmatprep.subr.bf16.mxu0 %v2788_v1 }
  0x4b   : > { %2528 = vmatpush3.bf16.msra.mxu0 %v2675_v44  ;;  %v2699_v44 = vld [vmem:[%s3359_s6 + $0x78] sm:$0xff]  }
  0x4c   : > { %2565 = vmatprep.subr.bf16.mxu0 %v2788_v1 }
  0x4e   : > { %2530 = vmatmul.mubr.bf16.vlgmr.msra.gmra.mrb[4].mxu0 %v2979_v19 }
  0x4f   : > { %2581 = vmatprep.mubr.msk.bf16.mxu0 %vm2789_vm0, %v2788_v1  ;;  %2566 = vmatpush3.bf16.msra.mxu0 %v2676_v5 }
  0x50   : > { %2567 = vmatprep.subr.bf16.mxu0 %v2788_v1 }
  0x53   : > { %2568 = vmatpush3.bf16.msra.mxu0 %v2677_v11 }
  0x54   : > { %2569 = vmatprep.subr.bf16.mxu0 %v2788_v1 }
  0x57   : > { %2570 = vmatpush3.bf16.msra.mxu0 %v2678_v13 }
  0x58   : > { %2571 = vmatprep.subr.bf16.mxu0 %v2788_v1 }
  0x5b   : > { %2572 = vmatpush3.bf16.msra.mxu0 %v2680_v14 }
  0x5c   : > { %2573 = vmatprep.subr.bf16.mxu0 %v2788_v1 }
  0x5f   : > { %2574 = vmatpush3.bf16.msra.mxu0 %v2682_v15 }
  0x60   : > { %2575 = vmatprep.subr.bf16.mxu0 %v2788_v1 }
  0x63   : > { %2576 = vmatpush3.bf16.msra.mxu0 %v2684_v18 }
  0x64   : > { %2577 = vmatprep.subr.bf16.mxu0 %v2788_v1 }
  0xfc   : > { %v812_v21 = vpop.f32.mrb[0].mxu1 }
  0xfd   : > { %v2511_v23 = vpop.f32.mrb[1].mxu1  ;;  %v813_v26 = vadd.f32 %v2218_v20, %v812_v21  ;;  %v2688_v21 = vld [vmem:[%s3357_s4 + $0x78] sm:$0xff]  }
  0xfe   : > { %v815_v24 = vpop.f32.mrb[2].mxu1 }
  0xff   : > { %v816_v27 = vadd.f32 %v2218_v20, %v815_v24  ;;  %v2512_v28 = vpop.f32.mrb[3].mxu1  ;;  %v2686_v20 = vld [vmem:[%s3357_s4 + $0x70] sm:$0xff]  }
 0x100   : > { %2578 = vmatpush3.bf16.msra.mxu0 %v2686_v20  ;;  %v2679_v28 = vld [vmem:[%s3376_s21 + $0x40] sm:$0xff]  }
 0x101   : > { %v700_v25 = vpop.f32.mrb[0].mxu0  ;;  %v932_v32 = vpack.c.bf16 %v816_v27, %v813_v26  ;;  %2579 = vmatprep.subr.bf16.mxu0 %v2788_v1 }
 0x102   : > { %v701_v29 = vadd.f32 %v2209_v22, %v700_v25  ;;  %v2491_v30 = vpop.f32.mrb[1].mxu0 }
 0x103   : > { %v703_v31 = vpop.f32.mrb[2].mxu0  ;;  %v938_v36 = vsel %vm933_vm1, %v932_v32, 0  ;;  %v2681_v30 = vld [vmem:[%s3376_s21 + $0x48] sm:$0xff]   ;;  %v2685_v32 = vld [vmem:[%s3376_s21 + $0x58] sm:$0xff]  }
 0x104   : > { %v704_v33 = vadd.f32 %v2209_v22, %v703_v31  ;;  %v2492_v34 = vpop.f32.mrb[3].mxu0  ;;  %2534 = vmatpush3.bf16.xpose.msra.mxu1 %v938_v36  ;;  %2580 = vmatpush3.bf16.msra.mxu0 %v2688_v21  ;;  %v2683_v31 = vld [vmem:[%s3376_s21 + $0x50] sm:$0xff]   ;;  %v2691_v36 = vld [vmem:[%s3376_s21 + $0x78] sm:$0xff]  }
 0x105   : > { %2539 = vmatprep.subr.bf16.mxu1 %v2788_v1  ;;  %2605 = vmatprep.subr.bf16.mxu0 %v2788_v1  ;;  %v2689_v34 = vld [vmem:[%s3376_s21 + $0x68] sm:$0xff]  }
 0x106   : > { %v931_v35 = vpack.c.bf16 %v704_v33, %v701_v29  ;;  %v2687_v33 = vld [vmem:[%s3376_s21 + $0x60] sm:$0xff]  }
 0x107   : > { %2582 = vmatmul.mubr.bf16.vlgmr.msra.gmra.mrb[8].mxu0 %v2979_v19 }
 0x108   : > { %2607 = vmatprep.mubr.msk.bf16.mxu0 %vm2789_vm0, %v2788_v1 }
 0x10b   : > { %2536 = vmatmul.mubr.msk.bf16.vlgmr.msra.gmra.mrb[4].mxu1 %vm933_vm1, %v931_v35  ;;  %v2690_v35 = vld [vmem:[%s3376_s21 + $0x70] sm:$0xff]  }
 0x10c   : > { %2541 = vmatprep.mubr.msk.bf16.mxu1 %vm2789_vm0, %v2788_v1 }
 0x121   : > { %v924_v3 = vpop.f32.mrb[4].mxu0 }
 0x122   : > { %v2531_v4 = vpop.f32.mrb[5].mxu0  ;;  %v925_v9 = vadd.f32 %v2227_v7, %v924_v3 }
 0x123   : > { %v927_v6 = vpop.f32.mrb[6].mxu0 }
 0x124   : > { %v2532_v8 = vpop.f32.mrb[7].mxu0  ;;  %v928_v10 = vadd.f32 %v2227_v7, %v927_v6 }
 0x125   : > { %v2308_v8 = vld [vmem:[%s3360_s7 + $0x1] ss:$0 sm:$0xff] }
 0x126   : > { %v1015_v12 = vpack.c.bf16 %v928_v10, %v925_v9 }
 0x128   : > { %2540 = vmatpush3.bf16.msra.mxu1 %v1015_v12 }
 0x129   : > { %2545 = vmatprep.subr.bf16.mxu1 %v2788_v1 }
 0x1de   : > { %v974_v45 = vpop.f32.mrb[4].mxu1 }
 0x1df   : > { %v981_v47 = vmul.f32 0.125, %v974_v45  ;;  %v2537_v48 = vpop.f32.mrb[5].mxu1  ;;  %v2700_v45 = vld [vmem:[%s3361_s8] sm:$0xff]  }
 0x1e0   : > { %v977_v49 = vpop.f32.mrb[6].mxu1  ;;  %v2702_v48 = vld [vmem:[%s3361_s8 + $0x10] sm:$0xff]  }
 0x1e1   : > { %v982_v50 = vmul.f32 0.125, %v977_v49  ;;  %v2538_v51 = vpop.f32.mrb[7].mxu1  ;;  %v989_v52 = vadd.f32 %v3040_v46, %v981_v47  ;;  %v2701_v47 = vld [vmem:[%s3361_s8 + $0x8] sm:$0xff]   ;;  %v2282_v49 = vld [vmem:[%s3358_s5 + $0x1] ss:$0 sm:$0xff] }
 0x1e3   : > { %v992_v53 = vsel %vm991_vm2, %v989_v52, -inf  ;;  %v990_v54 = vadd.f32 %v3040_v46, %v982_v50  ;;  %v1290_v50 = vpop.f32.mrb[8].mxu0 }
 0x1e4   : > { %993 = vmax.xlane.f32.xlu0 %v992_v53  ;;  %v1291_v51 = vadd.f32 %v2282_v49, %v1290_v50  ;;  %v2705_v50 = vld [vmem:[%s3361_s8 + $0x28] sm:$0xff]  }
 0x1e5   : > { %v995_v55 = vsel %vm991_vm2, %v990_v54, -inf }
 0x1e8   : > { %996 = vmax.xlane.f32.xlu0 %v995_v55 }
 0x271   : > { %v994_v56 = vpop.xlane.xlu0 %993 }
 0x272   : > { %v998_v57 = vsub.f32 %v989_v52, %v994_v56  ;;  %v2583_v52 = vpop.f32.mrb[9].mxu0 }
 0x273   : > { %v1293_v53 = vpop.f32.mrb[10].mxu0  ;;  %v2707_v52 = vld [vmem:[%s3361_s8 + $0x38] sm:$0xff]  }
 0x274   : > { %v1000_v58 = vmul.f32 1.442695, %v998_v57  ;;  %v2584_v55 = vpop.f32.mrb[11].mxu0 }
 0x275   : > { %v997_v59 = vpop.xlane.xlu0 %996 }
 0x276   : > { %2748 = vpow2.f32 %v1000_v58  ;;  %v999_v60 = vsub.f32 %v990_v54, %v997_v59  ;;  %v1294_v54 = vadd.f32 %v2282_v49, %v1293_v53 }
 0x278   : > { %v1002_v61 = vmul.f32 1.442695, %v999_v60  ;;  %v1412_v56 = vpack.c.bf16 %v1294_v54, %v1291_v51  ;;  %v2706_v51 = vld [vmem:[%s3361_s8 + $0x30] sm:$0xff]  }
 0x27a   : > { %2750 = vpow2.f32 %v1002_v61  ;;  %v1417_v57 = vsel %vm933_vm1, %v1412_v56, 0 }
 0x27b   : > { %2606 = vmatpush3.bf16.xpose.msra.mxu0 %v1417_v57 }
 0x27c   : > { %2611 = vmatprep.subr.bf16.mxu0 %v2788_v1 }
 0x280   : > { %v2749_v62 = vpop.eup %2748 }
 0x281   : > { %v1004_v63 = vsel %vm991_vm2, %v2749_v62, 0.0 }
 0x282   : > { %1005 = vadd.xlane.f32.xlu1 %v1004_v63  ;;  %v2256_v63 = vld [vmem:[%s3356_s3 + $0x1] ss:$0 sm:$0xff] }
 0x284   : > { %v2751_v0 = vpop.eup %2750 }
 0x285   : > { %v1007_v2 = vsel %vm991_vm2, %v2751_v0, 0.0 }
 0x286   : > { %1008 = vadd.xlane.f32.xlu1 %v1007_v2 }
 0x30f   : > { %v1006_v22 = vpop.xlane.xlu1 %1005 }
 0x310   : > { %2752 = vrcp.f32 %v1006_v22 }
 0x313   : > { %v1009_v23 = vpop.xlane.xlu1 %1008 }
 0x314   : > { %2754 = vrcp.f32 %v1009_v23 }
 0x31a   : > { %v2753_v24 = vpop.eup %2752 }
 0x31b   : > { %v1012_v26 = vmul.f32 %v2753_v24, %v2749_v62 }
 0x31e   : > { %v2755_v25 = vpop.eup %2754 }
 0x31f   : > { %v1013_v27 = vmul.f32 %v2755_v25, %v2751_v0 }
 0x321   : > { %v1014_v29 = vpack.c.bf16 %v1013_v27, %v1012_v26 }
 0x323   : > { %2542 = vmatmul.mubr.msk.bf16.vlgmr.msra.gmra.mrb[8].mxu1 %vm991_vm2, %v1014_v29 }
 0x324   : > { %2546 = vmatpush3.bf16.msra.mxu1 %v2679_v28  ;;  %2561 = vmatprep.mubr.msk.bf16.mxu1 %vm2789_vm0, %v2788_v1 }
 0x325   : > { %2547 = vmatprep.subr.bf16.mxu1 %v2788_v1 }
 0x328   : > { %2548 = vmatpush3.bf16.msra.mxu1 %v2681_v30 }
 0x329   : > { %2549 = vmatprep.subr.bf16.mxu1 %v2788_v1 }
 0x32c   : > { %2550 = vmatpush3.bf16.msra.mxu1 %v2683_v31 }
 0x32d   : > { %2551 = vmatprep.subr.bf16.mxu1 %v2788_v1 }
 0x330   : > { %2552 = vmatpush3.bf16.msra.mxu1 %v2685_v32 }
 0x331   : > { %2553 = vmatprep.subr.bf16.mxu1 %v2788_v1 }
 0x334   : > { %2554 = vmatpush3.bf16.msra.mxu1 %v2687_v33 }
 0x335   : > { %2555 = vmatprep.subr.bf16.mxu1 %v2788_v1 }
 0x338   : > { %2556 = vmatpush3.bf16.msra.mxu1 %v2689_v34 }
 0x339   : > { %2557 = vmatprep.subr.bf16.mxu1 %v2788_v1 }
 0x33c   : > { %2558 = vmatpush3.bf16.msra.mxu1 %v2690_v35 }
 0x33d   : > { %2559 = vmatprep.subr.bf16.mxu1 %v2788_v1 }
 0x340   : > { %2560 = vmatpush3.bf16.msra.mxu1 %v2691_v36 }
 0x341   : > { %2585 = vmatprep.subr.bf16.mxu1 %v2788_v1 }
 0x343   : > { %2562 = vmatmul.mubr.bf16.vlgmr.msra.gmra.mrb[12].mxu1 %v2979_v19 }
 0x344   : > { %2586 = vmatpush3.bf16.msra.mxu1 %v2692_v37  ;;  %2601 = vmatprep.mubr.msk.bf16.mxu1 %vm2789_vm0, %v2788_v1 }
 0x345   : > { %2587 = vmatprep.subr.bf16.mxu1 %v2788_v1 }
 0x348   : > { %2588 = vmatpush3.bf16.msra.mxu1 %v2693_v38 }
 0x349   : > { %2589 = vmatprep.subr.bf16.mxu1 %v2788_v1 }
 0x34c   : > { %2590 = vmatpush3.bf16.msra.mxu1 %v2694_v39 }
 0x34d   : > { %2591 = vmatprep.subr.bf16.mxu1 %v2788_v1 }
 0x350   : > { %2592 = vmatpush3.bf16.msra.mxu1 %v2695_v40 }
 0x351   : > { %2593 = vmatprep.subr.bf16.mxu1 %v2788_v1 }
 0x354   : > { %2594 = vmatpush3.bf16.msra.mxu1 %v2696_v41 }
 0x355   : > { %2595 = vmatprep.subr.bf16.mxu1 %v2788_v1 }
 0x358   : > { %2596 = vmatpush3.bf16.msra.mxu1 %v2697_v42 }
 0x359   : > { %2597 = vmatprep.subr.bf16.mxu1 %v2788_v1 }
 0x35c   : > { %2598 = vmatpush3.bf16.msra.mxu1 %v2698_v43 }
 0x35d   : > { %2599 = vmatprep.subr.bf16.mxu1 %v2788_v1 }
 0x360   : > { %2600 = vmatpush3.bf16.msra.mxu1 %v2699_v44 }
 0x361   : > { %2629 = vmatprep.subr.bf16.mxu1 %v2788_v1 }
 0x363   : > { %2602 = vmatmul.mubr.bf16.vlgmr.msra.gmra.mrb[16].mxu1 %v2979_v19  ;;  %v2703_v19 = vld [vmem:[%s3361_s8 + $0x18] sm:$0xff]  }
 0x364   : > { %2630 = vmatpush3.bf16.msra.mxu1 %v2700_v45  ;;  %2637 = vmatprep.mubr.msk.bf16.mxu1 %vm2789_vm0, %v2788_v1 }
 0x365   : > { %2631 = vmatprep.subr.bf16.mxu1 %v2788_v1 }
 0x368   : > { %2632 = vmatpush3.bf16.msra.mxu1 %v2701_v47 }
 0x369   : > { %2633 = vmatprep.subr.bf16.mxu1 %v2788_v1 }
 0x36c   : > { %2634 = vmatpush3.bf16.msra.mxu1 %v2702_v48 }
 0x36d   : > { %2635 = vmatprep.subr.bf16.mxu1 %v2788_v1 }
 0x370   : > { %2636 = vmatpush3.bf16.msra.mxu1 %v2703_v19  ;;  %v2704_v19 = vld [vmem:[%s3361_s8 + $0x20] sm:$0xff]  }
 0x3f6   : > { %v1053_v58 = vpop.f32.mrb[8].mxu1 }
 0x3f7   : > { %v2543_v59 = vpop.f32.mrb[9].mxu1 }
 0x3f8   : > { %v1056_v60 = vpop.f32.mrb[10].mxu1  ;;  %v2337_v59 = vld [vmem:[%s3362_s9] ss:$0 sm:$0xff] }
 0x3f9   : > { %v1060_v61 = vpack.c.bf16 %v1056_v60, %v1053_v58  ;;  %v2544_v62 = vpop.f32.mrb[11].mxu1 }
 0x3fb   : > { %2638 = vmatmul.mubr.msk.bf16.vlgmr.msra.gmra.mrb[20].mxu1 %vm933_vm1, %v1060_v61 }
 0x416   : > { %v1176_v0 = vpop.f32.mrb[12].mxu1 }
 0x417   : > { %v2563_v2 = vpop.f32.mrb[13].mxu1  ;;  %v1177_v4 = vadd.f32 %v2256_v63, %v1176_v0 }
 0x418   : > { %v1179_v3 = vpop.f32.mrb[14].mxu1 }
 0x419   : > { %v1180_v5 = vadd.f32 %v2256_v63, %v1179_v3  ;;  %v2564_v6 = vpop.f32.mrb[15].mxu1 }
 0x41b   : > { %v1411_v7 = vpack.c.bf16 %v1180_v5, %v1177_v4 }
 0x41d   : > { %2608 = vmatmul.mubr.msk.bf16.vlgmr.msra.gmra.mrb[12].mxu0 %vm933_vm1, %v1411_v7 }
 0x41e   : > { %2613 = vmatprep.mubr.msk.bf16.mxu0 %vm2789_vm0, %v2788_v1 }
 0x436   : > { %v1404_v9 = vpop.f32.mrb[16].mxu1 }
 0x437   : > { %v1405_v10 = vadd.f32 %v2308_v8, %v1404_v9  ;;  %v2603_v11 = vpop.f32.mrb[17].mxu1 }
 0x438   : > { %v1407_v12 = vpop.f32.mrb[18].mxu1 }
 0x439   : > { %v1408_v13 = vadd.f32 %v2308_v8, %v1407_v12  ;;  %v2604_v14 = vpop.f32.mrb[19].mxu1 }
 0x43a   : > { %v2711_v14 = vld [vmem:[%s3365_s12 + $0x10] ss:$8 sps:$4 sm:$0xff]  }
 0x43b   : > { %v1487_v15 = vpack.c.bf16 %v1408_v13, %v1405_v10  ;;  %v2713_v13 = vld [vmem:[%s3365_s12 + $0x14] ss:$8 sps:$4 sm:$0xff]  }
 0x43d   : > { %2612 = vmatpush3.bf16.msra.mxu0 %v1487_v15  ;;  %v2716_v15 = vld [vmem:[%s3365_s12 + $0x24] ss:$8 sps:$4 sm:$0xff]  }
 0x43e   : > { %2617 = vmatprep.subr.bf16.mxu0 %v2788_v1 }
 0x4ce   : > { %v1671_v18 = vpop.f32.mrb[20].mxu1 }
 0x4cf   : > { %v2639_v20 = vpop.f32.mrb[21].mxu1 }
 0x4d0   : > { %v1674_v21 = vpop.f32.mrb[22].mxu1  ;;  %v2719_v20 = vld [vmem:[%s3365_s12 + $0x34] ss:$8 sps:$4 sm:$0xff]  }
 0x4d1   : > { %v2640_v22 = vpop.f32.mrb[23].mxu1 }
 0x4d2   : > { %v2722_v22 = vld [vmem:[%s3365_s12 + $0x44] ss:$8 sps:$4 sm:$0xff]  }
 0x4f0   : > { %v1453_v23 = vpop.f32.mrb[12].mxu0 }
 0x4f1   : > { %v1460_v24 = vmul.f32 0.125, %v1453_v23  ;;  %v2609_v25 = vpop.f32.mrb[13].mxu0  ;;  %v2720_v23 = vld [vmem:[%s3365_s12 + $0x40] ss:$8 sps:$4 sm:$0xff]  }
 0x4f2   : > { %v1456_v26 = vpop.f32.mrb[14].mxu0  ;;  %v2723_v25 = vld [vmem:[%s3365_s12 + $0x50] ss:$8 sps:$4 sm:$0xff]  }
 0x4f3   : > { %v1461_v27 = vmul.f32 0.125, %v1456_v26  ;;  %v2610_v28 = vpop.f32.mrb[15].mxu0  ;;  %v1462_v29 = vadd.f32 %v3040_v46, %v1460_v24  ;;  %v2725_v24 = vld [vmem:[%s3365_s12 + $0x54] ss:$8 sps:$4 sm:$0xff]   ;;  %v2728_v26 = vld [vmem:[%s3365_s12 + $0x64] ss:$8 sps:$4 sm:$0xff]  }
 0x4f4   : > { %v2726_v28 = vld [vmem:[%s3365_s12 + $0x60] ss:$8 sps:$4 sm:$0xff]  }
 0x4f5   : > { %v1464_v30 = vsel %vm991_vm2, %v1462_v29, -inf  ;;  %v1463_v31 = vadd.f32 %v3040_v46, %v1461_v27  ;;  %v2790_v27 = vmov 0  }
 0x4f6   : > { %1465 = vmax.xlane.f32.xlu0 %v1464_v30  ;;  %v2729_v30 = vld [vmem:[%s3365_s12 + $0x70] ss:$8 sps:$4 sm:$0xff]  }
 0x4f7   : > { %v1467_v32 = vsel %vm991_vm2, %v1463_v31, -inf }
 0x4f8   : > { %1468 = vmax.xlane.f32.xlu1 %v1467_v32  ;;  %v2733_v32 = vld [vmem:[%s3367_s14] sm:$0xff]  }
 0x583   : > { %v1466_v33 = vpop.xlane.xlu0 %1465 }
 0x584   : > { %v1470_v34 = vsub.f32 %v1462_v29, %v1466_v33  ;;  %v2731_v29 = vld [vmem:[%s3365_s12 + $0x74] ss:$8 sps:$4 sm:$0xff]   ;;  %v2734_v33 = vld [vmem:[%s3367_s14 + $0x48] sm:$0xff]  }
 0x585   : > { %v1469_v35 = vpop.xlane.xlu1 %1468 }
 0x586   : > { %v1472_v36 = vmul.f32 1.442695, %v1470_v34  ;;  %v1471_v37 = vsub.f32 %v1463_v31, %v1469_v35  ;;  %v2732_v31 = vld [vmem:[%s3367_s14 + $0x40] sm:$0xff]   ;;  %v2735_v34 = vld [vmem:[%s3367_s14 + $0x8] sm:$0xff]   ;;  %v2736_v35 = vld [vmem:[%s3367_s14 + $0x50] sm:$0xff]  }
 0x587   : > { %2451 = vmatprep.subr.bf16.mxu1 %v2732_v31 }
 0x588   : > { %2756 = vpow2.f32 %v1472_v36  ;;  %v1474_v38 = vmul.f32 1.442695, %v1471_v37  ;;  %2452 = vmatpush3.bf16.msra.mxu1 %v2733_v32  ;;  %v2737_v36 = vld [vmem:[%s3367_s14 + $0x10] sm:$0xff]   ;;  %v2738_v37 = vld [vmem:[%s3367_s14 + $0x58] sm:$0xff]   ;;  %v2356_v32 = vld [vmem:[%s3368_s15] ss:$0 sm:$0xff] }
 0x589   : > { %2453 = vmatprep.subr.bf16.mxu1 %v2734_v33 }
 0x58a   : > { %2758 = vpow2.f32 %v1474_v38  ;;  %v2739_v38 = vld [vmem:[%s3367_s14 + $0x18] sm:$0xff]  }
 0x58c   : > { %2454 = vmatpush3.bf16.msra.mxu1 %v2735_v34 }
 0x58d   : > { %2455 = vmatprep.subr.bf16.mxu1 %v2736_v35 }
 0x590   : > { %2456 = vmatpush3.bf16.msra.mxu1 %v2737_v36 }
 0x591   : > { %2457 = vmatprep.subr.bf16.mxu1 %v2738_v37 }
 0x592   : > { %v2757_v39 = vpop.eup %2756 }
 0x593   : > { %v1476_v40 = vsel %vm991_vm2, %v2757_v39, 0.0 }
 0x594   : > { %v2759_v41 = vpop.eup %2758  ;;  %1477 = vadd.xlane.f32.xlu0 %v1476_v40  ;;  %2458 = vmatpush3.bf16.msra.mxu1 %v2739_v38  ;;  %v2741_v40 = vld [vmem:[%s3367_s14 + $0x20] sm:$0xff]  }
 0x595   : > { %v1479_v42 = vsel %vm991_vm2, %v2759_v41, 0.0 }
 0x596   : > { %1480 = vadd.xlane.f32.xlu1 %v1479_v42 }
 0x621   : > { %v1478_v46 = vpop.xlane.xlu0 %1477 }
 0x622   : > { %2760 = vrcp.f32 %v1478_v46 }
 0x623   : > { %v1481_v43 = vpop.xlane.xlu1 %1480 }
 0x624   : > { %2762 = vrcp.f32 %v1481_v43 }
 0x62c   : > { %v2761_v44 = vpop.eup %2760 }
 0x62d   : > { %v1484_v47 = vmul.f32 %v2761_v44, %v2757_v39  ;;  %v2740_v39 = vld [vmem:[%s3367_s14 + $0x60] sm:$0xff]  }
 0x62e   : > { %v2763_v45 = vpop.eup %2762  ;;  %2459 = vmatprep.subr.bf16.mxu1 %v2740_v39 }
 0x62f   : > { %v1485_v48 = vmul.f32 %v2763_v45, %v2759_v41  ;;  %v2742_v41 = vld [vmem:[%s3367_s14 + $0x68] sm:$0xff]   ;;  %2460 = vmatpush3.bf16.msra.mxu1 %v2741_v40 }
 0x630   : > { %2461 = vmatprep.subr.bf16.mxu1 %v2742_v41 }
 0x631   : > { %v1486_v49 = vpack.c.bf16 %v1485_v48, %v1484_v47 }
 0x633   : > { %2614 = vmatmul.mubr.msk.bf16.vlgmr.msra.gmra.mrb[16].mxu0 %vm991_vm2, %v1486_v49 }
 0x634   : > { %2618 = vmatpush3.bf16.msra.mxu0 %v2704_v19  ;;  %2625 = vmatprep.mubr.msk.bf16.mxu0 %vm2789_vm0, %v2788_v1 }
 0x635   : > { %2619 = vmatprep.subr.bf16.mxu0 %v2788_v1 }
 0x638   : > { %2620 = vmatpush3.bf16.msra.mxu0 %v2705_v50 }
 0x639   : > { %2621 = vmatprep.subr.bf16.mxu0 %v2788_v1 }
 0x63c   : > { %2622 = vmatpush3.bf16.msra.mxu0 %v2706_v51 }
 0x63d   : > { %2623 = vmatprep.subr.bf16.mxu0 %v2788_v1 }
 0x640   : > { %2624 = vmatpush3.bf16.msra.mxu0 %v2707_v52 }
 0x706   : > { %v1525_v53 = vpop.f32.mrb[16].mxu0 }
 0x707   : > { %v2615_v54 = vpop.f32.mrb[17].mxu0 }
 0x708   : > { %v1528_v55 = vpop.f32.mrb[18].mxu0 }
 0x709   : > { %v1532_v56 = vpack.c.bf16 %v1528_v55, %v1525_v53  ;;  %v2616_v57 = vpop.f32.mrb[19].mxu0 }
 0x70a   : > { %v2338_v57 = vld [vmem:[%s3363_s10] ss:$0 sm:$0xff] }
 0x70b   : > { %2626 = vmatmul.mubr.msk.bf16.vlgmr.msra.gmra.mrb[20].mxu0 %vm933_vm1, %v1532_v56 }
 0x70c   : > { %1885 = vmatprep.mubr.bf16.mxu0 %v2790_v27 }
 0x7de   : > { %v1603_v58 = vpop.f32.mrb[20].mxu0 }
 0x7df   : > { %v1672_v60 = vadd.f32 %v1671_v18, %v1603_v58  ;;  %v2627_v61 = vpop.f32.mrb[21].mxu0  ;;  %v2714_v18 = vld [vmem:[%s3365_s12 + $0x20] ss:$8 sps:$4 sm:$0xff]  }
 0x7e0   : > { %v1606_v1 = vpop.f32.mrb[22].mxu0 }
 0x7e1   : > { %v1685_v62 = vadd.f32 %v2337_v59, %v1672_v60  ;;  %v1675_v63 = vadd.f32 %v1674_v21, %v1606_v1  ;;  %v2628_v0 = vpop.f32.mrb[23].mxu0  ;;  %v2717_v21 = vld [vmem:[%s3365_s12 + $0x30] ss:$8 sps:$4 sm:$0xff]  }
 0x7e3   : > { %v1686_v2 = vadd.f32 %v2337_v59, %v1675_v63  ;;  %v1687_v3 = vadd.f32 %v1685_v62, %v2968_v16  ;;  %v2710_v16 = vld [vmem:[%s3365_s12 + $0x4] ss:$8 sps:$4 sm:$0xff]   ;;  %v2339_v62 = vld [vmem:[%s3364_s11] ss:$0 sm:$0xff] }
 0x7e4   : > { %1853 = vmatprep.subr.bf16.mxu0 %v2710_v16 }
 0x7e5   : > { %1691 = vadd.xlane.f32.xlu0 %v1687_v3  ;;  %v1688_v4 = vadd.f32 %v1686_v2, %v2970_v17  ;;  %v2708_v17 = vld [vmem:[%s3365_s12] ss:$8 sps:$4 sm:$0xff]  }
 0x7e6   : > { %1854 = vmatpush1.bf16.msra.mxu0 %v2708_v17 }
 0x7e7   : > { %1693 = vadd.xlane.f32.xlu1 %v1688_v4  ;;  %1855 = vmatprep.subr.bf16.mxu0 %v2713_v13 }
 0x7ea   : > { %1856 = vmatpush1.bf16.msra.mxu0 %v2711_v14 }
 0x7eb   : > { %1857 = vmatprep.subr.bf16.mxu0 %v2716_v15 }
 0x7ee   : > { %1858 = vmatpush1.bf16.msra.mxu0 %v2714_v18 }
 0x7ef   : > { %1859 = vmatprep.subr.bf16.mxu0 %v2719_v20 }
 0x7f2   : > { %1860 = vmatpush1.bf16.msra.mxu0 %v2717_v21 }
 0x7f3   : > { %1861 = vmatprep.subr.bf16.mxu0 %v2722_v22 }
 0x7f6   : > { %1862 = vmatpush1.bf16.msra.mxu0 %v2720_v23 }
 0x7f7   : > { %1863 = vmatprep.subr.bf16.mxu0 %v2725_v24 }
 0x7fa   : > { %1864 = vmatpush1.bf16.msra.mxu0 %v2723_v25 }
 0x7fb   : > { %1865 = vmatprep.subr.bf16.mxu0 %v2728_v26 }
 0x7fe   : > { %1866 = vmatpush1.bf16.msra.mxu0 %v2726_v28 }
 0x7ff   : > { %1867 = vmatprep.subr.bf16.mxu0 %v2731_v29 }
 0x802   : > { %1868 = vmatpush1.bf16.msra.mxu0 %v2729_v30 }
 0x872   : > { %v1692_v5 = vpop.xlane.xlu0 %1691 }
 0x873   : > { %v1696_v6 = vmul.f32 0.0078125, %v1692_v5  ;;  %v2744_v5 = vld [vmem:[%s3367_s14 + $0x70] sm:$0xff]  }
 0x874   : > { %v1694_v7 = vpop.xlane.xlu1 %1693 }
 0x875   : > { %v3221_v8 = vsub.f32 %v1687_v3, %v1696_v6  ;;  %v1697_v9 = vmul.f32 0.0078125, %v1694_v7  ;;  %v2745_v6 = vld [vmem:[%s3367_s14 + $0x30] sm:$0xff]   ;;  %v2746_v7 = vld [vmem:[%s3367_s14 + $0x78] sm:$0xff]  }
 0x877   : > { %v3223_v10 = vsub.f32 %v1688_v4, %v1697_v9  ;;  %v1700_v11 = vmul.f32 %v3221_v8, %v3221_v8  ;;  %v1728_v59 = vmul.f32 %v2338_v57, %v3221_v8  ;;  %v2743_v4 = vld [vmem:[%s3367_s14 + $0x28] sm:$0xff]   ;;  %v2747_v8 = vld [vmem:[%s3367_s14 + $0x38] sm:$0xff]   ;;  %v1763_v9 = vlaneseq }
 0x878   : > { %2462 = vmatpush3.bf16.msra.mxu1 %v2743_v4  ;;  %v2374_v4 = vld [vmem:[%s3370_s17] ss:$0 sm:$0xff] }
 0x879   : > { %1702 = vadd.xlane.f32.xlu0 %v1700_v11  ;;  %v1701_v12 = vmul.f32 %v3223_v10, %v3223_v10  ;;  %v1729_v60 = vmul.f32 %v2338_v57, %v3223_v10  ;;  %2463 = vmatprep.subr.bf16.mxu1 %v2744_v5  ;;  %v1764_v10 = vshrl.u32 %v1763_v9, 7 }
 0x87b   : > { %1704 = vadd.xlane.f32.xlu1 %v1701_v12  ;;  %v1765_v11 = vsub.s32 0, %v1764_v10  ;;  %v1761_v12 = vld [vmem:[%s3366_s13] sm:$0x3]  ;;  %v1769_v16 = vsub.s32 1, %v1764_v10 }
 0x87c   : > { %2464 = vmatpush3.bf16.msra.mxu1 %v2745_v6 }
 0x87d   : > { %2465 = vmatprep.subr.bf16.mxu1 %v2746_v7  ;;  %v1766_v17 = vrot.slane %v1761_v12, %v1765_v11  ;;  %v1770_v13 = vrot.slane %v1761_v12, %v1769_v16 }
 0x880   : > { %2466 = vmatpush3.bf16.msra.mxu1 %v2747_v8 }
 0x906   : > { %v1703_v42 = vpop.xlane.xlu0 %1702 }
 0x907   : > { %v1706_v46 = vmul.f32 0.007874016, %v1703_v42 }
 0x908   : > { %v1705_v43 = vpop.xlane.xlu1 %1704 }
 0x909   : > { %2764 = vrsqrt.f32 %v1706_v46  ;;  %v1707_v44 = vmul.f32 0.007874016, %v1705_v43  ;;  %vm1710_vm3 = vcmp.eq.f32.partialorder %v1706_v46, inf  ;;  %v1713_v48 = vand.u32 2147483648, %v1706_v46 }
 0x90a   : > { %vm1712_vm4 = vcmp.eq.f32.partialorder %v1706_v46, 0.0 }
 0x90b   : > { %2766 = vrsqrt.f32 %v1707_v44  ;;  %vm1717_vm5 = vcmp.eq.f32.partialorder %v1707_v44, inf  ;;  %v1720_v53 = vand.u32 2147483648, %v1707_v44  ;;  %vm1719_vm6 = vcmp.eq.f32.partialorder %v1707_v44, 0.0 }
 0x913   : > { %v2765_v45 = vpop.eup %2764 }
 0x914   : > { %v1709_v47 = vmul.f32 %v2765_v45, %v1706_v46 }
 0x915   : > { %v2767_v19 = vpop.eup %2766 }
 0x916   : > { %v1711_v49 = vsel %vm1710_vm3, %v1706_v46, %v1709_v47  ;;  %v1716_v51 = vmul.f32 %v2767_v19, %v1707_v44 }
 0x917   : > { %v1714_v50 = vsel %vm1712_vm4, %v1713_v48, %v1711_v49 }
 0x918   : > { %v1730_v52 = vadd.f32 1e-06, %v1714_v50  ;;  %v1718_v54 = vsel %vm1717_vm5, %v1707_v44, %v1716_v51 }
 0x919   : > { %v1721_v55 = vsel %vm1719_vm6, %v1720_v53, %v1718_v54 }
 0x91a   : > { %2768 = vrcp.f32 %v1730_v52  ;;  %v1731_v56 = vadd.f32 1e-06, %v1721_v55 }
 0x91c   : > { %2770 = vrcp.f32 %v1731_v56 }
 0x924   : > { %v2769_v58 = vpop.eup %2768 }
 0x925   : > { %v1734_v61 = vmul.f32 %v2769_v58, %v1728_v59 }
 0x926   : > { %v2771_v1 = vpop.eup %2770 }
 0x927   : > { %v1735_v63 = vmul.f32 %v2771_v1, %v1729_v60  ;;  %v1742_v0 = vadd.f32 %v2339_v62, %v1734_v61 }
 0x929   : > { %v1743_v2 = vadd.f32 %v2339_v62, %v1735_v63 }
 0x92b   : > { %v1744_v3 = vpack.c.bf16 %v1743_v2, %v1742_v0 }
 0x92d   : > { %1886 = vmatmul.mubr.bf16.vlgmr.msra.gmra.mrb[24].mxu0 %v1744_v3 }
 0xa00   : > { %v1887_v14 = vpop.f32.mrb[24].mxu0 }
 0xa01   : > { %v1888_v15 = vadd.f32 %v1887_v14, %v1766_v17  ;;  %v1889_v18 = vpop.f32.mrb[25].mxu0 }
 0xa02   : > { %v1890_v20 = vadd.f32 %v1889_v18, %v1770_v13  ;;  %v1891_v21 = vpop.f32.mrb[26].mxu0 }
 0xa03   : > { %v1892_v22 = vadd.f32 %v1891_v21, %v1766_v17  ;;  %v1893_v23 = vpop.f32.mrb[27].mxu0  ;;  %v1896_v25 = vmax.f32 %v1888_v15, 0.0 }
 0xa04   : > { %v1894_v24 = vadd.f32 %v1893_v23, %v1770_v13  ;;  %v1897_v27 = vmax.f32 %v1890_v20, 0.0 }
 0xa05   : > { %v1898_v26 = vmax.f32 %v1892_v22, 0.0 }
 0xa06   : > { %v1899_v28 = vmax.f32 %v1894_v24, 0.0 }
 0xa07   : > { %v1900_v29 = vpack.c.bf16 %v1898_v26, %v1896_v25 }
 0xa08   : > { %v1901_v30 = vpack.c.bf16 %v1899_v28, %v1897_v27 }
 0xa0a   : > { %2069 = vmatprep.mubr.bf16.mxu1 %v1901_v30 }
 0xa0b   : > { %2070 = vmatmul.mubr.bf16.vlgmr.msra.gmra.mrb[24].mxu1 %v1900_v29 }
 0xade   : > { %v2467_v31 = vpop.f32.mrb[24].mxu1 }
 0xadf   : > { %v2468_v33 = vpop.f32.mrb[25].mxu1 }
 0xae0   : > { %v2469_v34 = vadd.f32 %v2468_v33, %v2467_v31  ;;  %v2470_v35 = vpop.f32.mrb[26].mxu1 }
 0xae1   : > { %v2471_v36 = vpop.f32.mrb[27].mxu1 }
 0xae2   : > { %v2072_v37 = vadd.f32 %v2469_v34, %v2356_v32  ;;  %v2472_v38 = vadd.f32 %v2471_v36, %v2470_v35 }
 0xae4   : > { %v2075_v39 = vadd.f32 %v2472_v38, %v2356_v32  ;;  %v2078_v40 = vadd.f32 %v2072_v37, %v1742_v0  ;;  %v2373_v0 = vld [vmem:[%s3369_s16] ss:$0 sm:$0xff] }
 0xae6   : > { %2082 = vadd.xlane.f32.xlu0 %v2078_v40  ;;  %v2079_v41 = vadd.f32 %v2075_v39, %v1743_v2 }
 0xae8   : > { %2084 = vadd.xlane.f32.xlu1 %v2079_v41 }
 0xb73   : > { %v2083_v42 = vpop.xlane.xlu0 %2082 }
 0xb74   : > { %v2086_v46 = vmul.f32 0.0078125, %v2083_v42 }
 0xb75   : > { %v2085_v43 = vpop.xlane.xlu1 %2084 }
 0xb76   : > { %v2088_v44 = vsub.f32 %v2078_v40, %v2086_v46  ;;  %v2087_v45 = vmul.f32 0.0078125, %v2085_v43 }
 0xb78   : > { %v2089_v47 = vsub.f32 %v2079_v41, %v2087_v45  ;;  %v2090_v48 = vmul.f32 %v2088_v44, %v2088_v44  ;;  %v2118_v2 = vmul.f32 %v2373_v0, %v2088_v44 }
 0xb7a   : > { %2092 = vadd.xlane.f32.xlu0 %v2090_v48  ;;  %v2091_v19 = vmul.f32 %v2089_v47, %v2089_v47  ;;  %v2119_v6 = vmul.f32 %v2373_v0, %v2089_v47 }
 0xb7c   : > { %2094 = vadd.xlane.f32.xlu1 %v2091_v19 }
 0xc07   : > { %v2093_v49 = vpop.xlane.xlu0 %2092 }
 0xc08   : > { %v2096_v50 = vmul.f32 0.007874016, %v2093_v49 }
 0xc09   : > { %v2095_v51 = vpop.xlane.xlu1 %2094 }
 0xc0a   : > { %2772 = vrsqrt.f32 %v2096_v50  ;;  %v2097_v52 = vmul.f32 0.007874016, %v2095_v51  ;;  %vm2100_vm7 = vcmp.eq.f32.partialorder %v2096_v50, inf  ;;  %v2103_v55 = vand.u32 2147483648, %v2096_v50 }
 0xc0b   : > { %vm2102_vm8 = vcmp.eq.f32.partialorder %v2096_v50, 0.0 }
 0xc0c   : > { %2774 = vrsqrt.f32 %v2097_v52  ;;  %vm2107_vm9 = vcmp.eq.f32.partialorder %v2097_v52, inf  ;;  %v2110_v61 = vand.u32 2147483648, %v2097_v52  ;;  %vm2109_vm10 = vcmp.eq.f32.partialorder %v2097_v52, 0.0 }
 0xc14   : > { %v2773_v53 = vpop.eup %2772 }
 0xc15   : > { %v2099_v54 = vmul.f32 %v2773_v53, %v2096_v50 }
 0xc16   : > { %v2775_v56 = vpop.eup %2774 }
 0xc17   : > { %v2101_v57 = vsel %vm2100_vm7, %v2096_v50, %v2099_v54  ;;  %v2106_v59 = vmul.f32 %v2775_v56, %v2097_v52 }
 0xc18   : > { %v2104_v58 = vsel %vm2102_vm8, %v2103_v55, %v2101_v57 }
 0xc19   : > { %v2120_v60 = vadd.f32 1e-06, %v2104_v58  ;;  %v2108_v1 = vsel %vm2107_vm9, %v2097_v52, %v2106_v59 }
 0xc1a   : > { %v2111_v62 = vsel %vm2109_vm10, %v2110_v61, %v2108_v1 }
 0xc1b   : > { %2776 = vrcp.f32 %v2120_v60  ;;  %v2121_v63 = vadd.f32 1e-06, %v2111_v62 }
 0xc1d   : > { %2778 = vrcp.f32 %v2121_v63 }
 0xc25   : > { %v2777_v3 = vpop.eup %2776 }
 0xc26   : > { %v2124_v5 = vmul.f32 %v2777_v3, %v2118_v2 }
 0xc27   : > { %v2779_v7 = vpop.eup %2778 }
 0xc28   : > { %v2132_v8 = vadd.f32 %v2374_v4, %v2124_v5  ;;  %v2125_v9 = vmul.f32 %v2779_v7, %v2119_v6 }
 0xc2a   : > { %2134 = vst [vmem:[%s589_s0] sm:$0xff] %v2132_v8  ;;  %v2133_v10 = vadd.f32 %v2374_v4, %v2125_v9 }
 0xc2c   : > { %2135 = vst [vmem:[%s589_s0 + $0x8] sm:$0xff] %v2133_v10 }
 0xc2d PF: > { %s28_s27 = sadd.s32 1, %s2786_s27  }
 0xc2e   : > { %p25_p4 = scmp.ge.s32.totalorder %s28_s27, 4  }
 0xc30   :  { %27 = sbr.rel (!%p25_p4) target bundleno = 4 (0x4), region = 132 }

// kernel: apply_cme.26
= control target key start
LH: loop header
LB: loop body
LE: loop exit
PB: predicated region body
PF: predicated region fallthrough
CT: control target
= control target key end

     0   :  { %s4863_s6 = smov 1   ;;  %s4864_s10 = smov 2   ;;  %s5521_s0 = inlined_call_operand.smem [shape: u32[31], index: -1, kind: input, shape index: {}] }
   0x1   :  { %s4904_s5 = sld [smem:[%s5521_s0]]   ;;  %s4865_s14 = smov 3  }
   0x2   :  { %s4909_s9 = sld [smem:[%s5521_s0 + %s4863_s6]]   ;;  %s4866_s18 = smov 4  }
   0x3   :  { %s4914_s13 = sld [smem:[%s5521_s0 + %s4864_s10]]   ;;  %s4867_s22 = smov 5  }
   0x4   :  { %s4919_s17 = sld [smem:[%s5521_s0 + %s4865_s14]]   ;;  %s4868_s26 = smov 6  }
   0x5   :  { %s4924_s21 = sld [smem:[%s5521_s0 + %s4866_s18]]   ;;  %s4869_s30 = smov 7  }
   0x6   :  { %s4929_s25 = sld [smem:[%s5521_s0 + %s4867_s22]]   ;;  %s4870_s4 = smov 8  }
   0x7   :  { %s4934_s29 = sld [smem:[%s5521_s0 + %s4868_s26]]   ;;  %s4871_s10 = smov 9  }
   0x8   :  { %s4939_s3 = sld [smem:[%s5521_s0 + %s4869_s30]]   ;;  %s4872_s15 = smov 10  }
   0x9   :  { %s4944_s8 = sld [smem:[%s5521_s0 + %s4870_s4]]   ;;  %s4873_s20 = smov 11  }
   0xa   :  { %5529 = sst [smem:[#allocation2_spill]] %s4919_s17  ;;  %s4874_s26 = smov 12  }
   0xb   :  { %s4949_s14 = sld [smem:[%s5521_s0 + %s4871_s10]]   ;;  %s4875_s1 = smov 13  }
   0xc   :  { %s4954_s19 = sld [smem:[%s5521_s0 + %s4872_s15]]   ;;  %s4876_s7 = smov 14  }
   0xd   :  { %s4959_s24 = sld [smem:[%s5521_s0 + %s4873_s20]]   ;;  %s4877_s15 = smov 15  }
   0xe   :  { %s4964_s30 = sld [smem:[%s5521_s0 + %s4874_s26]]   ;;  %s4878_s22 = smov 16  }
   0xf   :  { %s4969_s6 = sld [smem:[%s5521_s0 + %s4875_s1]]   ;;  %s4879_s28 = smov 17  }
  0x10   :  { %s4974_s12 = sld [smem:[%s5521_s0 + %s4876_s7]]   ;;  %s4880_s7 = smov 18  }
  0x11   :  { %s4979_s20 = sld [smem:[%s5521_s0 + %s4877_s15]]   ;;  %s4881_s15 = smov 19  }
  0x12   :  { %s4984_s27 = sld [smem:[%s5521_s0 + %s4878_s22]]   ;;  %s4882_s22 = smov 20  }
  0x13   :  { %s4989_s4 = sld [smem:[%s5521_s0 + %s4879_s28]]   ;;  %s4883_s28 = smov 21  }
  0x14   :  { %s4994_s17 = sld [smem:[%s5521_s0 + %s4880_s7]]   ;;  %s4884_s7 = smov 22  }
  0x15   :  { %5530 = sst [smem:[#allocation3_spill]] %s4969_s6 }
  0x16   :  { %s5004_s6 = sld [smem:[%s5521_s0 + %s4882_s22]]   ;;  %s4886_s22 = smov 24  }
  0x17   :  { %5531 = sst [smem:[#allocation4_spill]] %s4979_s20 }
  0x18   :  { %s4999_s20 = sld [smem:[%s5521_s0 + %s4881_s15]]   ;;  %s4885_s15 = smov 23  }
  0x19   :  { %5532 = sst [smem:[#allocation5_spill]] %s4989_s4 }
  0x1a   :  { %5533 = sst [smem:[#allocation6_spill]] %s4994_s17 }
  0x1b   :  { %s5009_s4 = sld [smem:[%s5521_s0 + %s4883_s28]]   ;;  %s4887_s28 = smov 25  }
  0x1c   :  { %5535 = sst [smem:[#allocation8_spill]] %s5004_s6 }
  0x1d   :  { %s5014_s17 = sld [smem:[%s5521_s0 + %s4884_s7]]   ;;  %s4888_s7 = smov 26  }
  0x1e   :  { %5534 = sst [smem:[#allocation7_spill]] %s4999_s20 }
  0x1f   :  { %s5019_s20 = sld [smem:[%s5521_s0 + %s4885_s15]]   ;;  %s4889_s15 = smov 27  }
  0x20   :  { %s5024_s6 = sld [smem:[%s5521_s0 + %s4886_s22]]   ;;  %s4890_s22 = smov 28  }
  0x21   :  { %5536 = sst [smem:[#allocation9_spill]] %s5009_s4 }
  0x22   :  { %s5029_s4 = sld [smem:[%s5521_s0 + %s4887_s28]]   ;;  %s4891_s28 = smov 29  }
  0x23   :  { %5537 = sst [smem:[#allocation10_spill]] %s5014_s17 }
  0x24   :  { %s5034_s17 = sld [smem:[%s5521_s0 + %s4888_s7]]   ;;  %s4892_s7 = smov 30  }
  0x25   :  { %5538 = sst [smem:[#allocation11_spill]] %s5019_s20 }
  0x26   :  { %5539 = sst [smem:[#allocation12_spill]] %s5024_s6 }
  0x27   :  { %s5039_s20 = sld [smem:[%s5521_s0 + %s4889_s15]]   ;;  %s5056_s15 = smov 0  }
  0x28   :  { %5540 = sst [smem:[#allocation13_spill]] %s5029_s4 }
  0x29   :  { %s5044_s6 = sld [smem:[%s5521_s0 + %s4890_s22]]  }
  0x2a   :  { %5541 = sst [smem:[#allocation14_spill]] %s5034_s17 }
  0x2b   :  { %s5049_s4 = sld [smem:[%s5521_s0 + %s4891_s28]]  }
  0x2c   :  { %s5054_s17 = sld [smem:[%s5521_s0 + %s4892_s7]]  }
  0x2d LB: > { %s3791_s16 = sadd.s32 4294967295, %s4861_s15   ;;  %p3795_p0 = scmp.ge.s32.totalorder %s4861_s15, 1  ;;  %s4861_s15 = sphi %s5056_s15, %s71_s15  }
  0x2e   : > { %p868_p1 = scmp.lt.s32.totalorder %s4861_s15, 3 }
  0x30   : > { %p869_p2 = pnand %p3795_p0, %p868_p1 }
  0x31   : > { %v4645_v0 = vld [vmem:[%s4934_s29] sm:$0xff] (!%p869_p2)   ;;  %v4893_v1 = vmov (!%p869_p2), 0.0   ;;  %v4646_v2 = vld [vmem:[%s4934_s29 + $0x8] sm:$0xff] (!%p869_p2)   ;;  %vm4894_vm0 = vmmov (!%p869_p2), 0   ;;  %v4648_v5 = vld [vmem:[%s4934_s29 + $0x10] sm:$0xff] (!%p869_p2)   ;;  %p956_p3 = scmp.lt.s32.totalorder (!%p869_p2), %s3791_s16, 1 }
  0x32   : > { %872 = sbr.rel (%p869_p2) target bundleno = 5456 (0x1550), region = 140  ;;  %4288 = vmatprep.subr.bf16.mxu1 (!%p869_p2), %v4893_v1  ;;  %4268 = vmatprep.subr.bf16.mxu0 (!%p869_p2), %v4893_v1  ;;  %v4647_v3 = vld [vmem:[%s4924_s21] sm:$0xff] (!%p869_p2)   ;;  %v4649_v4 = vld [vmem:[%s4924_s21 + $0x8] sm:$0xff] (!%p869_p2)   ;;  %v4651_v6 = vld [vmem:[%s4924_s21 + $0x10] sm:$0xff] (!%p869_p2)   ;;  %vm1321_vm1 = vcmask (!%p869_p2), 523264   ;;  %vm1379_vm2 = vcmask (!%p869_p2), 130048  }
  0x33   : > { %4289 = vmatpush3.bf16.msra.mxu1 (!%p869_p2), %v4645_v0  ;;  %4304 = vmatprep.mubr.msk.bf16.mxu1 (!%p869_p2), %vm4894_vm0, %v4893_v1  ;;  %v4650_v7 = vld [vmem:[%s4934_s29 + $0x18] sm:$0xff] (!%p869_p2)   ;;  %v4652_v9 = vld [vmem:[%s4934_s29 + $0x20] sm:$0xff] (!%p869_p2)   ;;  %v4654_v10 = vld [vmem:[%s4934_s29 + $0x28] sm:$0xff] (!%p869_p2)   ;;  %s5542_s28 = sld [smem:[#allocation3_spill]] (!%p869_p2)  ;;  %s5543_s1 = sld [smem:[#allocation5_spill]] (!%p869_p2)  ;;  %vm2527_vm7 = vcmask (!%p869_p2), 64512  }
  0x34   : > { %4290 = vmatprep.subr.bf16.mxu1 (!%p869_p2), %v4893_v1  ;;  %4284 = vmatprep.mubr.msk.bf16.mxu0 (!%p869_p2), %vm4894_vm0, %v4893_v1  ;;  %v4653_v8 = vld [vmem:[%s4924_s21 + $0x18] sm:$0xff] (!%p869_p2)   ;;  %v4655_v11 = vld [vmem:[%s4924_s21 + $0x20] sm:$0xff] (!%p869_p2)   ;;  %v4657_v12 = vld [vmem:[%s4924_s21 + $0x28] sm:$0xff] (!%p869_p2)   ;;  %s5544_s2 = sld [smem:[#allocation4_spill]] (!%p869_p2)  ;;  %s5545_s7 = sld [smem:[#allocation6_spill]] (!%p869_p2)  ;;  %vm2555_vm8 = vcmask (!%p869_p2), 1043456  }
  0x35   : > { %4269 = vmatpush3.bf16.msra.mxu0 (!%p869_p2), %v4647_v3  ;;  %v4656_v13 = vld [vmem:[%s4934_s29 + $0x30] sm:$0xff] (!%p869_p2)   ;;  %v4658_v15 = vld [vmem:[%s4934_s29 + $0x38] sm:$0xff] (!%p869_p2)   ;;  %v3810_v20 = vld [vmem:[%s4939_s3] ss:$0 sm:$0xff] (!%p869_p2)  ;;  %s5546_s10 = sld [smem:[#allocation2_spill]] (!%p869_p2) }
  0x36   : > { %4270 = vmatprep.subr.bf16.mxu0 (!%p869_p2), %v4893_v1  ;;  %v4659_v14 = vld [vmem:[%s4924_s21 + $0x30] sm:$0xff] (!%p869_p2)   ;;  %v4660_v18 = vld [vmem:[%s4924_s21 + $0x38] sm:$0xff] (!%p869_p2)   ;;  %v3801_v22 = vld [vmem:[%s4929_s25] ss:$0 sm:$0xff] (!%p869_p2) }
  0x37   : > { %4291 = vmatpush3.bf16.msra.mxu1 (!%p869_p2), %v4646_v2  ;;  %v4661_v37 = vld [vmem:[%s4944_s8] sm:$0xff] (!%p869_p2)   ;;  %v4662_v38 = vld [vmem:[%s4944_s8 + $0x8] sm:$0xff] (!%p869_p2)   ;;  %v4663_v39 = vld [vmem:[%s4944_s8 + $0x10] sm:$0xff] (!%p869_p2)  }
  0x38   : > { %4292 = vmatprep.subr.bf16.mxu1 (!%p869_p2), %v4893_v1  ;;  %v4664_v40 = vld [vmem:[%s4944_s8 + $0x18] sm:$0xff] (!%p869_p2)   ;;  %v4665_v41 = vld [vmem:[%s4944_s8 + $0x20] sm:$0xff] (!%p869_p2)   ;;  %v4666_v42 = vld [vmem:[%s4944_s8 + $0x28] sm:$0xff] (!%p869_p2)  }
  0x39   : > { %4271 = vmatpush3.bf16.msra.mxu0 %v4649_v4  ;;  %s5556_s16 = smov (!%p956_p3, %s3791_s16), 1  ;;  %v4667_v43 = vld [vmem:[%s4944_s8 + $0x30] sm:$0xff]   ;;  %v4668_v44 = vld [vmem:[%s4944_s8 + $0x38] sm:$0xff]  }
  0x3a   : > { %4272 = vmatprep.subr.bf16.mxu0 %v4893_v1  ;;  %s4100_s0 = sshll.u32 %s5556_s16, 4  ;;  %s967_s22 = scalar_lea.vmem %s4914_s13, %s5556_s16 }
  0x3b   : > { %4293 = vmatpush3.bf16.msra.mxu1 %v4648_v5  ;;  %s5103_s18 = scalar_lea.vmem %s4904_s5, %s4100_s0  ;;  %v5152_v46 = vld [vmem:[%s967_s22] ss:$0 sm:$0xff]  ;;  %s3798_s23 = sshll.u32 %s5556_s16, 3 }
  0x3c   : > { %4294 = vmatprep.subr.bf16.mxu1 %v4893_v1  ;;  %v977_v16 = vld [vmem:[%s5103_s18] sm:$0xff]  ;;  %v978_v17 = vld [vmem:[%s5103_s18 + $0x8] sm:$0xff]  ;;  %s964_s26 = scalar_lea.vmem %s4909_s9, %s3798_s23  ;;  %s970_s11 = scalar_lea.vmem %s5546_s10, %s5556_s16 }
  0x3d   : > { %4273 = vmatpush3.bf16.msra.mxu0 %v4651_v6  ;;  %v5113_v19 = vpack.c.bf16 %v978_v17, %v977_v16  ;;  %v4669_v5 = vld [vmem:[%s4934_s29 + $0x40] sm:$0xff]   ;;  %v4677_v16 = vld [vmem:[%s4934_s29 + $0x68] sm:$0xff]   ;;  %v4679_v17 = vld [vmem:[%s4934_s29 + $0x70] sm:$0xff]   ;;  %s5548_s22 = sld [smem:[#allocation8_spill]]  ;;  %s5549_s23 = sld [smem:[#allocation9_spill]] }
  0x3e   : > { %4274 = vmatprep.subr.bf16.mxu0 %v4893_v1  ;;  %s5552_s10 = sld [smem:[#allocation10_spill]] }
  0x3f   : > { %4295 = vmatpush3.bf16.msra.mxu1 %v4650_v7  ;;  %v3819_v7 = vld [vmem:[%s4949_s14] ss:$0 sm:$0xff] }
  0x40   : > { %4296 = vmatprep.subr.bf16.mxu1 %v4893_v1 }
  0x41   : > { %4275 = vmatpush3.bf16.msra.mxu0 %v4653_v8 }
  0x42   : > { %4276 = vmatprep.subr.bf16.mxu0 %v4893_v1 }
  0x43   : > { %4297 = vmatpush3.bf16.msra.mxu1 %v4652_v9 }
  0x44   : > { %4298 = vmatprep.subr.bf16.mxu1 %v4893_v1 }
  0x45   : > { %4277 = vmatpush3.bf16.msra.mxu0 %v4655_v11  ;;  %v4670_v11 = vld [vmem:[%s4934_s29 + $0x48] sm:$0xff]  }
  0x46   : > { %4278 = vmatprep.subr.bf16.mxu0 %v4893_v1 }
  0x47   : > { %4299 = vmatpush3.bf16.msra.mxu1 %v4654_v10 }
  0x48   : > { %4300 = vmatprep.subr.bf16.mxu1 %v4893_v1 }
  0x49   : > { %4279 = vmatpush3.bf16.msra.mxu0 %v4657_v12 }
  0x4a   : > { %4280 = vmatprep.subr.bf16.mxu0 %v4893_v1 }
  0x4b   : > { %4301 = vmatpush3.bf16.msra.mxu1 %v4656_v13  ;;  %v4671_v13 = vld [vmem:[%s4934_s29 + $0x50] sm:$0xff]  }
  0x4c   : > { %4302 = vmatprep.subr.bf16.mxu1 %v4893_v1 }
  0x4d   : > { %4281 = vmatpush3.bf16.msra.mxu0 %v4659_v14  ;;  %v4673_v14 = vld [vmem:[%s4934_s29 + $0x58] sm:$0xff]  }
  0x4e   : > { %4282 = vmatprep.subr.bf16.mxu0 %v4893_v1 }
  0x4f   : > { %4303 = vmatpush3.bf16.msra.mxu1 %v4658_v15  ;;  %v4675_v15 = vld [vmem:[%s4934_s29 + $0x60] sm:$0xff]  }
  0x50   : > { %4328 = vmatprep.subr.bf16.mxu1 %v4893_v1 }
  0x51   : > { %4283 = vmatpush3.bf16.msra.mxu0 %v4660_v18  ;;  %v4681_v18 = vld [vmem:[%s4934_s29 + $0x78] sm:$0xff]  }
  0x52   : > { %4305 = vmatmul.mubr.bf16.vlgmr.msra.gmra.mrb[0].mxu1 %v5113_v19  ;;  %4308 = vmatprep.subr.bf16.mxu0 %v4893_v1 }
  0x53   : > { %4330 = vmatprep.mubr.msk.bf16.mxu1 %vm4894_vm0, %v4893_v1 }
  0x54   : > { %4285 = vmatmul.mubr.bf16.vlgmr.msra.gmra.mrb[0].mxu0 %v5113_v19 }
  0x55   : > { %4324 = vmatprep.mubr.msk.bf16.mxu0 %vm4894_vm0, %v4893_v1  ;;  %4309 = vmatpush3.bf16.msra.mxu0 %v4661_v37  ;;  %v4687_v37 = vld [vmem:[%s4944_s8 + $0x50] sm:$0xff]  }
  0x56   : > { %4310 = vmatprep.subr.bf16.mxu0 %v4893_v1 }
  0x59   : > { %4311 = vmatpush3.bf16.msra.mxu0 %v4662_v38  ;;  %v4688_v38 = vld [vmem:[%s4944_s8 + $0x58] sm:$0xff]  }
  0x5a   : > { %4312 = vmatprep.subr.bf16.mxu0 %v4893_v1 }
  0x5d   : > { %4313 = vmatpush3.bf16.msra.mxu0 %v4663_v39  ;;  %v4689_v39 = vld [vmem:[%s4944_s8 + $0x60] sm:$0xff]  }
  0x5e   : > { %4314 = vmatprep.subr.bf16.mxu0 %v4893_v1 }
  0x61   : > { %4315 = vmatpush3.bf16.msra.mxu0 %v4664_v40  ;;  %v4690_v40 = vld [vmem:[%s4944_s8 + $0x68] sm:$0xff]  }
  0x62   : > { %4316 = vmatprep.subr.bf16.mxu0 %v4893_v1 }
  0x65   : > { %4317 = vmatpush3.bf16.msra.mxu0 %v4665_v41  ;;  %v4691_v41 = vld [vmem:[%s4944_s8 + $0x70] sm:$0xff]  }
  0x66   : > { %4318 = vmatprep.subr.bf16.mxu0 %v4893_v1 }
  0x69   : > { %4319 = vmatpush3.bf16.msra.mxu0 %v4666_v42  ;;  %v4692_v42 = vld [vmem:[%s4944_s8 + $0x78] sm:$0xff]  }
  0x6a   : > { %4320 = vmatprep.subr.bf16.mxu0 %v4893_v1 }
  0x6d   : > { %4321 = vmatpush3.bf16.msra.mxu0 %v4667_v43  ;;  %v4693_v43 = vld [vmem:[%s4954_s19] sm:$0xff]  }
  0x6e   : > { %4322 = vmatprep.subr.bf16.mxu0 %v4893_v1 }
  0x71   : > { %4323 = vmatpush3.bf16.msra.mxu0 %v4668_v44  ;;  %v4694_v44 = vld [vmem:[%s4954_s19 + $0x8] sm:$0xff]  }
  0x72   : > { %4360 = vmatprep.subr.bf16.mxu0 %v4893_v1 }
  0x74   : > { %4325 = vmatmul.mubr.bf16.vlgmr.msra.gmra.mrb[4].mxu0 %v5113_v19 }
  0x75   : > { %4376 = vmatprep.mubr.msk.bf16.mxu0 %vm4894_vm0, %v4893_v1  ;;  %4361 = vmatpush3.bf16.msra.mxu0 %v4669_v5 }
  0x76   : > { %4362 = vmatprep.subr.bf16.mxu0 %v4893_v1 }
  0x79   : > { %4363 = vmatpush3.bf16.msra.mxu0 %v4670_v11 }
  0x7a   : > { %4364 = vmatprep.subr.bf16.mxu0 %v4893_v1 }
  0x7d   : > { %4365 = vmatpush3.bf16.msra.mxu0 %v4671_v13 }
  0x7e   : > { %4366 = vmatprep.subr.bf16.mxu0 %v4893_v1 }
  0x81   : > { %4367 = vmatpush3.bf16.msra.mxu0 %v4673_v14 }
  0x82   : > { %4368 = vmatprep.subr.bf16.mxu0 %v4893_v1 }
  0x85   : > { %4369 = vmatpush3.bf16.msra.mxu0 %v4675_v15 }
  0x86   : > { %4370 = vmatprep.subr.bf16.mxu0 %v4893_v1 }
  0x89   : > { %4371 = vmatpush3.bf16.msra.mxu0 %v4677_v16 }
  0x8a   : > { %4372 = vmatprep.subr.bf16.mxu0 %v4893_v1 }
  0x8d   : > { %4373 = vmatpush3.bf16.msra.mxu0 %v4679_v17 }
  0x8e   : > { %4374 = vmatprep.subr.bf16.mxu0 %v4893_v1 }
  0x91   : > { %4375 = vmatpush3.bf16.msra.mxu0 %v4681_v18 }
  0x92   : > { %4400 = vmatprep.subr.bf16.mxu0 %v4893_v1 }
  0x94   : > { %4377 = vmatmul.mubr.bf16.vlgmr.msra.gmra.mrb[8].mxu0 %v5113_v19 }
  0x95   : > { %4402 = vmatprep.mubr.msk.bf16.mxu0 %vm4894_vm0, %v4893_v1 }
 0x125   : > { %v1200_v21 = vpop.f32.mrb[0].mxu1 }
 0x126   : > { %v4306_v23 = vpop.f32.mrb[1].mxu1  ;;  %v1201_v26 = vadd.f32 %v3810_v20, %v1200_v21 }
 0x127   : > { %v1203_v24 = vpop.f32.mrb[2].mxu1  ;;  %v1088_v25 = vpop.f32.mrb[0].mxu0 }
 0x128   : > { %v1204_v27 = vadd.f32 %v3810_v20, %v1203_v24  ;;  %v4307_v28 = vpop.f32.mrb[3].mxu1  ;;  %v1089_v29 = vadd.f32 %v3801_v22, %v1088_v25  ;;  %v4286_v30 = vpop.f32.mrb[1].mxu0 }
 0x129   : > { %v1091_v31 = vpop.f32.mrb[2].mxu0  ;;  %v4674_v28 = vld [vmem:[%s4924_s21 + $0x48] sm:$0xff]   ;;  %v4678_v30 = vld [vmem:[%s4924_s21 + $0x58] sm:$0xff]  }
 0x12a   : > { %v1320_v32 = vpack.c.bf16 %v1204_v27, %v1201_v26  ;;  %v1092_v33 = vadd.f32 %v3801_v22, %v1091_v31  ;;  %v4287_v34 = vpop.f32.mrb[3].mxu0  ;;  %v4672_v26 = vld [vmem:[%s4924_s21 + $0x40] sm:$0xff]  }
 0x12b   : > { %v4680_v31 = vld [vmem:[%s4924_s21 + $0x60] sm:$0xff]   ;;  %v4684_v34 = vld [vmem:[%s4924_s21 + $0x78] sm:$0xff]  }
 0x12c   : > { %v1319_v35 = vpack.c.bf16 %v1092_v33, %v1089_v29  ;;  %v1326_v36 = vsel %vm1321_vm1, %v1320_v32, 0  ;;  %v4676_v29 = vld [vmem:[%s4924_s21 + $0x50] sm:$0xff]   ;;  %v4682_v32 = vld [vmem:[%s4924_s21 + $0x68] sm:$0xff]  }
 0x12d   : > { %4329 = vmatpush3.bf16.xpose.msra.mxu1 %v1326_v36  ;;  %v4683_v33 = vld [vmem:[%s4924_s21 + $0x70] sm:$0xff]   ;;  %v4686_v36 = vld [vmem:[%s4944_s8 + $0x48] sm:$0xff]  }
 0x12e   : > { %4334 = vmatprep.subr.bf16.mxu1 %v4893_v1 }
 0x134   : > { %4331 = vmatmul.mubr.msk.bf16.vlgmr.msra.gmra.mrb[4].mxu1 %vm1321_vm1, %v1319_v35  ;;  %v4685_v35 = vld [vmem:[%s4944_s8 + $0x40] sm:$0xff]  }
 0x135   : > { %4336 = vmatprep.mubr.msk.bf16.mxu1 %vm4894_vm0, %v4893_v1 }
 0x147   : > { %v1312_v3 = vpop.f32.mrb[4].mxu0 }
 0x148   : > { %v4326_v4 = vpop.f32.mrb[5].mxu0  ;;  %v1313_v9 = vadd.f32 %v3819_v7, %v1312_v3 }
 0x149   : > { %v1315_v6 = vpop.f32.mrb[6].mxu0 }
 0x14a   : > { %v4327_v8 = vpop.f32.mrb[7].mxu0  ;;  %v1316_v10 = vadd.f32 %v3819_v7, %v1315_v6  ;;  %v3900_v6 = vld [vmem:[%s4949_s14 + $0x1] ss:$0 sm:$0xff] }
 0x14c   : > { %v1403_v12 = vpack.c.bf16 %v1316_v10, %v1313_v9 }
 0x14e   : > { %4335 = vmatpush3.bf16.msra.mxu1 %v1403_v12 }
 0x14f   : > { %4340 = vmatprep.subr.bf16.mxu1 %v4893_v1 }
 0x207   : > { %v1362_v45 = vpop.f32.mrb[4].mxu1 }
 0x208   : > { %v1369_v47 = vmul.f32 0.125, %v1362_v45  ;;  %v4332_v48 = vpop.f32.mrb[5].mxu1  ;;  %v4695_v45 = vld [vmem:[%s4954_s19 + $0x10] sm:$0xff]  }
 0x209   : > { %v1365_v49 = vpop.f32.mrb[6].mxu1  ;;  %v3874_v48 = vld [vmem:[%s4939_s3 + $0x1] ss:$0 sm:$0xff] }
 0x20a   : > { %v1370_v50 = vmul.f32 0.125, %v1365_v49  ;;  %v4333_v51 = vpop.f32.mrb[7].mxu1  ;;  %v1377_v52 = vadd.f32 %v5152_v46, %v1369_v47  ;;  %v4696_v47 = vld [vmem:[%s4954_s19 + $0x18] sm:$0xff]  }
 0x20c   : > { %v1380_v53 = vsel %vm1379_vm2, %v1377_v52, -inf  ;;  %v1378_v54 = vadd.f32 %v5152_v46, %v1370_v50 }
 0x20d   : > { %1381 = vmax.xlane.f32.xlu0 %v1380_v53 }
 0x20e   : > { %v1383_v55 = vsel %vm1379_vm2, %v1378_v54, -inf }
 0x211   : > { %1384 = vmax.xlane.f32.xlu0 %v1383_v55 }
 0x29a   : > { %v1382_v56 = vpop.xlane.xlu0 %1381 }
 0x29b   : > { %v1386_v57 = vsub.f32 %v1377_v52, %v1382_v56 }
 0x29d   : > { %v1388_v58 = vmul.f32 1.442695, %v1386_v57 }
 0x29e   : > { %v1385_v59 = vpop.xlane.xlu0 %1384 }
 0x29f   : > { %4797 = vpow2.f32 %v1388_v58  ;;  %v1387_v60 = vsub.f32 %v1378_v54, %v1385_v59 }
 0x2a1   : > { %v1390_v61 = vmul.f32 1.442695, %v1387_v60 }
 0x2a3   : > { %4799 = vpow2.f32 %v1390_v61  ;;  %v3848_v61 = vld [vmem:[%s4929_s25 + $0x1] ss:$0 sm:$0xff] }
 0x2a9   : > { %v4798_v62 = vpop.eup %4797 }
 0x2aa   : > { %v1392_v63 = vsel %vm1379_vm2, %v4798_v62, 0.0 }
 0x2ab   : > { %1393 = vadd.xlane.f32.xlu1 %v1392_v63 }
 0x2ad   : > { %v4800_v0 = vpop.eup %4799 }
 0x2ae   : > { %v1395_v2 = vsel %vm1379_vm2, %v4800_v0, 0.0 }
 0x2af   : > { %1396 = vadd.xlane.f32.xlu1 %v1395_v2 }
 0x338   : > { %v1394_v20 = vpop.xlane.xlu1 %1393 }
 0x339   : > { %4801 = vrcp.f32 %v1394_v20 }
 0x33c   : > { %v1397_v21 = vpop.xlane.xlu1 %1396 }
 0x33d   : > { %4803 = vrcp.f32 %v1397_v21 }
 0x343   : > { %v4802_v22 = vpop.eup %4801 }
 0x344   : > { %v1400_v24 = vmul.f32 %v4802_v22, %v4798_v62 }
 0x347   : > { %v4804_v23 = vpop.eup %4803 }
 0x348   : > { %v1401_v25 = vmul.f32 %v4804_v23, %v4800_v0 }
 0x34a   : > { %v1402_v27 = vpack.c.bf16 %v1401_v25, %v1400_v24 }
 0x34c   : > { %4337 = vmatmul.mubr.msk.bf16.vlgmr.msra.gmra.mrb[8].mxu1 %vm1379_vm2, %v1402_v27 }
 0x34d   : > { %4341 = vmatpush3.bf16.msra.mxu1 %v4672_v26  ;;  %4356 = vmatprep.mubr.msk.bf16.mxu1 %vm4894_vm0, %v4893_v1 }
 0x34e   : > { %4342 = vmatprep.subr.bf16.mxu1 %v4893_v1 }
 0x351   : > { %4343 = vmatpush3.bf16.msra.mxu1 %v4674_v28 }
 0x352   : > { %4344 = vmatprep.subr.bf16.mxu1 %v4893_v1 }
 0x355   : > { %4345 = vmatpush3.bf16.msra.mxu1 %v4676_v29 }
 0x356   : > { %4346 = vmatprep.subr.bf16.mxu1 %v4893_v1 }
 0x359   : > { %4347 = vmatpush3.bf16.msra.mxu1 %v4678_v30 }
 0x35a   : > { %4348 = vmatprep.subr.bf16.mxu1 %v4893_v1 }
 0x35d   : > { %4349 = vmatpush3.bf16.msra.mxu1 %v4680_v31 }
 0x35e   : > { %4350 = vmatprep.subr.bf16.mxu1 %v4893_v1 }
 0x361   : > { %4351 = vmatpush3.bf16.msra.mxu1 %v4682_v32 }
 0x362   : > { %4352 = vmatprep.subr.bf16.mxu1 %v4893_v1 }
 0x365   : > { %4353 = vmatpush3.bf16.msra.mxu1 %v4683_v33 }
 0x366   : > { %4354 = vmatprep.subr.bf16.mxu1 %v4893_v1 }
 0x369   : > { %4355 = vmatpush3.bf16.msra.mxu1 %v4684_v34 }
 0x36a   : > { %4380 = vmatprep.subr.bf16.mxu1 %v4893_v1 }
 0x36c   : > { %4357 = vmatmul.mubr.bf16.vlgmr.msra.gmra.mrb[12].mxu1 %v5113_v19 }
 0x36d   : > { %4381 = vmatpush3.bf16.msra.mxu1 %v4685_v35  ;;  %4396 = vmatprep.mubr.msk.bf16.mxu1 %vm4894_vm0, %v4893_v1 }
 0x36e   : > { %4382 = vmatprep.subr.bf16.mxu1 %v4893_v1 }
 0x371   : > { %4383 = vmatpush3.bf16.msra.mxu1 %v4686_v36 }
 0x372   : > { %4384 = vmatprep.subr.bf16.mxu1 %v4893_v1 }
 0x375   : > { %4385 = vmatpush3.bf16.msra.mxu1 %v4687_v37 }
 0x376   : > { %4386 = vmatprep.subr.bf16.mxu1 %v4893_v1 }
 0x379   : > { %4387 = vmatpush3.bf16.msra.mxu1 %v4688_v38 }
 0x37a   : > { %4388 = vmatprep.subr.bf16.mxu1 %v4893_v1 }
 0x37d   : > { %4389 = vmatpush3.bf16.msra.mxu1 %v4689_v39 }
 0x37e   : > { %4390 = vmatprep.subr.bf16.mxu1 %v4893_v1 }
 0x381   : > { %4391 = vmatpush3.bf16.msra.mxu1 %v4690_v40 }
 0x382   : > { %4392 = vmatprep.subr.bf16.mxu1 %v4893_v1 }
 0x385   : > { %4393 = vmatpush3.bf16.msra.mxu1 %v4691_v41 }
 0x386   : > { %4394 = vmatprep.subr.bf16.mxu1 %v4893_v1 }
 0x389   : > { %4395 = vmatpush3.bf16.msra.mxu1 %v4692_v42 }
 0x38a   : > { %4424 = vmatprep.subr.bf16.mxu1 %v4893_v1 }
 0x38c   : > { %4397 = vmatmul.mubr.bf16.vlgmr.msra.gmra.mrb[16].mxu1 %v5113_v19  ;;  %v1678_v19 = vpop.f32.mrb[8].mxu0 }
 0x38d   : > { %4425 = vmatpush3.bf16.msra.mxu1 %v4693_v43  ;;  %4432 = vmatprep.mubr.msk.bf16.mxu1 %vm4894_vm0, %v4893_v1  ;;  %v1679_v49 = vadd.f32 %v3874_v48, %v1678_v19  ;;  %v4378_v50 = vpop.f32.mrb[9].mxu0  ;;  %v4700_v19 = vld [vmem:[%s4954_s19 + $0x38] sm:$0xff]  }
 0x38e   : > { %4426 = vmatprep.subr.bf16.mxu1 %v4893_v1  ;;  %v1681_v51 = vpop.f32.mrb[10].mxu0 }
 0x38f   : > { %v1682_v52 = vadd.f32 %v3874_v48, %v1681_v51  ;;  %v4379_v53 = vpop.f32.mrb[11].mxu0  ;;  %v4699_v48 = vld [vmem:[%s4954_s19 + $0x30] sm:$0xff]  }
 0x391   : > { %4427 = vmatpush3.bf16.msra.mxu1 %v4694_v44  ;;  %v1800_v54 = vpack.c.bf16 %v1682_v52, %v1679_v49  ;;  %v4697_v44 = vld [vmem:[%s4954_s19 + $0x20] sm:$0xff]  }
 0x392   : > { %4428 = vmatprep.subr.bf16.mxu1 %v4893_v1 }
 0x393   : > { %v1805_v55 = vsel %vm1321_vm1, %v1800_v54, 0 }
 0x394   : > { %4401 = vmatpush3.bf16.xpose.msra.mxu0 %v1805_v55  ;;  %v3929_v55 = vld [vmem:[%s4959_s24] ss:$0 sm:$0xff] }
 0x395   : > { %4429 = vmatpush3.bf16.msra.mxu1 %v4695_v45  ;;  %4406 = vmatprep.subr.bf16.mxu0 %v4893_v1 }
 0x396   : > { %4430 = vmatprep.subr.bf16.mxu1 %v4893_v1 }
 0x399   : > { %4431 = vmatpush3.bf16.msra.mxu1 %v4696_v47  ;;  %v4698_v47 = vld [vmem:[%s4954_s19 + $0x28] sm:$0xff]  }
 0x39a   : > { %4456 = vmatprep.subr.bf16.mxu1 %v4893_v1 }
 0x41f   : > { %v1441_v56 = vpop.f32.mrb[8].mxu1 }
 0x420   : > { %v4338_v57 = vpop.f32.mrb[9].mxu1 }
 0x421   : > { %v1444_v58 = vpop.f32.mrb[10].mxu1 }
 0x422   : > { %v1448_v59 = vpack.c.bf16 %v1444_v58, %v1441_v56  ;;  %v4339_v60 = vpop.f32.mrb[11].mxu1 }
 0x424   : > { %4433 = vmatmul.mubr.msk.bf16.vlgmr.msra.gmra.mrb[20].mxu1 %vm1321_vm1, %v1448_v59 }
 0x425   : > { %4472 = vmatprep.mubr.msk.bf16.mxu1 %vm4894_vm0, %v4893_v1 }
 0x43f   : > { %v1564_v62 = vpop.f32.mrb[12].mxu1 }
 0x440   : > { %v4358_v63 = vpop.f32.mrb[13].mxu1  ;;  %v1565_v2 = vadd.f32 %v3848_v61, %v1564_v62 }
 0x441   : > { %v1567_v0 = vpop.f32.mrb[14].mxu1  ;;  %v4853_v63 = vld [vmem:[%s5103_s18] sm:$0xff] }
 0x442   : > { %v1568_v3 = vadd.f32 %v3848_v61, %v1567_v0  ;;  %v4359_v4 = vpop.f32.mrb[15].mxu1 }
 0x443   : > { %v4701_v4 = vld [vmem:[%s4984_s27] sm:$0xff]  }
 0x444   : > { %v1799_v5 = vpack.c.bf16 %v1568_v3, %v1565_v2  ;;  %v4854_v2 = vld [vmem:[%s5103_s18 + $0x8] sm:$0xff]  ;;  %4457 = vmatpush3.bf16.msra.mxu1 %v4701_v4  ;;  %s5547_s18 = sld [smem:[#allocation7_spill]] }
 0x445   : > { %4458 = vmatprep.subr.bf16.mxu1 %v4893_v1 }
 0x446   : > { %4403 = vmatmul.mubr.msk.bf16.vlgmr.msra.gmra.mrb[12].mxu0 %vm1321_vm1, %v1799_v5 }
 0x447   : > { %4408 = vmatprep.mubr.msk.bf16.mxu0 %vm4894_vm0, %v4893_v1 }
 0x45f   : > { %v1792_v7 = vpop.f32.mrb[16].mxu1 }
 0x460   : > { %v1793_v8 = vadd.f32 %v3900_v6, %v1792_v7  ;;  %v4398_v9 = vpop.f32.mrb[17].mxu1 }
 0x461   : > { %v1795_v10 = vpop.f32.mrb[18].mxu1 }
 0x462   : > { %v1796_v11 = vadd.f32 %v3900_v6, %v1795_v10  ;;  %v4399_v12 = vpop.f32.mrb[19].mxu1 }
 0x464   : > { %v1875_v13 = vpack.c.bf16 %v1796_v11, %v1793_v8 }
 0x466   : > { %4407 = vmatpush3.bf16.msra.mxu0 %v1875_v13  ;;  %v4702_v13 = vld [vmem:[%s4984_s27 + $0x8] sm:$0xff]  }
 0x467   : > { %4412 = vmatprep.subr.bf16.mxu0 %v4893_v1  ;;  %4459 = vmatpush3.bf16.msra.mxu1 %v4702_v13  ;;  %v4720_v13 = vld [vmem:[%s5545_s7 + $0x18] sm:$0xff]  }
 0x468   : > { %4460 = vmatprep.subr.bf16.mxu1 %v4893_v1 }
 0x4f7   : > { %v2059_v14 = vpop.f32.mrb[20].mxu1 }
 0x4f8   : > { %v4434_v15 = vpop.f32.mrb[21].mxu1 }
 0x4f9   : > { %v5242_v16 = vpop.f32.mrb[22].mxu1  ;;  %v4704_v15 = vld [vmem:[%s4974_s12] sm:$0xff]  }
 0x4fa   : > { %v4435_v17 = vpop.f32.mrb[23].mxu1 }
 0x4fb   : > { %v4706_v17 = vld [vmem:[%s4974_s12 + $0x8] sm:$0xff]  }
 0x519   : > { %v1841_v18 = vpop.f32.mrb[12].mxu0 }
 0x51a   : > { %v1848_v20 = vmul.f32 0.125, %v1841_v18  ;;  %v4404_v21 = vpop.f32.mrb[13].mxu0  ;;  %v4707_v18 = vld [vmem:[%s4984_s27 + $0x20] sm:$0xff]  }
 0x51b   : > { %v1844_v22 = vpop.f32.mrb[14].mxu0  ;;  %v4709_v21 = vld [vmem:[%s4984_s27 + $0x28] sm:$0xff]  }
 0x51c   : > { %v1849_v23 = vmul.f32 0.125, %v1844_v22  ;;  %v4405_v24 = vpop.f32.mrb[15].mxu0  ;;  %v1850_v25 = vadd.f32 %v5152_v46, %v1848_v20  ;;  %v4708_v20 = vld [vmem:[%s4974_s12 + $0x10] sm:$0xff]   ;;  %v4710_v22 = vld [vmem:[%s4974_s12 + $0x18] sm:$0xff]  }
 0x51d   : > { %v4712_v24 = vld [vmem:[%s4974_s12 + $0x20] sm:$0xff]  }
 0x51e   : > { %v1852_v26 = vsel %vm1379_vm2, %v1850_v25, -inf  ;;  %v1851_v27 = vadd.f32 %v5152_v46, %v1849_v23  ;;  %v4711_v23 = vld [vmem:[%s4984_s27 + $0x30] sm:$0xff]  }
 0x51f   : > { %1853 = vmax.xlane.f32.xlu0 %v1852_v26  ;;  %v4714_v26 = vld [vmem:[%s4974_s12 + $0x28] sm:$0xff]  }
 0x520   : > { %v1855_v28 = vsel %vm1379_vm2, %v1851_v27, -inf }
 0x521   : > { %1856 = vmax.xlane.f32.xlu1 %v1855_v28 }
 0x5ac   : > { %v1854_v29 = vpop.xlane.xlu0 %1853 }
 0x5ad   : > { %v1858_v30 = vsub.f32 %v1850_v25, %v1854_v29  ;;  %v4713_v25 = vld [vmem:[%s4984_s27 + $0x38] sm:$0xff]   ;;  %v4715_v29 = vld [vmem:[%s4974_s12 + $0x30] sm:$0xff]  }
 0x5ae   : > { %v1857_v31 = vpop.xlane.xlu1 %1856 }
 0x5af   : > { %v1860_v32 = vmul.f32 1.442695, %v1858_v30  ;;  %v1859_v33 = vsub.f32 %v1851_v27, %v1857_v31  ;;  %v979_v27 = vld [vmem:[%s964_s26] sm:$0xff]  ;;  %v4716_v30 = vld [vmem:[%s4974_s12 + $0x38] sm:$0xff]   ;;  %s5550_s26 = sld [smem:[#allocation12_spill]] }
 0x5b0   : > { %v5304_v28 = vpack.c.bf16 %v979_v27, %v979_v27 }
 0x5b1   : > { %4805 = vpow2.f32 %v1860_v32  ;;  %v1862_v34 = vmul.f32 1.442695, %v1859_v33 }
 0x5b3   : > { %4807 = vpow2.f32 %v1862_v34 }
 0x5bb   : > { %v4806_v35 = vpop.eup %4805 }
 0x5bc   : > { %v1864_v36 = vsel %vm1379_vm2, %v4806_v35, 0.0 }
 0x5bd   : > { %v4808_v37 = vpop.eup %4807  ;;  %1865 = vadd.xlane.f32.xlu0 %v1864_v36 }
 0x5be   : > { %v1867_v46 = vsel %vm1379_vm2, %v4808_v37, 0.0 }
 0x5bf   : > { %1868 = vadd.xlane.f32.xlu1 %v1867_v46 }
 0x64a   : > { %v1866_v38 = vpop.xlane.xlu0 %1865 }
 0x64b   : > { %4809 = vrcp.f32 %v1866_v38 }
 0x64c   : > { %v1869_v39 = vpop.xlane.xlu1 %1868 }
 0x64d   : > { %4811 = vrcp.f32 %v1869_v39 }
 0x655   : > { %v4810_v40 = vpop.eup %4809 }
 0x656   : > { %v1872_v42 = vmul.f32 %v4810_v40, %v4806_v35 }
 0x657   : > { %v4812_v41 = vpop.eup %4811 }
 0x658   : > { %v1873_v43 = vmul.f32 %v4812_v41, %v4808_v37 }
 0x65a   : > { %v1874_v45 = vpack.c.bf16 %v1873_v43, %v1872_v42 }
 0x65c   : > { %4409 = vmatmul.mubr.msk.bf16.vlgmr.msra.gmra.mrb[16].mxu0 %vm1379_vm2, %v1874_v45 }
 0x65d   : > { %4413 = vmatpush3.bf16.msra.mxu0 %v4697_v44  ;;  %4420 = vmatprep.mubr.msk.bf16.mxu0 %vm4894_vm0, %v4893_v1 }
 0x65e   : > { %4414 = vmatprep.subr.bf16.mxu0 %v4893_v1 }
 0x661   : > { %4415 = vmatpush3.bf16.msra.mxu0 %v4698_v47  ;;  %v3930_v47 = vld [vmem:[%s4964_s30] ss:$0 sm:$0xff] }
 0x662   : > { %4416 = vmatprep.subr.bf16.mxu0 %v4893_v1 }
 0x665   : > { %4417 = vmatpush3.bf16.msra.mxu0 %v4699_v48 }
 0x666   : > { %4418 = vmatprep.subr.bf16.mxu0 %v4893_v1 }
 0x669   : > { %4419 = vmatpush3.bf16.msra.mxu0 %v4700_v19 }
 0x66a   : > { %4436 = vmatprep.subr.bf16.mxu0 %v4893_v1 }
 0x72f   : > { %v1913_v49 = vpop.f32.mrb[16].mxu0 }
 0x730   : > { %v4410_v50 = vpop.f32.mrb[17].mxu0 }
 0x731   : > { %v1916_v51 = vpop.f32.mrb[18].mxu0 }
 0x732   : > { %v1920_v52 = vpack.c.bf16 %v1916_v51, %v1913_v49  ;;  %v4411_v53 = vpop.f32.mrb[19].mxu0 }
 0x734   : > { %4421 = vmatmul.mubr.msk.bf16.vlgmr.msra.gmra.mrb[20].mxu0 %vm1321_vm1, %v1920_v52  ;;  %v3931_v52 = vld [vmem:[%s5542_s28] ss:$0 sm:$0xff]  ;;  %s5551_s28 = sld [smem:[#allocation14_spill]] }
 0x735   : > { %4452 = vmatprep.mubr.msk.bf16.mxu0 %vm4894_vm0, %v4893_v1  ;;  %4437 = vmatpush3.bf16.msra.mxu0 %v4704_v15  ;;  %v4722_v15 = vld [vmem:[%s5545_s7 + $0x28] sm:$0xff]  }
 0x736   : > { %4438 = vmatprep.subr.bf16.mxu0 %v4893_v1 }
 0x739   : > { %4439 = vmatpush3.bf16.msra.mxu0 %v4706_v17  ;;  %v4724_v17 = vld [vmem:[%s5545_s7 + $0x38] sm:$0xff]  }
 0x73a   : > { %4440 = vmatprep.subr.bf16.mxu0 %v4893_v1 }
 0x73d   : > { %4441 = vmatpush3.bf16.msra.mxu0 %v4708_v20  ;;  %v5358_v20 = vld [vmem:[%s970_s11] ss:$0 sm:$0xff]  ;;  %s5553_s11 = sld [smem:[#allocation11_spill]] }
 0x73e   : > { %4442 = vmatprep.subr.bf16.mxu0 %v4893_v1 }
 0x741   : > { %4443 = vmatpush3.bf16.msra.mxu0 %v4710_v22 }
 0x742   : > { %4444 = vmatprep.subr.bf16.mxu0 %v4893_v1 }
 0x745   : > { %4445 = vmatpush3.bf16.msra.mxu0 %v4712_v24 }
 0x746   : > { %4446 = vmatprep.subr.bf16.mxu0 %v4893_v1 }
 0x749   : > { %4447 = vmatpush3.bf16.msra.mxu0 %v4714_v26 }
 0x74a   : > { %4448 = vmatprep.subr.bf16.mxu0 %v4893_v1 }
 0x74d   : > { %4449 = vmatpush3.bf16.msra.mxu0 %v4715_v29 }
 0x74e   : > { %4450 = vmatprep.subr.bf16.mxu0 %v4893_v1 }
 0x751   : > { %4451 = vmatpush3.bf16.msra.mxu0 %v4716_v30 }
 0x752   : > { %4476 = vmatprep.subr.bf16.mxu0 %v4893_v1 }
 0x807   : > { %v1991_v54 = vpop.f32.mrb[20].mxu0 }
 0x808   : > { %v2060_v56 = vadd.f32 %v2059_v14, %v1991_v54  ;;  %v4422_v57 = vpop.f32.mrb[21].mxu0  ;;  %v4703_v14 = vld [vmem:[%s4984_s27 + $0x10] sm:$0xff]  }
 0x809   : > { %v1994_v58 = vpop.f32.mrb[22].mxu0  ;;  %4461 = vmatpush3.bf16.msra.mxu1 %v4703_v14  ;;  %v3941_v57 = vld [vmem:[%s5543_s1] ss:$0 sm:$0xff] }
 0x80a   : > { %v2073_v59 = vadd.f32 %v3929_v55, %v2060_v56  ;;  %v2063_v60 = vadd.f32 %v5242_v16, %v1994_v58  ;;  %v4423_v61 = vpop.f32.mrb[23].mxu0  ;;  %4462 = vmatprep.subr.bf16.mxu1 %v4893_v1  ;;  %v4705_v16 = vld [vmem:[%s4984_s27 + $0x18] sm:$0xff]   ;;  %v4721_v14 = vld [vmem:[%s5545_s7 + $0x20] sm:$0xff]  }
 0x80c   : > { %v2074_v62 = vadd.f32 %v3929_v55, %v2063_v60  ;;  %v2075_v0 = vadd.f32 %v4853_v63, %v2073_v59 }
 0x80d   : > { %4463 = vmatpush3.bf16.msra.mxu1 %v4705_v16  ;;  %v4723_v16 = vld [vmem:[%s5545_s7 + $0x30] sm:$0xff]  }
 0x80e   : > { %2079 = vadd.xlane.f32.xlu0 %v2075_v0  ;;  %v2076_v3 = vadd.f32 %v4854_v2, %v2074_v62  ;;  %4464 = vmatprep.subr.bf16.mxu1 %v4893_v1  ;;  %v3932_v2 = vld [vmem:[%s5544_s2] ss:$0 sm:$0xff] }
 0x810   : > { %2081 = vadd.xlane.f32.xlu1 %v2076_v3 }
 0x811   : > { %4465 = vmatpush3.bf16.msra.mxu1 %v4707_v18 }
 0x812   : > { %4466 = vmatprep.subr.bf16.mxu1 %v4893_v1 }
 0x815   : > { %4467 = vmatpush3.bf16.msra.mxu1 %v4709_v21 }
 0x816   : > { %4468 = vmatprep.subr.bf16.mxu1 %v4893_v1 }
 0x819   : > { %4469 = vmatpush3.bf16.msra.mxu1 %v4711_v23 }
 0x81a   : > { %4470 = vmatprep.subr.bf16.mxu1 %v4893_v1 }
 0x81d   : > { %4471 = vmatpush3.bf16.msra.mxu1 %v4713_v25 }
 0x81e   : > { %4496 = vmatprep.subr.bf16.mxu1 %v4893_v1 }
 0x820   : > { %4473 = vmatmul.mubr.bf16.vlgmr.msra.gmra.mrb[24].mxu1 %v5304_v28 }
 0x821   : > { %4498 = vmatprep.mubr.msk.bf16.mxu1 %vm4894_vm0, %v4893_v1 }
 0x89b   : > { %v2080_v5 = vpop.xlane.xlu0 %2079 }
 0x89c   : > { %v2084_v6 = vmul.f32 0.0078125, %v2080_v5 }
 0x89d   : > { %v2082_v7 = vpop.xlane.xlu1 %2081 }
 0x89e   : > { %v5270_v8 = vsub.f32 %v2075_v0, %v2084_v6  ;;  %v2085_v9 = vmul.f32 0.0078125, %v2082_v7 }
 0x8a0   : > { %v5272_v10 = vsub.f32 %v2076_v3, %v2085_v9  ;;  %v2088_v11 = vmul.f32 %v5270_v8, %v5270_v8  ;;  %v2116_v19 = vmul.f32 %v3930_v47, %v5270_v8 }
 0x8a2   : > { %2090 = vadd.xlane.f32.xlu0 %v2088_v11  ;;  %v2089_v12 = vmul.f32 %v5272_v10, %v5272_v10  ;;  %v2117_v49 = vmul.f32 %v3930_v47, %v5272_v10  ;;  %v4717_v10 = vld [vmem:[%s5545_s7] sm:$0xff]   ;;  %v4718_v11 = vld [vmem:[%s5545_s7 + $0x8] sm:$0xff]  }
 0x8a4   : > { %2092 = vadd.xlane.f32.xlu1 %v2089_v12  ;;  %v4719_v12 = vld [vmem:[%s5545_s7 + $0x10] sm:$0xff]  }
 0x8f3   : > { %v2351_v58 = vpop.f32.mrb[24].mxu1 }
 0x8f4   : > { %v2352_v59 = vadd.f32 %v3941_v57, %v2351_v58  ;;  %v4474_v60 = vpop.f32.mrb[25].mxu1  ;;  %v4735_v57 = vld [vmem:[%s4984_s27 + $0x70] sm:$0xff]   ;;  %v4737_v58 = vld [vmem:[%s4984_s27 + $0x78] sm:$0xff]  }
 0x8f5   : > { %v2354_v61 = vpop.f32.mrb[26].mxu1 }
 0x8f6   : > { %v2469_v62 = vpack.c.bf16 %v2352_v59, %v2352_v59  ;;  %v4475_v63 = vpop.f32.mrb[27].mxu1 }
 0x8f8   : > { %v2474_v0 = vsel %vm1321_vm1, %v2469_v62, 0 }
 0x8f9   : > { %4497 = vmatpush3.bf16.xpose.msra.mxu1 %v2474_v0 }
 0x8fa   : > { %4502 = vmatprep.subr.bf16.mxu1 %v4893_v1 }
 0x92f   : > { %v2091_v31 = vpop.xlane.xlu0 %2090 }
 0x930   : > { %v2094_v32 = vmul.f32 0.007874016, %v2091_v31 }
 0x931   : > { %v2093_v33 = vpop.xlane.xlu1 %2092 }
 0x932   : > { %4813 = vrsqrt.f32 %v2094_v32  ;;  %v2095_v34 = vmul.f32 0.007874016, %v2093_v33  ;;  %vm2098_vm3 = vcmp.eq.f32.partialorder %v2094_v32, inf  ;;  %v2101_v37 = vand.u32 2147483648, %v2094_v32 }
 0x933   : > { %vm2100_vm4 = vcmp.eq.f32.partialorder %v2094_v32, 0.0 }
 0x934   : > { %4815 = vrsqrt.f32 %v2095_v34  ;;  %vm2105_vm5 = vcmp.eq.f32.partialorder %v2095_v34, inf  ;;  %v2108_v42 = vand.u32 2147483648, %v2095_v34  ;;  %vm2107_vm6 = vcmp.eq.f32.partialorder %v2095_v34, 0.0 }
 0x93c   : > { %v4814_v35 = vpop.eup %4813 }
 0x93d   : > { %v2097_v36 = vmul.f32 %v4814_v35, %v2094_v32 }
 0x93e   : > { %v4816_v46 = vpop.eup %4815 }
 0x93f   : > { %v2099_v38 = vsel %vm2098_vm3, %v2094_v32, %v2097_v36  ;;  %v2104_v40 = vmul.f32 %v4816_v46, %v2095_v34 }
 0x940   : > { %v2102_v39 = vsel %vm2100_vm4, %v2101_v37, %v2099_v38 }
 0x941   : > { %v2118_v41 = vadd.f32 1e-06, %v2102_v39  ;;  %v2106_v43 = vsel %vm2105_vm5, %v2095_v34, %v2104_v40 }
 0x942   : > { %v2109_v44 = vsel %vm2107_vm6, %v2108_v42, %v2106_v43  ;;  %v4725_v43 = vld [vmem:[%s4984_s27 + $0x40] sm:$0xff]  }
 0x943   : > { %4817 = vrcp.f32 %v2118_v41  ;;  %v2119_v45 = vadd.f32 1e-06, %v2109_v44  ;;  %v3950_v44 = vld [vmem:[%s5547_s18] ss:$0 sm:$0xff] }
 0x945   : > { %4819 = vrcp.f32 %v2119_v45 }
 0x94d   : > { %v4818_v48 = vpop.eup %4817 }
 0x94e   : > { %v2122_v50 = vmul.f32 %v4818_v48, %v2116_v19  ;;  %v4726_v19 = vld [vmem:[%s4984_s27 + $0x48] sm:$0xff]  }
 0x94f   : > { %v4820_v51 = vpop.eup %4819 }
 0x950   : > { %v2123_v53 = vmul.f32 %v4820_v51, %v2117_v49  ;;  %v5319_v54 = vadd.f32 %v3931_v52, %v2122_v50  ;;  %v4727_v50 = vld [vmem:[%s4984_s27 + $0x50] sm:$0xff]   ;;  %v4729_v51 = vld [vmem:[%s4984_s27 + $0x58] sm:$0xff]  }
 0x952   : > { %v5321_v55 = vadd.f32 %v3931_v52, %v2123_v53  ;;  %v4731_v52 = vld [vmem:[%s4984_s27 + $0x60] sm:$0xff]   ;;  %v4733_v53 = vld [vmem:[%s4984_s27 + $0x68] sm:$0xff]  }
 0x954   : > { %v5325_v56 = vpack.c.bf16 %v5321_v55, %v5319_v54 }
 0x956   : > { %4453 = vmatmul.mubr.bf16.vlgmr.msra.gmra.mrb[24].mxu0 %v5325_v56 }
 0x957   : > { %4492 = vmatprep.mubr.msk.bf16.mxu0 %vm4894_vm0, %v4893_v1  ;;  %4477 = vmatpush3.bf16.msra.mxu0 %v4717_v10  ;;  %v4740_v10 = vld [vmem:[%s4974_s12 + $0x78] sm:$0xff]  }
 0x958   : > { %4478 = vmatprep.subr.bf16.mxu0 %v4893_v1 }
 0x95b   : > { %4479 = vmatpush3.bf16.msra.mxu0 %v4718_v11  ;;  %v4741_v11 = vld [vmem:[%s5545_s7 + $0x40] sm:$0xff]  }
 0x95c   : > { %4480 = vmatprep.subr.bf16.mxu0 %v4893_v1 }
 0x95f   : > { %4481 = vmatpush3.bf16.msra.mxu0 %v4719_v12  ;;  %v4742_v12 = vld [vmem:[%s5545_s7 + $0x48] sm:$0xff]  }
 0x960   : > { %4482 = vmatprep.subr.bf16.mxu0 %v4893_v1 }
 0x963   : > { %4483 = vmatpush3.bf16.msra.mxu0 %v4720_v13  ;;  %v4743_v13 = vld [vmem:[%s5545_s7 + $0x50] sm:$0xff]  }
 0x964   : > { %4484 = vmatprep.subr.bf16.mxu0 %v4893_v1 }
 0x967   : > { %4485 = vmatpush3.bf16.msra.mxu0 %v4721_v14  ;;  %v4744_v14 = vld [vmem:[%s5545_s7 + $0x58] sm:$0xff]  }
 0x968   : > { %4486 = vmatprep.subr.bf16.mxu0 %v4893_v1 }
 0x96b   : > { %4487 = vmatpush3.bf16.msra.mxu0 %v4722_v15  ;;  %v4746_v15 = vld [vmem:[%s5545_s7 + $0x68] sm:$0xff]  }
 0x96c   : > { %4488 = vmatprep.subr.bf16.mxu0 %v4893_v1 }
 0x96f   : > { %4489 = vmatpush3.bf16.msra.mxu0 %v4723_v16  ;;  %v4747_v16 = vld [vmem:[%s5545_s7 + $0x70] sm:$0xff]  }
 0x970   : > { %4490 = vmatprep.subr.bf16.mxu0 %v4893_v1 }
 0x973   : > { %4491 = vmatpush3.bf16.msra.mxu0 %v4724_v17  ;;  %v4748_v17 = vld [vmem:[%s5545_s7 + $0x78] sm:$0xff]  }
 0x974   : > { %4528 = vmatprep.subr.bf16.mxu0 %v4893_v1 }
 0x976   : > { %4493 = vmatmul.mubr.bf16.vlgmr.msra.gmra.mrb[28].mxu0 %v5304_v28 }
 0x977   : > { %4544 = vmatprep.mubr.msk.bf16.mxu0 %vm4894_vm0, %v4893_v1  ;;  %4529 = vmatpush3.bf16.msra.mxu0 %v4725_v43 }
 0x978   : > { %4530 = vmatprep.subr.bf16.mxu0 %v4893_v1 }
 0x97b   : > { %4531 = vmatpush3.bf16.msra.mxu0 %v4726_v19 }
 0x97c   : > { %4532 = vmatprep.subr.bf16.mxu0 %v4893_v1 }
 0x97f   : > { %4533 = vmatpush3.bf16.msra.mxu0 %v4727_v50 }
 0x980   : > { %4534 = vmatprep.subr.bf16.mxu0 %v4893_v1 }
 0x983   : > { %4535 = vmatpush3.bf16.msra.mxu0 %v4729_v51 }
 0x984   : > { %4536 = vmatprep.subr.bf16.mxu0 %v4893_v1 }
 0x987   : > { %4537 = vmatpush3.bf16.msra.mxu0 %v4731_v52 }
 0x988   : > { %4538 = vmatprep.subr.bf16.mxu0 %v4893_v1 }
 0x98b   : > { %4539 = vmatpush3.bf16.msra.mxu0 %v4733_v53 }
 0x98c   : > { %4540 = vmatprep.subr.bf16.mxu0 %v4893_v1 }
 0x98f   : > { %4541 = vmatpush3.bf16.msra.mxu0 %v4735_v57 }
 0x990   : > { %4542 = vmatprep.subr.bf16.mxu0 %v4893_v1 }
 0x993   : > { %4543 = vmatpush3.bf16.msra.mxu0 %v4737_v58 }
 0x994   : > { %4568 = vmatprep.subr.bf16.mxu0 %v4893_v1 }
 0x996   : > { %4545 = vmatmul.mubr.bf16.vlgmr.msra.gmra.mrb[32].mxu0 %v5304_v28 }
 0x997   : > { %4570 = vmatprep.mubr.msk.bf16.mxu0 %vm4894_vm0, %v4893_v1 }
 0xa29   : > { %v2239_v3 = vpop.f32.mrb[24].mxu0 }
 0xa2a   : > { %v4454_v4 = vpop.f32.mrb[25].mxu0  ;;  %v2240_v6 = vadd.f32 %v3932_v2, %v2239_v3 }
 0xa2b   : > { %v2242_v5 = vpop.f32.mrb[26].mxu0  ;;  %v4730_v4 = vld [vmem:[%s4974_s12 + $0x48] sm:$0xff]  }
 0xa2c   : > { %v2243_v7 = vadd.f32 %v3932_v2, %v2242_v5  ;;  %v4455_v8 = vpop.f32.mrb[27].mxu0  ;;  %v4728_v2 = vld [vmem:[%s4974_s12 + $0x40] sm:$0xff]   ;;  %v4732_v5 = vld [vmem:[%s4974_s12 + $0x50] sm:$0xff]  }
 0xa2d   : > { %v4738_v8 = vld [vmem:[%s4974_s12 + $0x68] sm:$0xff]  }
 0xa2e   : > { %v2468_v9 = vpack.c.bf16 %v2243_v7, %v2240_v6  ;;  %v4734_v6 = vld [vmem:[%s4974_s12 + $0x58] sm:$0xff]   ;;  %v4736_v7 = vld [vmem:[%s4974_s12 + $0x60] sm:$0xff]  }
 0xa30   : > { %4499 = vmatmul.mubr.msk.bf16.vlgmr.msra.gmra.mrb[28].mxu1 %vm1321_vm1, %v2468_v9  ;;  %v4739_v9 = vld [vmem:[%s4974_s12 + $0x70] sm:$0xff]  }
 0xa31   : > { %4504 = vmatprep.mubr.msk.bf16.mxu1 %vm4894_vm0, %v4893_v1 }
 0xa49   : > { %v2462_v40 = vpop.f32.mrb[28].mxu0 }
 0xa4a   : > { %v4494_v41 = vpop.f32.mrb[29].mxu0  ;;  %v2463_v47 = vadd.f32 %v3950_v44, %v2462_v40  ;;  %v4031_v44 = vld [vmem:[%s5547_s18 + $0x1] ss:$0 sm:$0xff] }
 0xa4b   : > { %v2465_v42 = vpop.f32.mrb[30].mxu0 }
 0xa4c   : > { %v4495_v45 = vpop.f32.mrb[31].mxu0  ;;  %v2551_v48 = vpack.c.bf16 %v2463_v47, %v2463_v47 }
 0xa4e   : > { %v2557_v49 = vsel %vm2555_vm8, %v2551_v48, 0 }
 0xa4f   : > { %4503 = vmatpush3.bf16.msra.mxu1 %v2557_v49 }
 0xa50   : > { %4508 = vmatprep.subr.bf16.mxu1 %v4893_v1 }
 0xb03   : > { %v2510_v18 = vpop.f32.mrb[28].mxu1 }
 0xb04   : > { %v2517_v21 = vmul.f32 0.125, %v2510_v18  ;;  %v4500_v22 = vpop.f32.mrb[29].mxu1  ;;  %v4749_v18 = vld [vmem:[%s5548_s22] sm:$0xff]  }
 0xb05   : > { %v2513_v23 = vpop.f32.mrb[30].mxu1  ;;  %v4751_v22 = vld [vmem:[%s5548_s22 + $0x10] sm:$0xff]  }
 0xb06   : > { %v2518_v24 = vmul.f32 0.125, %v2513_v23  ;;  %v4501_v25 = vpop.f32.mrb[31].mxu1  ;;  %v2525_v26 = vadd.f32 %v5358_v20, %v2517_v21  ;;  %v4750_v21 = vld [vmem:[%s5548_s22 + $0x8] sm:$0xff]   ;;  %v4752_v23 = vld [vmem:[%s5548_s22 + $0x18] sm:$0xff]  }
 0xb07   : > { %v2830_v25 = vpop.f32.mrb[32].mxu0 }
 0xb08   : > { %v2528_v27 = vsel %vm2527_vm7, %v2525_v26, -inf  ;;  %v2526_v29 = vadd.f32 %v5358_v20, %v2518_v24  ;;  %v4005_v24 = vld [vmem:[%s5543_s1 + $0x1] ss:$0 sm:$0xff] }
 0xb09   : > { %2529 = vmax.xlane.f32.xlu0 %v2528_v27 }
 0xb0a   : > { %v2531_v30 = vsel %vm2527_vm7, %v2526_v29, -inf }
 0xb0b   : > { %2532 = vmax.xlane.f32.xlu1 %v2531_v30 }
 0xb96   : > { %v2530_v31 = vpop.xlane.xlu0 %2529 }
 0xb97   : > { %v2534_v32 = vsub.f32 %v2525_v26, %v2530_v31  ;;  %v4546_v26 = vpop.f32.mrb[33].mxu0 }
 0xb98   : > { %v2533_v33 = vpop.xlane.xlu1 %2532  ;;  %v2833_v27 = vpop.f32.mrb[34].mxu0 }
 0xb99   : > { %v2536_v34 = vmul.f32 1.442695, %v2534_v32  ;;  %v2535_v35 = vsub.f32 %v2526_v29, %v2533_v33  ;;  %v4547_v30 = vpop.f32.mrb[35].mxu0 }
 0xb9b   : > { %4821 = vpow2.f32 %v2536_v34  ;;  %v2538_v36 = vmul.f32 1.442695, %v2535_v35 }
 0xb9d   : > { %4823 = vpow2.f32 %v2538_v36 }
 0xba5   : > { %v4822_v37 = vpop.eup %4821 }
 0xba6   : > { %v2540_v46 = vsel %vm2527_vm7, %v4822_v37, 0.0 }
 0xba7   : > { %v4824_v38 = vpop.eup %4823  ;;  %2541 = vadd.xlane.f32.xlu0 %v2540_v46 }
 0xba8   : > { %v2543_v39 = vsel %vm2527_vm7, %v4824_v38, 0.0 }
 0xba9   : > { %2544 = vadd.xlane.f32.xlu1 %v2543_v39 }
 0xc34   : > { %v2542_v59 = vpop.xlane.xlu0 %2541 }
 0xc35   : > { %4825 = vrcp.f32 %v2542_v59 }
 0xc36   : > { %v2545_v60 = vpop.xlane.xlu1 %2544 }
 0xc37   : > { %4827 = vrcp.f32 %v2545_v60 }
 0xc3f   : > { %v4826_v61 = vpop.eup %4825 }
 0xc40   : > { %v2548_v63 = vmul.f32 %v4826_v61, %v4822_v37  ;;  %v3979_v37 = vld [vmem:[%s5544_s2 + $0x1] ss:$0 sm:$0xff] }
 0xc41   : > { %v4828_v62 = vpop.eup %4827 }
 0xc42   : > { %v2549_v0 = vmul.f32 %v4828_v62, %v4824_v38 }
 0xc44   : > { %v2550_v3 = vpack.c.bf16 %v2549_v0, %v2548_v63 }
 0xc46   : > { %4505 = vmatmul.mubr.msk.bf16.vlgmr.msra.gmra.mrb[32].mxu1 %vm2527_vm7, %v2550_v3 }
 0xc47   : > { %4509 = vmatpush3.bf16.msra.mxu1 %v4728_v2  ;;  %4524 = vmatprep.mubr.msk.bf16.mxu1 %vm4894_vm0, %v4893_v1 }
 0xc48   : > { %4510 = vmatprep.subr.bf16.mxu1 %v4893_v1 }
 0xc4b   : > { %4511 = vmatpush3.bf16.msra.mxu1 %v4730_v4 }
 0xc4c   : > { %4512 = vmatprep.subr.bf16.mxu1 %v4893_v1 }
 0xc4f   : > { %4513 = vmatpush3.bf16.msra.mxu1 %v4732_v5 }
 0xc50   : > { %4514 = vmatprep.subr.bf16.mxu1 %v4893_v1 }
 0xc53   : > { %4515 = vmatpush3.bf16.msra.mxu1 %v4734_v6 }
 0xc54   : > { %4516 = vmatprep.subr.bf16.mxu1 %v4893_v1 }
 0xc57   : > { %4517 = vmatpush3.bf16.msra.mxu1 %v4736_v7 }
 0xc58   : > { %4518 = vmatprep.subr.bf16.mxu1 %v4893_v1 }
 0xc5b   : > { %4519 = vmatpush3.bf16.msra.mxu1 %v4738_v8 }
 0xc5c   : > { %4520 = vmatprep.subr.bf16.mxu1 %v4893_v1 }
 0xc5f   : > { %4521 = vmatpush3.bf16.msra.mxu1 %v4739_v9 }
 0xc60   : > { %4522 = vmatprep.subr.bf16.mxu1 %v4893_v1 }
 0xc63   : > { %4523 = vmatpush3.bf16.msra.mxu1 %v4740_v10 }
 0xc64   : > { %4548 = vmatprep.subr.bf16.mxu1 %v4893_v1 }
 0xc66   : > { %4525 = vmatmul.mubr.bf16.vlgmr.msra.gmra.mrb[36].mxu1 %v5325_v56  ;;  %v4745_v56 = vld [vmem:[%s5545_s7 + $0x60] sm:$0xff]  }
 0xc67   : > { %4549 = vmatpush3.bf16.msra.mxu1 %v4741_v11  ;;  %4564 = vmatprep.mubr.msk.bf16.mxu1 %vm4894_vm0, %v4893_v1 }
 0xc68   : > { %4550 = vmatprep.subr.bf16.mxu1 %v4893_v1 }
 0xc6b   : > { %4551 = vmatpush3.bf16.msra.mxu1 %v4742_v12 }
 0xc6c   : > { %4552 = vmatprep.subr.bf16.mxu1 %v4893_v1 }
 0xc6f   : > { %4553 = vmatpush3.bf16.msra.mxu1 %v4743_v13 }
 0xc70   : > { %4554 = vmatprep.subr.bf16.mxu1 %v4893_v1 }
 0xc73   : > { %4555 = vmatpush3.bf16.msra.mxu1 %v4744_v14 }
 0xc74   : > { %4556 = vmatprep.subr.bf16.mxu1 %v4893_v1 }
 0xc77   : > { %4557 = vmatpush3.bf16.msra.mxu1 %v4745_v56 }
 0xc78   : > { %4558 = vmatprep.subr.bf16.mxu1 %v4893_v1 }
 0xc7b   : > { %4559 = vmatpush3.bf16.msra.mxu1 %v4746_v15 }
 0xc7c   : > { %4560 = vmatprep.subr.bf16.mxu1 %v4893_v1 }
 0xc7f   : > { %4561 = vmatpush3.bf16.msra.mxu1 %v4747_v16 }
 0xc80   : > { %4562 = vmatprep.subr.bf16.mxu1 %v4893_v1 }
 0xc83   : > { %4563 = vmatpush3.bf16.msra.mxu1 %v4748_v17 }
 0xc84   : > { %4592 = vmatprep.subr.bf16.mxu1 %v4893_v1 }
 0xc86   : > { %4565 = vmatmul.mubr.bf16.vlgmr.msra.gmra.mrb[40].mxu1 %v5304_v28  ;;  %v2831_v28 = vadd.f32 %v4005_v24, %v2830_v25  ;;  %v4754_v24 = vld [vmem:[%s5548_s22 + $0x28] sm:$0xff]   ;;  %v4755_v25 = vld [vmem:[%s5548_s22 + $0x30] sm:$0xff]  }
 0xc87   : > { %4593 = vmatpush3.bf16.msra.mxu1 %v4749_v18  ;;  %4600 = vmatprep.mubr.msk.bf16.mxu1 %vm4894_vm0, %v4893_v1 }
 0xc88   : > { %4594 = vmatprep.subr.bf16.mxu1 %v4893_v1  ;;  %v2950_v29 = vpack.c.bf16 %v2831_v28, %v2831_v28  ;;  %v4756_v28 = vld [vmem:[%s5548_s22 + $0x38] sm:$0xff]  }
 0xc8a   : > { %v2955_v31 = vsel %vm1321_vm1, %v2950_v29, 0 }
 0xc8b   : > { %4595 = vmatpush3.bf16.msra.mxu1 %v4750_v21  ;;  %4569 = vmatpush3.bf16.xpose.msra.mxu0 %v2955_v31 }
 0xc8c   : > { %4596 = vmatprep.subr.bf16.mxu1 %v4893_v1  ;;  %4574 = vmatprep.subr.bf16.mxu0 %v4893_v1 }
 0xc8f   : > { %4597 = vmatpush3.bf16.msra.mxu1 %v4751_v22  ;;  %v4753_v22 = vld [vmem:[%s5548_s22 + $0x20] sm:$0xff]  }
 0xc90   : > { %4598 = vmatprep.subr.bf16.mxu1 %v4893_v1 }
 0xc93   : > { %4599 = vmatpush3.bf16.msra.mxu1 %v4752_v23 }
 0xd19   : > { %v2593_v32 = vpop.f32.mrb[32].mxu1 }
 0xd1a   : > { %v4506_v33 = vpop.f32.mrb[33].mxu1 }
 0xd1b   : > { %v2596_v34 = vpop.f32.mrb[34].mxu1  ;;  %v4060_v33 = vld [vmem:[%s5549_s23] ss:$0 sm:$0xff]  ;;  %s5554_s23 = sld [smem:[#allocation13_spill]] }
 0xd1c   : > { %v2600_v35 = vpack.c.bf16 %v2596_v34, %v2593_v32  ;;  %v4507_v36 = vpop.f32.mrb[35].mxu1 }
 0xd1e   : > { %4601 = vmatmul.mubr.msk.bf16.vlgmr.msra.gmra.mrb[44].mxu1 %vm1321_vm1, %v2600_v35 }
 0xd39   : > { %v2716_v46 = vpop.f32.mrb[36].mxu1 }
 0xd3a   : > { %v4526_v38 = vpop.f32.mrb[37].mxu1  ;;  %v2717_v40 = vadd.f32 %v3979_v37, %v2716_v46 }
 0xd3b   : > { %v2719_v39 = vpop.f32.mrb[38].mxu1 }
 0xd3c   : > { %v2720_v41 = vadd.f32 %v3979_v37, %v2719_v39  ;;  %v4527_v42 = vpop.f32.mrb[39].mxu1 }
 0xd3e   : > { %v2949_v43 = vpack.c.bf16 %v2720_v41, %v2717_v40 }
 0xd40   : > { %4571 = vmatmul.mubr.msk.bf16.vlgmr.msra.gmra.mrb[36].mxu0 %vm1321_vm1, %v2949_v43 }
 0xd41   : > { %4576 = vmatprep.mubr.msk.bf16.mxu0 %vm4894_vm0, %v4893_v1 }
 0xd59   : > { %v2943_v45 = vpop.f32.mrb[40].mxu1 }
 0xd5a   : > { %v2944_v47 = vadd.f32 %v4031_v44, %v2943_v45  ;;  %v4566_v48 = vpop.f32.mrb[41].mxu1 }
 0xd5b   : > { %v2946_v19 = vpop.f32.mrb[42].mxu1 }
 0xd5c   : > { %v3025_v49 = vpack.c.bf16 %v2944_v47, %v2944_v47  ;;  %v4567_v50 = vpop.f32.mrb[43].mxu1  ;;  %v4757_v19 = vld [vmem:[%s5550_s26] ss:$8 sps:$4 sm:$0xff]  }
 0xd5d   : > { %v4760_v50 = vld [vmem:[%s5550_s26 + $0x10] ss:$8 sps:$4 sm:$0xff]  }
 0xd5e   : > { %v3030_v51 = vsel %vm2555_vm8, %v3025_v49, 0  ;;  %v4762_v49 = vld [vmem:[%s5550_s26 + $0x14] ss:$8 sps:$4 sm:$0xff]  }
 0xd5f   : > { %4575 = vmatpush3.bf16.msra.mxu0 %v3030_v51  ;;  %v4765_v51 = vld [vmem:[%s5550_s26 + $0x24] ss:$8 sps:$4 sm:$0xff]  }
 0xd60   : > { %4580 = vmatprep.subr.bf16.mxu0 %v4893_v1 }
 0xdf1   : > { %v3212_v52 = vpop.f32.mrb[44].mxu1 }
 0xdf2   : > { %v4602_v53 = vpop.f32.mrb[45].mxu1 }
 0xdf3   : > { %v3215_v57 = vpop.f32.mrb[46].mxu1  ;;  %v4768_v53 = vld [vmem:[%s5550_s26 + $0x34] ss:$8 sps:$4 sm:$0xff]  }
 0xdf4   : > { %v4603_v58 = vpop.f32.mrb[47].mxu1 }
 0xdf5   : > { %v4771_v58 = vld [vmem:[%s5550_s26 + $0x44] ss:$8 sps:$4 sm:$0xff]  }
 0xe13   : > { %v2991_v59 = vpop.f32.mrb[36].mxu0 }
 0xe14   : > { %v2998_v60 = vmul.f32 0.125, %v2991_v59  ;;  %v4572_v61 = vpop.f32.mrb[37].mxu0  ;;  %v4769_v59 = vld [vmem:[%s5550_s26 + $0x40] ss:$8 sps:$4 sm:$0xff]  }
 0xe15   : > { %v2994_v62 = vpop.f32.mrb[38].mxu0  ;;  %v4772_v61 = vld [vmem:[%s5550_s26 + $0x50] ss:$8 sps:$4 sm:$0xff]  }
 0xe16   : > { %v2999_v63 = vmul.f32 0.125, %v2994_v62  ;;  %v4573_v0 = vpop.f32.mrb[39].mxu0  ;;  %v3000_v2 = vadd.f32 %v5358_v20, %v2998_v60  ;;  %v4774_v60 = vld [vmem:[%s5550_s26 + $0x54] ss:$8 sps:$4 sm:$0xff]   ;;  %v4777_v62 = vld [vmem:[%s5550_s26 + $0x64] ss:$8 sps:$4 sm:$0xff]  }
 0xe17   : > { %v4775_v0 = vld [vmem:[%s5550_s26 + $0x60] ss:$8 sps:$4 sm:$0xff]  }
 0xe18   : > { %v3002_v3 = vsel %vm2527_vm7, %v3000_v2, -inf  ;;  %v3001_v4 = vadd.f32 %v5358_v20, %v2999_v63  ;;  %v4895_v63 = vmov 0  }
 0xe19   : > { %3003 = vmax.xlane.f32.xlu0 %v3002_v3  ;;  %v4778_v3 = vld [vmem:[%s5550_s26 + $0x70] ss:$8 sps:$4 sm:$0xff]  }
 0xe1a   : > { %v3005_v5 = vsel %vm2527_vm7, %v3001_v4, -inf }
 0xe1b   : > { %3006 = vmax.xlane.f32.xlu1 %v3005_v5  ;;  %v4782_v5 = vld [vmem:[%s5551_s28] sm:$0xff]  }
 0xea6   : > { %v3004_v6 = vpop.xlane.xlu0 %3003 }
 0xea7   : > { %v3008_v7 = vsub.f32 %v3000_v2, %v3004_v6  ;;  %v4780_v2 = vld [vmem:[%s5550_s26 + $0x74] ss:$8 sps:$4 sm:$0xff]   ;;  %v4783_v6 = vld [vmem:[%s5551_s28 + $0x48] sm:$0xff]  }
 0xea8   : > { %v3007_v8 = vpop.xlane.xlu1 %3006 }
 0xea9   : > { %v3010_v9 = vmul.f32 1.442695, %v3008_v7  ;;  %v3009_v10 = vsub.f32 %v3001_v4, %v3007_v8  ;;  %v4781_v4 = vld [vmem:[%s5551_s28 + $0x40] sm:$0xff]   ;;  %v4784_v7 = vld [vmem:[%s5551_s28 + $0x8] sm:$0xff]   ;;  %v4785_v8 = vld [vmem:[%s5551_s28 + $0x50] sm:$0xff]  }
 0xeaa   : > { %4246 = vmatprep.subr.bf16.mxu1 %v4781_v4 }
 0xeab   : > { %4829 = vpow2.f32 %v3010_v9  ;;  %v3012_v11 = vmul.f32 1.442695, %v3009_v10  ;;  %4247 = vmatpush3.bf16.msra.mxu1 %v4782_v5  ;;  %v4786_v9 = vld [vmem:[%s5551_s28 + $0x10] sm:$0xff]   ;;  %v4787_v10 = vld [vmem:[%s5551_s28 + $0x58] sm:$0xff]   ;;  %v4079_v5 = vld [vmem:[%s5039_s20] ss:$0 sm:$0xff] }
 0xeac   : > { %4248 = vmatprep.subr.bf16.mxu1 %v4783_v6 }
 0xead   : > { %4831 = vpow2.f32 %v3012_v11  ;;  %v4788_v11 = vld [vmem:[%s5551_s28 + $0x18] sm:$0xff]  }
 0xeaf   : > { %4249 = vmatpush3.bf16.msra.mxu1 %v4784_v7 }
 0xeb0   : > { %4250 = vmatprep.subr.bf16.mxu1 %v4785_v8 }
 0xeb3   : > { %4251 = vmatpush3.bf16.msra.mxu1 %v4786_v9 }
 0xeb4   : > { %4252 = vmatprep.subr.bf16.mxu1 %v4787_v10 }
 0xeb5   : > { %v4830_v12 = vpop.eup %4829 }
 0xeb6   : > { %v3014_v13 = vsel %vm2527_vm7, %v4830_v12, 0.0 }
 0xeb7   : > { %v4832_v14 = vpop.eup %4831  ;;  %3015 = vadd.xlane.f32.xlu0 %v3014_v13  ;;  %4253 = vmatpush3.bf16.msra.mxu1 %v4788_v11  ;;  %v4790_v13 = vld [vmem:[%s5551_s28 + $0x20] sm:$0xff]  }
 0xeb8   : > { %v3017_v20 = vsel %vm2527_vm7, %v4832_v14, 0.0 }
 0xeb9   : > { %3018 = vadd.xlane.f32.xlu1 %v3017_v20 }
 0xf44   : > { %v3016_v56 = vpop.xlane.xlu0 %3015 }
 0xf45   : > { %4833 = vrcp.f32 %v3016_v56 }
 0xf46   : > { %v3019_v15 = vpop.xlane.xlu1 %3018 }
 0xf47   : > { %4835 = vrcp.f32 %v3019_v15 }
 0xf4f   : > { %v4834_v16 = vpop.eup %4833 }
 0xf50   : > { %v3022_v18 = vmul.f32 %v4834_v16, %v4830_v12  ;;  %v4789_v12 = vld [vmem:[%s5551_s28 + $0x60] sm:$0xff]  }
 0xf51   : > { %v4836_v17 = vpop.eup %4835  ;;  %4254 = vmatprep.subr.bf16.mxu1 %v4789_v12 }
 0xf52   : > { %v3023_v21 = vmul.f32 %v4836_v17, %v4832_v14  ;;  %v4791_v14 = vld [vmem:[%s5551_s28 + $0x68] sm:$0xff]   ;;  %4255 = vmatpush3.bf16.msra.mxu1 %v4790_v13 }
 0xf53   : > { %4256 = vmatprep.subr.bf16.mxu1 %v4791_v14 }
 0xf54   : > { %v3024_v23 = vpack.c.bf16 %v3023_v21, %v3022_v18 }
 0xf56   : > { %4577 = vmatmul.mubr.msk.bf16.vlgmr.msra.gmra.mrb[40].mxu0 %vm2527_vm7, %v3024_v23 }
 0xf57   : > { %4581 = vmatpush3.bf16.msra.mxu0 %v4753_v22  ;;  %4588 = vmatprep.mubr.msk.bf16.mxu0 %vm4894_vm0, %v4893_v1 }
 0xf58   : > { %4582 = vmatprep.subr.bf16.mxu0 %v4893_v1 }
 0xf5b   : > { %4583 = vmatpush3.bf16.msra.mxu0 %v4754_v24 }
 0xf5c   : > { %4584 = vmatprep.subr.bf16.mxu0 %v4893_v1 }
 0xf5f   : > { %4585 = vmatpush3.bf16.msra.mxu0 %v4755_v25 }
 0xf60   : > { %4586 = vmatprep.subr.bf16.mxu0 %v4893_v1 }
 0xf63   : > { %4587 = vmatpush3.bf16.msra.mxu0 %v4756_v28 }
0x1029   : > { %v3066_v26 = vpop.f32.mrb[40].mxu0 }
0x102a   : > { %v4578_v27 = vpop.f32.mrb[41].mxu0 }
0x102b   : > { %v3069_v29 = vpop.f32.mrb[42].mxu0 }
0x102c   : > { %v3073_v30 = vpack.c.bf16 %v3069_v29, %v3066_v26  ;;  %v4579_v31 = vpop.f32.mrb[43].mxu0 }
0x102d   : > { %v4061_v31 = vld [vmem:[%s5552_s10] ss:$0 sm:$0xff]  ;;  %s975_s10 = scalar_lea.vmem %s5054_s17, %s4100_s0 }
0x102e   : > { %4589 = vmatmul.mubr.msk.bf16.vlgmr.msra.gmra.mrb[44].mxu0 %vm1321_vm1, %v3073_v30 }
0x102f   : > { %3425 = vmatprep.mubr.bf16.mxu0 %v4895_v63 }
0x1101   : > { %v3144_v32 = vpop.f32.mrb[44].mxu0 }
0x1102   : > { %v3213_v34 = vadd.f32 %v3212_v52, %v3144_v32  ;;  %v4590_v35 = vpop.f32.mrb[45].mxu0  ;;  %v4763_v52 = vld [vmem:[%s5550_s26 + $0x20] ss:$8 sps:$4 sm:$0xff]  }
0x1103   : > { %v3147_v36 = vpop.f32.mrb[46].mxu0 }
0x1104   : > { %v3226_v37 = vadd.f32 %v4060_v33, %v3213_v34  ;;  %v3216_v46 = vadd.f32 %v3215_v57, %v3147_v36  ;;  %v4591_v38 = vpop.f32.mrb[47].mxu0  ;;  %v4766_v57 = vld [vmem:[%s5550_s26 + $0x30] ss:$8 sps:$4 sm:$0xff]  }
0x1106   : > { %v3227_v39 = vadd.f32 %v4060_v33, %v3216_v46  ;;  %v3228_v1 = vadd.f32 %v3226_v37, %v5319_v54  ;;  %v4062_v37 = vld [vmem:[%s5553_s11] ss:$0 sm:$0xff] }
0x1108   : > { %3232 = vadd.xlane.f32.xlu0 %v3228_v1  ;;  %v3229_v40 = vadd.f32 %v3227_v39, %v5321_v55  ;;  %v4759_v55 = vld [vmem:[%s5550_s26 + $0x4] ss:$8 sps:$4 sm:$0xff]  }
0x1109   : > { %3393 = vmatprep.subr.bf16.mxu0 %v4759_v55 }
0x110a   : > { %3234 = vadd.xlane.f32.xlu1 %v3229_v40  ;;  %3394 = vmatpush1.bf16.msra.mxu0 %v4757_v19 }
0x110b   : > { %3395 = vmatprep.subr.bf16.mxu0 %v4762_v49 }
0x110e   : > { %3396 = vmatpush1.bf16.msra.mxu0 %v4760_v50 }
0x110f   : > { %3397 = vmatprep.subr.bf16.mxu0 %v4765_v51 }
0x1112   : > { %3398 = vmatpush1.bf16.msra.mxu0 %v4763_v52 }
0x1113   : > { %3399 = vmatprep.subr.bf16.mxu0 %v4768_v53 }
0x1116   : > { %3400 = vmatpush1.bf16.msra.mxu0 %v4766_v57 }
0x1117   : > { %3401 = vmatprep.subr.bf16.mxu0 %v4771_v58 }
0x111a   : > { %3402 = vmatpush1.bf16.msra.mxu0 %v4769_v59 }
0x111b   : > { %3403 = vmatprep.subr.bf16.mxu0 %v4774_v60 }
0x111e   : > { %3404 = vmatpush1.bf16.msra.mxu0 %v4772_v61 }
0x111f   : > { %3405 = vmatprep.subr.bf16.mxu0 %v4777_v62 }
0x1122   : > { %3406 = vmatpush1.bf16.msra.mxu0 %v4775_v0 }
0x1123   : > { %3407 = vmatprep.subr.bf16.mxu0 %v4780_v2 }
0x1126   : > { %3408 = vmatpush1.bf16.msra.mxu0 %v4778_v3 }
0x1195   : > { %v3233_v41 = vpop.xlane.xlu0 %3232 }
0x1196   : > { %v3236_v42 = vmul.f32 0.0078125, %v3233_v41  ;;  %v4793_v41 = vld [vmem:[%s5551_s28 + $0x70] sm:$0xff]  }
0x1197   : > { %v3235_v43 = vpop.xlane.xlu1 %3234 }
0x1198   : > { %v5467_v44 = vsub.f32 %v3228_v1, %v3236_v42  ;;  %v3237_v45 = vmul.f32 0.0078125, %v3235_v43  ;;  %v4794_v42 = vld [vmem:[%s5551_s28 + $0x30] sm:$0xff]   ;;  %v4795_v43 = vld [vmem:[%s5551_s28 + $0x78] sm:$0xff]  }
0x119a   : > { %v5469_v47 = vsub.f32 %v3229_v40, %v3237_v45  ;;  %v3240_v48 = vmul.f32 %v5467_v44, %v5467_v44  ;;  %v3268_v33 = vmul.f32 %v4061_v31, %v5467_v44  ;;  %v4792_v40 = vld [vmem:[%s5551_s28 + $0x28] sm:$0xff]   ;;  %v4796_v44 = vld [vmem:[%s5551_s28 + $0x38] sm:$0xff]   ;;  %v3303_v45 = vlaneseq }
0x119b   : > { %4257 = vmatpush3.bf16.msra.mxu1 %v4792_v40  ;;  %v4097_v40 = vld [vmem:[%s5049_s4] ss:$0 sm:$0xff] }
0x119c   : > { %3242 = vadd.xlane.f32.xlu0 %v3240_v48  ;;  %v3241_v54 = vmul.f32 %v5469_v47, %v5469_v47  ;;  %v3269_v34 = vmul.f32 %v4061_v31, %v5469_v47  ;;  %4258 = vmatprep.subr.bf16.mxu1 %v4793_v41  ;;  %v3304_v47 = vshrl.u32 %v3303_v45, 7 }
0x119e   : > { %3244 = vadd.xlane.f32.xlu1 %v3241_v54  ;;  %v3305_v48 = vsub.s32 0, %v3304_v47  ;;  %v3301_v54 = vld [vmem:[%s5554_s23] sm:$0x3]  ;;  %v3309_v55 = vsub.s32 1, %v3304_v47 }
0x119f   : > { %4259 = vmatpush3.bf16.msra.mxu1 %v4794_v42 }
0x11a0   : > { %4260 = vmatprep.subr.bf16.mxu1 %v4795_v43  ;;  %v3306_v19 = vrot.slane %v3301_v54, %v3305_v48  ;;  %v3310_v49 = vrot.slane %v3301_v54, %v3309_v55 }
0x11a3   : > { %4261 = vmatpush3.bf16.msra.mxu1 %v4796_v44 }
0x1229   : > { %v3243_v20 = vpop.xlane.xlu0 %3242 }
0x122a   : > { %v3246_v56 = vmul.f32 0.007874016, %v3243_v20 }
0x122b   : > { %v3245_v15 = vpop.xlane.xlu1 %3244 }
0x122c   : > { %4837 = vrsqrt.f32 %v3246_v56  ;;  %v3247_v16 = vmul.f32 0.007874016, %v3245_v15  ;;  %vm3250_vm9 = vcmp.eq.f32.partialorder %v3246_v56, inf  ;;  %v3253_v21 = vand.u32 2147483648, %v3246_v56 }
0x122d   : > { %vm3252_vm10 = vcmp.eq.f32.partialorder %v3246_v56, 0.0 }
0x122e   : > { %4839 = vrsqrt.f32 %v3247_v16  ;;  %vm3257_vm11 = vcmp.eq.f32.partialorder %v3247_v16, inf  ;;  %v3260_v26 = vand.u32 2147483648, %v3247_v16  ;;  %vm3259_vm12 = vcmp.eq.f32.partialorder %v3247_v16, 0.0 }
0x1236   : > { %v4838_v17 = vpop.eup %4837 }
0x1237   : > { %v3249_v18 = vmul.f32 %v4838_v17, %v3246_v56 }
0x1238   : > { %v4840_v22 = vpop.eup %4839 }
0x1239   : > { %v3251_v23 = vsel %vm3250_vm9, %v3246_v56, %v3249_v18  ;;  %v3256_v25 = vmul.f32 %v4840_v22, %v3247_v16 }
0x123a   : > { %v3254_v24 = vsel %vm3252_vm10, %v3253_v21, %v3251_v23 }
0x123b   : > { %v3270_v28 = vadd.f32 1e-06, %v3254_v24  ;;  %v3258_v27 = vsel %vm3257_vm11, %v3247_v16, %v3256_v25 }
0x123c   : > { %v3261_v29 = vsel %vm3259_vm12, %v3260_v26, %v3258_v27 }
0x123d   : > { %4841 = vrcp.f32 %v3270_v28  ;;  %v3271_v30 = vadd.f32 1e-06, %v3261_v29 }
0x123f   : > { %4843 = vrcp.f32 %v3271_v30 }
0x1247   : > { %v4842_v32 = vpop.eup %4841 }
0x1248   : > { %v3274_v35 = vmul.f32 %v4842_v32, %v3268_v33 }
0x1249   : > { %v4844_v36 = vpop.eup %4843 }
0x124a   : > { %v3275_v46 = vmul.f32 %v4844_v36, %v3269_v34  ;;  %v3282_v38 = vadd.f32 %v4062_v37, %v3274_v35 }
0x124c   : > { %v3283_v39 = vadd.f32 %v4062_v37, %v3275_v46 }
0x124e   : > { %v3284_v1 = vpack.c.bf16 %v3283_v39, %v3282_v38 }
0x1250   : > { %3426 = vmatmul.mubr.bf16.vlgmr.msra.gmra.mrb[48].mxu0 %v3284_v1 }
0x1323   : > { %v3427_v50 = vpop.f32.mrb[48].mxu0 }
0x1324   : > { %v3428_v51 = vadd.f32 %v3427_v50, %v3306_v19  ;;  %v3429_v52 = vpop.f32.mrb[49].mxu0 }
0x1325   : > { %v3430_v53 = vadd.f32 %v3429_v52, %v3310_v49  ;;  %v3431_v57 = vpop.f32.mrb[50].mxu0 }
0x1326   : > { %v3432_v58 = vadd.f32 %v3431_v57, %v3306_v19  ;;  %v3433_v59 = vpop.f32.mrb[51].mxu0  ;;  %v3436_v61 = vmax.f32 %v3428_v51, 0.0 }
0x1327   : > { %v3434_v60 = vadd.f32 %v3433_v59, %v3310_v49  ;;  %v3437_v63 = vmax.f32 %v3430_v53, 0.0 }
0x1328   : > { %v3438_v62 = vmax.f32 %v3432_v58, 0.0 }
0x1329   : > { %v3439_v0 = vmax.f32 %v3434_v60, 0.0 }
0x132a   : > { %v3440_v2 = vpack.c.bf16 %v3438_v62, %v3436_v61 }
0x132b   : > { %v3441_v3 = vpack.c.bf16 %v3439_v0, %v3437_v63 }
0x132d   : > { %3609 = vmatprep.mubr.bf16.mxu1 %v3441_v3 }
0x132e   : > { %3610 = vmatmul.mubr.bf16.vlgmr.msra.gmra.mrb[48].mxu1 %v3440_v2 }
0x1401   : > { %v4262_v4 = vpop.f32.mrb[48].mxu1 }
0x1402   : > { %v4263_v6 = vpop.f32.mrb[49].mxu1 }
0x1403   : > { %v4264_v7 = vadd.f32 %v4263_v6, %v4262_v4  ;;  %v4265_v8 = vpop.f32.mrb[50].mxu1 }
0x1404   : > { %v4266_v9 = vpop.f32.mrb[51].mxu1 }
0x1405   : > { %v3612_v10 = vadd.f32 %v4264_v7, %v4079_v5  ;;  %v4267_v11 = vadd.f32 %v4266_v9, %v4265_v8 }
0x1407   : > { %v3615_v12 = vadd.f32 %v4267_v11, %v4079_v5  ;;  %v3618_v13 = vadd.f32 %v3612_v10, %v3282_v38  ;;  %v4096_v38 = vld [vmem:[%s5044_s6] ss:$0 sm:$0xff] }
0x1409   : > { %3622 = vadd.xlane.f32.xlu0 %v3618_v13  ;;  %v3619_v14 = vadd.f32 %v3615_v12, %v3283_v39 }
0x140b   : > { %3624 = vadd.xlane.f32.xlu1 %v3619_v14 }
0x1496   : > { %v3623_v20 = vpop.xlane.xlu0 %3622 }
0x1497   : > { %v3626_v56 = vmul.f32 0.0078125, %v3623_v20 }
0x1498   : > { %v3625_v15 = vpop.xlane.xlu1 %3624 }
0x1499   : > { %v3628_v16 = vsub.f32 %v3618_v13, %v3626_v56  ;;  %v3627_v17 = vmul.f32 0.0078125, %v3625_v15 }
0x149b   : > { %v3629_v18 = vsub.f32 %v3619_v14, %v3627_v17  ;;  %v3630_v21 = vmul.f32 %v3628_v16, %v3628_v16  ;;  %v3658_v39 = vmul.f32 %v4096_v38, %v3628_v16 }
0x149d   : > { %3632 = vadd.xlane.f32.xlu0 %v3630_v21  ;;  %v3631_v22 = vmul.f32 %v3629_v18, %v3629_v18  ;;  %v3659_v42 = vmul.f32 %v4096_v38, %v3629_v18 }
0x149f   : > { %3634 = vadd.xlane.f32.xlu1 %v3631_v22 }
0x152a   : > { %v3633_v23 = vpop.xlane.xlu0 %3632 }
0x152b   : > { %v3636_v24 = vmul.f32 0.007874016, %v3633_v23 }
0x152c   : > { %v3635_v25 = vpop.xlane.xlu1 %3634 }
0x152d   : > { %4845 = vrsqrt.f32 %v3636_v24  ;;  %v3637_v28 = vmul.f32 0.007874016, %v3635_v25  ;;  %vm3640_vm13 = vcmp.eq.f32.partialorder %v3636_v24, inf  ;;  %v3643_v29 = vand.u32 2147483648, %v3636_v24 }
0x152e   : > { %vm3642_vm14 = vcmp.eq.f32.partialorder %v3636_v24, 0.0 }
0x152f   : > { %4847 = vrsqrt.f32 %v3637_v28  ;;  %vm3647_vm15 = vcmp.eq.f32.partialorder %v3637_v28, inf  ;;  %v3650_v35 = vand.u32 2147483648, %v3637_v28  ;;  %vm3649_vm0 = vcmp.eq.f32.partialorder %v3637_v28, 0.0 }
0x1537   : > { %v4846_v26 = vpop.eup %4845 }
0x1538   : > { %v3639_v27 = vmul.f32 %v4846_v26, %v3636_v24 }
0x1539   : > { %v4848_v30 = vpop.eup %4847 }
0x153a   : > { %v3641_v31 = vsel %vm3640_vm13, %v3636_v24, %v3639_v27  ;;  %v3646_v33 = vmul.f32 %v4848_v30, %v3637_v28 }
0x153b   : > { %v3644_v32 = vsel %vm3642_vm14, %v3643_v29, %v3641_v31 }
0x153c   : > { %v3660_v34 = vadd.f32 1e-06, %v3644_v32  ;;  %v3648_v36 = vsel %vm3647_vm15, %v3637_v28, %v3646_v33 }
0x153d   : > { %v3651_v37 = vsel %vm3649_vm0, %v3650_v35, %v3648_v36 }
0x153e   : > { %4849 = vrcp.f32 %v3660_v34  ;;  %v3661_v46 = vadd.f32 1e-06, %v3651_v37 }
0x1540   : > { %4851 = vrcp.f32 %v3661_v46 }
0x1548   : > { %v4850_v1 = vpop.eup %4849 }
0x1549   : > { %v3664_v41 = vmul.f32 %v4850_v1, %v3658_v39 }
0x154a   : > { %v4852_v43 = vpop.eup %4851 }
0x154b   : > { %v3672_v44 = vadd.f32 %v4097_v40, %v3664_v41  ;;  %v3665_v45 = vmul.f32 %v4852_v43, %v3659_v42 }
0x154d   : > { %3674 = vst [vmem:[%s975_s10] sm:$0xff] %v3672_v44  ;;  %v3673_v47 = vadd.f32 %v4097_v40, %v3665_v45 }
0x154f   : > { %3675 = vst [vmem:[%s975_s10 + $0x8] sm:$0xff] %v3673_v47 }
0x1550 PF: > { %s71_s15 = sadd.s32 1, %s4861_s15  }
0x1551   : > { %p68_p4 = scmp.ge.s32.totalorder %s71_s15, 4  }
0x1553   :  { %70 = sbr.rel (!%p68_p4) target bundleno = 45 (0x2d), region = 223 }

// kernel: apply_cme.27
= control target key start
LH: loop header
LB: loop body
LE: loop exit
PB: predicated region body
PF: predicated region fallthrough
CT: control target
= control target key end

     0   :  { %s4688_s6 = smov 1   ;;  %s4689_s10 = smov 2   ;;  %s5317_s0 = inlined_call_operand.smem [shape: u32[31], index: -1, kind: input, shape index: {}] }
   0x1   :  { %s4729_s5 = sld [smem:[%s5317_s0]]   ;;  %s4690_s14 = smov 3  }
   0x2   :  { %s4734_s9 = sld [smem:[%s5317_s0 + %s4688_s6]]   ;;  %s4691_s18 = smov 4  }
   0x3   :  { %s4739_s13 = sld [smem:[%s5317_s0 + %s4689_s10]]   ;;  %s4692_s22 = smov 5  }
   0x4   :  { %s4744_s17 = sld [smem:[%s5317_s0 + %s4690_s14]]   ;;  %s4693_s26 = smov 6  }
   0x5   :  { %s4749_s21 = sld [smem:[%s5317_s0 + %s4691_s18]]   ;;  %s4694_s30 = smov 7  }
   0x6   :  { %s4754_s25 = sld [smem:[%s5317_s0 + %s4692_s22]]   ;;  %s4695_s4 = smov 8  }
   0x7   :  { %s4759_s29 = sld [smem:[%s5317_s0 + %s4693_s26]]   ;;  %s4696_s10 = smov 9  }
   0x8   :  { %s4764_s3 = sld [smem:[%s5317_s0 + %s4694_s30]]   ;;  %s4697_s15 = smov 10  }
   0x9   :  { %s4769_s8 = sld [smem:[%s5317_s0 + %s4695_s4]]   ;;  %s4698_s20 = smov 11  }
   0xa   :  { %5325 = sst [smem:[#allocation2_spill]] %s4744_s17  ;;  %s4699_s26 = smov 12  }
   0xb   :  { %s4774_s14 = sld [smem:[%s5317_s0 + %s4696_s10]]   ;;  %s4700_s1 = smov 13  }
   0xc   :  { %s4779_s19 = sld [smem:[%s5317_s0 + %s4697_s15]]   ;;  %s4701_s7 = smov 14  }
   0xd   :  { %s4784_s24 = sld [smem:[%s5317_s0 + %s4698_s20]]   ;;  %s4702_s15 = smov 15  }
   0xe   :  { %s4789_s30 = sld [smem:[%s5317_s0 + %s4699_s26]]   ;;  %s4703_s22 = smov 16  }
   0xf   :  { %s4794_s6 = sld [smem:[%s5317_s0 + %s4700_s1]]   ;;  %s4704_s28 = smov 17  }
  0x10   :  { %s4799_s12 = sld [smem:[%s5317_s0 + %s4701_s7]]   ;;  %s4705_s7 = smov 18  }
  0x11   :  { %s4804_s20 = sld [smem:[%s5317_s0 + %s4702_s15]]   ;;  %s4706_s15 = smov 19  }
  0x12   :  { %s4809_s27 = sld [smem:[%s5317_s0 + %s4703_s22]]   ;;  %s4707_s22 = smov 20  }
  0x13   :  { %s4814_s4 = sld [smem:[%s5317_s0 + %s4704_s28]]   ;;  %s4708_s28 = smov 21  }
  0x14   :  { %s4819_s17 = sld [smem:[%s5317_s0 + %s4705_s7]]   ;;  %s4709_s7 = smov 22  }
  0x15   :  { %5326 = sst [smem:[#allocation3_spill]] %s4794_s6 }
  0x16   :  { %s4829_s6 = sld [smem:[%s5317_s0 + %s4707_s22]]   ;;  %s4711_s22 = smov 24  }
  0x17   :  { %5327 = sst [smem:[#allocation4_spill]] %s4804_s20 }
  0x18   :  { %s4824_s20 = sld [smem:[%s5317_s0 + %s4706_s15]]   ;;  %s4710_s15 = smov 23  }
  0x19   :  { %5328 = sst [smem:[#allocation5_spill]] %s4814_s4 }
  0x1a   :  { %5329 = sst [smem:[#allocation6_spill]] %s4819_s17 }
  0x1b   :  { %s4834_s4 = sld [smem:[%s5317_s0 + %s4708_s28]]   ;;  %s4712_s28 = smov 25  }
  0x1c   :  { %5331 = sst [smem:[#allocation8_spill]] %s4829_s6 }
  0x1d   :  { %s4839_s17 = sld [smem:[%s5317_s0 + %s4709_s7]]   ;;  %s4713_s7 = smov 26  }
  0x1e   :  { %5330 = sst [smem:[#allocation7_spill]] %s4824_s20 }
  0x1f   :  { %s4844_s20 = sld [smem:[%s5317_s0 + %s4710_s15]]   ;;  %s4714_s15 = smov 27  }
  0x20   :  { %s4849_s6 = sld [smem:[%s5317_s0 + %s4711_s22]]   ;;  %s4715_s22 = smov 28  }
  0x21   :  { %5332 = sst [smem:[#allocation9_spill]] %s4834_s4 }
  0x22   :  { %s4854_s4 = sld [smem:[%s5317_s0 + %s4712_s28]]   ;;  %s4716_s28 = smov 29  }
  0x23   :  { %5333 = sst [smem:[#allocation10_spill]] %s4839_s17 }
  0x24   :  { %s4859_s17 = sld [smem:[%s5317_s0 + %s4713_s7]]   ;;  %s4717_s7 = smov 30  }
  0x25   :  { %5334 = sst [smem:[#allocation11_spill]] %s4844_s20 }
  0x26   :  { %5335 = sst [smem:[#allocation12_spill]] %s4849_s6 }
  0x27   :  { %s4864_s20 = sld [smem:[%s5317_s0 + %s4714_s15]]   ;;  %s4881_s15 = smov 0  }
  0x28   :  { %5336 = sst [smem:[#allocation13_spill]] %s4854_s4 }
  0x29   :  { %s4869_s6 = sld [smem:[%s5317_s0 + %s4715_s22]]  }
  0x2a   :  { %5337 = sst [smem:[#allocation14_spill]] %s4859_s17 }
  0x2b   :  { %s4874_s4 = sld [smem:[%s5317_s0 + %s4716_s28]]  }
  0x2c   :  { %s4879_s17 = sld [smem:[%s5317_s0 + %s4717_s7]]  }
  0x2d LB: > { %s3648_s16 = sadd.s32 4294967295, %s4686_s15   ;;  %p3652_p0 = scmp.ge.s32.totalorder %s4686_s15, 1  ;;  %s4686_s15 = sphi %s4881_s15, %s71_s15  }
  0x2e   : > { %p868_p1 = scmp.lt.s32.totalorder %s4686_s15, 3 }
  0x30   : > { %p869_p2 = pnand %p3652_p0, %p868_p1 }
  0x31   : > { %v4500_v0 = vld [vmem:[%s4759_s29] sm:$0xff] (!%p869_p2)   ;;  %v4718_v1 = vmov (!%p869_p2), 0.0   ;;  %v4501_v2 = vld [vmem:[%s4759_s29 + $0x8] sm:$0xff] (!%p869_p2)   ;;  %vm4719_vm0 = vmmov (!%p869_p2), 0   ;;  %v4503_v5 = vld [vmem:[%s4759_s29 + $0x10] sm:$0xff] (!%p869_p2)   ;;  %p955_p3 = scmp.lt.s32.totalorder (!%p869_p2), %s3648_s16, 1 }
  0x32   : > { %872 = sbr.rel (%p869_p2) target bundleno = 5426 (0x1532), region = 140  ;;  %4143 = vmatprep.subr.bf16.mxu1 (!%p869_p2), %v4718_v1  ;;  %4123 = vmatprep.subr.bf16.mxu0 (!%p869_p2), %v4718_v1  ;;  %v4502_v3 = vld [vmem:[%s4749_s21] sm:$0xff] (!%p869_p2)   ;;  %v4504_v4 = vld [vmem:[%s4749_s21 + $0x8] sm:$0xff] (!%p869_p2)   ;;  %v4506_v6 = vld [vmem:[%s4749_s21 + $0x10] sm:$0xff] (!%p869_p2)   ;;  %vm1316_vm1 = vcmask (!%p869_p2), 523264   ;;  %vm1371_vm2 = vcmask (!%p869_p2), 64512  }
  0x33   : > { %4144 = vmatpush3.bf16.msra.mxu1 (!%p869_p2), %v4500_v0  ;;  %4159 = vmatprep.mubr.msk.bf16.mxu1 (!%p869_p2), %vm4719_vm0, %v4718_v1  ;;  %v4505_v7 = vld [vmem:[%s4759_s29 + $0x18] sm:$0xff] (!%p869_p2)   ;;  %v4507_v9 = vld [vmem:[%s4759_s29 + $0x20] sm:$0xff] (!%p869_p2)   ;;  %v4509_v10 = vld [vmem:[%s4759_s29 + $0x28] sm:$0xff] (!%p869_p2)   ;;  %vm1388_vm3 = vcmask (!%p869_p2), 1043456   ;;  %s5338_s28 = sld [smem:[#allocation3_spill]] (!%p869_p2)  ;;  %s5339_s1 = sld [smem:[#allocation5_spill]] (!%p869_p2) }
  0x34   : > { %4145 = vmatprep.subr.bf16.mxu1 (!%p869_p2), %v4718_v1  ;;  %4139 = vmatprep.mubr.msk.bf16.mxu0 (!%p869_p2), %vm4719_vm0, %v4718_v1  ;;  %v4508_v8 = vld [vmem:[%s4749_s21 + $0x18] sm:$0xff] (!%p869_p2)   ;;  %v4510_v11 = vld [vmem:[%s4749_s21 + $0x20] sm:$0xff] (!%p869_p2)   ;;  %v4512_v12 = vld [vmem:[%s4749_s21 + $0x28] sm:$0xff] (!%p869_p2)   ;;  %s5340_s2 = sld [smem:[#allocation4_spill]] (!%p869_p2)  ;;  %s5341_s7 = sld [smem:[#allocation6_spill]] (!%p869_p2)  ;;  %vm2470_vm6 = vcmask (!%p869_p2), 130048  }
  0x35   : > { %4124 = vmatpush3.bf16.msra.mxu0 (!%p869_p2), %v4502_v3  ;;  %v4511_v13 = vld [vmem:[%s4759_s29 + $0x30] sm:$0xff] (!%p869_p2)   ;;  %v4513_v15 = vld [vmem:[%s4759_s29 + $0x38] sm:$0xff] (!%p869_p2)   ;;  %v3666_v19 = vld [vmem:[%s4764_s3] ss:$0 sm:$0xff] (!%p869_p2)  ;;  %s5342_s10 = sld [smem:[#allocation2_spill]] (!%p869_p2) }
  0x36   : > { %4125 = vmatprep.subr.bf16.mxu0 (!%p869_p2), %v4718_v1  ;;  %v4514_v14 = vld [vmem:[%s4749_s21 + $0x30] sm:$0xff] (!%p869_p2)   ;;  %v4515_v17 = vld [vmem:[%s4749_s21 + $0x38] sm:$0xff] (!%p869_p2)   ;;  %v3657_v24 = vld [vmem:[%s4754_s25] ss:$0 sm:$0xff] (!%p869_p2) }
  0x37   : > { %4146 = vmatpush3.bf16.msra.mxu1 (!%p869_p2), %v4501_v2  ;;  %v4516_v34 = vld [vmem:[%s4769_s8] sm:$0xff] (!%p869_p2)   ;;  %v4517_v35 = vld [vmem:[%s4769_s8 + $0x8] sm:$0xff] (!%p869_p2)   ;;  %v4518_v36 = vld [vmem:[%s4769_s8 + $0x10] sm:$0xff] (!%p869_p2)  }
  0x38   : > { %4147 = vmatprep.subr.bf16.mxu1 (!%p869_p2), %v4718_v1  ;;  %v4519_v37 = vld [vmem:[%s4769_s8 + $0x18] sm:$0xff] (!%p869_p2)   ;;  %v4520_v38 = vld [vmem:[%s4769_s8 + $0x20] sm:$0xff] (!%p869_p2)   ;;  %v4521_v39 = vld [vmem:[%s4769_s8 + $0x28] sm:$0xff] (!%p869_p2)  }
  0x39   : > { %4126 = vmatpush3.bf16.msra.mxu0 %v4504_v4  ;;  %s5352_s16 = smov (!%p955_p3, %s3648_s16), 1  ;;  %v4522_v40 = vld [vmem:[%s4769_s8 + $0x30] sm:$0xff]   ;;  %v4523_v41 = vld [vmem:[%s4769_s8 + $0x38] sm:$0xff]   ;;  %v4524_v56 = vld [vmem:[%s4759_s29 + $0x40] sm:$0xff]  }
  0x3a   : > { %4127 = vmatprep.subr.bf16.mxu0 %v4718_v1  ;;  %s3653_s0 = sshll.u32 %s5352_s16, 3  ;;  %s966_s22 = scalar_lea.vmem %s4739_s13, %s5352_s16  ;;  %v3675_v59 = vld [vmem:[%s4774_s14] ss:$0 sm:$0xff]  ;;  %v4525_v62 = vld [vmem:[%s4759_s29 + $0x48] sm:$0xff]   ;;  %v4526_v2 = vld [vmem:[%s4759_s29 + $0x50] sm:$0xff]  }
  0x3b   : > { %4148 = vmatpush3.bf16.msra.mxu1 %v4503_v5  ;;  %s958_s18 = scalar_lea.vmem %s4729_s5, %s3653_s0  ;;  %v4977_v43 = vld [vmem:[%s966_s22] ss:$0 sm:$0xff]  ;;  %v4528_v3 = vld [vmem:[%s4759_s29 + $0x58] sm:$0xff]   ;;  %v4532_v5 = vld [vmem:[%s4759_s29 + $0x68] sm:$0xff]   ;;  %s3956_s23 = sshll.u32 %s5352_s16, 4 }
  0x3c   : > { %4149 = vmatprep.subr.bf16.mxu1 %v4718_v1  ;;  %v4931_v16 = vld [vmem:[%s958_s18] sm:$0xff]  ;;  %s963_s26 = scalar_lea.vmem %s4734_s9, %s3956_s23  ;;  %s969_s11 = scalar_lea.vmem %s5342_s10, %s5352_s16 }
  0x3d   : > { %4128 = vmatpush3.bf16.msra.mxu0 %v4506_v6  ;;  %v4938_v18 = vpack.c.bf16 %v4931_v16, %v4931_v16  ;;  %v4530_v4 = vld [vmem:[%s4759_s29 + $0x60] sm:$0xff]   ;;  %v4534_v6 = vld [vmem:[%s4759_s29 + $0x70] sm:$0xff]   ;;  %s5343_s18 = sld [smem:[#allocation7_spill]]  ;;  %s5344_s22 = sld [smem:[#allocation8_spill]] }
  0x3e   : > { %4129 = vmatprep.subr.bf16.mxu0 %v4718_v1  ;;  %s5345_s23 = sld [smem:[#allocation9_spill]]  ;;  %s5348_s10 = sld [smem:[#allocation10_spill]] }
  0x3f   : > { %4150 = vmatpush3.bf16.msra.mxu1 %v4505_v7  ;;  %v4536_v7 = vld [vmem:[%s4759_s29 + $0x78] sm:$0xff]  }
  0x40   : > { %4151 = vmatprep.subr.bf16.mxu1 %v4718_v1 }
  0x41   : > { %4130 = vmatpush3.bf16.msra.mxu0 %v4508_v8 }
  0x42   : > { %4131 = vmatprep.subr.bf16.mxu0 %v4718_v1 }
  0x43   : > { %4152 = vmatpush3.bf16.msra.mxu1 %v4507_v9 }
  0x44   : > { %4153 = vmatprep.subr.bf16.mxu1 %v4718_v1 }
  0x45   : > { %4132 = vmatpush3.bf16.msra.mxu0 %v4510_v11  ;;  %v4527_v11 = vld [vmem:[%s4749_s21 + $0x40] sm:$0xff]  }
  0x46   : > { %4133 = vmatprep.subr.bf16.mxu0 %v4718_v1 }
  0x47   : > { %4154 = vmatpush3.bf16.msra.mxu1 %v4509_v10 }
  0x48   : > { %4155 = vmatprep.subr.bf16.mxu1 %v4718_v1 }
  0x49   : > { %4134 = vmatpush3.bf16.msra.mxu0 %v4512_v12 }
  0x4a   : > { %4135 = vmatprep.subr.bf16.mxu0 %v4718_v1 }
  0x4b   : > { %4156 = vmatpush3.bf16.msra.mxu1 %v4511_v13  ;;  %v4529_v13 = vld [vmem:[%s4749_s21 + $0x48] sm:$0xff]  }
  0x4c   : > { %4157 = vmatprep.subr.bf16.mxu1 %v4718_v1 }
  0x4d   : > { %4136 = vmatpush3.bf16.msra.mxu0 %v4514_v14  ;;  %v4531_v14 = vld [vmem:[%s4749_s21 + $0x50] sm:$0xff]  }
  0x4e   : > { %4137 = vmatprep.subr.bf16.mxu0 %v4718_v1 }
  0x4f   : > { %4158 = vmatpush3.bf16.msra.mxu1 %v4513_v15  ;;  %v4533_v15 = vld [vmem:[%s4749_s21 + $0x58] sm:$0xff]  }
  0x50   : > { %4183 = vmatprep.subr.bf16.mxu1 %v4718_v1 }
  0x51   : > { %4138 = vmatpush3.bf16.msra.mxu0 %v4515_v17  ;;  %v4535_v17 = vld [vmem:[%s4749_s21 + $0x60] sm:$0xff]  }
  0x52   : > { %4160 = vmatmul.mubr.bf16.vlgmr.msra.gmra.mrb[0].mxu1 %v4938_v18  ;;  %4163 = vmatprep.subr.bf16.mxu0 %v4718_v1 }
  0x53   : > { %4185 = vmatprep.mubr.msk.bf16.mxu1 %vm4719_vm0, %v4718_v1 }
  0x54   : > { %4140 = vmatmul.mubr.bf16.vlgmr.msra.gmra.mrb[0].mxu0 %v4938_v18 }
  0x55   : > { %4179 = vmatprep.mubr.msk.bf16.mxu0 %vm4719_vm0, %v4718_v1  ;;  %4164 = vmatpush3.bf16.msra.mxu0 %v4516_v34  ;;  %v3730_v34 = vld [vmem:[%s4764_s3 + $0x1] ss:$0 sm:$0xff] }
  0x56   : > { %4165 = vmatprep.subr.bf16.mxu0 %v4718_v1 }
  0x59   : > { %4166 = vmatpush3.bf16.msra.mxu0 %v4517_v35 }
  0x5a   : > { %4167 = vmatprep.subr.bf16.mxu0 %v4718_v1 }
  0x5d   : > { %4168 = vmatpush3.bf16.msra.mxu0 %v4518_v36 }
  0x5e   : > { %4169 = vmatprep.subr.bf16.mxu0 %v4718_v1 }
  0x61   : > { %4170 = vmatpush3.bf16.msra.mxu0 %v4519_v37 }
  0x62   : > { %4171 = vmatprep.subr.bf16.mxu0 %v4718_v1 }
  0x65   : > { %4172 = vmatpush3.bf16.msra.mxu0 %v4520_v38 }
  0x66   : > { %4173 = vmatprep.subr.bf16.mxu0 %v4718_v1 }
  0x69   : > { %4174 = vmatpush3.bf16.msra.mxu0 %v4521_v39 }
  0x6a   : > { %4175 = vmatprep.subr.bf16.mxu0 %v4718_v1 }
  0x6d   : > { %4176 = vmatpush3.bf16.msra.mxu0 %v4522_v40 }
  0x6e   : > { %4177 = vmatprep.subr.bf16.mxu0 %v4718_v1 }
  0x71   : > { %4178 = vmatpush3.bf16.msra.mxu0 %v4523_v41 }
  0x72   : > { %4215 = vmatprep.subr.bf16.mxu0 %v4718_v1 }
  0x74   : > { %4180 = vmatmul.mubr.bf16.vlgmr.msra.gmra.mrb[4].mxu0 %v4938_v18 }
  0x75   : > { %4231 = vmatprep.mubr.msk.bf16.mxu0 %vm4719_vm0, %v4718_v1  ;;  %4216 = vmatpush3.bf16.msra.mxu0 %v4524_v56 }
  0x76   : > { %4217 = vmatprep.subr.bf16.mxu0 %v4718_v1 }
  0x79   : > { %4218 = vmatpush3.bf16.msra.mxu0 %v4525_v62 }
  0x7a   : > { %4219 = vmatprep.subr.bf16.mxu0 %v4718_v1 }
  0x7d   : > { %4220 = vmatpush3.bf16.msra.mxu0 %v4526_v2 }
  0x7e   : > { %4221 = vmatprep.subr.bf16.mxu0 %v4718_v1 }
  0x81   : > { %4222 = vmatpush3.bf16.msra.mxu0 %v4528_v3 }
  0x82   : > { %4223 = vmatprep.subr.bf16.mxu0 %v4718_v1 }
  0x85   : > { %4224 = vmatpush3.bf16.msra.mxu0 %v4530_v4 }
  0x86   : > { %4225 = vmatprep.subr.bf16.mxu0 %v4718_v1 }
  0x89   : > { %4226 = vmatpush3.bf16.msra.mxu0 %v4532_v5 }
  0x8a   : > { %4227 = vmatprep.subr.bf16.mxu0 %v4718_v1 }
  0x8d   : > { %4228 = vmatpush3.bf16.msra.mxu0 %v4534_v6 }
  0x8e   : > { %4229 = vmatprep.subr.bf16.mxu0 %v4718_v1 }
  0x91   : > { %4230 = vmatpush3.bf16.msra.mxu0 %v4536_v7 }
  0x92   : > { %4255 = vmatprep.subr.bf16.mxu0 %v4718_v1 }
  0x94   : > { %4232 = vmatmul.mubr.bf16.vlgmr.msra.gmra.mrb[8].mxu0 %v4938_v18 }
  0x95   : > { %4257 = vmatprep.mubr.msk.bf16.mxu0 %vm4719_vm0, %v4718_v1 }
 0x125   : > { %v1197_v20 = vpop.f32.mrb[0].mxu1 }
 0x126   : > { %v1198_v21 = vadd.f32 %v3666_v19, %v1197_v20  ;;  %v4161_v22 = vpop.f32.mrb[1].mxu1  ;;  %v4537_v19 = vld [vmem:[%s4749_s21 + $0x68] sm:$0xff]   ;;  %v4538_v20 = vld [vmem:[%s4749_s21 + $0x70] sm:$0xff]  }
 0x127   : > { %v1200_v23 = vpop.f32.mrb[2].mxu1  ;;  %v1086_v25 = vpop.f32.mrb[0].mxu0  ;;  %v4540_v22 = vld [vmem:[%s4769_s8 + $0x40] sm:$0xff]  }
 0x128   : > { %v1315_v26 = vpack.c.bf16 %v1198_v21, %v1198_v21  ;;  %v4162_v27 = vpop.f32.mrb[3].mxu1  ;;  %v4141_v28 = vpop.f32.mrb[1].mxu0  ;;  %v1087_v31 = vadd.f32 %v3657_v24, %v1086_v25  ;;  %v4539_v21 = vld [vmem:[%s4749_s21 + $0x78] sm:$0xff]   ;;  %v4541_v23 = vld [vmem:[%s4769_s8 + $0x48] sm:$0xff]   ;;  %v4542_v24 = vld [vmem:[%s4769_s8 + $0x50] sm:$0xff]  }
 0x129   : > { %v1089_v29 = vpop.f32.mrb[2].mxu0  ;;  %v4543_v25 = vld [vmem:[%s4769_s8 + $0x58] sm:$0xff]   ;;  %v4545_v27 = vld [vmem:[%s4769_s8 + $0x68] sm:$0xff]   ;;  %v4546_v28 = vld [vmem:[%s4769_s8 + $0x70] sm:$0xff]  }
 0x12a   : > { %v1321_v30 = vsel %vm1316_vm1, %v1315_v26, 0  ;;  %v4142_v32 = vpop.f32.mrb[3].mxu0  ;;  %v1314_v33 = vpack.c.bf16 %v1087_v31, %v1087_v31  ;;  %v4544_v26 = vld [vmem:[%s4769_s8 + $0x60] sm:$0xff]   ;;  %v4547_v29 = vld [vmem:[%s4769_s8 + $0x78] sm:$0xff]   ;;  %v4549_v31 = vld [vmem:[%s4779_s19 + $0x8] sm:$0xff]  }
 0x12b   : > { %4184 = vmatpush3.bf16.xpose.msra.mxu1 %v1321_v30  ;;  %v4548_v30 = vld [vmem:[%s4779_s19] sm:$0xff]   ;;  %v4550_v32 = vld [vmem:[%s4779_s19 + $0x10] sm:$0xff]  }
 0x12c   : > { %4189 = vmatprep.subr.bf16.mxu1 %v4718_v1 }
 0x132   : > { %4186 = vmatmul.mubr.msk.bf16.vlgmr.msra.gmra.mrb[4].mxu1 %vm1316_vm1, %v1314_v33  ;;  %v4551_v33 = vld [vmem:[%s4779_s19 + $0x18] sm:$0xff]  }
 0x133   : > { %4191 = vmatprep.mubr.msk.bf16.mxu1 %vm4719_vm0, %v4718_v1 }
 0x147   : > { %v1308_v55 = vpop.f32.mrb[4].mxu0 }
 0x148   : > { %v4181_v57 = vpop.f32.mrb[5].mxu0  ;;  %v1309_v61 = vadd.f32 %v3675_v59, %v1308_v55 }
 0x149   : > { %v1311_v58 = vpop.f32.mrb[6].mxu0 }
 0x14a   : > { %v4182_v60 = vpop.f32.mrb[7].mxu0  ;;  %v1384_v63 = vpack.c.bf16 %v1309_v61, %v1309_v61 }
 0x14c   : > { %v1390_v0 = vsel %vm1388_vm3, %v1384_v63, 0 }
 0x14d   : > { %4190 = vmatpush3.bf16.msra.mxu1 %v1390_v0 }
 0x14e   : > { %4195 = vmatprep.subr.bf16.mxu1 %v4718_v1 }
 0x205   : > { %v1357_v42 = vpop.f32.mrb[4].mxu1 }
 0x206   : > { %v1363_v44 = vmul.f32 0.125, %v1357_v42  ;;  %v4187_v45 = vpop.f32.mrb[5].mxu1 }
 0x207   : > { %v1360_v46 = vpop.f32.mrb[6].mxu1 }
 0x208   : > { %v4188_v47 = vpop.f32.mrb[7].mxu1  ;;  %v1370_v48 = vadd.f32 %v4977_v43, %v1363_v44 }
 0x209   : > { %v3704_v47 = vld [vmem:[%s4754_s25 + $0x1] ss:$0 sm:$0xff] }
 0x20a   : > { %v1372_v49 = vsel %vm1371_vm2, %v1370_v48, -inf }
 0x20b   : > { %1373 = vmax.xlane.f32.xlu0 %v1372_v49 }
 0x298   : > { %v1374_v50 = vpop.xlane.xlu0 %1373 }
 0x299   : > { %v1375_v51 = vsub.f32 %v1370_v48, %v1374_v50 }
 0x29b   : > { %v1376_v52 = vmul.f32 1.442695, %v1375_v51 }
 0x29d   : > { %4652 = vpow2.f32 %v1376_v52 }
 0x2a7   : > { %v4653_v53 = vpop.eup %4652 }
 0x2a8   : > { %v1378_v54 = vsel %vm1371_vm2, %v4653_v53, 0.0 }
 0x2a9   : > { %1379 = vadd.xlane.f32.xlu0 %v1378_v54  ;;  %v3756_v54 = vld [vmem:[%s4774_s14 + $0x1] ss:$0 sm:$0xff] }
 0x336   : > { %v1380_v8 = vpop.xlane.xlu0 %1379 }
 0x337   : > { %4654 = vrcp.f32 %v1380_v8 }
 0x341   : > { %v4655_v9 = vpop.eup %4654 }
 0x342   : > { %v1382_v10 = vmul.f32 %v4655_v9, %v4653_v53 }
 0x344   : > { %v1383_v12 = vpack.c.bf16 %v1382_v10, %v1382_v10 }
 0x346   : > { %4192 = vmatmul.mubr.msk.bf16.vlgmr.msra.gmra.mrb[8].mxu1 %vm1371_vm2, %v1383_v12 }
 0x347   : > { %4196 = vmatpush3.bf16.msra.mxu1 %v4527_v11  ;;  %4211 = vmatprep.mubr.msk.bf16.mxu1 %vm4719_vm0, %v4718_v1 }
 0x348   : > { %4197 = vmatprep.subr.bf16.mxu1 %v4718_v1 }
 0x34b   : > { %4198 = vmatpush3.bf16.msra.mxu1 %v4529_v13 }
 0x34c   : > { %4199 = vmatprep.subr.bf16.mxu1 %v4718_v1 }
 0x34f   : > { %4200 = vmatpush3.bf16.msra.mxu1 %v4531_v14 }
 0x350   : > { %4201 = vmatprep.subr.bf16.mxu1 %v4718_v1 }
 0x353   : > { %4202 = vmatpush3.bf16.msra.mxu1 %v4533_v15 }
 0x354   : > { %4203 = vmatprep.subr.bf16.mxu1 %v4718_v1 }
 0x357   : > { %4204 = vmatpush3.bf16.msra.mxu1 %v4535_v17 }
 0x358   : > { %4205 = vmatprep.subr.bf16.mxu1 %v4718_v1 }
 0x35b   : > { %4206 = vmatpush3.bf16.msra.mxu1 %v4537_v19 }
 0x35c   : > { %4207 = vmatprep.subr.bf16.mxu1 %v4718_v1 }
 0x35f   : > { %4208 = vmatpush3.bf16.msra.mxu1 %v4538_v20  ;;  %v4552_v20 = vld [vmem:[%s4779_s19 + $0x20] sm:$0xff]  }
 0x360   : > { %4209 = vmatprep.subr.bf16.mxu1 %v4718_v1 }
 0x363   : > { %4210 = vmatpush3.bf16.msra.mxu1 %v4539_v21  ;;  %v4553_v21 = vld [vmem:[%s4779_s19 + $0x28] sm:$0xff]  }
 0x364   : > { %4235 = vmatprep.subr.bf16.mxu1 %v4718_v1 }
 0x366   : > { %4212 = vmatmul.mubr.bf16.vlgmr.msra.gmra.mrb[12].mxu1 %v4938_v18 }
 0x367   : > { %4236 = vmatpush3.bf16.msra.mxu1 %v4540_v22  ;;  %4251 = vmatprep.mubr.msk.bf16.mxu1 %vm4719_vm0, %v4718_v1  ;;  %v4554_v22 = vld [vmem:[%s4779_s19 + $0x30] sm:$0xff]  }
 0x368   : > { %4237 = vmatprep.subr.bf16.mxu1 %v4718_v1 }
 0x36b   : > { %4238 = vmatpush3.bf16.msra.mxu1 %v4541_v23  ;;  %v4555_v23 = vld [vmem:[%s4779_s19 + $0x38] sm:$0xff]  }
 0x36c   : > { %4239 = vmatprep.subr.bf16.mxu1 %v4718_v1 }
 0x36f   : > { %4240 = vmatpush3.bf16.msra.mxu1 %v4542_v24 }
 0x370   : > { %4241 = vmatprep.subr.bf16.mxu1 %v4718_v1 }
 0x373   : > { %4242 = vmatpush3.bf16.msra.mxu1 %v4543_v25 }
 0x374   : > { %4243 = vmatprep.subr.bf16.mxu1 %v4718_v1 }
 0x377   : > { %4244 = vmatpush3.bf16.msra.mxu1 %v4544_v26 }
 0x378   : > { %4245 = vmatprep.subr.bf16.mxu1 %v4718_v1 }
 0x37b   : > { %4246 = vmatpush3.bf16.msra.mxu1 %v4545_v27 }
 0x37c   : > { %4247 = vmatprep.subr.bf16.mxu1 %v4718_v1 }
 0x37f   : > { %4248 = vmatpush3.bf16.msra.mxu1 %v4546_v28 }
 0x380   : > { %4249 = vmatprep.subr.bf16.mxu1 %v4718_v1 }
 0x383   : > { %4250 = vmatpush3.bf16.msra.mxu1 %v4547_v29 }
 0x384   : > { %4279 = vmatprep.subr.bf16.mxu1 %v4718_v1 }
 0x386   : > { %4252 = vmatmul.mubr.bf16.vlgmr.msra.gmra.mrb[16].mxu1 %v4938_v18  ;;  %v1661_v18 = vpop.f32.mrb[8].mxu0 }
 0x387   : > { %4280 = vmatpush3.bf16.msra.mxu1 %v4548_v30  ;;  %4287 = vmatprep.mubr.msk.bf16.mxu1 %vm4719_vm0, %v4718_v1  ;;  %v1662_v35 = vadd.f32 %v3730_v34, %v1661_v18  ;;  %v4233_v36 = vpop.f32.mrb[9].mxu0  ;;  %v3785_v30 = vld [vmem:[%s4784_s24] ss:$0 sm:$0xff] }
 0x388   : > { %4281 = vmatprep.subr.bf16.mxu1 %v4718_v1  ;;  %v1664_v37 = vpop.f32.mrb[10].mxu0  ;;  %v4556_v36 = vld [vmem:[%s4809_s27] sm:$0xff]  }
 0x389   : > { %v1781_v38 = vpack.c.bf16 %v1662_v35, %v1662_v35  ;;  %v4234_v39 = vpop.f32.mrb[11].mxu0  ;;  %v4557_v37 = vld [vmem:[%s4809_s27 + $0x8] sm:$0xff]  }
 0x38b   : > { %4282 = vmatpush3.bf16.msra.mxu1 %v4549_v31  ;;  %v1786_v40 = vsel %vm1316_vm1, %v1781_v38, 0 }
 0x38c   : > { %4283 = vmatprep.subr.bf16.mxu1 %v4718_v1  ;;  %4256 = vmatpush3.bf16.xpose.msra.mxu0 %v1786_v40 }
 0x38d   : > { %4261 = vmatprep.subr.bf16.mxu0 %v4718_v1 }
 0x38f   : > { %4284 = vmatpush3.bf16.msra.mxu1 %v4550_v32 }
 0x390   : > { %4285 = vmatprep.subr.bf16.mxu1 %v4718_v1 }
 0x393   : > { %4286 = vmatpush3.bf16.msra.mxu1 %v4551_v33 }
 0x394   : > { %4311 = vmatprep.subr.bf16.mxu1 %v4718_v1 }
 0x419   : > { %v1426_v41 = vpop.f32.mrb[8].mxu1 }
 0x41a   : > { %v1432_v42 = vpack.c.bf16 %v1426_v41, %v1426_v41  ;;  %v4193_v44 = vpop.f32.mrb[9].mxu1  ;;  %v4558_v41 = vld [vmem:[%s4809_s27 + $0x10] sm:$0xff]  }
 0x41b   : > { %v1429_v45 = vpop.f32.mrb[10].mxu1  ;;  %v4560_v44 = vld [vmem:[%s4799_s12] sm:$0xff]  }
 0x41c   : > { %v4194_v46 = vpop.f32.mrb[11].mxu1  ;;  %4288 = vmatmul.mubr.msk.bf16.vlgmr.msra.gmra.mrb[20].mxu1 %vm1316_vm1, %v1432_v42  ;;  %v4559_v42 = vld [vmem:[%s4809_s27 + $0x18] sm:$0xff]   ;;  %v4561_v45 = vld [vmem:[%s4809_s27 + $0x20] sm:$0xff]  }
 0x41d   : > { %4327 = vmatprep.mubr.msk.bf16.mxu1 %vm4719_vm0, %v4718_v1  ;;  %4312 = vmatpush3.bf16.msra.mxu1 %v4556_v36  ;;  %v4562_v46 = vld [vmem:[%s4799_s12 + $0x8] sm:$0xff]   ;;  %v5168_v36 = vld [vmem:[%s969_s11] ss:$0 sm:$0xff]  ;;  %s5349_s11 = sld [smem:[#allocation11_spill]] }
 0x41e   : > { %4313 = vmatprep.subr.bf16.mxu1 %v4718_v1 }
 0x421   : > { %4314 = vmatpush3.bf16.msra.mxu1 %v4557_v37 }
 0x422   : > { %4315 = vmatprep.subr.bf16.mxu1 %v4718_v1 }
 0x425   : > { %4316 = vmatpush3.bf16.msra.mxu1 %v4558_v41 }
 0x426   : > { %4317 = vmatprep.subr.bf16.mxu1 %v4718_v1 }
 0x429   : > { %4318 = vmatpush3.bf16.msra.mxu1 %v4559_v42 }
 0x42a   : > { %4319 = vmatprep.subr.bf16.mxu1 %v4718_v1 }
 0x42d   : > { %4320 = vmatpush3.bf16.msra.mxu1 %v4561_v45 }
 0x42e   : > { %4321 = vmatprep.subr.bf16.mxu1 %v4718_v1 }
 0x439   : > { %v1548_v48 = vpop.f32.mrb[12].mxu1 }
 0x43a   : > { %v1549_v49 = vadd.f32 %v3704_v47, %v1548_v48  ;;  %v4213_v50 = vpop.f32.mrb[13].mxu1  ;;  %v4563_v47 = vld [vmem:[%s4809_s27 + $0x28] sm:$0xff]   ;;  %v4564_v48 = vld [vmem:[%s4799_s12 + $0x10] sm:$0xff]  }
 0x43b   : > { %v1551_v51 = vpop.f32.mrb[14].mxu1  ;;  %4322 = vmatpush3.bf16.msra.mxu1 %v4563_v47  ;;  %v4566_v50 = vld [vmem:[%s4799_s12 + $0x18] sm:$0xff]  }
 0x43c   : > { %v1780_v52 = vpack.c.bf16 %v1549_v49, %v1549_v49  ;;  %v4214_v53 = vpop.f32.mrb[15].mxu1  ;;  %4323 = vmatprep.subr.bf16.mxu1 %v4718_v1  ;;  %v4565_v49 = vld [vmem:[%s4809_s27 + $0x30] sm:$0xff]   ;;  %v4567_v51 = vld [vmem:[%s4809_s27 + $0x38] sm:$0xff]  }
 0x43d   : > { %v976_v53 = vld [vmem:[%s963_s26] sm:$0xff] }
 0x43e   : > { %4258 = vmatmul.mubr.msk.bf16.vlgmr.msra.gmra.mrb[12].mxu0 %vm1316_vm1, %v1780_v52  ;;  %v4568_v52 = vld [vmem:[%s4799_s12 + $0x20] sm:$0xff]  }
 0x43f   : > { %4263 = vmatprep.mubr.msk.bf16.mxu0 %vm4719_vm0, %v4718_v1  ;;  %4324 = vmatpush3.bf16.msra.mxu1 %v4565_v49 }
 0x440   : > { %4325 = vmatprep.subr.bf16.mxu1 %v4718_v1 }
 0x443   : > { %4326 = vmatpush3.bf16.msra.mxu1 %v4567_v51  ;;  %v4580_v51 = vld [vmem:[%s4809_s27 + $0x40] sm:$0xff]  }
 0x444   : > { %4351 = vmatprep.subr.bf16.mxu1 %v4718_v1 }
 0x459   : > { %v1774_v55 = vpop.f32.mrb[16].mxu1 }
 0x45a   : > { %v1775_v56 = vadd.f32 %v3756_v54, %v1774_v55  ;;  %v4253_v57 = vpop.f32.mrb[17].mxu1  ;;  %v977_v54 = vld [vmem:[%s963_s26 + $0x8] sm:$0xff]  ;;  %s5346_s26 = sld [smem:[#allocation12_spill]] }
 0x45b   : > { %v1777_v58 = vpop.f32.mrb[18].mxu1  ;;  %v5115_v55 = vpack.c.bf16 %v977_v54, %v976_v53  ;;  %v4570_v57 = vld [vmem:[%s4799_s12 + $0x30] sm:$0xff]  }
 0x45c   : > { %v1842_v59 = vpack.c.bf16 %v1775_v56, %v1775_v56  ;;  %v4254_v60 = vpop.f32.mrb[19].mxu1  ;;  %v4569_v56 = vld [vmem:[%s4799_s12 + $0x28] sm:$0xff]   ;;  %v4571_v58 = vld [vmem:[%s4799_s12 + $0x38] sm:$0xff]  }
 0x45d   : > { %4328 = vmatmul.mubr.bf16.vlgmr.msra.gmra.mrb[24].mxu1 %v5115_v55 }
 0x45e   : > { %v1847_v61 = vsel %vm1388_vm3, %v1842_v59, 0  ;;  %4353 = vmatprep.mubr.msk.bf16.mxu1 %vm4719_vm0, %v4718_v1 }
 0x45f   : > { %4262 = vmatpush3.bf16.msra.mxu0 %v1847_v61 }
 0x460   : > { %4267 = vmatprep.subr.bf16.mxu0 %v4718_v1 }
 0x4ef   : > { %v2027_v62 = vpop.f32.mrb[20].mxu1 }
 0x4f0   : > { %v4289_v63 = vpop.f32.mrb[21].mxu1 }
 0x4f1   : > { %v2030_v0 = vpop.f32.mrb[22].mxu1 }
 0x4f2   : > { %v4290_v2 = vpop.f32.mrb[23].mxu1 }
 0x511   : > { %v1822_v3 = vpop.f32.mrb[12].mxu0 }
 0x512   : > { %v1828_v4 = vmul.f32 0.125, %v1822_v3  ;;  %v4259_v5 = vpop.f32.mrb[13].mxu0 }
 0x513   : > { %v1825_v6 = vpop.f32.mrb[14].mxu0 }
 0x514   : > { %v4260_v7 = vpop.f32.mrb[15].mxu0  ;;  %v1829_v8 = vadd.f32 %v4977_v43, %v1828_v4  ;;  %v3786_v4 = vld [vmem:[%s4789_s30] ss:$0 sm:$0xff] }
 0x515   : > { %v3787_v7 = vld [vmem:[%s5338_s28] ss:$0 sm:$0xff]  ;;  %s5347_s28 = sld [smem:[#allocation14_spill]] }
 0x516   : > { %v1830_v9 = vsel %vm1371_vm2, %v1829_v8, -inf }
 0x517   : > { %1831 = vmax.xlane.f32.xlu1 %v1830_v9 }
 0x5a4   : > { %v1832_v10 = vpop.xlane.xlu1 %1831 }
 0x5a5   : > { %v1833_v11 = vsub.f32 %v1829_v8, %v1832_v10 }
 0x5a7   : > { %v1834_v12 = vmul.f32 1.442695, %v1833_v11  ;;  %v3797_v11 = vld [vmem:[%s5339_s1] ss:$0 sm:$0xff] }
 0x5a9   : > { %4656 = vpow2.f32 %v1834_v12  ;;  %v2295_v12 = vpop.f32.mrb[24].mxu1 }
 0x5b3   : > { %v4657_v13 = vpop.eup %4656 }
 0x5b4   : > { %v1836_v14 = vsel %vm1371_vm2, %v4657_v13, 0.0 }
 0x5b5   : > { %1837 = vadd.xlane.f32.xlu1 %v1836_v14  ;;  %v4329_v14 = vpop.f32.mrb[25].mxu1 }
 0x5b6   : > { %v4594_v14 = vld [vmem:[%s4799_s12 + $0x70] sm:$0xff]  }
 0x642   : > { %v1838_v15 = vpop.xlane.xlu1 %1837 }
 0x643   : > { %4658 = vrcp.f32 %v1838_v15  ;;  %v2298_v15 = vpop.f32.mrb[26].mxu1 }
 0x64d   : > { %v4659_v17 = vpop.eup %4658 }
 0x64e   : > { %v1840_v19 = vmul.f32 %v4659_v17, %v4657_v13  ;;  %v2296_v13 = vadd.f32 %v3797_v11, %v2295_v12  ;;  %v2299_v17 = vadd.f32 %v3797_v11, %v2298_v15  ;;  %v4590_v11 = vld [vmem:[%s4799_s12 + $0x58] sm:$0xff]   ;;  %v4592_v12 = vld [vmem:[%s4799_s12 + $0x60] sm:$0xff]  }
 0x64f   : > { %v4595_v15 = vld [vmem:[%s4799_s12 + $0x78] sm:$0xff]  }
 0x650   : > { %v1841_v43 = vpack.c.bf16 %v1840_v19, %v1840_v19  ;;  %v4330_v19 = vpop.f32.mrb[27].mxu1 }
 0x651   : > { %v4597_v19 = vld [vmem:[%s5341_s7 + $0x48] sm:$0xff]  }
 0x652   : > { %4264 = vmatmul.mubr.msk.bf16.vlgmr.msra.gmra.mrb[16].mxu0 %vm1371_vm2, %v1841_v43 }
 0x653   : > { %4268 = vmatpush3.bf16.msra.mxu0 %v4552_v20  ;;  %4275 = vmatprep.mubr.msk.bf16.mxu0 %vm4719_vm0, %v4718_v1  ;;  %v2415_v20 = vpack.c.bf16 %v2299_v17, %v2296_v13  ;;  %v4593_v13 = vld [vmem:[%s4799_s12 + $0x68] sm:$0xff]   ;;  %v4596_v17 = vld [vmem:[%s5341_s7 + $0x40] sm:$0xff]  }
 0x654   : > { %4269 = vmatprep.subr.bf16.mxu0 %v4718_v1 }
 0x655   : > { %v2420_v43 = vsel %vm1316_vm1, %v2415_v20, 0  ;;  %v4598_v20 = vld [vmem:[%s5341_s7 + $0x50] sm:$0xff]  }
 0x656   : > { %4352 = vmatpush3.bf16.xpose.msra.mxu1 %v2420_v43  ;;  %v4599_v43 = vld [vmem:[%s5341_s7 + $0x58] sm:$0xff]  }
 0x657   : > { %4270 = vmatpush3.bf16.msra.mxu0 %v4553_v21  ;;  %4357 = vmatprep.subr.bf16.mxu1 %v4718_v1  ;;  %v3788_v21 = vld [vmem:[%s5340_s2] ss:$0 sm:$0xff] }
 0x658   : > { %4271 = vmatprep.subr.bf16.mxu0 %v4718_v1 }
 0x65b   : > { %4272 = vmatpush3.bf16.msra.mxu0 %v4554_v22 }
 0x65c   : > { %4273 = vmatprep.subr.bf16.mxu0 %v4718_v1 }
 0x65f   : > { %4274 = vmatpush3.bf16.msra.mxu0 %v4555_v23 }
 0x660   : > { %4291 = vmatprep.subr.bf16.mxu0 %v4718_v1 }
 0x725   : > { %v1883_v24 = vpop.f32.mrb[16].mxu0 }
 0x726   : > { %v1889_v25 = vpack.c.bf16 %v1883_v24, %v1883_v24  ;;  %v4265_v26 = vpop.f32.mrb[17].mxu0 }
 0x727   : > { %v1886_v27 = vpop.f32.mrb[18].mxu0 }
 0x728   : > { %v4266_v28 = vpop.f32.mrb[19].mxu0  ;;  %4276 = vmatmul.mubr.msk.bf16.vlgmr.msra.gmra.mrb[20].mxu0 %vm1316_vm1, %v1889_v25 }
 0x729   : > { %4307 = vmatprep.mubr.msk.bf16.mxu0 %vm4719_vm0, %v4718_v1  ;;  %4292 = vmatpush3.bf16.msra.mxu0 %v4560_v44  ;;  %v4572_v28 = vld [vmem:[%s5341_s7] sm:$0xff]  }
 0x72a   : > { %4293 = vmatprep.subr.bf16.mxu0 %v4718_v1 }
 0x72d   : > { %4294 = vmatpush3.bf16.msra.mxu0 %v4562_v46 }
 0x72e   : > { %4295 = vmatprep.subr.bf16.mxu0 %v4718_v1 }
 0x731   : > { %4296 = vmatpush3.bf16.msra.mxu0 %v4564_v48 }
 0x732   : > { %4297 = vmatprep.subr.bf16.mxu0 %v4718_v1 }
 0x735   : > { %4298 = vmatpush3.bf16.msra.mxu0 %v4566_v50  ;;  %v3806_v50 = vld [vmem:[%s5343_s18] ss:$0 sm:$0xff] }
 0x736   : > { %4299 = vmatprep.subr.bf16.mxu0 %v4718_v1 }
 0x739   : > { %4300 = vmatpush3.bf16.msra.mxu0 %v4568_v52 }
 0x73a   : > { %4301 = vmatprep.subr.bf16.mxu0 %v4718_v1 }
 0x73d   : > { %4302 = vmatpush3.bf16.msra.mxu0 %v4569_v56  ;;  %v4581_v56 = vld [vmem:[%s4809_s27 + $0x48] sm:$0xff]  }
 0x73e   : > { %4303 = vmatprep.subr.bf16.mxu0 %v4718_v1 }
 0x741   : > { %4304 = vmatpush3.bf16.msra.mxu0 %v4570_v57 }
 0x742   : > { %4305 = vmatprep.subr.bf16.mxu0 %v4718_v1 }
 0x745   : > { %4306 = vmatpush3.bf16.msra.mxu0 %v4571_v58 }
 0x746   : > { %4331 = vmatprep.subr.bf16.mxu0 %v4718_v1 }
 0x7fb   : > { %v1960_v29 = vpop.f32.mrb[20].mxu0 }
 0x7fc   : > { %v2028_v31 = vadd.f32 %v2027_v62, %v1960_v29  ;;  %v4277_v32 = vpop.f32.mrb[21].mxu0  ;;  %v4573_v29 = vld [vmem:[%s5341_s7 + $0x8] sm:$0xff]  }
 0x7fd   : > { %v1963_v33 = vpop.f32.mrb[22].mxu0  ;;  %v4576_v32 = vld [vmem:[%s5341_s7 + $0x20] sm:$0xff]  }
 0x7fe   : > { %v2040_v34 = vadd.f32 %v3785_v30, %v2028_v31  ;;  %v4278_v18 = vpop.f32.mrb[23].mxu0  ;;  %v4574_v30 = vld [vmem:[%s5341_s7 + $0x10] sm:$0xff]   ;;  %v4575_v31 = vld [vmem:[%s5341_s7 + $0x18] sm:$0xff]   ;;  %v4577_v33 = vld [vmem:[%s5341_s7 + $0x28] sm:$0xff]  }
 0x7ff   : > { %v4579_v18 = vld [vmem:[%s5341_s7 + $0x38] sm:$0xff]  }
 0x800   : > { %v2041_v35 = vadd.f32 %v2040_v34, %v4931_v16  ;;  %v4578_v34 = vld [vmem:[%s5341_s7 + $0x30] sm:$0xff]  }
 0x802   : > { %2044 = vadd.xlane.f32.xlu0 %v2041_v35 }
 0x88f   : > { %v2045_v38 = vpop.xlane.xlu0 %2044 }
 0x890   : > { %v2047_v39 = vmul.f32 0.0078125, %v2045_v38 }
 0x892   : > { %v5089_v40 = vsub.f32 %v2041_v35, %v2047_v39 }
 0x894   : > { %v2049_v16 = vmul.f32 %v5089_v40, %v5089_v40  ;;  %v2066_v5 = vmul.f32 %v3786_v4, %v5089_v40 }
 0x896   : > { %2050 = vadd.xlane.f32.xlu1 %v2049_v16 }
 0x923   : > { %v2051_v59 = vpop.xlane.xlu1 %2050 }
 0x924   : > { %v2052_v60 = vmul.f32 0.007874016, %v2051_v59  ;;  %v4582_v59 = vld [vmem:[%s4809_s27 + $0x50] sm:$0xff]  }
 0x926   : > { %4660 = vrsqrt.f32 %v2052_v60  ;;  %vm2055_vm4 = vcmp.eq.f32.partialorder %v2052_v60, inf  ;;  %v2058_v63 = vand.u32 2147483648, %v2052_v60  ;;  %vm2057_vm5 = vcmp.eq.f32.partialorder %v2052_v60, 0.0 }
 0x930   : > { %v4661_v61 = vpop.eup %4660 }
 0x931   : > { %v2054_v62 = vmul.f32 %v4661_v61, %v2052_v60  ;;  %v4585_v61 = vld [vmem:[%s4809_s27 + $0x60] sm:$0xff]  }
 0x933   : > { %v2056_v0 = vsel %vm2055_vm4, %v2052_v60, %v2054_v62  ;;  %v4583_v60 = vld [vmem:[%s4809_s27 + $0x58] sm:$0xff]   ;;  %v4587_v62 = vld [vmem:[%s4809_s27 + $0x68] sm:$0xff]  }
 0x934   : > { %v2059_v2 = vsel %vm2057_vm5, %v2058_v63, %v2056_v0  ;;  %v4589_v63 = vld [vmem:[%s4809_s27 + $0x70] sm:$0xff]   ;;  %v4591_v0 = vld [vmem:[%s4809_s27 + $0x78] sm:$0xff]  }
 0x935   : > { %v2067_v3 = vadd.f32 1e-06, %v2059_v2 }
 0x937   : > { %4662 = vrcp.f32 %v2067_v3 }
 0x941   : > { %v4663_v6 = vpop.eup %4662 }
 0x942   : > { %v2069_v8 = vmul.f32 %v4663_v6, %v2066_v5  ;;  %v4584_v5 = vld [vmem:[%s4799_s12 + $0x40] sm:$0xff]  }
 0x944   : > { %v5131_v9 = vadd.f32 %v3787_v7, %v2069_v8  ;;  %v4586_v7 = vld [vmem:[%s4799_s12 + $0x48] sm:$0xff]   ;;  %v4588_v8 = vld [vmem:[%s4799_s12 + $0x50] sm:$0xff]  }
 0x946   : > { %v5135_v10 = vpack.c.bf16 %v5131_v9, %v5131_v9 }
 0x948   : > { %4308 = vmatmul.mubr.bf16.vlgmr.msra.gmra.mrb[24].mxu0 %v5135_v10 }
 0x949   : > { %4347 = vmatprep.mubr.msk.bf16.mxu0 %vm4719_vm0, %v4718_v1  ;;  %4332 = vmatpush3.bf16.msra.mxu0 %v4572_v28  ;;  %v3861_v28 = vld [vmem:[%s5339_s1 + $0x1] ss:$0 sm:$0xff] }
 0x94a   : > { %4333 = vmatprep.subr.bf16.mxu0 %v4718_v1 }
 0x94d   : > { %4334 = vmatpush3.bf16.msra.mxu0 %v4573_v29 }
 0x94e   : > { %4335 = vmatprep.subr.bf16.mxu0 %v4718_v1 }
 0x951   : > { %4336 = vmatpush3.bf16.msra.mxu0 %v4574_v30 }
 0x952   : > { %4337 = vmatprep.subr.bf16.mxu0 %v4718_v1 }
 0x955   : > { %4338 = vmatpush3.bf16.msra.mxu0 %v4575_v31 }
 0x956   : > { %4339 = vmatprep.subr.bf16.mxu0 %v4718_v1 }
 0x959   : > { %4340 = vmatpush3.bf16.msra.mxu0 %v4576_v32 }
 0x95a   : > { %4341 = vmatprep.subr.bf16.mxu0 %v4718_v1 }
 0x95d   : > { %4342 = vmatpush3.bf16.msra.mxu0 %v4577_v33 }
 0x95e   : > { %4343 = vmatprep.subr.bf16.mxu0 %v4718_v1 }
 0x961   : > { %4344 = vmatpush3.bf16.msra.mxu0 %v4578_v34 }
 0x962   : > { %4345 = vmatprep.subr.bf16.mxu0 %v4718_v1 }
 0x965   : > { %4346 = vmatpush3.bf16.msra.mxu0 %v4579_v18 }
 0x966   : > { %4383 = vmatprep.subr.bf16.mxu0 %v4718_v1 }
 0x968   : > { %4348 = vmatmul.mubr.bf16.vlgmr.msra.gmra.mrb[28].mxu0 %v5115_v55 }
 0x969   : > { %4399 = vmatprep.mubr.msk.bf16.mxu0 %vm4719_vm0, %v4718_v1  ;;  %4384 = vmatpush3.bf16.msra.mxu0 %v4580_v51 }
 0x96a   : > { %4385 = vmatprep.subr.bf16.mxu0 %v4718_v1 }
 0x96d   : > { %4386 = vmatpush3.bf16.msra.mxu0 %v4581_v56 }
 0x96e   : > { %4387 = vmatprep.subr.bf16.mxu0 %v4718_v1 }
 0x971   : > { %4388 = vmatpush3.bf16.msra.mxu0 %v4582_v59 }
 0x972   : > { %4389 = vmatprep.subr.bf16.mxu0 %v4718_v1 }
 0x975   : > { %4390 = vmatpush3.bf16.msra.mxu0 %v4583_v60 }
 0x976   : > { %4391 = vmatprep.subr.bf16.mxu0 %v4718_v1 }
 0x979   : > { %4392 = vmatpush3.bf16.msra.mxu0 %v4585_v61 }
 0x97a   : > { %4393 = vmatprep.subr.bf16.mxu0 %v4718_v1 }
 0x97d   : > { %4394 = vmatpush3.bf16.msra.mxu0 %v4587_v62 }
 0x97e   : > { %4395 = vmatprep.subr.bf16.mxu0 %v4718_v1 }
 0x981   : > { %4396 = vmatpush3.bf16.msra.mxu0 %v4589_v63 }
 0x982   : > { %4397 = vmatprep.subr.bf16.mxu0 %v4718_v1 }
 0x985   : > { %4398 = vmatpush3.bf16.msra.mxu0 %v4591_v0 }
 0x986   : > { %4423 = vmatprep.subr.bf16.mxu0 %v4718_v1 }
 0x988   : > { %4400 = vmatmul.mubr.bf16.vlgmr.msra.gmra.mrb[32].mxu0 %v5115_v55 }
 0x989   : > { %4425 = vmatprep.mubr.msk.bf16.mxu0 %vm4719_vm0, %v4718_v1 }
 0xa1b   : > { %v2184_v22 = vpop.f32.mrb[24].mxu0 }
 0xa1c   : > { %v2185_v23 = vadd.f32 %v3788_v21, %v2184_v22  ;;  %v4309_v24 = vpop.f32.mrb[25].mxu0  ;;  %v4601_v21 = vld [vmem:[%s5341_s7 + $0x68] sm:$0xff]   ;;  %v4602_v22 = vld [vmem:[%s5341_s7 + $0x70] sm:$0xff]  }
 0xa1d   : > { %v2187_v25 = vpop.f32.mrb[26].mxu0  ;;  %v4604_v24 = vld [vmem:[%s5344_s22] sm:$0xff]  }
 0xa1e   : > { %v2414_v26 = vpack.c.bf16 %v2185_v23, %v2185_v23  ;;  %v4310_v27 = vpop.f32.mrb[27].mxu0  ;;  %v4603_v23 = vld [vmem:[%s5341_s7 + $0x78] sm:$0xff]   ;;  %v4605_v25 = vld [vmem:[%s5344_s22 + $0x8] sm:$0xff]  }
 0xa1f   : > { %v4607_v27 = vld [vmem:[%s5344_s22 + $0x18] sm:$0xff]  }
 0xa20   : > { %4354 = vmatmul.mubr.msk.bf16.vlgmr.msra.gmra.mrb[28].mxu1 %vm1316_vm1, %v2414_v26  ;;  %v4606_v26 = vld [vmem:[%s5344_s22 + $0x10] sm:$0xff]  }
 0xa21   : > { %4359 = vmatprep.mubr.msk.bf16.mxu1 %vm4719_vm0, %v4718_v1 }
 0xa3b   : > { %v2407_v42 = vpop.f32.mrb[28].mxu0 }
 0xa3c   : > { %v4349_v44 = vpop.f32.mrb[29].mxu0  ;;  %v2408_v52 = vadd.f32 %v3806_v50, %v2407_v42 }
 0xa3d   : > { %v2410_v53 = vpop.f32.mrb[30].mxu0 }
 0xa3e   : > { %v4350_v54 = vpop.f32.mrb[31].mxu0  ;;  %v2411_v57 = vadd.f32 %v3806_v50, %v2410_v53 }
 0xa40   : > { %v2483_v58 = vpack.c.bf16 %v2411_v57, %v2408_v52 }
 0xa42   : > { %4358 = vmatpush3.bf16.msra.mxu1 %v2483_v58 }
 0xa43   : > { %4363 = vmatprep.subr.bf16.mxu1 %v4718_v1 }
 0xa5b   : > { %v2756_v29 = vpop.f32.mrb[32].mxu0 }
 0xa5c   : > { %v4401_v30 = vpop.f32.mrb[33].mxu0 }
 0xa5d   : > { %v2759_v31 = vpop.f32.mrb[34].mxu0 }
 0xa5e   : > { %v2760_v32 = vadd.f32 %v3861_v28, %v2759_v31  ;;  %v4402_v33 = vpop.f32.mrb[35].mxu0 }
 0xaf3   : > { %v2456_v35 = vpop.f32.mrb[28].mxu1 }
 0xaf4   : > { %v2462_v37 = vmul.f32 0.125, %v2456_v35  ;;  %v4355_v38 = vpop.f32.mrb[29].mxu1 }
 0xaf5   : > { %v2459_v39 = vpop.f32.mrb[30].mxu1 }
 0xaf6   : > { %v4356_v40 = vpop.f32.mrb[31].mxu1  ;;  %v2469_v16 = vadd.f32 %v5168_v36, %v2462_v37 }
 0xaf8   : > { %v2471_v41 = vsel %vm2470_vm6, %v2469_v16, -inf }
 0xaf9   : > { %2472 = vmax.xlane.f32.xlu0 %v2471_v41 }
 0xb86   : > { %v2473_v45 = vpop.xlane.xlu0 %2472 }
 0xb87   : > { %v2474_v46 = vsub.f32 %v2469_v16, %v2473_v45  ;;  %v3835_v16 = vld [vmem:[%s5340_s2 + $0x1] ss:$0 sm:$0xff] }
 0xb89   : > { %v2475_v47 = vmul.f32 1.442695, %v2474_v46 }
 0xb8b   : > { %4664 = vpow2.f32 %v2475_v47 }
 0xb95   : > { %v4665_v48 = vpop.eup %4664 }
 0xb96   : > { %v2477_v49 = vsel %vm2470_vm6, %v4665_v48, 0.0 }
 0xb97   : > { %2478 = vadd.xlane.f32.xlu1 %v2477_v49 }
 0xc24   : > { %v2479_v2 = vpop.xlane.xlu1 %2478 }
 0xc25   : > { %4666 = vrcp.f32 %v2479_v2 }
 0xc2f   : > { %v4667_v3 = vpop.eup %4666 }
 0xc30   : > { %v2481_v4 = vmul.f32 %v4667_v3, %v4665_v48  ;;  %v3887_v48 = vld [vmem:[%s5343_s18 + $0x1] ss:$0 sm:$0xff] }
 0xc32   : > { %v2482_v6 = vpack.c.bf16 %v2481_v4, %v2481_v4 }
 0xc34   : > { %4360 = vmatmul.mubr.msk.bf16.vlgmr.msra.gmra.mrb[32].mxu1 %vm2470_vm6, %v2482_v6 }
 0xc35   : > { %4364 = vmatpush3.bf16.msra.mxu1 %v4584_v5  ;;  %4379 = vmatprep.mubr.msk.bf16.mxu1 %vm4719_vm0, %v4718_v1 }
 0xc36   : > { %4365 = vmatprep.subr.bf16.mxu1 %v4718_v1 }
 0xc39   : > { %4366 = vmatpush3.bf16.msra.mxu1 %v4586_v7 }
 0xc3a   : > { %4367 = vmatprep.subr.bf16.mxu1 %v4718_v1 }
 0xc3d   : > { %4368 = vmatpush3.bf16.msra.mxu1 %v4588_v8 }
 0xc3e   : > { %4369 = vmatprep.subr.bf16.mxu1 %v4718_v1 }
 0xc41   : > { %4370 = vmatpush3.bf16.msra.mxu1 %v4590_v11 }
 0xc42   : > { %4371 = vmatprep.subr.bf16.mxu1 %v4718_v1 }
 0xc45   : > { %4372 = vmatpush3.bf16.msra.mxu1 %v4592_v12 }
 0xc46   : > { %4373 = vmatprep.subr.bf16.mxu1 %v4718_v1 }
 0xc49   : > { %4374 = vmatpush3.bf16.msra.mxu1 %v4593_v13 }
 0xc4a   : > { %4375 = vmatprep.subr.bf16.mxu1 %v4718_v1 }
 0xc4d   : > { %4376 = vmatpush3.bf16.msra.mxu1 %v4594_v14 }
 0xc4e   : > { %4377 = vmatprep.subr.bf16.mxu1 %v4718_v1 }
 0xc51   : > { %4378 = vmatpush3.bf16.msra.mxu1 %v4595_v15  ;;  %v4608_v15 = vld [vmem:[%s5344_s22 + $0x20] sm:$0xff]  }
 0xc52   : > { %4403 = vmatprep.subr.bf16.mxu1 %v4718_v1 }
 0xc54   : > { %4380 = vmatmul.mubr.bf16.vlgmr.msra.gmra.mrb[36].mxu1 %v5135_v10  ;;  %v4600_v10 = vld [vmem:[%s5341_s7 + $0x60] sm:$0xff]  }
 0xc55   : > { %4404 = vmatpush3.bf16.msra.mxu1 %v4596_v17  ;;  %4419 = vmatprep.mubr.msk.bf16.mxu1 %vm4719_vm0, %v4718_v1  ;;  %v4609_v17 = vld [vmem:[%s5344_s22 + $0x28] sm:$0xff]  }
 0xc56   : > { %4405 = vmatprep.subr.bf16.mxu1 %v4718_v1 }
 0xc59   : > { %4406 = vmatpush3.bf16.msra.mxu1 %v4597_v19  ;;  %v4610_v19 = vld [vmem:[%s5344_s22 + $0x30] sm:$0xff]  }
 0xc5a   : > { %4407 = vmatprep.subr.bf16.mxu1 %v4718_v1 }
 0xc5d   : > { %4408 = vmatpush3.bf16.msra.mxu1 %v4598_v20  ;;  %v4611_v20 = vld [vmem:[%s5344_s22 + $0x38] sm:$0xff]  }
 0xc5e   : > { %4409 = vmatprep.subr.bf16.mxu1 %v4718_v1 }
 0xc61   : > { %4410 = vmatpush3.bf16.msra.mxu1 %v4599_v43 }
 0xc62   : > { %4411 = vmatprep.subr.bf16.mxu1 %v4718_v1 }
 0xc65   : > { %4412 = vmatpush3.bf16.msra.mxu1 %v4600_v10 }
 0xc66   : > { %4413 = vmatprep.subr.bf16.mxu1 %v4718_v1 }
 0xc69   : > { %4414 = vmatpush3.bf16.msra.mxu1 %v4601_v21 }
 0xc6a   : > { %4415 = vmatprep.subr.bf16.mxu1 %v4718_v1 }
 0xc6d   : > { %4416 = vmatpush3.bf16.msra.mxu1 %v4602_v22 }
 0xc6e   : > { %4417 = vmatprep.subr.bf16.mxu1 %v4718_v1 }
 0xc71   : > { %4418 = vmatpush3.bf16.msra.mxu1 %v4603_v23 }
 0xc72   : > { %4447 = vmatprep.subr.bf16.mxu1 %v4718_v1 }
 0xc74   : > { %4420 = vmatmul.mubr.bf16.vlgmr.msra.gmra.mrb[40].mxu1 %v5115_v55  ;;  %v2757_v55 = vadd.f32 %v3861_v28, %v2756_v29 }
 0xc75   : > { %4448 = vmatpush3.bf16.msra.mxu1 %v4604_v24  ;;  %4455 = vmatprep.mubr.msk.bf16.mxu1 %vm4719_vm0, %v4718_v1 }
 0xc76   : > { %4449 = vmatprep.subr.bf16.mxu1 %v4718_v1  ;;  %v2878_v34 = vpack.c.bf16 %v2760_v32, %v2757_v55 }
 0xc78   : > { %v2883_v18 = vsel %vm1316_vm1, %v2878_v34, 0  ;;  %v4614_v34 = vld [vmem:[%s5346_s26 + $0x4] ss:$8 sps:$4 sm:$0xff]  }
 0xc79   : > { %4450 = vmatpush3.bf16.msra.mxu1 %v4605_v25  ;;  %4424 = vmatpush3.bf16.xpose.msra.mxu0 %v2883_v18  ;;  %v3916_v25 = vld [vmem:[%s5345_s23] ss:$0 sm:$0xff]  ;;  %s5350_s23 = sld [smem:[#allocation13_spill]] }
 0xc7a   : > { %4451 = vmatprep.subr.bf16.mxu1 %v4718_v1  ;;  %4429 = vmatprep.subr.bf16.mxu0 %v4718_v1  ;;  %v4612_v18 = vld [vmem:[%s5346_s26] ss:$8 sps:$4 sm:$0xff]  }
 0xc7d   : > { %4452 = vmatpush3.bf16.msra.mxu1 %v4606_v26 }
 0xc7e   : > { %4453 = vmatprep.subr.bf16.mxu1 %v4718_v1 }
 0xc81   : > { %4454 = vmatpush3.bf16.msra.mxu1 %v4607_v27 }
 0xd07   : > { %v2521_v35 = vpop.f32.mrb[32].mxu1 }
 0xd08   : > { %v2527_v37 = vpack.c.bf16 %v2521_v35, %v2521_v35  ;;  %v4361_v38 = vpop.f32.mrb[33].mxu1  ;;  %v4615_v35 = vld [vmem:[%s5346_s26 + $0x10] ss:$8 sps:$4 sm:$0xff]  }
 0xd09   : > { %v2524_v39 = vpop.f32.mrb[34].mxu1  ;;  %v4618_v38 = vld [vmem:[%s5346_s26 + $0x20] ss:$8 sps:$4 sm:$0xff]  }
 0xd0a   : > { %v4362_v40 = vpop.f32.mrb[35].mxu1  ;;  %4456 = vmatmul.mubr.msk.bf16.vlgmr.msra.gmra.mrb[44].mxu1 %vm1316_vm1, %v2527_v37  ;;  %v4620_v37 = vld [vmem:[%s5346_s26 + $0x24] ss:$8 sps:$4 sm:$0xff]   ;;  %v4623_v39 = vld [vmem:[%s5346_s26 + $0x34] ss:$8 sps:$4 sm:$0xff]  }
 0xd0b   : > { %v4621_v40 = vld [vmem:[%s5346_s26 + $0x30] ss:$8 sps:$4 sm:$0xff]  }
 0xd27   : > { %v2643_v41 = vpop.f32.mrb[36].mxu1 }
 0xd28   : > { %v2644_v42 = vadd.f32 %v3835_v16, %v2643_v41  ;;  %v4381_v44 = vpop.f32.mrb[37].mxu1  ;;  %v4626_v16 = vld [vmem:[%s5346_s26 + $0x44] ss:$8 sps:$4 sm:$0xff]   ;;  %v4624_v41 = vld [vmem:[%s5346_s26 + $0x40] ss:$8 sps:$4 sm:$0xff]  }
 0xd29   : > { %v2646_v45 = vpop.f32.mrb[38].mxu1  ;;  %v4627_v44 = vld [vmem:[%s5346_s26 + $0x50] ss:$8 sps:$4 sm:$0xff]  }
 0xd2a   : > { %v2877_v46 = vpack.c.bf16 %v2644_v42, %v2644_v42  ;;  %v4382_v47 = vpop.f32.mrb[39].mxu1  ;;  %v4629_v42 = vld [vmem:[%s5346_s26 + $0x54] ss:$8 sps:$4 sm:$0xff]   ;;  %v4632_v45 = vld [vmem:[%s5346_s26 + $0x64] ss:$8 sps:$4 sm:$0xff]  }
 0xd2b   : > { %v4630_v47 = vld [vmem:[%s5346_s26 + $0x60] ss:$8 sps:$4 sm:$0xff]  }
 0xd2c   : > { %4426 = vmatmul.mubr.msk.bf16.vlgmr.msra.gmra.mrb[36].mxu0 %vm1316_vm1, %v2877_v46  ;;  %v4720_v46 = vmov 0  }
 0xd2d   : > { %4431 = vmatprep.mubr.msk.bf16.mxu0 %vm4719_vm0, %v4718_v1 }
 0xd47   : > { %v2870_v49 = vpop.f32.mrb[40].mxu1 }
 0xd48   : > { %v2871_v50 = vadd.f32 %v3887_v48, %v2870_v49  ;;  %v4421_v51 = vpop.f32.mrb[41].mxu1  ;;  %v4633_v49 = vld [vmem:[%s5346_s26 + $0x70] ss:$8 sps:$4 sm:$0xff]  }
 0xd49   : > { %v2873_v52 = vpop.f32.mrb[42].mxu1  ;;  %v4637_v51 = vld [vmem:[%s5347_s28] sm:$0xff]  }
 0xd4a   : > { %v2874_v53 = vadd.f32 %v3887_v48, %v2873_v52  ;;  %v4422_v54 = vpop.f32.mrb[43].mxu1  ;;  %v4635_v48 = vld [vmem:[%s5346_s26 + $0x74] ss:$8 sps:$4 sm:$0xff]   ;;  %v4638_v52 = vld [vmem:[%s5347_s28 + $0x48] sm:$0xff]  }
 0xd4b   : > { %v4640_v54 = vld [vmem:[%s5347_s28 + $0x50] sm:$0xff]  }
 0xd4c   : > { %v2939_v56 = vpack.c.bf16 %v2874_v53, %v2871_v50  ;;  %v4636_v50 = vld [vmem:[%s5347_s28 + $0x40] sm:$0xff]   ;;  %v4639_v53 = vld [vmem:[%s5347_s28 + $0x8] sm:$0xff]  }
 0xd4d   : > { %4101 = vmatprep.subr.bf16.mxu1 %v4636_v50 }
 0xd4e   : > { %4430 = vmatpush3.bf16.msra.mxu0 %v2939_v56  ;;  %4102 = vmatpush3.bf16.msra.mxu1 %v4637_v51  ;;  %v4641_v56 = vld [vmem:[%s5347_s28 + $0x10] sm:$0xff]  }
 0xd4f   : > { %4435 = vmatprep.subr.bf16.mxu0 %v4718_v1  ;;  %4103 = vmatprep.subr.bf16.mxu1 %v4638_v52 }
 0xd52   : > { %4104 = vmatpush3.bf16.msra.mxu1 %v4639_v53 }
 0xd53   : > { %4105 = vmatprep.subr.bf16.mxu1 %v4640_v54  ;;  %v3952_v54 = vld [vmem:[%s4869_s6] ss:$0 sm:$0xff] }
 0xd56   : > { %4106 = vmatpush3.bf16.msra.mxu1 %v4641_v56 }
 0xddd   : > { %v3121_v57 = vpop.f32.mrb[44].mxu1 }
 0xdde   : > { %v4457_v58 = vpop.f32.mrb[45].mxu1 }
 0xddf   : > { %v3124_v59 = vpop.f32.mrb[46].mxu1  ;;  %v4643_v58 = vld [vmem:[%s5347_s28 + $0x18] sm:$0xff]  }
 0xde0   : > { %v4458_v60 = vpop.f32.mrb[47].mxu1  ;;  %v4644_v59 = vld [vmem:[%s5347_s28 + $0x60] sm:$0xff]  }
 0xde1   : > { %v4645_v60 = vld [vmem:[%s5347_s28 + $0x20] sm:$0xff]  }
 0xdff   : > { %v2919_v61 = vpop.f32.mrb[36].mxu0 }
 0xe00   : > { %v2925_v62 = vmul.f32 0.125, %v2919_v61  ;;  %v4427_v63 = vpop.f32.mrb[37].mxu0  ;;  %v4646_v61 = vld [vmem:[%s5347_s28 + $0x68] sm:$0xff]  }
 0xe01   : > { %v2922_v0 = vpop.f32.mrb[38].mxu0 }
 0xe02   : > { %v4428_v2 = vpop.f32.mrb[39].mxu0  ;;  %v2926_v3 = vadd.f32 %v5168_v36, %v2925_v62  ;;  %v4647_v62 = vld [vmem:[%s5347_s28 + $0x28] sm:$0xff]  }
 0xe04   : > { %v2927_v4 = vsel %vm2470_vm6, %v2926_v3, -inf }
 0xe05   : > { %2928 = vmax.xlane.f32.xlu0 %v2927_v4 }
 0xe92   : > { %v2929_v5 = vpop.xlane.xlu0 %2928 }
 0xe93   : > { %v2930_v6 = vsub.f32 %v2926_v3, %v2929_v5 }
 0xe95   : > { %v2931_v7 = vmul.f32 1.442695, %v2930_v6 }
 0xe97   : > { %4668 = vpow2.f32 %v2931_v7 }
 0xea1   : > { %v4669_v8 = vpop.eup %4668 }
 0xea2   : > { %v2933_v11 = vsel %vm2470_vm6, %v4669_v8, 0.0 }
 0xea3   : > { %2934 = vadd.xlane.f32.xlu1 %v2933_v11 }
 0xf30   : > { %v2935_v12 = vpop.xlane.xlu1 %2934 }
 0xf31   : > { %4670 = vrcp.f32 %v2935_v12 }
 0xf3b   : > { %v4671_v13 = vpop.eup %4670 }
 0xf3c   : > { %v2937_v14 = vmul.f32 %v4671_v13, %v4669_v8  ;;  %v3917_v8 = vld [vmem:[%s5348_s10] ss:$0 sm:$0xff]  ;;  %s973_s10 = scalar_lea.vmem %s4879_s17, %s3653_s0 }
 0xf3d   : > { %v3918_v13 = vld [vmem:[%s5349_s11] ss:$0 sm:$0xff] }
 0xf3e   : > { %v2938_v36 = vpack.c.bf16 %v2937_v14, %v2937_v14 }
 0xf40   : > { %4432 = vmatmul.mubr.msk.bf16.vlgmr.msra.gmra.mrb[40].mxu0 %vm2470_vm6, %v2938_v36 }
 0xf41   : > { %4436 = vmatpush3.bf16.msra.mxu0 %v4608_v15  ;;  %4443 = vmatprep.mubr.msk.bf16.mxu0 %vm4719_vm0, %v4718_v1 }
 0xf42   : > { %4437 = vmatprep.subr.bf16.mxu0 %v4718_v1 }
 0xf45   : > { %4438 = vmatpush3.bf16.msra.mxu0 %v4609_v17  ;;  %v4648_v17 = vld [vmem:[%s5347_s28 + $0x70] sm:$0xff]  }
 0xf46   : > { %4439 = vmatprep.subr.bf16.mxu0 %v4718_v1 }
 0xf49   : > { %4440 = vmatpush3.bf16.msra.mxu0 %v4610_v19  ;;  %v4649_v19 = vld [vmem:[%s5347_s28 + $0x30] sm:$0xff]  }
 0xf4a   : > { %4441 = vmatprep.subr.bf16.mxu0 %v4718_v1 }
 0xf4d   : > { %4442 = vmatpush3.bf16.msra.mxu0 %v4611_v20  ;;  %v4650_v20 = vld [vmem:[%s5347_s28 + $0x78] sm:$0xff]  }
 0xf4e   : > { %3279 = vmatprep.subr.bf16.mxu0 %v4614_v34 }
0x1013   : > { %v2977_v43 = vpop.f32.mrb[40].mxu0 }
0x1014   : > { %v2983_v10 = vpack.c.bf16 %v2977_v43, %v2977_v43  ;;  %v4433_v21 = vpop.f32.mrb[41].mxu0  ;;  %v4651_v43 = vld [vmem:[%s5347_s28 + $0x38] sm:$0xff]  }
0x1015   : > { %v2980_v22 = vpop.f32.mrb[42].mxu0 }
0x1016   : > { %v4434_v23 = vpop.f32.mrb[43].mxu0  ;;  %4444 = vmatmul.mubr.msk.bf16.vlgmr.msra.gmra.mrb[44].mxu0 %vm1316_vm1, %v2983_v10  ;;  %v3189_v10 = vlaneseq }
0x1017   : > { %3280 = vmatpush1.bf16.msra.mxu0 %v4612_v18  ;;  %3311 = vmatprep.mubr.bf16.mxu0 %v4720_v46  ;;  %v3187_v23 = vld [vmem:[%s5350_s23] sm:$0x3] }
0x1018   : > { %v3190_v21 = vshrl.u32 %v3189_v10, 7 }
0x101a   : > { %v3191_v22 = vsub.s32 0, %v3190_v21 }
0x10e9   : > { %v3054_v24 = vpop.f32.mrb[44].mxu0 }
0x10ea   : > { %v3122_v26 = vadd.f32 %v3121_v57, %v3054_v24  ;;  %v4445_v27 = vpop.f32.mrb[45].mxu0  ;;  %v4642_v57 = vld [vmem:[%s5347_s28 + $0x58] sm:$0xff]   ;;  %v3195_v24 = vsub.s32 1, %v3190_v21 }
0x10eb   : > { %v3057_v28 = vpop.f32.mrb[46].mxu0  ;;  %4107 = vmatprep.subr.bf16.mxu1 %v4642_v57 }
0x10ec   : > { %v3134_v29 = vadd.f32 %v3916_v25, %v3122_v26  ;;  %v4446_v1 = vpop.f32.mrb[47].mxu0  ;;  %4108 = vmatpush3.bf16.msra.mxu1 %v4643_v58  ;;  %v3192_v25 = vrot.slane %v3187_v23, %v3191_v22  ;;  %v3196_v26 = vrot.slane %v3187_v23, %v3195_v24  ;;  %v3953_v58 = vld [vmem:[%s4874_s4] ss:$0 sm:$0xff] }
0x10ed   : > { %4109 = vmatprep.subr.bf16.mxu1 %v4644_v59 }
0x10ee   : > { %v3135_v55 = vadd.f32 %v3134_v29, %v5131_v9  ;;  %v4617_v9 = vld [vmem:[%s5346_s26 + $0x14] ss:$8 sps:$4 sm:$0xff]  }
0x10ef   : > { %3281 = vmatprep.subr.bf16.mxu0 %v4617_v9  ;;  %v3935_v9 = vld [vmem:[%s4864_s20] ss:$0 sm:$0xff] }
0x10f0   : > { %3138 = vadd.xlane.f32.xlu0 %v3135_v55  ;;  %3282 = vmatpush1.bf16.msra.mxu0 %v4615_v35 }
0x10f1   : > { %3283 = vmatprep.subr.bf16.mxu0 %v4620_v37  ;;  %4110 = vmatpush3.bf16.msra.mxu1 %v4645_v60 }
0x10f2   : > { %4111 = vmatprep.subr.bf16.mxu1 %v4646_v61 }
0x10f4   : > { %3284 = vmatpush1.bf16.msra.mxu0 %v4618_v38 }
0x10f5   : > { %3285 = vmatprep.subr.bf16.mxu0 %v4623_v39  ;;  %4112 = vmatpush3.bf16.msra.mxu1 %v4647_v62 }
0x10f6   : > { %4113 = vmatprep.subr.bf16.mxu1 %v4648_v17 }
0x10f8   : > { %3286 = vmatpush1.bf16.msra.mxu0 %v4621_v40 }
0x10f9   : > { %3287 = vmatprep.subr.bf16.mxu0 %v4626_v16  ;;  %4114 = vmatpush3.bf16.msra.mxu1 %v4649_v19 }
0x10fa   : > { %4115 = vmatprep.subr.bf16.mxu1 %v4650_v20 }
0x10fc   : > { %3288 = vmatpush1.bf16.msra.mxu0 %v4624_v41 }
0x10fd   : > { %3289 = vmatprep.subr.bf16.mxu0 %v4629_v42  ;;  %4116 = vmatpush3.bf16.msra.mxu1 %v4651_v43 }
0x1100   : > { %3290 = vmatpush1.bf16.msra.mxu0 %v4627_v44 }
0x1101   : > { %3291 = vmatprep.subr.bf16.mxu0 %v4632_v45 }
0x1104   : > { %3292 = vmatpush1.bf16.msra.mxu0 %v4630_v47 }
0x1105   : > { %3293 = vmatprep.subr.bf16.mxu0 %v4635_v48 }
0x1108   : > { %3294 = vmatpush1.bf16.msra.mxu0 %v4633_v49 }
0x117d   : > { %v3139_v30 = vpop.xlane.xlu0 %3138 }
0x117e   : > { %v3140_v31 = vmul.f32 0.0078125, %v3139_v30 }
0x1180   : > { %v5268_v32 = vsub.f32 %v3135_v55, %v3140_v31 }
0x1182   : > { %v3142_v33 = vmul.f32 %v5268_v32, %v5268_v32  ;;  %v3159_v11 = vmul.f32 %v3917_v8, %v5268_v32 }
0x1184   : > { %3143 = vadd.xlane.f32.xlu1 %v3142_v33 }
0x1211   : > { %v3144_v63 = vpop.xlane.xlu1 %3143 }
0x1212   : > { %v3145_v0 = vmul.f32 0.007874016, %v3144_v63 }
0x1214   : > { %4672 = vrsqrt.f32 %v3145_v0  ;;  %vm3148_vm7 = vcmp.eq.f32.partialorder %v3145_v0, inf  ;;  %v3151_v4 = vand.u32 2147483648, %v3145_v0  ;;  %vm3150_vm8 = vcmp.eq.f32.partialorder %v3145_v0, 0.0 }
0x121e   : > { %v4673_v2 = vpop.eup %4672 }
0x121f   : > { %v3147_v3 = vmul.f32 %v4673_v2, %v3145_v0 }
0x1221   : > { %v3149_v5 = vsel %vm3148_vm7, %v3145_v0, %v3147_v3 }
0x1222   : > { %v3152_v6 = vsel %vm3150_vm8, %v3151_v4, %v3149_v5 }
0x1223   : > { %v3160_v7 = vadd.f32 1e-06, %v3152_v6 }
0x1225   : > { %4674 = vrcp.f32 %v3160_v7 }
0x122f   : > { %v4675_v12 = vpop.eup %4674 }
0x1230   : > { %v3162_v14 = vmul.f32 %v4675_v12, %v3159_v11 }
0x1232   : > { %v3169_v15 = vadd.f32 %v3918_v13, %v3162_v14 }
0x1234   : > { %v3170_v36 = vpack.c.bf16 %v3169_v15, %v3169_v15 }
0x1236   : > { %3312 = vmatmul.mubr.bf16.vlgmr.msra.gmra.mrb[48].mxu0 %v3170_v36 }
0x1309   : > { %v3313_v27 = vpop.f32.mrb[48].mxu0 }
0x130a   : > { %v3314_v28 = vadd.f32 %v3313_v27, %v3192_v25  ;;  %v3315_v29 = vpop.f32.mrb[49].mxu0 }
0x130b   : > { %v3316_v1 = vadd.f32 %v3315_v29, %v3196_v26  ;;  %v3317_v55 = vpop.f32.mrb[50].mxu0 }
0x130c   : > { %v3320_v30 = vmax.f32 %v3314_v28, 0.0  ;;  %v3318_v31 = vpop.f32.mrb[51].mxu0 }
0x130d   : > { %v3321_v32 = vmax.f32 %v3316_v1, 0.0 }
0x130e   : > { %v3322_v34 = vpack.c.bf16 %v3320_v30, %v3320_v30 }
0x130f   : > { %v3323_v33 = vpack.c.bf16 %v3321_v32, %v3321_v32 }
0x1311   : > { %3491 = vmatprep.mubr.bf16.mxu1 %v3323_v33 }
0x1312   : > { %3492 = vmatmul.mubr.bf16.vlgmr.msra.gmra.mrb[48].mxu1 %v3322_v34 }
0x13e5   : > { %v4117_v18 = vpop.f32.mrb[48].mxu1 }
0x13e6   : > { %v4118_v35 = vpop.f32.mrb[49].mxu1 }
0x13e7   : > { %v4119_v37 = vadd.f32 %v4118_v35, %v4117_v18  ;;  %v4120_v38 = vpop.f32.mrb[50].mxu1 }
0x13e8   : > { %v4121_v39 = vpop.f32.mrb[51].mxu1 }
0x13e9   : > { %v3494_v40 = vadd.f32 %v4119_v37, %v3935_v9 }
0x13eb   : > { %v3499_v16 = vadd.f32 %v3494_v40, %v3169_v15 }
0x13ed   : > { %3502 = vadd.xlane.f32.xlu0 %v3499_v16 }
0x147a   : > { %v3503_v41 = vpop.xlane.xlu0 %3502 }
0x147b   : > { %v3504_v42 = vmul.f32 0.0078125, %v3503_v41 }
0x147d   : > { %v3505_v44 = vsub.f32 %v3499_v16, %v3504_v42 }
0x147f   : > { %v3506_v45 = vmul.f32 %v3505_v44, %v3505_v44  ;;  %v3523_v56 = vmul.f32 %v3952_v54, %v3505_v44 }
0x1481   : > { %3507 = vadd.xlane.f32.xlu1 %v3506_v45 }
0x150e   : > { %v3508_v46 = vpop.xlane.xlu1 %3507 }
0x150f   : > { %v3509_v47 = vmul.f32 0.007874016, %v3508_v46 }
0x1511   : > { %4676 = vrsqrt.f32 %v3509_v47  ;;  %vm3512_vm9 = vcmp.eq.f32.partialorder %v3509_v47, inf  ;;  %v3515_v50 = vand.u32 2147483648, %v3509_v47  ;;  %vm3514_vm10 = vcmp.eq.f32.partialorder %v3509_v47, 0.0 }
0x151b   : > { %v4677_v48 = vpop.eup %4676 }
0x151c   : > { %v3511_v49 = vmul.f32 %v4677_v48, %v3509_v47 }
0x151e   : > { %v3513_v51 = vsel %vm3512_vm9, %v3509_v47, %v3511_v49 }
0x151f   : > { %v3516_v52 = vsel %vm3514_vm10, %v3515_v50, %v3513_v51 }
0x1520   : > { %v3524_v53 = vadd.f32 1e-06, %v3516_v52 }
0x1522   : > { %4678 = vrcp.f32 %v3524_v53 }
0x152c   : > { %v4679_v57 = vpop.eup %4678 }
0x152d   : > { %v3526_v59 = vmul.f32 %v4679_v57, %v3523_v56 }
0x152f   : > { %v3533_v60 = vadd.f32 %v3953_v58, %v3526_v59 }
0x1531   : > { %3534 = vst [vmem:[%s973_s10] sm:$0xff] %v3533_v60 }
0x1532 PF: > { %s71_s15 = sadd.s32 1, %s4686_s15  }
0x1533   : > { %p68_p4 = scmp.ge.s32.totalorder %s71_s15, 4  }
0x1535   :  { %70 = sbr.rel (!%p68_p4) target bundleno = 45 (0x2d), region = 223 }

// kernel: apply_cme.39
= control target key start
LH: loop header
LB: loop body
LE: loop exit
PB: predicated region body
PF: predicated region fallthrough
CT: control target
= control target key end

     0   :  { %s4796_s6 = smov 1   ;;  %s4797_s10 = smov 2   ;;  %s5497_s0 = inlined_call_operand.smem [shape: u32[31], index: -1, kind: input, shape index: {}] }
   0x1   :  { %s4838_s5 = sld [smem:[%s5497_s0]]   ;;  %s4798_s14 = smov 3  }
   0x2   :  { %s4843_s9 = sld [smem:[%s5497_s0 + %s4796_s6]]   ;;  %s4799_s18 = smov 4  }
   0x3   :  { %s4848_s13 = sld [smem:[%s5497_s0 + %s4797_s10]]   ;;  %s4800_s22 = smov 5  }
   0x4   :  { %s4853_s17 = sld [smem:[%s5497_s0 + %s4798_s14]]   ;;  %s4801_s26 = smov 6  }
   0x5   :  { %s4858_s21 = sld [smem:[%s5497_s0 + %s4799_s18]]   ;;  %s4802_s30 = smov 7  }
   0x6   :  { %s4863_s25 = sld [smem:[%s5497_s0 + %s4800_s22]]   ;;  %s4803_s4 = smov 8  }
   0x7   :  { %5513 = sst [smem:[#allocation5_spill]] %s4838_s5  ;;  %s4804_s10 = smov 9  }
   0x8   :  { %5514 = sst [smem:[#allocation6_spill]] %s4843_s9  ;;  %s4805_s15 = smov 10  }
   0x9   :  { %5515 = sst [smem:[#allocation7_spill]] %s4848_s13  ;;  %s4806_s20 = smov 11  }
   0xa   :  { %5516 = sst [smem:[#allocation8_spill]] %s4853_s17  ;;  %s4808_s1 = smov 13  }
   0xb   :  { %s4868_s29 = sld [smem:[%s5497_s0 + %s4801_s26]]   ;;  %s4807_s26 = smov 12  }
   0xc   :  { %s4873_s3 = sld [smem:[%s5497_s0 + %s4802_s30]]   ;;  %s4809_s7 = smov 14  }
   0xd   :  { %s4878_s8 = sld [smem:[%s5497_s0 + %s4803_s4]]   ;;  %s4811_s22 = smov 16  }
   0xe   :  { %s4883_s14 = sld [smem:[%s5497_s0 + %s4804_s10]]   ;;  %s4812_s28 = smov 17  }
   0xf   :  { %s4888_s19 = sld [smem:[%s5497_s0 + %s4805_s15]]   ;;  %s4810_s15 = smov 15  }
  0x10   :  { %s4893_s24 = sld [smem:[%s5497_s0 + %s4806_s20]]  }
  0x11   :  { %s4898_s30 = sld [smem:[%s5497_s0 + %s4807_s26]]  }
  0x12   :  { %5517 = sst [smem:[#allocation9_spill]] %s4873_s3 }
  0x13   :  { %5518 = sst [smem:[#allocation10_spill]] %s4878_s8 }
  0x14   :  { %s4903_s6 = sld [smem:[%s5497_s0 + %s4808_s1]]  }
  0x15   :  { %s4908_s12 = sld [smem:[%s5497_s0 + %s4809_s7]]   ;;  %s4813_s7 = smov 18  }
  0x16   :  { %s4913_s20 = sld [smem:[%s5497_s0 + %s4810_s15]]   ;;  %s4814_s15 = smov 19  }
  0x17   :  { %s4918_s27 = sld [smem:[%s5497_s0 + %s4811_s22]]   ;;  %s4815_s22 = smov 20  }
  0x18   :  { %s4923_s4 = sld [smem:[%s5497_s0 + %s4812_s28]]   ;;  %s4816_s28 = smov 21  }
  0x19   :  { %s4928_s17 = sld [smem:[%s5497_s0 + %s4813_s7]]   ;;  %s4817_s7 = smov 22  }
  0x1a   :  { %5519 = sst [smem:[#allocation11_spill]] %s4903_s6 }
  0x1b   :  { %5520 = sst [smem:[#allocation12_spill]] %s4908_s12 }
  0x1c   :  { %5521 = sst [smem:[#allocation13_spill]] %s4913_s20 }
  0x1d   :  { %s4933_s20 = sld [smem:[%s5497_s0 + %s4814_s15]]   ;;  %s4818_s15 = smov 23  }
  0x1e   :  { %5522 = sst [smem:[#allocation14_spill]] %s4923_s4 }
  0x1f   :  { %5523 = sst [smem:[#allocation15_spill]] %s4928_s17 }
  0x20   :  { %s4938_s6 = sld [smem:[%s5497_s0 + %s4815_s22]]   ;;  %s4819_s22 = smov 24  }
  0x21   :  { %s4943_s4 = sld [smem:[%s5497_s0 + %s4816_s28]]   ;;  %s4820_s28 = smov 25  }
  0x22   :  { %s4948_s17 = sld [smem:[%s5497_s0 + %s4817_s7]]   ;;  %s4821_s7 = smov 26  }
  0x23   :  { %5524 = sst [smem:[#allocation16_spill]] %s4933_s20 }
  0x24   :  { %s4953_s20 = sld [smem:[%s5497_s0 + %s4818_s15]]   ;;  %s4822_s15 = smov 27  }
  0x26   :  { %5525 = sst [smem:[#allocation17_spill]] %s4938_s6 }
  0x27   :  { %5526 = sst [smem:[#allocation18_spill]] %s4943_s4 }
  0x28   :  { %5527 = sst [smem:[#allocation19_spill]] %s4948_s17 }
  0x29   :  { %s4958_s6 = sld [smem:[%s5497_s0 + %s4819_s22]]   ;;  %s4823_s22 = smov 28  }
  0x2a   :  { %5528 = sst [smem:[#allocation20_spill]] %s4953_s20 }
  0x2b   :  { %s4963_s4 = sld [smem:[%s5497_s0 + %s4820_s28]]   ;;  %s4824_s28 = smov 29  }
  0x2c   :  { %s4968_s17 = sld [smem:[%s5497_s0 + %s4821_s7]]   ;;  %s4825_s7 = smov 30  }
  0x2d   :  { %s4973_s20 = sld [smem:[%s5497_s0 + %s4822_s15]]  }
  0x2f   :  { %5529 = sst [smem:[#allocation21_spill]] %s4958_s6 }
  0x30   :  { %s4978_s6 = sld [smem:[%s5497_s0 + %s4823_s22]]  }
  0x31   :  { %5530 = sst [smem:[#allocation22_spill]] %s4963_s4 }
  0x32   :  { %5531 = sst [smem:[#allocation23_spill]] %s4968_s17 }
  0x33   :  { %s4983_s4 = sld [smem:[%s5497_s0 + %s4824_s28]]  }
  0x34   :  { %s4988_s17 = sld [smem:[%s5497_s0 + %s4825_s7]]  }
  0x39   :  { %5532 = sst [smem:[#allocation24_spill]] %s4983_s4 }
  0x3a   :  { %66 = vsyncpa [#allocation3], 0 }
  0x3b   :  { %68 = vsyncpa [#allocation3 + $0x1], 0  ;;  %s4990_s15 = smov 0   ;;  %s4992_s16 = smov 0  }
  0x3c   :  { %s4994_s18 = smov 0   ;;  %s4996_s22 = smov 0  }
  0x3d LB: > { %s5533_s12 = sld [smem:[#allocation12_spill]]  ;;  %s5534_s8 = sld [smem:[#allocation10_spill]]  ;;  %s4790_s18 = sphi %s4994_s18, %s5557_s18   ;;  %s4786_s16 = sphi %s4992_s16, %s5556_s16   ;;  %s4782_s15 = sphi %s4990_s15, %s5555_s15   ;;  %s4794_s22 = sphi %s4996_s22, %s5558_s22  }
  0x3e   : > { %s5535_s3 = sld [smem:[#allocation9_spill]]  ;;  %s5011_s0 = sadd.s32 4294967295, %s4794_s22  }
  0x3f   : > { %s3668_s23 = sadd.s32 4294967294, %s4794_s22   ;;  %s5015_s26 = sadd.s32 1, %s4794_s22  }
  0x40   : > { %s731_s28 = sadd.s32 1, %s4790_s18  ;;  %s728_s1 = ssub.s32 %s4794_s22, %s5015_s26 }
  0x41   : > { %p741_p0 = scmp.ne.s32.totalorder %s4790_s18, %s4786_s16  ;;  %p729_p1 = scmp.eq.s32.totalorder %s728_s1, 0 }
  0x42   : > { %p742_p2 = scmp.eq.s32.totalorder %s5011_s0, 1  ;;  %p747_p3 = scmp.ne.s32.totalorder %s4786_s16, %s4782_s15 }
  0x43   : > { %p748_p4 = scmp.eq.s32.totalorder %s3668_s23, 1  ;;  %p3671_p7 = scmp.ge.s32.totalorder %s4794_s22, 1 }
  0x44   : > { %s5026_s2 = scalar_select %p729_p1, %s4790_s18, %s731_s28  }
  0x45   : > { %p5028_p5 = por %p742_p2, %p741_p0  ;;  %p5032_p6 = por %p748_p4, %p747_p3 }
  0x46   : > { %p871_p8 = scmp.lt.s32.totalorder %s4794_s22, 3 }
  0x48   : > { %p872_p9 = pnand %p3671_p7, %p871_p8 }
  0x49   : > { %v4552_v0 = vld [vmem:[%s4868_s29] sm:$0xff] (!%p872_p9)   ;;  %v4826_v1 = vmov (!%p872_p9), 0.0   ;;  %v4553_v2 = vld [vmem:[%s4868_s29 + $0x8] sm:$0xff] (!%p872_p9)   ;;  %vm4827_vm0 = vmmov (!%p872_p9), 0   ;;  %v4555_v5 = vld [vmem:[%s4868_s29 + $0x10] sm:$0xff] (!%p872_p9)   ;;  %p959_p10 = scmp.lt.s32.totalorder (!%p872_p9), %s5011_s0, 1 }
  0x4a   : > { %875 = sbr.rel (%p872_p9) target bundleno = 5463 (0x1557), region = 140  ;;  %4164 = vmatprep.subr.bf16.mxu1 (!%p872_p9), %v4826_v1  ;;  %4144 = vmatprep.subr.bf16.mxu0 (!%p872_p9), %v4826_v1  ;;  %v4554_v3 = vld [vmem:[%s4858_s21] sm:$0xff] (!%p872_p9)   ;;  %v4556_v4 = vld [vmem:[%s4858_s21 + $0x8] sm:$0xff] (!%p872_p9)   ;;  %v4558_v6 = vld [vmem:[%s4858_s21 + $0x10] sm:$0xff] (!%p872_p9)   ;;  %s5538_s5 = sld [smem:[#allocation5_spill]] (!%p872_p9)  ;;  %vm1316_vm1 = vcmask (!%p872_p9), 523264  }
  0x4b   : > { %4165 = vmatpush3.bf16.msra.mxu1 (!%p872_p9), %v4552_v0  ;;  %4180 = vmatprep.mubr.msk.bf16.mxu1 (!%p872_p9), %vm4827_vm0, %v4826_v1  ;;  %v4557_v7 = vld [vmem:[%s4868_s29 + $0x18] sm:$0xff] (!%p872_p9)   ;;  %v4559_v9 = vld [vmem:[%s4868_s29 + $0x20] sm:$0xff] (!%p872_p9)   ;;  %v4561_v10 = vld [vmem:[%s4868_s29 + $0x28] sm:$0xff] (!%p872_p9)   ;;  %s5539_s13 = sld [smem:[#allocation7_spill]] (!%p872_p9)  ;;  %vm1371_vm2 = vcmask (!%p872_p9), 64512   ;;  %vm1388_vm3 = vcmask (!%p872_p9), 1043456  }
  0x4c   : > { %4166 = vmatprep.subr.bf16.mxu1 (!%p872_p9), %v4826_v1  ;;  %4160 = vmatprep.mubr.msk.bf16.mxu0 (!%p872_p9), %vm4827_vm0, %v4826_v1  ;;  %v4560_v8 = vld [vmem:[%s4858_s21 + $0x18] sm:$0xff] (!%p872_p9)   ;;  %v4562_v11 = vld [vmem:[%s4858_s21 + $0x20] sm:$0xff] (!%p872_p9)   ;;  %v4564_v12 = vld [vmem:[%s4858_s21 + $0x28] sm:$0xff] (!%p872_p9)   ;;  %s5540_s9 = sld [smem:[#allocation6_spill]] (!%p872_p9)  ;;  %vm2470_vm6 = vcmask (!%p872_p9), 130048   ;;  %s5554_s4 = sld [smem:[#allocation24_spill]] (!%p872_p9) }
  0x4d   : > { %4145 = vmatpush3.bf16.msra.mxu0 (!%p872_p9), %v4554_v3  ;;  %v4563_v13 = vld [vmem:[%s4868_s29 + $0x30] sm:$0xff] (!%p872_p9)   ;;  %v4565_v15 = vld [vmem:[%s4868_s29 + $0x38] sm:$0xff] (!%p872_p9)   ;;  %v3685_v19 = vld [vmem:[%s5535_s3] ss:$0 sm:$0xff] (!%p872_p9) }
  0x4e   : > { %4146 = vmatprep.subr.bf16.mxu0 (!%p872_p9), %v4826_v1  ;;  %v4566_v14 = vld [vmem:[%s4858_s21 + $0x30] sm:$0xff] (!%p872_p9)   ;;  %v4567_v17 = vld [vmem:[%s4858_s21 + $0x38] sm:$0xff] (!%p872_p9)   ;;  %v3676_v24 = vld [vmem:[%s4863_s25] ss:$0 sm:$0xff] (!%p872_p9) }
  0x4f   : > { %4167 = vmatpush3.bf16.msra.mxu1 (!%p872_p9), %v4553_v2  ;;  %v4568_v34 = vld [vmem:[%s5534_s8] sm:$0xff] (!%p872_p9)   ;;  %v4569_v35 = vld [vmem:[%s5534_s8 + $0x8] sm:$0xff] (!%p872_p9)   ;;  %v4570_v36 = vld [vmem:[%s5534_s8 + $0x10] sm:$0xff] (!%p872_p9)  }
  0x50   : > { %4168 = vmatprep.subr.bf16.mxu1 (!%p872_p9), %v4826_v1  ;;  %v4571_v37 = vld [vmem:[%s5534_s8 + $0x18] sm:$0xff] (!%p872_p9)   ;;  %v4572_v38 = vld [vmem:[%s5534_s8 + $0x20] sm:$0xff] (!%p872_p9)   ;;  %v4573_v39 = vld [vmem:[%s5534_s8 + $0x28] sm:$0xff] (!%p872_p9)  }
  0x51   : > { %4147 = vmatpush3.bf16.msra.mxu0 %v4556_v4  ;;  %s5059_s11 = scalar_select %p959_p10, %s5011_s0, 1  ;;  %v4574_v40 = vld [vmem:[%s5534_s8 + $0x30] sm:$0xff]   ;;  %v4575_v41 = vld [vmem:[%s5534_s8 + $0x38] sm:$0xff]   ;;  %v4576_v56 = vld [vmem:[%s4868_s29 + $0x40] sm:$0xff]  }
  0x52   : > { %4148 = vmatprep.subr.bf16.mxu0 %v4826_v1  ;;  %v3694_v59 = vld [vmem:[%s4883_s14] ss:$0 sm:$0xff]  ;;  %v4577_v62 = vld [vmem:[%s4868_s29 + $0x48] sm:$0xff]   ;;  %v4578_v2 = vld [vmem:[%s4868_s29 + $0x50] sm:$0xff]  }
  0x53   : > { %4169 = vmatpush3.bf16.msra.mxu1 %v4555_v5  ;;  %s3673_s23 = sshll.u32 %s5059_s11, 3  ;;  %s970_s1 = scalar_lea.vmem %s5539_s13, %s5059_s11  ;;  %v4580_v3 = vld [vmem:[%s4868_s29 + $0x58] sm:$0xff]   ;;  %v4582_v4 = vld [vmem:[%s4868_s29 + $0x60] sm:$0xff]   ;;  %v4584_v5 = vld [vmem:[%s4868_s29 + $0x68] sm:$0xff]  }
  0x54   : > { %4170 = vmatprep.subr.bf16.mxu1 %v4826_v1  ;;  %s962_s28 = scalar_lea.vmem %s5538_s5, %s3673_s23  ;;  %v5122_v43 = vld [vmem:[%s970_s1] ss:$0 sm:$0xff]  ;;  %s3977_s23 = sshll.u32 %s5059_s11, 4 }
  0x55   : > { %4149 = vmatpush3.bf16.msra.mxu0 %v4558_v6  ;;  %v5076_v16 = vld [vmem:[%s962_s28] sm:$0xff]  ;;  %v4586_v6 = vld [vmem:[%s4868_s29 + $0x70] sm:$0xff]   ;;  %s967_s28 = scalar_lea.vmem %s5540_s9, %s3977_s23  ;;  %s5541_s1 = sld [smem:[#allocation11_spill]] }
  0x56   : > { %4150 = vmatprep.subr.bf16.mxu0 %v4826_v1  ;;  %v5083_v18 = vpack.c.bf16 %v5076_v16, %v5076_v16  ;;  %s5542_s23 = sld [smem:[#allocation14_spill]] }
  0x57   : > { %4171 = vmatpush3.bf16.msra.mxu1 %v4557_v7  ;;  %v4588_v7 = vld [vmem:[%s4868_s29 + $0x78] sm:$0xff]  }
  0x58   : > { %4172 = vmatprep.subr.bf16.mxu1 %v4826_v1 }
  0x59   : > { %4151 = vmatpush3.bf16.msra.mxu0 %v4560_v8 }
  0x5a   : > { %4152 = vmatprep.subr.bf16.mxu0 %v4826_v1 }
  0x5b   : > { %4173 = vmatpush3.bf16.msra.mxu1 %v4559_v9 }
  0x5c   : > { %4174 = vmatprep.subr.bf16.mxu1 %v4826_v1 }
  0x5d   : > { %4153 = vmatpush3.bf16.msra.mxu0 %v4562_v11  ;;  %v4579_v11 = vld [vmem:[%s4858_s21 + $0x40] sm:$0xff]  }
  0x5e   : > { %4154 = vmatprep.subr.bf16.mxu0 %v4826_v1 }
  0x5f   : > { %4175 = vmatpush3.bf16.msra.mxu1 %v4561_v10 }
  0x60   : > { %4176 = vmatprep.subr.bf16.mxu1 %v4826_v1 }
  0x61   : > { %4155 = vmatpush3.bf16.msra.mxu0 %v4564_v12 }
  0x62   : > { %4156 = vmatprep.subr.bf16.mxu0 %v4826_v1 }
  0x63   : > { %4177 = vmatpush3.bf16.msra.mxu1 %v4563_v13  ;;  %v4581_v13 = vld [vmem:[%s4858_s21 + $0x48] sm:$0xff]  }
  0x64   : > { %4178 = vmatprep.subr.bf16.mxu1 %v4826_v1 }
  0x65   : > { %4157 = vmatpush3.bf16.msra.mxu0 %v4566_v14  ;;  %v4583_v14 = vld [vmem:[%s4858_s21 + $0x50] sm:$0xff]  }
  0x66   : > { %4158 = vmatprep.subr.bf16.mxu0 %v4826_v1 }
  0x67   : > { %4179 = vmatpush3.bf16.msra.mxu1 %v4565_v15  ;;  %v4585_v15 = vld [vmem:[%s4858_s21 + $0x58] sm:$0xff]  }
  0x68   : > { %4204 = vmatprep.subr.bf16.mxu1 %v4826_v1 }
  0x69   : > { %4159 = vmatpush3.bf16.msra.mxu0 %v4567_v17  ;;  %v4587_v17 = vld [vmem:[%s4858_s21 + $0x60] sm:$0xff]  }
  0x6a   : > { %4181 = vmatmul.mubr.bf16.vlgmr.msra.gmra.mrb[0].mxu1 %v5083_v18  ;;  %4184 = vmatprep.subr.bf16.mxu0 %v4826_v1 }
  0x6b   : > { %4206 = vmatprep.mubr.msk.bf16.mxu1 %vm4827_vm0, %v4826_v1 }
  0x6c   : > { %4161 = vmatmul.mubr.bf16.vlgmr.msra.gmra.mrb[0].mxu0 %v5083_v18 }
  0x6d   : > { %4200 = vmatprep.mubr.msk.bf16.mxu0 %vm4827_vm0, %v4826_v1  ;;  %4185 = vmatpush3.bf16.msra.mxu0 %v4568_v34  ;;  %v3749_v34 = vld [vmem:[%s5535_s3 + $0x1] ss:$0 sm:$0xff]  ;;  %s5544_s3 = sld [smem:[#allocation15_spill]] }
  0x6e   : > { %4186 = vmatprep.subr.bf16.mxu0 %v4826_v1 }
  0x71   : > { %4187 = vmatpush3.bf16.msra.mxu0 %v4569_v35 }
  0x72   : > { %4188 = vmatprep.subr.bf16.mxu0 %v4826_v1 }
  0x75   : > { %4189 = vmatpush3.bf16.msra.mxu0 %v4570_v36 }
  0x76   : > { %4190 = vmatprep.subr.bf16.mxu0 %v4826_v1 }
  0x79   : > { %4191 = vmatpush3.bf16.msra.mxu0 %v4571_v37 }
  0x7a   : > { %4192 = vmatprep.subr.bf16.mxu0 %v4826_v1 }
  0x7d   : > { %4193 = vmatpush3.bf16.msra.mxu0 %v4572_v38 }
  0x7e   : > { %4194 = vmatprep.subr.bf16.mxu0 %v4826_v1 }
  0x81   : > { %4195 = vmatpush3.bf16.msra.mxu0 %v4573_v39 }
  0x82   : > { %4196 = vmatprep.subr.bf16.mxu0 %v4826_v1 }
  0x85   : > { %4197 = vmatpush3.bf16.msra.mxu0 %v4574_v40 }
  0x86   : > { %4198 = vmatprep.subr.bf16.mxu0 %v4826_v1 }
  0x89   : > { %4199 = vmatpush3.bf16.msra.mxu0 %v4575_v41 }
  0x8a   : > { %4236 = vmatprep.subr.bf16.mxu0 %v4826_v1 }
  0x8c   : > { %4201 = vmatmul.mubr.bf16.vlgmr.msra.gmra.mrb[4].mxu0 %v5083_v18 }
  0x8d   : > { %4252 = vmatprep.mubr.msk.bf16.mxu0 %vm4827_vm0, %v4826_v1  ;;  %4237 = vmatpush3.bf16.msra.mxu0 %v4576_v56 }
  0x8e   : > { %4238 = vmatprep.subr.bf16.mxu0 %v4826_v1 }
  0x91   : > { %4239 = vmatpush3.bf16.msra.mxu0 %v4577_v62 }
  0x92   : > { %4240 = vmatprep.subr.bf16.mxu0 %v4826_v1 }
  0x95   : > { %4241 = vmatpush3.bf16.msra.mxu0 %v4578_v2 }
  0x96   : > { %4242 = vmatprep.subr.bf16.mxu0 %v4826_v1 }
  0x99   : > { %4243 = vmatpush3.bf16.msra.mxu0 %v4580_v3 }
  0x9a   : > { %4244 = vmatprep.subr.bf16.mxu0 %v4826_v1 }
  0x9d   : > { %4245 = vmatpush3.bf16.msra.mxu0 %v4582_v4 }
  0x9e   : > { %4246 = vmatprep.subr.bf16.mxu0 %v4826_v1 }
  0xa1   : > { %4247 = vmatpush3.bf16.msra.mxu0 %v4584_v5 }
  0xa2   : > { %4248 = vmatprep.subr.bf16.mxu0 %v4826_v1 }
  0xa5   : > { %4249 = vmatpush3.bf16.msra.mxu0 %v4586_v6 }
  0xa6   : > { %4250 = vmatprep.subr.bf16.mxu0 %v4826_v1 }
  0xa9   : > { %4251 = vmatpush3.bf16.msra.mxu0 %v4588_v7 }
  0xaa   : > { %4276 = vmatprep.subr.bf16.mxu0 %v4826_v1 }
  0xac   : > { %4253 = vmatmul.mubr.bf16.vlgmr.msra.gmra.mrb[8].mxu0 %v5083_v18 }
  0xad   : > { %4278 = vmatprep.mubr.msk.bf16.mxu0 %vm4827_vm0, %v4826_v1 }
 0x13d   : > { %v1197_v20 = vpop.f32.mrb[0].mxu1 }
 0x13e   : > { %v1198_v21 = vadd.f32 %v3685_v19, %v1197_v20  ;;  %v4182_v22 = vpop.f32.mrb[1].mxu1  ;;  %v4589_v19 = vld [vmem:[%s4858_s21 + $0x68] sm:$0xff]   ;;  %v4590_v20 = vld [vmem:[%s4858_s21 + $0x70] sm:$0xff]  }
 0x13f   : > { %v1200_v23 = vpop.f32.mrb[2].mxu1  ;;  %v1086_v25 = vpop.f32.mrb[0].mxu0  ;;  %v4592_v22 = vld [vmem:[%s5534_s8 + $0x40] sm:$0xff]  }
 0x140   : > { %v1315_v26 = vpack.c.bf16 %v1198_v21, %v1198_v21  ;;  %v4183_v27 = vpop.f32.mrb[3].mxu1  ;;  %v4162_v28 = vpop.f32.mrb[1].mxu0  ;;  %v1087_v31 = vadd.f32 %v3676_v24, %v1086_v25  ;;  %v4591_v21 = vld [vmem:[%s4858_s21 + $0x78] sm:$0xff]   ;;  %v4593_v23 = vld [vmem:[%s5534_s8 + $0x48] sm:$0xff]   ;;  %v4594_v24 = vld [vmem:[%s5534_s8 + $0x50] sm:$0xff]  }
 0x141   : > { %v1089_v29 = vpop.f32.mrb[2].mxu0  ;;  %v4595_v25 = vld [vmem:[%s5534_s8 + $0x58] sm:$0xff]   ;;  %v4597_v27 = vld [vmem:[%s5534_s8 + $0x68] sm:$0xff]   ;;  %v4598_v28 = vld [vmem:[%s5534_s8 + $0x70] sm:$0xff]  }
 0x142   : > { %v1321_v30 = vsel %vm1316_vm1, %v1315_v26, 0  ;;  %v4163_v32 = vpop.f32.mrb[3].mxu0  ;;  %v1314_v33 = vpack.c.bf16 %v1087_v31, %v1087_v31  ;;  %v4596_v26 = vld [vmem:[%s5534_s8 + $0x60] sm:$0xff]   ;;  %v4599_v29 = vld [vmem:[%s5534_s8 + $0x78] sm:$0xff]   ;;  %v4601_v31 = vld [vmem:[%s4888_s19 + $0x8] sm:$0xff]   ;;  %s5546_s8 = sld [smem:[#allocation16_spill]] }
 0x143   : > { %4205 = vmatpush3.bf16.xpose.msra.mxu1 %v1321_v30  ;;  %v4600_v30 = vld [vmem:[%s4888_s19] sm:$0xff]   ;;  %v4602_v32 = vld [vmem:[%s4888_s19 + $0x10] sm:$0xff]  }
 0x144   : > { %4210 = vmatprep.subr.bf16.mxu1 %v4826_v1 }
 0x14a   : > { %4207 = vmatmul.mubr.msk.bf16.vlgmr.msra.gmra.mrb[4].mxu1 %vm1316_vm1, %v1314_v33  ;;  %v4603_v33 = vld [vmem:[%s4888_s19 + $0x18] sm:$0xff]  }
 0x14b   : > { %4212 = vmatprep.mubr.msk.bf16.mxu1 %vm4827_vm0, %v4826_v1 }
 0x15f   : > { %v1308_v55 = vpop.f32.mrb[4].mxu0 }
 0x160   : > { %v4202_v57 = vpop.f32.mrb[5].mxu0  ;;  %v1309_v61 = vadd.f32 %v3694_v59, %v1308_v55 }
 0x161   : > { %v1311_v58 = vpop.f32.mrb[6].mxu0 }
 0x162   : > { %v4203_v60 = vpop.f32.mrb[7].mxu0  ;;  %v1384_v63 = vpack.c.bf16 %v1309_v61, %v1309_v61 }
 0x164   : > { %v1390_v0 = vsel %vm1388_vm3, %v1384_v63, 0 }
 0x165   : > { %4211 = vmatpush3.bf16.msra.mxu1 %v1390_v0 }
 0x166   : > { %4216 = vmatprep.subr.bf16.mxu1 %v4826_v1 }
 0x21d   : > { %v1357_v42 = vpop.f32.mrb[4].mxu1 }
 0x21e   : > { %v1363_v44 = vmul.f32 0.125, %v1357_v42  ;;  %v4208_v45 = vpop.f32.mrb[5].mxu1 }
 0x21f   : > { %v1360_v46 = vpop.f32.mrb[6].mxu1 }
 0x220   : > { %v4209_v47 = vpop.f32.mrb[7].mxu1  ;;  %v1370_v48 = vadd.f32 %v5122_v43, %v1363_v44 }
 0x221   : > { %v3723_v47 = vld [vmem:[%s4863_s25 + $0x1] ss:$0 sm:$0xff] }
 0x222   : > { %v1372_v49 = vsel %vm1371_vm2, %v1370_v48, -inf }
 0x223   : > { %1373 = vmax.xlane.f32.xlu0 %v1372_v49 }
 0x2b0   : > { %v1374_v50 = vpop.xlane.xlu0 %1373 }
 0x2b1   : > { %v1375_v51 = vsub.f32 %v1370_v48, %v1374_v50 }
 0x2b3   : > { %v1376_v52 = vmul.f32 1.442695, %v1375_v51 }
 0x2b5   : > { %4704 = vpow2.f32 %v1376_v52 }
 0x2bf   : > { %v4705_v53 = vpop.eup %4704 }
 0x2c0   : > { %v1378_v54 = vsel %vm1371_vm2, %v4705_v53, 0.0 }
 0x2c1   : > { %1379 = vadd.xlane.f32.xlu0 %v1378_v54  ;;  %v3775_v54 = vld [vmem:[%s4883_s14 + $0x1] ss:$0 sm:$0xff] }
 0x34e   : > { %v1380_v8 = vpop.xlane.xlu0 %1379 }
 0x34f   : > { %4706 = vrcp.f32 %v1380_v8 }
 0x359   : > { %v4707_v9 = vpop.eup %4706 }
 0x35a   : > { %v1382_v10 = vmul.f32 %v4707_v9, %v4705_v53 }
 0x35c   : > { %v1383_v12 = vpack.c.bf16 %v1382_v10, %v1382_v10 }
 0x35e   : > { %4213 = vmatmul.mubr.msk.bf16.vlgmr.msra.gmra.mrb[8].mxu1 %vm1371_vm2, %v1383_v12 }
 0x35f   : > { %4217 = vmatpush3.bf16.msra.mxu1 %v4579_v11  ;;  %4232 = vmatprep.mubr.msk.bf16.mxu1 %vm4827_vm0, %v4826_v1 }
 0x360   : > { %4218 = vmatprep.subr.bf16.mxu1 %v4826_v1 }
 0x363   : > { %4219 = vmatpush3.bf16.msra.mxu1 %v4581_v13 }
 0x364   : > { %4220 = vmatprep.subr.bf16.mxu1 %v4826_v1 }
 0x367   : > { %4221 = vmatpush3.bf16.msra.mxu1 %v4583_v14 }
 0x368   : > { %4222 = vmatprep.subr.bf16.mxu1 %v4826_v1 }
 0x36b   : > { %4223 = vmatpush3.bf16.msra.mxu1 %v4585_v15 }
 0x36c   : > { %4224 = vmatprep.subr.bf16.mxu1 %v4826_v1 }
 0x36f   : > { %4225 = vmatpush3.bf16.msra.mxu1 %v4587_v17 }
 0x370   : > { %4226 = vmatprep.subr.bf16.mxu1 %v4826_v1 }
 0x373   : > { %4227 = vmatpush3.bf16.msra.mxu1 %v4589_v19 }
 0x374   : > { %4228 = vmatprep.subr.bf16.mxu1 %v4826_v1 }
 0x377   : > { %4229 = vmatpush3.bf16.msra.mxu1 %v4590_v20  ;;  %v4604_v20 = vld [vmem:[%s4888_s19 + $0x20] sm:$0xff]  }
 0x378   : > { %4230 = vmatprep.subr.bf16.mxu1 %v4826_v1 }
 0x37b   : > { %4231 = vmatpush3.bf16.msra.mxu1 %v4591_v21  ;;  %v4605_v21 = vld [vmem:[%s4888_s19 + $0x28] sm:$0xff]  }
 0x37c   : > { %4256 = vmatprep.subr.bf16.mxu1 %v4826_v1 }
 0x37e   : > { %4233 = vmatmul.mubr.bf16.vlgmr.msra.gmra.mrb[12].mxu1 %v5083_v18 }
 0x37f   : > { %4257 = vmatpush3.bf16.msra.mxu1 %v4592_v22  ;;  %4272 = vmatprep.mubr.msk.bf16.mxu1 %vm4827_vm0, %v4826_v1  ;;  %v4606_v22 = vld [vmem:[%s4888_s19 + $0x30] sm:$0xff]  }
 0x380   : > { %4258 = vmatprep.subr.bf16.mxu1 %v4826_v1 }
 0x383   : > { %4259 = vmatpush3.bf16.msra.mxu1 %v4593_v23  ;;  %v4607_v23 = vld [vmem:[%s4888_s19 + $0x38] sm:$0xff]  }
 0x384   : > { %4260 = vmatprep.subr.bf16.mxu1 %v4826_v1 }
 0x387   : > { %4261 = vmatpush3.bf16.msra.mxu1 %v4594_v24 }
 0x388   : > { %4262 = vmatprep.subr.bf16.mxu1 %v4826_v1 }
 0x38b   : > { %4263 = vmatpush3.bf16.msra.mxu1 %v4595_v25 }
 0x38c   : > { %4264 = vmatprep.subr.bf16.mxu1 %v4826_v1 }
 0x38f   : > { %4265 = vmatpush3.bf16.msra.mxu1 %v4596_v26 }
 0x390   : > { %4266 = vmatprep.subr.bf16.mxu1 %v4826_v1 }
 0x393   : > { %4267 = vmatpush3.bf16.msra.mxu1 %v4597_v27 }
 0x394   : > { %4268 = vmatprep.subr.bf16.mxu1 %v4826_v1 }
 0x397   : > { %4269 = vmatpush3.bf16.msra.mxu1 %v4598_v28 }
 0x398   : > { %4270 = vmatprep.subr.bf16.mxu1 %v4826_v1 }
 0x39b   : > { %4271 = vmatpush3.bf16.msra.mxu1 %v4599_v29 }
 0x39c   : > { %4300 = vmatprep.subr.bf16.mxu1 %v4826_v1 }
 0x39e   : > { %4273 = vmatmul.mubr.bf16.vlgmr.msra.gmra.mrb[16].mxu1 %v5083_v18  ;;  %v1661_v18 = vpop.f32.mrb[8].mxu0 }
 0x39f   : > { %4301 = vmatpush3.bf16.msra.mxu1 %v4600_v30  ;;  %4308 = vmatprep.mubr.msk.bf16.mxu1 %vm4827_vm0, %v4826_v1  ;;  %v1662_v35 = vadd.f32 %v3749_v34, %v1661_v18  ;;  %v4254_v36 = vpop.f32.mrb[9].mxu0  ;;  %v3804_v30 = vld [vmem:[%s4893_s24] ss:$0 sm:$0xff] }
 0x3a0   : > { %4302 = vmatprep.subr.bf16.mxu1 %v4826_v1  ;;  %v1664_v37 = vpop.f32.mrb[10].mxu0  ;;  %v4608_v36 = vld [vmem:[%s4918_s27] sm:$0xff]  }
 0x3a1   : > { %v1781_v38 = vpack.c.bf16 %v1662_v35, %v1662_v35  ;;  %v4255_v39 = vpop.f32.mrb[11].mxu0  ;;  %v4609_v37 = vld [vmem:[%s4918_s27 + $0x8] sm:$0xff]  }
 0x3a3   : > { %4303 = vmatpush3.bf16.msra.mxu1 %v4601_v31  ;;  %v1786_v40 = vsel %vm1316_vm1, %v1781_v38, 0 }
 0x3a4   : > { %4304 = vmatprep.subr.bf16.mxu1 %v4826_v1  ;;  %4277 = vmatpush3.bf16.xpose.msra.mxu0 %v1786_v40 }
 0x3a5   : > { %4282 = vmatprep.subr.bf16.mxu0 %v4826_v1 }
 0x3a7   : > { %4305 = vmatpush3.bf16.msra.mxu1 %v4602_v32 }
 0x3a8   : > { %4306 = vmatprep.subr.bf16.mxu1 %v4826_v1 }
 0x3ab   : > { %4307 = vmatpush3.bf16.msra.mxu1 %v4603_v33 }
 0x3ac   : > { %4332 = vmatprep.subr.bf16.mxu1 %v4826_v1 }
 0x431   : > { %v1426_v41 = vpop.f32.mrb[8].mxu1 }
 0x432   : > { %v1432_v42 = vpack.c.bf16 %v1426_v41, %v1426_v41  ;;  %v4214_v44 = vpop.f32.mrb[9].mxu1  ;;  %v4610_v41 = vld [vmem:[%s4918_s27 + $0x10] sm:$0xff]  }
 0x433   : > { %v1429_v45 = vpop.f32.mrb[10].mxu1  ;;  %v4612_v44 = vld [vmem:[%s5533_s12] sm:$0xff]  }
 0x434   : > { %v4215_v46 = vpop.f32.mrb[11].mxu1  ;;  %4309 = vmatmul.mubr.msk.bf16.vlgmr.msra.gmra.mrb[20].mxu1 %vm1316_vm1, %v1432_v42  ;;  %v4611_v42 = vld [vmem:[%s4918_s27 + $0x18] sm:$0xff]   ;;  %v4613_v45 = vld [vmem:[%s4918_s27 + $0x20] sm:$0xff]  }
 0x435   : > { %4348 = vmatprep.mubr.msk.bf16.mxu1 %vm4827_vm0, %v4826_v1  ;;  %4333 = vmatpush3.bf16.msra.mxu1 %v4608_v36  ;;  %v4614_v46 = vld [vmem:[%s5533_s12 + $0x8] sm:$0xff]  }
 0x436   : > { %4334 = vmatprep.subr.bf16.mxu1 %v4826_v1 }
 0x439   : > { %4335 = vmatpush3.bf16.msra.mxu1 %v4609_v37 }
 0x43a   : > { %4336 = vmatprep.subr.bf16.mxu1 %v4826_v1 }
 0x43d   : > { %4337 = vmatpush3.bf16.msra.mxu1 %v4610_v41 }
 0x43e   : > { %4338 = vmatprep.subr.bf16.mxu1 %v4826_v1 }
 0x441   : > { %4339 = vmatpush3.bf16.msra.mxu1 %v4611_v42 }
 0x442   : > { %4340 = vmatprep.subr.bf16.mxu1 %v4826_v1 }
 0x445   : > { %4341 = vmatpush3.bf16.msra.mxu1 %v4613_v45 }
 0x446   : > { %4342 = vmatprep.subr.bf16.mxu1 %v4826_v1 }
 0x451   : > { %v1548_v48 = vpop.f32.mrb[12].mxu1 }
 0x452   : > { %v1549_v49 = vadd.f32 %v3723_v47, %v1548_v48  ;;  %v4234_v50 = vpop.f32.mrb[13].mxu1  ;;  %v4615_v47 = vld [vmem:[%s4918_s27 + $0x28] sm:$0xff]   ;;  %v4616_v48 = vld [vmem:[%s5533_s12 + $0x10] sm:$0xff]  }
 0x453   : > { %v1551_v51 = vpop.f32.mrb[14].mxu1  ;;  %4343 = vmatpush3.bf16.msra.mxu1 %v4615_v47  ;;  %v4618_v50 = vld [vmem:[%s5533_s12 + $0x18] sm:$0xff]  }
 0x454   : > { %v1780_v52 = vpack.c.bf16 %v1549_v49, %v1549_v49  ;;  %v4235_v53 = vpop.f32.mrb[15].mxu1  ;;  %4344 = vmatprep.subr.bf16.mxu1 %v4826_v1  ;;  %v4617_v49 = vld [vmem:[%s4918_s27 + $0x30] sm:$0xff]   ;;  %v4619_v51 = vld [vmem:[%s4918_s27 + $0x38] sm:$0xff]  }
 0x455   : > { %v976_v53 = vld [vmem:[%s967_s28] sm:$0xff] }
 0x456   : > { %4279 = vmatmul.mubr.msk.bf16.vlgmr.msra.gmra.mrb[12].mxu0 %vm1316_vm1, %v1780_v52  ;;  %v4620_v52 = vld [vmem:[%s5533_s12 + $0x20] sm:$0xff]  }
 0x457   : > { %4284 = vmatprep.mubr.msk.bf16.mxu0 %vm4827_vm0, %v4826_v1  ;;  %4345 = vmatpush3.bf16.msra.mxu1 %v4617_v49 }
 0x458   : > { %4346 = vmatprep.subr.bf16.mxu1 %v4826_v1 }
 0x45b   : > { %4347 = vmatpush3.bf16.msra.mxu1 %v4619_v51  ;;  %v4632_v51 = vld [vmem:[%s4918_s27 + $0x40] sm:$0xff]  }
 0x45c   : > { %4372 = vmatprep.subr.bf16.mxu1 %v4826_v1 }
 0x471   : > { %v1774_v55 = vpop.f32.mrb[16].mxu1 }
 0x472   : > { %v1775_v56 = vadd.f32 %v3775_v54, %v1774_v55  ;;  %v4274_v57 = vpop.f32.mrb[17].mxu1  ;;  %v977_v54 = vld [vmem:[%s967_s28 + $0x8] sm:$0xff]  ;;  %s5543_s28 = sld [smem:[#allocation13_spill]] }
 0x473   : > { %v1777_v58 = vpop.f32.mrb[18].mxu1  ;;  %v5260_v55 = vpack.c.bf16 %v977_v54, %v976_v53  ;;  %v4622_v57 = vld [vmem:[%s5533_s12 + $0x30] sm:$0xff]  }
 0x474   : > { %v1842_v59 = vpack.c.bf16 %v1775_v56, %v1775_v56  ;;  %v4275_v60 = vpop.f32.mrb[19].mxu1  ;;  %v4621_v56 = vld [vmem:[%s5533_s12 + $0x28] sm:$0xff]   ;;  %v4623_v58 = vld [vmem:[%s5533_s12 + $0x38] sm:$0xff]  }
 0x475   : > { %4349 = vmatmul.mubr.bf16.vlgmr.msra.gmra.mrb[24].mxu1 %v5260_v55 }
 0x476   : > { %v1847_v61 = vsel %vm1388_vm3, %v1842_v59, 0  ;;  %4374 = vmatprep.mubr.msk.bf16.mxu1 %vm4827_vm0, %v4826_v1 }
 0x477   : > { %4283 = vmatpush3.bf16.msra.mxu0 %v1847_v61 }
 0x478   : > { %4288 = vmatprep.subr.bf16.mxu0 %v4826_v1 }
 0x507   : > { %v2027_v62 = vpop.f32.mrb[20].mxu1 }
 0x508   : > { %v4310_v63 = vpop.f32.mrb[21].mxu1 }
 0x509   : > { %v2030_v0 = vpop.f32.mrb[22].mxu1 }
 0x50a   : > { %v4311_v2 = vpop.f32.mrb[23].mxu1 }
 0x529   : > { %v1822_v3 = vpop.f32.mrb[12].mxu0 }
 0x52a   : > { %v1828_v4 = vmul.f32 0.125, %v1822_v3  ;;  %v4280_v5 = vpop.f32.mrb[13].mxu0 }
 0x52b   : > { %v1825_v6 = vpop.f32.mrb[14].mxu0 }
 0x52c   : > { %v4281_v7 = vpop.f32.mrb[15].mxu0  ;;  %v1829_v8 = vadd.f32 %v5122_v43, %v1828_v4  ;;  %v3805_v4 = vld [vmem:[%s4898_s30] ss:$0 sm:$0xff] }
 0x52d   : > { %v3806_v7 = vld [vmem:[%s5541_s1] ss:$0 sm:$0xff]  ;;  %s5545_s1 = sld [smem:[#allocation8_spill]] }
 0x52e   : > { %v1830_v9 = vsel %vm1371_vm2, %v1829_v8, -inf }
 0x52f   : > { %1831 = vmax.xlane.f32.xlu1 %v1830_v9 }
 0x533   : > { %s973_s5 = scalar_lea.vmem %s5545_s1, %s5059_s11  ;;  %s5548_s11 = sld [smem:[#allocation18_spill]] }
 0x534   : > { %v5313_v36 = vld [vmem:[%s973_s5] ss:$0 sm:$0xff]  ;;  %s5547_s5 = sld [smem:[#allocation17_spill]]  ;;  %s5549_s1 = sld [smem:[#allocation21_spill]] }
 0x5bc   : > { %v1832_v10 = vpop.xlane.xlu1 %1831 }
 0x5bd   : > { %v1833_v11 = vsub.f32 %v1829_v8, %v1832_v10 }
 0x5bf   : > { %v1834_v12 = vmul.f32 1.442695, %v1833_v11  ;;  %v3816_v11 = vld [vmem:[%s5542_s23] ss:$0 sm:$0xff] }
 0x5c1   : > { %4708 = vpow2.f32 %v1834_v12  ;;  %v2295_v12 = vpop.f32.mrb[24].mxu1 }
 0x5cb   : > { %v4709_v13 = vpop.eup %4708 }
 0x5cc   : > { %v1836_v14 = vsel %vm1371_vm2, %v4709_v13, 0.0 }
 0x5cd   : > { %1837 = vadd.xlane.f32.xlu1 %v1836_v14  ;;  %v4350_v14 = vpop.f32.mrb[25].mxu1 }
 0x5ce   : > { %v4646_v14 = vld [vmem:[%s5533_s12 + $0x70] sm:$0xff]  }
 0x65a   : > { %v1838_v15 = vpop.xlane.xlu1 %1837 }
 0x65b   : > { %4710 = vrcp.f32 %v1838_v15  ;;  %v2298_v15 = vpop.f32.mrb[26].mxu1 }
 0x665   : > { %v4711_v17 = vpop.eup %4710 }
 0x666   : > { %v1840_v19 = vmul.f32 %v4711_v17, %v4709_v13  ;;  %v2296_v13 = vadd.f32 %v3816_v11, %v2295_v12  ;;  %v2299_v17 = vadd.f32 %v3816_v11, %v2298_v15  ;;  %v4642_v11 = vld [vmem:[%s5533_s12 + $0x58] sm:$0xff]   ;;  %v4644_v12 = vld [vmem:[%s5533_s12 + $0x60] sm:$0xff]  }
 0x667   : > { %v4647_v15 = vld [vmem:[%s5533_s12 + $0x78] sm:$0xff]  }
 0x668   : > { %v1841_v43 = vpack.c.bf16 %v1840_v19, %v1840_v19  ;;  %v4351_v19 = vpop.f32.mrb[27].mxu1 }
 0x669   : > { %v4649_v19 = vld [vmem:[%s5544_s3 + $0x48] sm:$0xff]  }
 0x66a   : > { %4285 = vmatmul.mubr.msk.bf16.vlgmr.msra.gmra.mrb[16].mxu0 %vm1371_vm2, %v1841_v43 }
 0x66b   : > { %4289 = vmatpush3.bf16.msra.mxu0 %v4604_v20  ;;  %4296 = vmatprep.mubr.msk.bf16.mxu0 %vm4827_vm0, %v4826_v1  ;;  %v2415_v20 = vpack.c.bf16 %v2299_v17, %v2296_v13  ;;  %v4645_v13 = vld [vmem:[%s5533_s12 + $0x68] sm:$0xff]   ;;  %v4648_v17 = vld [vmem:[%s5544_s3 + $0x40] sm:$0xff]  }
 0x66c   : > { %4290 = vmatprep.subr.bf16.mxu0 %v4826_v1 }
 0x66d   : > { %v2420_v43 = vsel %vm1316_vm1, %v2415_v20, 0  ;;  %v4650_v20 = vld [vmem:[%s5544_s3 + $0x50] sm:$0xff]  }
 0x66e   : > { %4373 = vmatpush3.bf16.xpose.msra.mxu1 %v2420_v43  ;;  %v4651_v43 = vld [vmem:[%s5544_s3 + $0x58] sm:$0xff]  }
 0x66f   : > { %4291 = vmatpush3.bf16.msra.mxu0 %v4605_v21  ;;  %4378 = vmatprep.subr.bf16.mxu1 %v4826_v1  ;;  %v3807_v21 = vld [vmem:[%s5543_s28] ss:$0 sm:$0xff] }
 0x670   : > { %4292 = vmatprep.subr.bf16.mxu0 %v4826_v1 }
 0x673   : > { %4293 = vmatpush3.bf16.msra.mxu0 %v4606_v22 }
 0x674   : > { %4294 = vmatprep.subr.bf16.mxu0 %v4826_v1 }
 0x677   : > { %4295 = vmatpush3.bf16.msra.mxu0 %v4607_v23 }
 0x678   : > { %4312 = vmatprep.subr.bf16.mxu0 %v4826_v1 }
 0x73d   : > { %v1883_v24 = vpop.f32.mrb[16].mxu0 }
 0x73e   : > { %v1889_v25 = vpack.c.bf16 %v1883_v24, %v1883_v24  ;;  %v4286_v26 = vpop.f32.mrb[17].mxu0 }
 0x73f   : > { %v1886_v27 = vpop.f32.mrb[18].mxu0 }
 0x740   : > { %v4287_v28 = vpop.f32.mrb[19].mxu0  ;;  %4297 = vmatmul.mubr.msk.bf16.vlgmr.msra.gmra.mrb[20].mxu0 %vm1316_vm1, %v1889_v25 }
 0x741   : > { %4328 = vmatprep.mubr.msk.bf16.mxu0 %vm4827_vm0, %v4826_v1  ;;  %4313 = vmatpush3.bf16.msra.mxu0 %v4612_v44  ;;  %v4624_v28 = vld [vmem:[%s5544_s3] sm:$0xff]  }
 0x742   : > { %4314 = vmatprep.subr.bf16.mxu0 %v4826_v1 }
 0x745   : > { %4315 = vmatpush3.bf16.msra.mxu0 %v4614_v46 }
 0x746   : > { %4316 = vmatprep.subr.bf16.mxu0 %v4826_v1 }
 0x749   : > { %4317 = vmatpush3.bf16.msra.mxu0 %v4616_v48 }
 0x74a   : > { %4318 = vmatprep.subr.bf16.mxu0 %v4826_v1 }
 0x74d   : > { %4319 = vmatpush3.bf16.msra.mxu0 %v4618_v50  ;;  %v3825_v50 = vld [vmem:[%s5546_s8] ss:$0 sm:$0xff] }
 0x74e   : > { %4320 = vmatprep.subr.bf16.mxu0 %v4826_v1 }
 0x751   : > { %4321 = vmatpush3.bf16.msra.mxu0 %v4620_v52 }
 0x752   : > { %4322 = vmatprep.subr.bf16.mxu0 %v4826_v1 }
 0x755   : > { %4323 = vmatpush3.bf16.msra.mxu0 %v4621_v56  ;;  %v4633_v56 = vld [vmem:[%s4918_s27 + $0x48] sm:$0xff]  }
 0x756   : > { %4324 = vmatprep.subr.bf16.mxu0 %v4826_v1 }
 0x759   : > { %4325 = vmatpush3.bf16.msra.mxu0 %v4622_v57 }
 0x75a   : > { %4326 = vmatprep.subr.bf16.mxu0 %v4826_v1 }
 0x75d   : > { %4327 = vmatpush3.bf16.msra.mxu0 %v4623_v58 }
 0x75e   : > { %4352 = vmatprep.subr.bf16.mxu0 %v4826_v1 }
 0x813   : > { %v1960_v29 = vpop.f32.mrb[20].mxu0 }
 0x814   : > { %v2028_v31 = vadd.f32 %v2027_v62, %v1960_v29  ;;  %v4298_v32 = vpop.f32.mrb[21].mxu0  ;;  %v4625_v29 = vld [vmem:[%s5544_s3 + $0x8] sm:$0xff]  }
 0x815   : > { %v1963_v33 = vpop.f32.mrb[22].mxu0  ;;  %v4628_v32 = vld [vmem:[%s5544_s3 + $0x20] sm:$0xff]  }
 0x816   : > { %v2040_v34 = vadd.f32 %v3804_v30, %v2028_v31  ;;  %v4299_v18 = vpop.f32.mrb[23].mxu0  ;;  %v4626_v30 = vld [vmem:[%s5544_s3 + $0x10] sm:$0xff]   ;;  %v4627_v31 = vld [vmem:[%s5544_s3 + $0x18] sm:$0xff]   ;;  %v4629_v33 = vld [vmem:[%s5544_s3 + $0x28] sm:$0xff]  }
 0x817   : > { %v4631_v18 = vld [vmem:[%s5544_s3 + $0x38] sm:$0xff]  }
 0x818   : > { %v2041_v35 = vadd.f32 %v2040_v34, %v5076_v16  ;;  %v4630_v34 = vld [vmem:[%s5544_s3 + $0x30] sm:$0xff]  }
 0x81a   : > { %2044 = vadd.xlane.f32.xlu0 %v2041_v35 }
 0x8a7   : > { %v2045_v38 = vpop.xlane.xlu0 %2044 }
 0x8a8   : > { %v2047_v39 = vmul.f32 0.0078125, %v2045_v38 }
 0x8aa   : > { %v5234_v40 = vsub.f32 %v2041_v35, %v2047_v39 }
 0x8ac   : > { %v2049_v16 = vmul.f32 %v5234_v40, %v5234_v40  ;;  %v2066_v5 = vmul.f32 %v3805_v4, %v5234_v40 }
 0x8ae   : > { %2050 = vadd.xlane.f32.xlu1 %v2049_v16 }
 0x93b   : > { %v2051_v59 = vpop.xlane.xlu1 %2050 }
 0x93c   : > { %v2052_v60 = vmul.f32 0.007874016, %v2051_v59  ;;  %v4634_v59 = vld [vmem:[%s4918_s27 + $0x50] sm:$0xff]  }
 0x93e   : > { %4712 = vrsqrt.f32 %v2052_v60  ;;  %vm2055_vm4 = vcmp.eq.f32.partialorder %v2052_v60, inf  ;;  %v2058_v63 = vand.u32 2147483648, %v2052_v60  ;;  %vm2057_vm5 = vcmp.eq.f32.partialorder %v2052_v60, 0.0 }
 0x948   : > { %v4713_v61 = vpop.eup %4712 }
 0x949   : > { %v2054_v62 = vmul.f32 %v4713_v61, %v2052_v60  ;;  %v4637_v61 = vld [vmem:[%s4918_s27 + $0x60] sm:$0xff]  }
 0x94b   : > { %v2056_v0 = vsel %vm2055_vm4, %v2052_v60, %v2054_v62  ;;  %v4635_v60 = vld [vmem:[%s4918_s27 + $0x58] sm:$0xff]   ;;  %v4639_v62 = vld [vmem:[%s4918_s27 + $0x68] sm:$0xff]  }
 0x94c   : > { %v2059_v2 = vsel %vm2057_vm5, %v2058_v63, %v2056_v0  ;;  %v4641_v63 = vld [vmem:[%s4918_s27 + $0x70] sm:$0xff]   ;;  %v4643_v0 = vld [vmem:[%s4918_s27 + $0x78] sm:$0xff]  }
 0x94d   : > { %v2067_v3 = vadd.f32 1e-06, %v2059_v2 }
 0x94f   : > { %4714 = vrcp.f32 %v2067_v3 }
 0x959   : > { %v4715_v6 = vpop.eup %4714 }
 0x95a   : > { %v2069_v8 = vmul.f32 %v4715_v6, %v2066_v5  ;;  %v4636_v5 = vld [vmem:[%s5533_s12 + $0x40] sm:$0xff]  }
 0x95c   : > { %v5276_v9 = vadd.f32 %v3806_v7, %v2069_v8  ;;  %v4638_v7 = vld [vmem:[%s5533_s12 + $0x48] sm:$0xff]   ;;  %v4640_v8 = vld [vmem:[%s5533_s12 + $0x50] sm:$0xff]  }
 0x95e   : > { %v5280_v10 = vpack.c.bf16 %v5276_v9, %v5276_v9 }
 0x960   : > { %4329 = vmatmul.mubr.bf16.vlgmr.msra.gmra.mrb[24].mxu0 %v5280_v10 }
 0x961   : > { %4368 = vmatprep.mubr.msk.bf16.mxu0 %vm4827_vm0, %v4826_v1  ;;  %4353 = vmatpush3.bf16.msra.mxu0 %v4624_v28  ;;  %v3880_v28 = vld [vmem:[%s5542_s23 + $0x1] ss:$0 sm:$0xff] }
 0x962   : > { %4354 = vmatprep.subr.bf16.mxu0 %v4826_v1 }
 0x965   : > { %4355 = vmatpush3.bf16.msra.mxu0 %v4625_v29 }
 0x966   : > { %4356 = vmatprep.subr.bf16.mxu0 %v4826_v1 }
 0x969   : > { %4357 = vmatpush3.bf16.msra.mxu0 %v4626_v30 }
 0x96a   : > { %4358 = vmatprep.subr.bf16.mxu0 %v4826_v1 }
 0x96d   : > { %4359 = vmatpush3.bf16.msra.mxu0 %v4627_v31 }
 0x96e   : > { %4360 = vmatprep.subr.bf16.mxu0 %v4826_v1 }
 0x971   : > { %4361 = vmatpush3.bf16.msra.mxu0 %v4628_v32 }
 0x972   : > { %4362 = vmatprep.subr.bf16.mxu0 %v4826_v1 }
 0x975   : > { %4363 = vmatpush3.bf16.msra.mxu0 %v4629_v33 }
 0x976   : > { %4364 = vmatprep.subr.bf16.mxu0 %v4826_v1 }
 0x979   : > { %4365 = vmatpush3.bf16.msra.mxu0 %v4630_v34 }
 0x97a   : > { %4366 = vmatprep.subr.bf16.mxu0 %v4826_v1 }
 0x97d   : > { %4367 = vmatpush3.bf16.msra.mxu0 %v4631_v18 }
 0x97e   : > { %4404 = vmatprep.subr.bf16.mxu0 %v4826_v1 }
 0x980   : > { %4369 = vmatmul.mubr.bf16.vlgmr.msra.gmra.mrb[28].mxu0 %v5260_v55 }
 0x981   : > { %4420 = vmatprep.mubr.msk.bf16.mxu0 %vm4827_vm0, %v4826_v1  ;;  %4405 = vmatpush3.bf16.msra.mxu0 %v4632_v51 }
 0x982   : > { %4406 = vmatprep.subr.bf16.mxu0 %v4826_v1 }
 0x985   : > { %4407 = vmatpush3.bf16.msra.mxu0 %v4633_v56 }
 0x986   : > { %4408 = vmatprep.subr.bf16.mxu0 %v4826_v1 }
 0x989   : > { %4409 = vmatpush3.bf16.msra.mxu0 %v4634_v59 }
 0x98a   : > { %4410 = vmatprep.subr.bf16.mxu0 %v4826_v1 }
 0x98d   : > { %4411 = vmatpush3.bf16.msra.mxu0 %v4635_v60 }
 0x98e   : > { %4412 = vmatprep.subr.bf16.mxu0 %v4826_v1 }
 0x991   : > { %4413 = vmatpush3.bf16.msra.mxu0 %v4637_v61 }
 0x992   : > { %4414 = vmatprep.subr.bf16.mxu0 %v4826_v1 }
 0x995   : > { %4415 = vmatpush3.bf16.msra.mxu0 %v4639_v62 }
 0x996   : > { %4416 = vmatprep.subr.bf16.mxu0 %v4826_v1 }
 0x999   : > { %4417 = vmatpush3.bf16.msra.mxu0 %v4641_v63 }
 0x99a   : > { %4418 = vmatprep.subr.bf16.mxu0 %v4826_v1 }
 0x99d   : > { %4419 = vmatpush3.bf16.msra.mxu0 %v4643_v0 }
 0x99e   : > { %4444 = vmatprep.subr.bf16.mxu0 %v4826_v1 }
 0x9a0   : > { %4421 = vmatmul.mubr.bf16.vlgmr.msra.gmra.mrb[32].mxu0 %v5260_v55 }
 0x9a1   : > { %4446 = vmatprep.mubr.msk.bf16.mxu0 %vm4827_vm0, %v4826_v1 }
 0xa33   : > { %v2184_v22 = vpop.f32.mrb[24].mxu0 }
 0xa34   : > { %v2185_v23 = vadd.f32 %v3807_v21, %v2184_v22  ;;  %v4330_v24 = vpop.f32.mrb[25].mxu0  ;;  %v4653_v21 = vld [vmem:[%s5544_s3 + $0x68] sm:$0xff]   ;;  %v4654_v22 = vld [vmem:[%s5544_s3 + $0x70] sm:$0xff]  }
 0xa35   : > { %v2187_v25 = vpop.f32.mrb[26].mxu0  ;;  %v4656_v24 = vld [vmem:[%s5547_s5] sm:$0xff]  }
 0xa36   : > { %v2414_v26 = vpack.c.bf16 %v2185_v23, %v2185_v23  ;;  %v4331_v27 = vpop.f32.mrb[27].mxu0  ;;  %v4655_v23 = vld [vmem:[%s5544_s3 + $0x78] sm:$0xff]   ;;  %v4657_v25 = vld [vmem:[%s5547_s5 + $0x8] sm:$0xff]  }
 0xa37   : > { %v4659_v27 = vld [vmem:[%s5547_s5 + $0x18] sm:$0xff]  }
 0xa38   : > { %4375 = vmatmul.mubr.msk.bf16.vlgmr.msra.gmra.mrb[28].mxu1 %vm1316_vm1, %v2414_v26  ;;  %v4658_v26 = vld [vmem:[%s5547_s5 + $0x10] sm:$0xff]  }
 0xa39   : > { %4380 = vmatprep.mubr.msk.bf16.mxu1 %vm4827_vm0, %v4826_v1 }
 0xa53   : > { %v2407_v42 = vpop.f32.mrb[28].mxu0 }
 0xa54   : > { %v4370_v44 = vpop.f32.mrb[29].mxu0  ;;  %v2408_v52 = vadd.f32 %v3825_v50, %v2407_v42 }
 0xa55   : > { %v2410_v53 = vpop.f32.mrb[30].mxu0 }
 0xa56   : > { %v4371_v54 = vpop.f32.mrb[31].mxu0  ;;  %v2411_v57 = vadd.f32 %v3825_v50, %v2410_v53 }
 0xa58   : > { %v2483_v58 = vpack.c.bf16 %v2411_v57, %v2408_v52 }
 0xa5a   : > { %4379 = vmatpush3.bf16.msra.mxu1 %v2483_v58 }
 0xa5b   : > { %4384 = vmatprep.subr.bf16.mxu1 %v4826_v1 }
 0xa73   : > { %v2756_v29 = vpop.f32.mrb[32].mxu0 }
 0xa74   : > { %v4422_v30 = vpop.f32.mrb[33].mxu0 }
 0xa75   : > { %v2759_v31 = vpop.f32.mrb[34].mxu0 }
 0xa76   : > { %v2760_v32 = vadd.f32 %v3880_v28, %v2759_v31  ;;  %v4423_v33 = vpop.f32.mrb[35].mxu0 }
 0xb0b   : > { %v2456_v35 = vpop.f32.mrb[28].mxu1 }
 0xb0c   : > { %v2462_v37 = vmul.f32 0.125, %v2456_v35  ;;  %v4376_v38 = vpop.f32.mrb[29].mxu1 }
 0xb0d   : > { %v2459_v39 = vpop.f32.mrb[30].mxu1 }
 0xb0e   : > { %v4377_v40 = vpop.f32.mrb[31].mxu1  ;;  %v2469_v16 = vadd.f32 %v5313_v36, %v2462_v37 }
 0xb10   : > { %v2471_v41 = vsel %vm2470_vm6, %v2469_v16, -inf }
 0xb11   : > { %2472 = vmax.xlane.f32.xlu0 %v2471_v41 }
 0xb9e   : > { %v2473_v45 = vpop.xlane.xlu0 %2472 }
 0xb9f   : > { %v2474_v46 = vsub.f32 %v2469_v16, %v2473_v45  ;;  %v3854_v16 = vld [vmem:[%s5543_s28 + $0x1] ss:$0 sm:$0xff] }
 0xba1   : > { %v2475_v47 = vmul.f32 1.442695, %v2474_v46 }
 0xba3   : > { %4716 = vpow2.f32 %v2475_v47 }
 0xbad   : > { %v4717_v48 = vpop.eup %4716 }
 0xbae   : > { %v2477_v49 = vsel %vm2470_vm6, %v4717_v48, 0.0 }
 0xbaf   : > { %2478 = vadd.xlane.f32.xlu1 %v2477_v49 }
 0xc3c   : > { %v2479_v2 = vpop.xlane.xlu1 %2478 }
 0xc3d   : > { %4718 = vrcp.f32 %v2479_v2 }
 0xc47   : > { %v4719_v3 = vpop.eup %4718 }
 0xc48   : > { %v2481_v4 = vmul.f32 %v4719_v3, %v4717_v48  ;;  %v3906_v48 = vld [vmem:[%s5546_s8 + $0x1] ss:$0 sm:$0xff] }
 0xc4a   : > { %v2482_v6 = vpack.c.bf16 %v2481_v4, %v2481_v4 }
 0xc4c   : > { %4381 = vmatmul.mubr.msk.bf16.vlgmr.msra.gmra.mrb[32].mxu1 %vm2470_vm6, %v2482_v6 }
 0xc4d   : > { %4385 = vmatpush3.bf16.msra.mxu1 %v4636_v5  ;;  %4400 = vmatprep.mubr.msk.bf16.mxu1 %vm4827_vm0, %v4826_v1 }
 0xc4e   : > { %4386 = vmatprep.subr.bf16.mxu1 %v4826_v1 }
 0xc51   : > { %4387 = vmatpush3.bf16.msra.mxu1 %v4638_v7 }
 0xc52   : > { %4388 = vmatprep.subr.bf16.mxu1 %v4826_v1 }
 0xc55   : > { %4389 = vmatpush3.bf16.msra.mxu1 %v4640_v8 }
 0xc56   : > { %4390 = vmatprep.subr.bf16.mxu1 %v4826_v1 }
 0xc59   : > { %4391 = vmatpush3.bf16.msra.mxu1 %v4642_v11 }
 0xc5a   : > { %4392 = vmatprep.subr.bf16.mxu1 %v4826_v1 }
 0xc5d   : > { %4393 = vmatpush3.bf16.msra.mxu1 %v4644_v12 }
 0xc5e   : > { %4394 = vmatprep.subr.bf16.mxu1 %v4826_v1 }
 0xc61   : > { %4395 = vmatpush3.bf16.msra.mxu1 %v4645_v13 }
 0xc62   : > { %4396 = vmatprep.subr.bf16.mxu1 %v4826_v1 }
 0xc65   : > { %4397 = vmatpush3.bf16.msra.mxu1 %v4646_v14 }
 0xc66   : > { %4398 = vmatprep.subr.bf16.mxu1 %v4826_v1 }
 0xc69   : > { %4399 = vmatpush3.bf16.msra.mxu1 %v4647_v15  ;;  %v4660_v15 = vld [vmem:[%s5547_s5 + $0x20] sm:$0xff]  }
 0xc6a   : > { %4424 = vmatprep.subr.bf16.mxu1 %v4826_v1 }
 0xc6c   : > { %4401 = vmatmul.mubr.bf16.vlgmr.msra.gmra.mrb[36].mxu1 %v5280_v10  ;;  %v4652_v10 = vld [vmem:[%s5544_s3 + $0x60] sm:$0xff]   ;;  %s5552_s3 = sld [smem:[#allocation20_spill]] }
 0xc6d   : > { %4425 = vmatpush3.bf16.msra.mxu1 %v4648_v17  ;;  %4440 = vmatprep.mubr.msk.bf16.mxu1 %vm4827_vm0, %v4826_v1  ;;  %v4661_v17 = vld [vmem:[%s5547_s5 + $0x28] sm:$0xff]  }
 0xc6e   : > { %4426 = vmatprep.subr.bf16.mxu1 %v4826_v1 }
 0xc71   : > { %4427 = vmatpush3.bf16.msra.mxu1 %v4649_v19  ;;  %v4662_v19 = vld [vmem:[%s5547_s5 + $0x30] sm:$0xff]  }
 0xc72   : > { %4428 = vmatprep.subr.bf16.mxu1 %v4826_v1 }
 0xc75   : > { %4429 = vmatpush3.bf16.msra.mxu1 %v4650_v20  ;;  %v4663_v20 = vld [vmem:[%s5547_s5 + $0x38] sm:$0xff]   ;;  %s5553_s5 = sld [smem:[#allocation22_spill]] }
 0xc76   : > { %4430 = vmatprep.subr.bf16.mxu1 %v4826_v1 }
 0xc79   : > { %4431 = vmatpush3.bf16.msra.mxu1 %v4651_v43 }
 0xc7a   : > { %4432 = vmatprep.subr.bf16.mxu1 %v4826_v1 }
 0xc7d   : > { %4433 = vmatpush3.bf16.msra.mxu1 %v4652_v10 }
 0xc7e   : > { %4434 = vmatprep.subr.bf16.mxu1 %v4826_v1 }
 0xc81   : > { %4435 = vmatpush3.bf16.msra.mxu1 %v4653_v21 }
 0xc82   : > { %4436 = vmatprep.subr.bf16.mxu1 %v4826_v1 }
 0xc85   : > { %4437 = vmatpush3.bf16.msra.mxu1 %v4654_v22 }
 0xc86   : > { %4438 = vmatprep.subr.bf16.mxu1 %v4826_v1 }
 0xc89   : > { %4439 = vmatpush3.bf16.msra.mxu1 %v4655_v23 }
 0xc8a   : > { %4468 = vmatprep.subr.bf16.mxu1 %v4826_v1 }
 0xc8c   : > { %4441 = vmatmul.mubr.bf16.vlgmr.msra.gmra.mrb[40].mxu1 %v5260_v55  ;;  %v2757_v55 = vadd.f32 %v3880_v28, %v2756_v29 }
 0xc8d   : > { %4469 = vmatpush3.bf16.msra.mxu1 %v4656_v24  ;;  %4476 = vmatprep.mubr.msk.bf16.mxu1 %vm4827_vm0, %v4826_v1 }
 0xc8e   : > { %4470 = vmatprep.subr.bf16.mxu1 %v4826_v1  ;;  %v2878_v34 = vpack.c.bf16 %v2760_v32, %v2757_v55 }
 0xc90   : > { %v2883_v18 = vsel %vm1316_vm1, %v2878_v34, 0  ;;  %v4666_v34 = vld [vmem:[%s5549_s1 + $0x4] ss:$8 sps:$4 sm:$0xff]  }
 0xc91   : > { %4471 = vmatpush3.bf16.msra.mxu1 %v4657_v25  ;;  %4445 = vmatpush3.bf16.xpose.msra.mxu0 %v2883_v18  ;;  %v3935_v25 = vld [vmem:[%s5548_s11] ss:$0 sm:$0xff]  ;;  %s5550_s11 = sld [smem:[#allocation23_spill]] }
 0xc92   : > { %4472 = vmatprep.subr.bf16.mxu1 %v4826_v1  ;;  %4450 = vmatprep.subr.bf16.mxu0 %v4826_v1  ;;  %v4664_v18 = vld [vmem:[%s5549_s1] ss:$8 sps:$4 sm:$0xff]  }
 0xc95   : > { %4473 = vmatpush3.bf16.msra.mxu1 %v4658_v26 }
 0xc96   : > { %4474 = vmatprep.subr.bf16.mxu1 %v4826_v1 }
 0xc99   : > { %4475 = vmatpush3.bf16.msra.mxu1 %v4659_v27 }
 0xd1f   : > { %v2521_v35 = vpop.f32.mrb[32].mxu1 }
 0xd20   : > { %v2527_v37 = vpack.c.bf16 %v2521_v35, %v2521_v35  ;;  %v4382_v38 = vpop.f32.mrb[33].mxu1  ;;  %v4667_v35 = vld [vmem:[%s5549_s1 + $0x10] ss:$8 sps:$4 sm:$0xff]  }
 0xd21   : > { %v2524_v39 = vpop.f32.mrb[34].mxu1  ;;  %v4670_v38 = vld [vmem:[%s5549_s1 + $0x20] ss:$8 sps:$4 sm:$0xff]  }
 0xd22   : > { %v4383_v40 = vpop.f32.mrb[35].mxu1  ;;  %4477 = vmatmul.mubr.msk.bf16.vlgmr.msra.gmra.mrb[44].mxu1 %vm1316_vm1, %v2527_v37  ;;  %v4672_v37 = vld [vmem:[%s5549_s1 + $0x24] ss:$8 sps:$4 sm:$0xff]   ;;  %v4675_v39 = vld [vmem:[%s5549_s1 + $0x34] ss:$8 sps:$4 sm:$0xff]  }
 0xd23   : > { %v4673_v40 = vld [vmem:[%s5549_s1 + $0x30] ss:$8 sps:$4 sm:$0xff]  }
 0xd3f   : > { %v2643_v41 = vpop.f32.mrb[36].mxu1 }
 0xd40   : > { %v2644_v42 = vadd.f32 %v3854_v16, %v2643_v41  ;;  %v4402_v44 = vpop.f32.mrb[37].mxu1  ;;  %v4678_v16 = vld [vmem:[%s5549_s1 + $0x44] ss:$8 sps:$4 sm:$0xff]   ;;  %v4676_v41 = vld [vmem:[%s5549_s1 + $0x40] ss:$8 sps:$4 sm:$0xff]  }
 0xd41   : > { %v2646_v45 = vpop.f32.mrb[38].mxu1  ;;  %v4679_v44 = vld [vmem:[%s5549_s1 + $0x50] ss:$8 sps:$4 sm:$0xff]  }
 0xd42   : > { %v2877_v46 = vpack.c.bf16 %v2644_v42, %v2644_v42  ;;  %v4403_v47 = vpop.f32.mrb[39].mxu1  ;;  %v4681_v42 = vld [vmem:[%s5549_s1 + $0x54] ss:$8 sps:$4 sm:$0xff]   ;;  %v4684_v45 = vld [vmem:[%s5549_s1 + $0x64] ss:$8 sps:$4 sm:$0xff]  }
 0xd43   : > { %v4682_v47 = vld [vmem:[%s5549_s1 + $0x60] ss:$8 sps:$4 sm:$0xff]  }
 0xd44   : > { %4447 = vmatmul.mubr.msk.bf16.vlgmr.msra.gmra.mrb[36].mxu0 %vm1316_vm1, %v2877_v46  ;;  %v4828_v46 = vmov 0  }
 0xd45   : > { %4452 = vmatprep.mubr.msk.bf16.mxu0 %vm4827_vm0, %v4826_v1 }
 0xd5f   : > { %v2870_v49 = vpop.f32.mrb[40].mxu1 }
 0xd60   : > { %v2871_v50 = vadd.f32 %v3906_v48, %v2870_v49  ;;  %v4442_v51 = vpop.f32.mrb[41].mxu1  ;;  %v4685_v49 = vld [vmem:[%s5549_s1 + $0x70] ss:$8 sps:$4 sm:$0xff]  }
 0xd61   : > { %v2873_v52 = vpop.f32.mrb[42].mxu1  ;;  %v4689_v51 = vld [vmem:[%s5550_s11] sm:$0xff]  }
 0xd62   : > { %v2874_v53 = vadd.f32 %v3906_v48, %v2873_v52  ;;  %v4443_v54 = vpop.f32.mrb[43].mxu1  ;;  %v4687_v48 = vld [vmem:[%s5549_s1 + $0x74] ss:$8 sps:$4 sm:$0xff]   ;;  %v4690_v52 = vld [vmem:[%s5550_s11 + $0x48] sm:$0xff]  }
 0xd63   : > { %v4692_v54 = vld [vmem:[%s5550_s11 + $0x50] sm:$0xff]  }
 0xd64   : > { %v2939_v56 = vpack.c.bf16 %v2874_v53, %v2871_v50  ;;  %v4688_v50 = vld [vmem:[%s5550_s11 + $0x40] sm:$0xff]   ;;  %v4691_v53 = vld [vmem:[%s5550_s11 + $0x8] sm:$0xff]  }
 0xd65   : > { %4122 = vmatprep.subr.bf16.mxu1 %v4688_v50 }
 0xd66   : > { %4451 = vmatpush3.bf16.msra.mxu0 %v2939_v56  ;;  %4123 = vmatpush3.bf16.msra.mxu1 %v4689_v51  ;;  %v4693_v56 = vld [vmem:[%s5550_s11 + $0x10] sm:$0xff]  }
 0xd67   : > { %4456 = vmatprep.subr.bf16.mxu0 %v4826_v1  ;;  %4124 = vmatprep.subr.bf16.mxu1 %v4690_v52 }
 0xd6a   : > { %4125 = vmatpush3.bf16.msra.mxu1 %v4691_v53 }
 0xd6b   : > { %4126 = vmatprep.subr.bf16.mxu1 %v4692_v54  ;;  %v3971_v54 = vld [vmem:[%s4978_s6] ss:$0 sm:$0xff] }
 0xd6e   : > { %4127 = vmatpush3.bf16.msra.mxu1 %v4693_v56 }
 0xdf5   : > { %v3121_v57 = vpop.f32.mrb[44].mxu1 }
 0xdf6   : > { %v4478_v58 = vpop.f32.mrb[45].mxu1 }
 0xdf7   : > { %v3124_v59 = vpop.f32.mrb[46].mxu1  ;;  %v4695_v58 = vld [vmem:[%s5550_s11 + $0x18] sm:$0xff]  }
 0xdf8   : > { %v4479_v60 = vpop.f32.mrb[47].mxu1  ;;  %v4696_v59 = vld [vmem:[%s5550_s11 + $0x60] sm:$0xff]  }
 0xdf9   : > { %v4697_v60 = vld [vmem:[%s5550_s11 + $0x20] sm:$0xff]  }
 0xe17   : > { %v2919_v61 = vpop.f32.mrb[36].mxu0 }
 0xe18   : > { %v2925_v62 = vmul.f32 0.125, %v2919_v61  ;;  %v4448_v63 = vpop.f32.mrb[37].mxu0  ;;  %v4698_v61 = vld [vmem:[%s5550_s11 + $0x68] sm:$0xff]  }
 0xe19   : > { %v2922_v0 = vpop.f32.mrb[38].mxu0 }
 0xe1a   : > { %v4449_v2 = vpop.f32.mrb[39].mxu0  ;;  %v2926_v3 = vadd.f32 %v5313_v36, %v2925_v62  ;;  %v4699_v62 = vld [vmem:[%s5550_s11 + $0x28] sm:$0xff]  }
 0xe1c   : > { %v2927_v4 = vsel %vm2470_vm6, %v2926_v3, -inf }
 0xe1d   : > { %2928 = vmax.xlane.f32.xlu0 %v2927_v4 }
 0xeaa   : > { %v2929_v5 = vpop.xlane.xlu0 %2928 }
 0xeab   : > { %v2930_v6 = vsub.f32 %v2926_v3, %v2929_v5 }
 0xead   : > { %v2931_v7 = vmul.f32 1.442695, %v2930_v6 }
 0xeaf   : > { %4720 = vpow2.f32 %v2931_v7 }
 0xeb9   : > { %v4721_v8 = vpop.eup %4720 }
 0xeba   : > { %v2933_v11 = vsel %vm2470_vm6, %v4721_v8, 0.0 }
 0xebb   : > { %2934 = vadd.xlane.f32.xlu1 %v2933_v11 }
 0xf48   : > { %v2935_v12 = vpop.xlane.xlu1 %2934 }
 0xf49   : > { %4722 = vrcp.f32 %v2935_v12 }
 0xf53   : > { %v4723_v13 = vpop.eup %4722 }
 0xf54   : > { %v2937_v14 = vmul.f32 %v4723_v13, %v4721_v8  ;;  %v3937_v13 = vld [vmem:[%s5552_s3] ss:$0 sm:$0xff]  ;;  %s956_s3 = sand.u32 1, %s4786_s16  }
 0xf55   : > { %s3536_s12 = scalar_lea.sflag [#allocation3], %s956_s3 }
 0xf56   : > { %v2938_v36 = vpack.c.bf16 %v2937_v14, %v2937_v14 }
 0xf58   : > { %4453 = vmatmul.mubr.msk.bf16.vlgmr.msra.gmra.mrb[40].mxu0 %vm2470_vm6, %v2938_v36 }
 0xf59   : > { %4457 = vmatpush3.bf16.msra.mxu0 %v4660_v15  ;;  %4464 = vmatprep.mubr.msk.bf16.mxu0 %vm4827_vm0, %v4826_v1 }
 0xf5a   : > { %4458 = vmatprep.subr.bf16.mxu0 %v4826_v1 }
 0xf5d   : > { %4459 = vmatpush3.bf16.msra.mxu0 %v4661_v17  ;;  %v4700_v17 = vld [vmem:[%s5550_s11 + $0x70] sm:$0xff]  }
 0xf5e   : > { %4460 = vmatprep.subr.bf16.mxu0 %v4826_v1 }
 0xf61   : > { %4461 = vmatpush3.bf16.msra.mxu0 %v4662_v19  ;;  %v4701_v19 = vld [vmem:[%s5550_s11 + $0x30] sm:$0xff]  }
 0xf62   : > { %4462 = vmatprep.subr.bf16.mxu0 %v4826_v1 }
 0xf65   : > { %4463 = vmatpush3.bf16.msra.mxu0 %v4663_v20  ;;  %v4702_v20 = vld [vmem:[%s5550_s11 + $0x78] sm:$0xff]  }
 0xf66   : > { %3279 = vmatprep.subr.bf16.mxu0 %v4666_v34 }
0x102b   : > { %v2977_v43 = vpop.f32.mrb[40].mxu0 }
0x102c   : > { %v2983_v10 = vpack.c.bf16 %v2977_v43, %v2977_v43  ;;  %v4454_v21 = vpop.f32.mrb[41].mxu0  ;;  %v4703_v43 = vld [vmem:[%s5550_s11 + $0x38] sm:$0xff]  }
0x102d   : > { %v2980_v22 = vpop.f32.mrb[42].mxu0 }
0x102e   : > { %v4455_v23 = vpop.f32.mrb[43].mxu0  ;;  %4465 = vmatmul.mubr.msk.bf16.vlgmr.msra.gmra.mrb[44].mxu0 %vm1316_vm1, %v2983_v10  ;;  %v3189_v10 = vlaneseq }
0x102f   : > { %3280 = vmatpush1.bf16.msra.mxu0 %v4664_v18  ;;  %3311 = vmatprep.mubr.bf16.mxu0 %v4828_v46  ;;  %v3187_v23 = vld [vmem:[%s5553_s5] sm:$0x3]  ;;  %s3672_s5 = sshll.u32 %s956_s3, 3 }
0x1030   : > { %v3190_v21 = vshrl.u32 %v3189_v10, 7  ;;  %s958_s8 = scalar_lea.vmem [#allocation2], %s3672_s5 }
0x1031   : > { %s3549_s9 = sshll.u32 %s958_s8, 4  ;;  %s5461_s9 = int_to_ptr.vmem [resolvable:$true] %s3549_s9 }
0x1032   : > { %v3191_v22 = vsub.s32 0, %v3190_v21  ;;  %s4732_s13 = scalar_lea.vmem %s5461_s9, 128 }
0x1033   : > { %p4733_p11 = scmp.ne.s32.totalorder %s5461_s9, %s4732_s13 }
0x1035   : > { %p4734_p12 = pnand %p4733_p11, %p5028_p5 }
0x1037   : > { %p4735_p13 = pneg %p4734_p12 }
0x1101   : > { %v3054_v24 = vpop.f32.mrb[44].mxu0 }
0x1102   : > { %v3122_v26 = vadd.f32 %v3121_v57, %v3054_v24  ;;  %v4466_v27 = vpop.f32.mrb[45].mxu0  ;;  %v4694_v57 = vld [vmem:[%s5550_s11 + $0x58] sm:$0xff]   ;;  %v3195_v24 = vsub.s32 1, %v3190_v21 }
0x1103   : > { %v3057_v28 = vpop.f32.mrb[46].mxu0  ;;  %4128 = vmatprep.subr.bf16.mxu1 %v4694_v57 }
0x1104   : > { %v3134_v29 = vadd.f32 %v3935_v25, %v3122_v26  ;;  %v4467_v1 = vpop.f32.mrb[47].mxu0  ;;  %4129 = vmatpush3.bf16.msra.mxu1 %v4695_v58  ;;  %v3192_v25 = vrot.slane %v3187_v23, %v3191_v22  ;;  %v3196_v26 = vrot.slane %v3187_v23, %v3195_v24  ;;  %v3972_v58 = vld [vmem:[%s5554_s4] ss:$0 sm:$0xff]  ;;  %s4829_s4 = smov [#allocation2]  }
0x1105   : > { %4130 = vmatprep.subr.bf16.mxu1 %v4696_v59 }
0x1106   : > { %v3135_v55 = vadd.f32 %v3134_v29, %v5276_v9  ;;  %v4669_v9 = vld [vmem:[%s5549_s1 + $0x14] ss:$8 sps:$4 sm:$0xff]   ;;  %s5551_s1 = sld [smem:[#allocation19_spill]] }
0x1107   : > { %3281 = vmatprep.subr.bf16.mxu0 %v4669_v9  ;;  %v3954_v9 = vld [vmem:[%s4973_s20] ss:$0 sm:$0xff] }
0x1108   : > { %3138 = vadd.xlane.f32.xlu0 %v3135_v55  ;;  %3282 = vmatpush1.bf16.msra.mxu0 %v4667_v35 }
0x1109   : > { %3283 = vmatprep.subr.bf16.mxu0 %v4672_v37  ;;  %4131 = vmatpush3.bf16.msra.mxu1 %v4697_v60 }
0x110a   : > { %4132 = vmatprep.subr.bf16.mxu1 %v4698_v61 }
0x110c   : > { %3284 = vmatpush1.bf16.msra.mxu0 %v4670_v38  ;;  %v3936_v8 = vld [vmem:[%s5551_s1] ss:$0 sm:$0xff]  ;;  %s3974_s1 = sshll.u32 %s5011_s0, 7  ;;  %s4736_s0 = sshll.u32 %s4829_s4, 4  ;;  %s4737_s0 = int_to_ptr.vmem [resolvable:$false] %s4736_s0 }
0x110d   : > { %3285 = vmatprep.subr.bf16.mxu0 %v4675_v39  ;;  %4133 = vmatpush3.bf16.msra.mxu1 %v4699_v62  ;;  %s5459_s11 = scalar_lea.hbm %s4988_s17, %s3974_s1  ;;  %s4738_s5 = scalar_lea.vmem %s4737_s0, 256 }
0x110e   : > { %4134 = vmatprep.subr.bf16.mxu1 %v4700_v17  ;;  %p4739_p0 = scmp.lt.s32.totalorder %s5461_s9, %s4737_s0  ;;  %p4740_p1 = scmp.lt.s32.totalorder %s4738_s5, %s4732_s13 }
0x1110   : > { %3286 = vmatpush1.bf16.msra.mxu0 %v4673_v40  ;;  %p4741_p2 = por %p4740_p1, %p4739_p0 }
0x1111   : > { %3287 = vmatprep.subr.bf16.mxu0 %v4678_v16  ;;  %4135 = vmatpush3.bf16.msra.mxu1 %v4701_v19 }
0x1112   : > { %4136 = vmatprep.subr.bf16.mxu1 %v4702_v20  ;;  %p4742_p3 = pnand %p4741_p2, %p4735_p13 }
0x1114   : > { %3288 = vmatpush1.bf16.msra.mxu0 %v4676_v41 }
0x1115   : > { %3289 = vmatprep.subr.bf16.mxu0 %v4681_v42  ;;  %4137 = vmatpush3.bf16.msra.mxu1 %v4703_v43 }
0x1118   : > { %3290 = vmatpush1.bf16.msra.mxu0 %v4679_v44 }
0x1119   : > { %3291 = vmatprep.subr.bf16.mxu0 %v4684_v45 }
0x111c   : > { %3292 = vmatpush1.bf16.msra.mxu0 %v4682_v47 }
0x111d   : > { %3293 = vmatprep.subr.bf16.mxu0 %v4687_v48 }
0x1120   : > { %3294 = vmatpush1.bf16.msra.mxu0 %v4685_v49 }
0x1195   : > { %v3139_v30 = vpop.xlane.xlu0 %3138 }
0x1196   : > { %v3140_v31 = vmul.f32 0.0078125, %v3139_v30 }
0x1198   : > { %v5413_v32 = vsub.f32 %v3135_v55, %v3140_v31 }
0x119a   : > { %v3142_v33 = vmul.f32 %v5413_v32, %v5413_v32  ;;  %v3159_v11 = vmul.f32 %v3936_v8, %v5413_v32 }
0x119c   : > { %3143 = vadd.xlane.f32.xlu1 %v3142_v33 }
0x1229   : > { %v3144_v63 = vpop.xlane.xlu1 %3143 }
0x122a   : > { %v3145_v0 = vmul.f32 0.007874016, %v3144_v63 }
0x122c   : > { %4724 = vrsqrt.f32 %v3145_v0  ;;  %vm3148_vm7 = vcmp.eq.f32.partialorder %v3145_v0, inf  ;;  %v3151_v4 = vand.u32 2147483648, %v3145_v0  ;;  %vm3150_vm8 = vcmp.eq.f32.partialorder %v3145_v0, 0.0 }
0x1236   : > { %v4725_v2 = vpop.eup %4724 }
0x1237   : > { %v3147_v3 = vmul.f32 %v4725_v2, %v3145_v0 }
0x1239   : > { %v3149_v5 = vsel %vm3148_vm7, %v3145_v0, %v3147_v3 }
0x123a   : > { %v3152_v6 = vsel %vm3150_vm8, %v3151_v4, %v3149_v5 }
0x123b   : > { %v3160_v7 = vadd.f32 1e-06, %v3152_v6 }
0x123d   : > { %4726 = vrcp.f32 %v3160_v7 }
0x1247   : > { %v4727_v12 = vpop.eup %4726 }
0x1248   : > { %v3162_v14 = vmul.f32 %v4727_v12, %v3159_v11 }
0x124a   : > { %v3169_v15 = vadd.f32 %v3937_v13, %v3162_v14 }
0x124c   : > { %v3170_v36 = vpack.c.bf16 %v3169_v15, %v3169_v15 }
0x124e   : > { %3312 = vmatmul.mubr.bf16.vlgmr.msra.gmra.mrb[48].mxu0 %v3170_v36 }
0x1321   : > { %v3313_v27 = vpop.f32.mrb[48].mxu0 }
0x1322   : > { %v3314_v28 = vadd.f32 %v3313_v27, %v3192_v25  ;;  %v3315_v29 = vpop.f32.mrb[49].mxu0 }
0x1323   : > { %v3316_v1 = vadd.f32 %v3315_v29, %v3196_v26  ;;  %v3317_v55 = vpop.f32.mrb[50].mxu0 }
0x1324   : > { %v3320_v30 = vmax.f32 %v3314_v28, 0.0  ;;  %v3318_v31 = vpop.f32.mrb[51].mxu0 }
0x1325   : > { %v3321_v32 = vmax.f32 %v3316_v1, 0.0 }
0x1326   : > { %v3322_v34 = vpack.c.bf16 %v3320_v30, %v3320_v30 }
0x1327   : > { %v3323_v33 = vpack.c.bf16 %v3321_v32, %v3321_v32 }
0x1329   : > { %3491 = vmatprep.mubr.bf16.mxu1 %v3323_v33 }
0x132a   : > { %3492 = vmatmul.mubr.bf16.vlgmr.msra.gmra.mrb[48].mxu1 %v3322_v34 }
0x13fd   : > { %v4138_v18 = vpop.f32.mrb[48].mxu1 }
0x13fe   : > { %v4139_v35 = vpop.f32.mrb[49].mxu1 }
0x13ff   : > { %v4140_v37 = vadd.f32 %v4139_v35, %v4138_v18  ;;  %v4141_v38 = vpop.f32.mrb[50].mxu1 }
0x1400   : > { %v4142_v39 = vpop.f32.mrb[51].mxu1 }
0x1401   : > { %v3494_v40 = vadd.f32 %v4140_v37, %v3954_v9 }
0x1403   : > { %v3499_v16 = vadd.f32 %v3494_v40, %v3169_v15 }
0x1405   : > { %3502 = vadd.xlane.f32.xlu0 %v3499_v16 }
0x1492   : > { %v3503_v41 = vpop.xlane.xlu0 %3502 }
0x1493   : > { %v3504_v42 = vmul.f32 0.0078125, %v3503_v41 }
0x1495   : > { %v3505_v44 = vsub.f32 %v3499_v16, %v3504_v42 }
0x1497   : > { %v3506_v45 = vmul.f32 %v3505_v44, %v3505_v44  ;;  %v3523_v56 = vmul.f32 %v3971_v54, %v3505_v44 }
0x1499   : > { %3507 = vadd.xlane.f32.xlu1 %v3506_v45 }
0x1526   : > { %v3508_v46 = vpop.xlane.xlu1 %3507 }
0x1527   : > { %v3509_v47 = vmul.f32 0.007874016, %v3508_v46 }
0x1529   : > { %4728 = vrsqrt.f32 %v3509_v47  ;;  %vm3512_vm9 = vcmp.eq.f32.partialorder %v3509_v47, inf  ;;  %v3515_v50 = vand.u32 2147483648, %v3509_v47  ;;  %vm3514_vm10 = vcmp.eq.f32.partialorder %v3509_v47, 0.0 }
0x1533   : > { %v4729_v48 = vpop.eup %4728 }
0x1534   : > { %v3511_v49 = vmul.f32 %v4729_v48, %v3509_v47 }
0x1536   : > { %v3513_v51 = vsel %vm3512_vm9, %v3509_v47, %v3511_v49 }
0x1537   : > { %v3516_v52 = vsel %vm3514_vm10, %v3515_v50, %v3513_v51 }
0x1538   : > { %v3524_v53 = vadd.f32 1e-06, %v3516_v52 }
0x153a   : > { %4730 = vrcp.f32 %v3524_v53 }
0x1544   : > { %v4731_v57 = vpop.eup %4730 }
0x1545   : > { %v3526_v59 = vmul.f32 %v4731_v57, %v3523_v56 }
0x1547   : > { %v3533_v60 = vadd.f32 %v3972_v58, %v3526_v59 }
0x1549   : > { %3534 = vst [vmem:[%s958_s8] sm:$0xff] %v3533_v60 }
0x154a   : > { %4745 = shalt.err (!%p4742_p3)
}
0x154b   : > { %s4746_s8 = scalar_lea.hbm %s5459_s11, 128  ;;  %s4750_s4 = scalar_lea.hbm %s4988_s17, 256 }
0x154c   : > { %p4747_p4 = scmp.ne.s32.totalorder %s5459_s11, %s4746_s8  ;;  %p4751_p9 = scmp.lt.u32.totalorder %s5459_s11, %s4988_s17 }
0x154d   : > { %p4752_p10 = scmp.lt.u32.totalorder %s4750_s4, %s4746_s8  ;;  %p4754_p12 = scmp.lt.u32.totalorder %s4746_s8, %s5459_s11 }
0x154e   : > { %p4748_p7 = pnand %p4747_p4, %p5028_p5 }
0x154f   : > { %p4753_p11 = por %p4752_p10, %p4751_p9 }
0x1550   : > { %p4749_p8 = pneg %p4748_p7 }
0x1551   : > { %p4755_p0 = por %p4754_p12, %p4753_p11 }
0x1553   : > { %p4756_p13 = pnand %p4755_p0, %p4749_p8 }
0x1555   : > { %4759 = shalt.err (!%p4756_p13)
}
0x1556   : > { %4480 = dma.vmem_to_hbm [thread:$0]  (%p5028_p5), %s5461_s9, 128, %s5459_s11, %s3536_s12  }
0x1557 PF: > { %p4486_p1 = scmp.ge.s32.totalorder %s4794_s22, 2  ;;  %s3561_s13 = sand.u32 1, %s4782_s15  }
0x1558   : > { %s3562_s3 = scalar_lea.sflag [#allocation3], %s3561_s13 }
0x1559   : > { %p4483_p2 = pnand %p4486_p1, %p5032_p6 }
0x155b   : > { %4777 = dma.done.wait (!%p4483_p2), %s3562_s3, 128  }
0x155c   : > { %4779 = vsyncadd (!%p4483_p2), %s3562_s3, 4294967168  ;;  %p71_p3 = scmp.ge.s32.totalorder %s5015_s26, 4   ;;  %s5555_s15 = smov %s4786_s16 }
0x155d   : > { %s5556_s16 = smov %s4790_s18  ;;  %s5557_s18 = smov %s5026_s2 }
0x155e   : > { %s5558_s22 = smov %s5015_s26  ;;  %73 = sbr.rel (!%p71_p3) target bundleno = 61 (0x3d), region = 228 }
0x1565   :  { %3567 = vsyncpa [#allocation3], 1 }
0x1566   :  { %3569 = vsyncpa [#allocation3 + $0x1], 1 }

</bundles_post_ra>
